<compile_context>
chip_gen: v7x
topology: tpu7x:2x2x1
jax: 0.10.0
libtpu: 0.0.40
codegen_flags: <defaults>
</compile_context>

<pallas_src>
import functools

import jax
import jax.numpy as jnp
from jax import lax
from jax.experimental import pallas as pl
from jax.experimental.pallas import tpu as pltpu

BN_EPS = 1e-5
EXPANSION = 4                       # Bottleneck expansion

TM, TN, TK = 512, 256, 512          # matmul tile caps (clamped per call)
VMEM_LIMIT = 48 * 1024 * 1024       # < 64 MiB physical VMEM on v7x
NEG_SENTINEL = -1e30                # representable in bf16 (f32 exponent range)


def _round_up(x, m):
    return (x + m - 1) // m * m


def _cdiv(a, b):
    return (a + b - 1) // b


# --------------------------------------------------------------------------
# Pallas tiled matmul kernels (conv hot path), bf16 operands, f32 accumulation
# --------------------------------------------------------------------------
def _mm_plain_kernel(a_ref, b_ref, o_ref, acc_ref):
    @pl.when(pl.program_id(2) == 0)
    def _():
        acc_ref[...] = jnp.zeros_like(acc_ref)

    acc_ref[...] += jnp.dot(a_ref[...], b_ref[...],
                            preferred_element_type=jnp.float32)

    @pl.when(pl.program_id(2) == pl.num_programs(2) - 1)
    def _():
        o_ref[...] = acc_ref[...].astype(o_ref.dtype)


def _mm_affine_kernel(s_ref, t_ref, a_ref, b_ref, o_ref, acc_ref, *, relu_in):
    # BatchNorm(+ReLU) of the producing conv fused into the consuming GEMM:
    # the A tile is normalized on load (per K column), hidden under MXU work.
    @pl.when(pl.program_id(2) == 0)
    def _():
        acc_ref[...] = jnp.zeros_like(acc_ref)

    a = a_ref[...].astype(jnp.float32) * s_ref[...] + t_ref[...]
    if relu_in:
        a = jnp.maximum(a, 0.0)
    acc_ref[...] += jnp.dot(a.astype(jnp.bfloat16), b_ref[...],
                            preferred_element_type=jnp.float32)

    @pl.when(pl.program_id(2) == pl.num_programs(2) - 1)
    def _():
        o_ref[...] = acc_ref[...].astype(o_ref.dtype)


def _pick_tk(kp):
    for cand in (512, 384, 256, 128):
        if cand <= TK and kp % cand == 0:
            return cand
    return 128


def matmul_bn(a, w_mat, scale=None, shift=None, relu_in=False):
    """(M, K) bf16 @ (K, N) bf16 -> (M, N) bf16 with f32 accumulation.

    Optionally applies per-K-column affine (+ReLU) to A on load.  K and N are
    multiples of 128 by construction (build-time channel padding)."""
    M, K = a.shape
    Kp, Np = w_mat.shape
    assert K == Kp, (K, Kp)
    assert Kp % 128 == 0 and Np % 128 == 0

    tm = M if M < TM else TM
    if Np <= TN:
        tn = Np
    elif Np % TN == 0:
        tn = TN
    else:
        tn = 128
    tk = _pick_tk(Kp)
    grid = (_cdiv(M, tm), Np // tn, Kp // tk)

    if scale is not None:
        kernel = functools.partial(_mm_affine_kernel, relu_in=relu_in)
        in_specs = [
            pl.BlockSpec((1, tk), lambda i, j, k: (0, k)),
            pl.BlockSpec((1, tk), lambda i, j, k: (0, k)),
            pl.BlockSpec((tm, tk), lambda i, j, k: (i, k)),
            pl.BlockSpec((tk, tn), lambda i, j, k: (k, j)),
        ]
        args = (scale, shift, a, w_mat)
    else:
        kernel = _mm_plain_kernel
        in_specs = [
            pl.BlockSpec((tm, tk), lambda i, j, k: (i, k)),
            pl.BlockSpec((tk, tn), lambda i, j, k: (k, j)),
        ]
        args = (a, w_mat)

    return pl.pallas_call(
        kernel,
        out_shape=jax.ShapeDtypeStruct((M, Np), jnp.bfloat16),
        grid=grid,
        in_specs=in_specs,
        out_specs=pl.BlockSpec((tm, tn), lambda i, j, k: (i, j)),
        scratch_shapes=[pltpu.VMEM((tm, tn), jnp.float32)],
        compiler_params=pltpu.CompilerParams(
            dimension_semantics=("parallel", "parallel", "arbitrary"),
            vmem_limit_bytes=VMEM_LIMIT),
    )(*args)


# --------------------------------------------------------------------------
# Pallas BatchNorm statistics (gridded two-pass; gamma=1, beta=0, batch stats)
# --------------------------------------------------------------------------
def _bn_stats_kernel(x_ref, o_ref, *, total_rows, block_rows):
    r = pl.program_id(0)

    @pl.when(r == 0)
    def _():
        o_ref[...] = jnp.zeros_like(o_ref)

    x = x_ref[...].astype(jnp.float32)
    # mask rows of the (possibly partial) edge block
    row_ids = lax.broadcasted_iota(jnp.int32, x.shape, 0) + r * block_rows
    x = jnp.where(row_ids < total_rows, x, 0.0)
    o_ref[0:1, :] += jnp.sum(x, axis=0, keepdims=True)
    o_ref[1:2, :] += jnp.sum(x * x, axis=0, keepdims=True)

    @pl.when(r == pl.num_programs(0) - 1)
    def _():
        inv_n = 1.0 / total_rows
        mean = o_ref[0:1, :] * inv_n
        var = o_ref[1:2, :] * inv_n - mean * mean     # biased variance
        s = lax.rsqrt(var + BN_EPS)                   # gamma = 1
        o_ref[0:1, :] = s
        o_ref[1:2, :] = -mean * s                     # beta = 0


def bn_stats(y_nhwc, block_rows=512):
    """Per-channel (scale, shift) so that bn(y) = y * scale + shift."""
    N, H, W, C = y_nhwc.shape
    y2 = y_nhwc.reshape(N * H * W, C)
    M = y2.shape[0]
    tr = M if M < block_rows else block_rows
    st = pl.pallas_call(
        functools.partial(_bn_stats_kernel, total_rows=M, block_rows=tr),
        out_shape=jax.ShapeDtypeStruct((2, C), jnp.float32),
        grid=(_cdiv(M, tr),),
        in_specs=[pl.BlockSpec((tr, C), lambda r: (r, 0))],
        out_specs=pl.BlockSpec((2, C), lambda r: (0, 0)),
        compiler_params=pltpu.CompilerParams(
            dimension_semantics=("arbitrary",),
            vmem_limit_bytes=VMEM_LIMIT),
    )(y2)
    return st[0:1], st[1:2]


# --------------------------------------------------------------------------
# Fused bottleneck tail: relu(bn3(y) + bn_ds(residual))
# --------------------------------------------------------------------------
def _tail_kernel(sy_ref, by_ref, sr_ref, br_ref, y_ref, r_ref, o_ref):
    y = y_ref[...].astype(jnp.float32) * sy_ref[...] + by_ref[...]
    r = r_ref[...].astype(jnp.float32) * sr_ref[...] + br_ref[...]
    o_ref[...] = jnp.maximum(y + r, 0.0).astype(o_ref.dtype)


def bn_add_relu(y_nhwc, sy, by, r_nhwc, sr, br, block_rows=512):
    N, H, W, C = y_nhwc.shape
    y2 = y_nhwc.reshape(N * H * W, C)
    r2 = r_nhwc.reshape(N * H * W, C)
    M = y2.shape[0]
    tr = M if M < block_rows else block_rows
    vec = pl.BlockSpec((1, C), lambda i: (0, 0))
    mat = pl.BlockSpec((tr, C), lambda i: (i, 0))
    out = pl.pallas_call(
        _tail_kernel,
        out_shape=jax.ShapeDtypeStruct((M, C), y2.dtype),
        grid=(_cdiv(M, tr),),
        in_specs=[vec, vec, vec, vec, mat, mat],
        out_specs=mat,
        compiler_params=pltpu.CompilerParams(
            dimension_semantics=("parallel",),
            vmem_limit_bytes=VMEM_LIMIT),
    )(sy, by, sr, br, y2, r2)
    return out.reshape(N, H, W, C)


# --------------------------------------------------------------------------
# MaxPool 3x3 / stride 2 / pad 1 / ceil_mode, with fused bn1 + ReLU epilogue
# --------------------------------------------------------------------------
def _pool_out_dim(D, k=3, s=2, p=1):
    o = -(-(D + 2 * p - k) // s) + 1
    if (o - 1) * s >= D + p:          # PyTorch ceil_mode rule
        o -= 1
    return o


def _maxpool_kernel(s_ref, b_ref, e0_ref, o1_ref, e2_ref, o_ref):
    # Three column-parity planes -> every shift below is a unit-stride slice on a
    # non-layout dim (no strided VMEM access, no sublane relayout).
    w = jnp.maximum(jnp.maximum(e0_ref[0].astype(jnp.float32),
                                o1_ref[0].astype(jnp.float32)),
                    e2_ref[0].astype(jnp.float32))          # (2*Ho+2, Wo, C)
    hp, wo, c = w.shape
    ho = hp // 2 - 1
    w = w.reshape(ho + 1, 2, wo, c)
    m = jnp.maximum(jnp.maximum(w[:ho, 0], w[:ho, 1]), w[1:ho + 1, 0])
    y = m * s_ref[...] + b_ref[...]                         # fused bn1
    o_ref[0] = jnp.maximum(y, 0.0).astype(o_ref.dtype)      # fused ReLU


def maxpool_bn_relu(y_nhwc, scale, shift):
    """maxpool(relu(bn(y))) computed as relu(bn(maxpool(y))) - exact, since a
    per-channel positive-scale affine and ReLU commute with max."""
    N, H, W, C = y_nhwc.shape
    Ho, Wo = _pool_out_dim(H), _pool_out_dim(W)
    Hp, Wp = 2 * Ho + 2, 2 * Wo + 2
    yp = jnp.pad(y_nhwc, ((0, 0), (1, Hp - H - 1), (1, Wp - W - 1), (0, 0)),
                 constant_values=NEG_SENTINEL)
    e0 = yp[:, :, 0:2 * Wo:2, :]        # window columns 2j
    o1 = yp[:, :, 1:2 * Wo + 1:2, :]    # window columns 2j+1
    e2 = yp[:, :, 2:2 * Wo + 2:2, :]    # window columns 2j+2
    vec = pl.BlockSpec((1, C), lambda n: (0, 0))
    plane = pl.BlockSpec((1, Hp, Wo, C), lambda n: (n, 0, 0, 0))
    return pl.pallas_call(
        _maxpool_kernel,
        out_shape=jax.ShapeDtypeStruct((N, Ho, Wo, C), y_nhwc.dtype),
        grid=(N,),
        in_specs=[vec, vec, plane, plane, plane],
        out_specs=pl.BlockSpec((1, Ho, Wo, C), lambda n: (n, 0, 0, 0)),
        compiler_params=pltpu.CompilerParams(
            dimension_semantics=("parallel",),
            vmem_limit_bytes=VMEM_LIMIT),
    )(scale, shift, e0, o1, e2)


# --------------------------------------------------------------------------
# Convolutions = (optional im2col glue) + Pallas GEMM with fused input BN
# --------------------------------------------------------------------------
def conv1x1(x_nhwc, w_mat, stride=1, scale=None, shift=None, relu_in=False):
    if stride > 1:
        x_nhwc = x_nhwc[:, ::stride, ::stride, :]
    N, H, W, C = x_nhwc.shape
    a = x_nhwc.reshape(N * H * W, C)
    y = matmul_bn(a, w_mat, scale, shift, relu_in)
    return y.reshape(N, H, W, w_mat.shape[1])


def conv_im2col(x_nhwc, w_mat, ksize, stride=1, padding=0, dilation=1,
                scale=None, shift=None, relu_in=False):
    N, H, W, C = x_nhwc.shape
    KH = KW = ksize
    Ho = (H + 2 * padding - dilation * (KH - 1) - 1) // stride + 1
    Wo = (W + 2 * padding - dilation * (KW - 1) - 1) // stride + 1
    # When the input BN(+ReLU) is fused into the GEMM, spatial padding must use a
    # very negative sentinel so relu(pad*scale + shift) == 0 exactly, which matches
    # zero padding of the *normalized* activation.
    fused = scale is not None
    pad_val = NEG_SENTINEL if (fused and relu_in) else 0.0
    xp = jnp.pad(x_nhwc, ((0, 0), (padding, padding), (padding, padding), (0, 0)),
                 constant_values=pad_val)
    cols = []
    for kh in range(KH):
        for kw in range(KW):
            h0, w0 = kh * dilation, kw * dilation
            cols.append(xp[:, h0:h0 + (Ho - 1) * stride + 1:stride,
                              w0:w0 + (Wo - 1) * stride + 1:stride, :])
    patches = jnp.stack(cols, axis=3).reshape(N * Ho * Wo, KH * KW * C)
    patches = patches.astype(jnp.bfloat16)
    Kp = w_mat.shape[0]
    if patches.shape[1] != Kp:          # only the 7x7 stem (K=147 -> 256)
        patches = jnp.pad(patches, ((0, 0), (0, Kp - patches.shape[1])))
    if fused:
        scale = jnp.tile(scale, (1, KH * KW))
        shift = jnp.tile(shift, (1, KH * KW))
        if scale.shape[1] != Kp:
            scale = jnp.pad(scale, ((0, 0), (0, Kp - scale.shape[1])))
            shift = jnp.pad(shift, ((0, 0), (0, Kp - shift.shape[1])))
    y = matmul_bn(patches, w_mat, scale, shift, relu_in)
    return y.reshape(N, Ho, Wo, w_mat.shape[1])


# --------------------------------------------------------------------------
# Bottleneck block (deeplab-style: stride on the 1x1 conv, dilation on the 3x3)
# --------------------------------------------------------------------------
def bottleneck(x, p, stride, dilation):
    y1 = conv1x1(x, p["conv1"], stride=stride)                       # conv1
    s1, b1 = bn_stats(y1)                                            # bn1 stats
    y2 = conv_im2col(y1, p["conv2"], 3, stride=1, padding=dilation,  # conv2
                     dilation=dilation, scale=s1, shift=b1, relu_in=True)
    s2, b2 = bn_stats(y2)                                            # bn2 stats
    y3 = conv1x1(y2, p["conv3"], scale=s2, shift=b2, relu_in=True)   # conv3
    s3, b3 = bn_stats(y3)                                            # bn3 stats
    if "ds_conv" in p:
        yr = conv1x1(x, p["ds_conv"], stride=stride)
        sr, br = bn_stats(yr)
    else:
        yr = x
        C = x.shape[-1]
        sr = jnp.ones((1, C), jnp.float32)
        br = jnp.zeros((1, C), jnp.float32)
    return bn_add_relu(y3, s3, b3, yr, sr, br)                       # relu(bn3+res)


def run_layer(x, layer_params, stride, dilation):
    for i, bp in enumerate(layer_params):
        x = bottleneck(x, bp, stride if i == 0 else 1, dilation)
    # TODO(synk): the PyTorch `block` class is not provided in the reference module;
    # each layer returns (activation, activation) to match the (act_i, out_i) tuple.
    return x, x


# --------------------------------------------------------------------------
# Parameter construction (deterministic; GEMM-ready, channel-padded, bf16)
# --------------------------------------------------------------------------
def _conv_gemm_weight(key, cout, cin, kh, kw, cin_pad=None):
    cin_pad = cin if cin_pad is None else cin_pad
    cout_p = _round_up(cout, 128)
    w = 0.01 * jax.random.normal(key, (cout, cin, kh, kw), jnp.float32)
    w = jnp.transpose(w, (2, 3, 1, 0))                    # (kh, kw, cin, cout)
    w = jnp.pad(w, ((0, 0), (0, 0), (0, cin_pad - cin), (0, cout_p - cout)))
    w = w.reshape(kh * kw * cin_pad, cout_p)
    kp = _round_up(w.shape[0], 128)
    if kp != w.shape[0]:
        w = jnp.pad(w, ((0, kp - w.shape[0]), (0, 0)))
    return w.astype(jnp.bfloat16)


def make_params(key, layers, stop_layer):
    keys = iter(jax.random.split(key, 256))
    params = {"conv1": _conv_gemm_weight(next(keys), 64, 3, 7, 7)}
    inplanes = 64

    def cpad(c):
        return _round_up(c, 128)

    def make_layer(planes, blocks):
        nonlocal inplanes
        blocks_p = []
        for b in range(blocks):
            in_c = inplanes if b == 0 else planes * EXPANSION
            bp = {
                "conv1": _conv_gemm_weight(next(keys), planes, in_c, 1, 1,
                                           cin_pad=cpad(in_c)),
                "conv2": _conv_gemm_weight(next(keys), planes, planes, 3, 3,
                                           cin_pad=cpad(planes)),
                "conv3": _conv_gemm_weight(next(keys), planes * EXPANSION, planes,
                                           1, 1, cin_pad=cpad(planes)),
            }
            if b == 0:
                # downsample exists for the first block of every layer in this module
                bp["ds_conv"] = _conv_gemm_weight(next(keys), planes * EXPANSION,
                                                  in_c, 1, 1, cin_pad=cpad(in_c))
            blocks_p.append(bp)
        inplanes = planes * EXPANSION
        return blocks_p

    params["layer1"] = make_layer(64, layers[0])
    params["layer2"] = make_layer(128, layers[1])
    params["layer3"] = make_layer(256, layers[2])
    if stop_layer != "layer4":
        params["layer4"] = make_layer(512, layers[3])
    return params


# --------------------------------------------------------------------------
# Forward pass (mirrors ResNet.forward)
# --------------------------------------------------------------------------
def resnet_forward(x_nchw, params, stop_layer="layer4"):
    to_nhwc = lambda t: jnp.transpose(t, (0, 2, 3, 1))
    to_nchw = lambda t: jnp.transpose(t, (0, 3, 1, 2)).astype(jnp.float32)

    x = to_nhwc(x_nchw).astype(jnp.float32)
    y0 = conv_im2col(x, params["conv1"], 7, stride=2, padding=3)   # conv1 (raw)
    s0, b0 = bn_stats(y0)                                          # bn1 batch stats
    x = maxpool_bn_relu(y0, s0, b0)                                # maxpool∘relu∘bn1

    act1, out1 = run_layer(x, params["layer1"], stride=1, dilation=1)
    act2, out2 = run_layer(act1, params["layer2"], stride=2, dilation=1)
    act3, out3 = run_layer(act2, params["layer3"], stride=1, dilation=2)

    out_list = [to_nchw(out1), to_nchw(out2), to_nchw(out3)]
    if stop_layer != "layer4":
        act4, out4 = run_layer(act3, params["layer4"], stride=1, dilation=4)
        out_list.append(to_nchw(out4))
        return to_nchw(act4), out_list
    return to_nchw(act3), out_list


# --------------------------------------------------------------------------
if __name__ == "__main__":
    key = jax.random.PRNGKey(0)
    kx, kp = jax.random.split(key)

    # small shapes consistent with the module: NCHW with 3 input channels
    x = jax.random.normal(kx, (2, 3, 16, 16), jnp.float32)

    stop_layer = "layer4"          # module configured to stop before layer4
    layers = (1, 1, 1, 1)          # toy depth (ResNet-50 would be (3, 4, 6, 3))
    params = make_params(kp, layers, stop_layer)

    fwd = jax.jit(functools.partial(resnet_forward, stop_layer=stop_layer))
    act, out_list = fwd(x, params)

    jax.block_until_ready(act)
    for o in out_list:
        jax.block_until_ready(o)

    ok = bool(jnp.isfinite(act).all()) and all(
        bool(jnp.isfinite(o).all()) for o in out_list)
    assert ok, "non-finite values in outputs"
    print("KERNEL_OK")
</pallas_src>

<mosaic_0001>
module attributes {stable_mosaic.version = 11 : i64} {
  func.func @_mm_plain_kernel(%arg0: i32, %arg1: i32, %arg2: i32, %arg3: memref<128x256xbf16, #tpu.memory_space<vmem>>, %arg4: memref<256x128xbf16, #tpu.memory_space<vmem>>, %arg5: memref<128x128xbf16, #tpu.memory_space<vmem>>, %arg6: memref<128x128xf32, #tpu.memory_space<vmem>>) attributes {dimension_semantics = [#tpu.dimension_semantics<parallel>, #tpu.dimension_semantics<parallel>, #tpu.dimension_semantics<arbitrary>], iteration_bounds = array<i64: 1, 1, 1>, scalar_prefetch = 0 : i64, scratch_operands = 1 : i64, tpu.core_type = #tpu.core_type<tc>, window_params = [{transform_indices = @transform_0, window_bounds = array<i64: 128, 256>}, {transform_indices = @transform_1, window_bounds = array<i64: 256, 128>}, {transform_indices = @transform_2, window_bounds = array<i64: 128, 128>}]} {
    %c0_i32 = arith.constant 0 : i32
    %0 = arith.cmpi eq, %arg2, %c0_i32 : i32
    %1 = arith.extui %0 : i1 to i32
    %c0_i32_0 = arith.constant 0 : i32
    %2 = arith.cmpi ne, %1, %c0_i32_0 : i32
    scf.if %2 {
      %cst_10 = arith.constant 0.000000e+00 : f32
      %12 = vector.broadcast %cst_10 : f32 to vector<128x128xf32>
      %c0_11 = arith.constant 0 : index
      %c0_12 = arith.constant 0 : index
      %13 = vector.load %arg6[%c0_11, %c0_12] : memref<128x128xf32, #tpu.memory_space<vmem>>, vector<128x128xf32>
      tpu.vector_store %arg6[%c0_11, %c0_12], %12 {strides = array<i32>} : memref<128x128xf32, #tpu.memory_space<vmem>>, vector<128x128xf32>,
    } else {
    }
    %c0 = arith.constant 0 : index
    %c0_1 = arith.constant 0 : index
    %3 = vector.load %arg6[%c0, %c0_1] : memref<128x128xf32, #tpu.memory_space<vmem>>, vector<128x128xf32>
    %c0_2 = arith.constant 0 : index
    %c0_3 = arith.constant 0 : index
    %4 = vector.load %arg3[%c0_2, %c0_3] : memref<128x256xbf16, #tpu.memory_space<vmem>>, vector<128x256xbf16>
    %c0_4 = arith.constant 0 : index
    %c0_5 = arith.constant 0 : index
    %5 = vector.load %arg4[%c0_4, %c0_5] : memref<256x128xbf16, #tpu.memory_space<vmem>>, vector<256x128xbf16>
    %cst = arith.constant dense<0.000000e+00> : vector<128x128xf32>
    %6 = tpu.matmul %4, %5, %cst {dimension_numbers = #tpu.dot_dimension_numbers<[1], [0], [0], [1], [0, 0, 1, 1], [], []>} : vector<128x256xbf16>, vector<256x128xbf16>, vector<128x128xf32> -> vector<128x128xf32>
    %7 = arith.addf %3, %6 : vector<128x128xf32>
    %c0_6 = arith.constant 0 : index
    %c0_7 = arith.constant 0 : index
    %8 = vector.load %arg6[%c0_6, %c0_7] : memref<128x128xf32, #tpu.memory_space<vmem>>, vector<128x128xf32>
    tpu.vector_store %arg6[%c0_6, %c0_7], %7 {strides = array<i32>} : memref<128x128xf32, #tpu.memory_space<vmem>>, vector<128x128xf32>,
    %c0_i32_8 = arith.constant 0 : i32
    %9 = arith.cmpi eq, %arg2, %c0_i32_8 : i32
    %10 = arith.extui %9 : i1 to i32
    %c0_i32_9 = arith.constant 0 : i32
    %11 = arith.cmpi ne, %10, %c0_i32_9 : i32
    scf.if %11 {
      %c0_10 = arith.constant 0 : index
      %c0_11 = arith.constant 0 : index
      %12 = vector.load %arg6[%c0_10, %c0_11] : memref<128x128xf32, #tpu.memory_space<vmem>>, vector<128x128xf32>
      %13 = arith.truncf %12 : vector<128x128xf32> to vector<128x128xbf16>
      %c0_12 = arith.constant 0 : index
      %c0_13 = arith.constant 0 : index
      %14 = vector.load %arg5[%c0_12, %c0_13] : memref<128x128xbf16, #tpu.memory_space<vmem>>, vector<128x128xbf16>
      tpu.vector_store %arg5[%c0_12, %c0_13], %13 {strides = array<i32>} : memref<128x128xbf16, #tpu.memory_space<vmem>>, vector<128x128xbf16>,
    } else {
    }
    return
  }
  func.func @transform_0(%arg0: i32, %arg1: i32, %arg2: i32) -> (i32, i32) {
    %c0_i32 = arith.constant 0 : i32
    return %arg0, %arg2 : i32, i32
  }
  func.func @transform_1(%arg0: i32, %arg1: i32, %arg2: i32) -> (i32, i32) {
    %c0_i32 = arith.constant 0 : i32
    return %arg2, %arg1 : i32, i32
  }
  func.func @transform_2(%arg0: i32, %arg1: i32, %arg2: i32) -> (i32, i32) {
    %c0_i32 = arith.constant 0 : i32
    return %arg0, %arg1 : i32, i32
  }
}

module attributes {stable_mosaic.version = 11 : i64} {
  func.func @_maxpool_kernel(%arg0: i32, %arg1: memref<1x128xf32, #tpu.memory_space<vmem>>, %arg2: memref<1x128xf32, #tpu.memory_space<vmem>>, %arg3: memref<1x12x5x128xbf16, #tpu.memory_space<vmem>>, %arg4: memref<1x12x5x128xbf16, #tpu.memory_space<vmem>>, %arg5: memref<1x12x5x128xbf16, #tpu.memory_space<vmem>>, %arg6: memref<1x5x5x128xbf16, #tpu.memory_space<vmem>>) attributes {dimension_semantics = [#tpu.dimension_semantics<parallel>], iteration_bounds = array<i64: 2>, scalar_prefetch = 0 : i64, scratch_operands = 0 : i64, tpu.core_type = #tpu.core_type<tc>, window_params = [{pipeline_mode = #tpu.pipeline_mode<synchronous>, transform_indices = @transform_0, window_bounds = array<i64: 1, 128>}, {pipeline_mode = #tpu.pipeline_mode<synchronous>, transform_indices = @transform_1, window_bounds = array<i64: 1, 128>}, {transform_indices = @transform_2, window_bounds = array<i64: 1, 12, 5, 128>}, {transform_indices = @transform_3, window_bounds = array<i64: 1, 12, 5, 128>}, {transform_indices = @transform_4, window_bounds = array<i64: 1, 12, 5, 128>}, {transform_indices = @transform_5, window_bounds = array<i64: 1, 5, 5, 128>}]} {
    %c0 = arith.constant 0 : index
    %c0_0 = arith.constant 0 : index
    %c0_1 = arith.constant 0 : index
    %c0_2 = arith.constant 0 : index
    %0 = vector.load %arg3[%c0, %c0_0, %c0_1, %c0_2] : memref<1x12x5x128xbf16, #tpu.memory_space<vmem>>, vector<1x12x5x128xbf16>
    %1 = vector.shape_cast %0 : vector<1x12x5x128xbf16> to vector<12x5x128xbf16>
    %2 = arith.extf %1 : vector<12x5x128xbf16> to vector<12x5x128xf32>
    %c0_3 = arith.constant 0 : index
    %c0_4 = arith.constant 0 : index
    %c0_5 = arith.constant 0 : index
    %c0_6 = arith.constant 0 : index
    %3 = vector.load %arg4[%c0_3, %c0_4, %c0_5, %c0_6] : memref<1x12x5x128xbf16, #tpu.memory_space<vmem>>, vector<1x12x5x128xbf16>
    %4 = vector.shape_cast %3 : vector<1x12x5x128xbf16> to vector<12x5x128xbf16>
    %5 = arith.extf %4 : vector<12x5x128xbf16> to vector<12x5x128xf32>
    %6 = arith.maximumf %2, %5 : vector<12x5x128xf32>
    %c0_7 = arith.constant 0 : index
    %c0_8 = arith.constant 0 : index
    %c0_9 = arith.constant 0 : index
    %c0_10 = arith.constant 0 : index
    %7 = vector.load %arg5[%c0_7, %c0_8, %c0_9, %c0_10] : memref<1x12x5x128xbf16, #tpu.memory_space<vmem>>, vector<1x12x5x128xbf16>
    %8 = vector.shape_cast %7 : vector<1x12x5x128xbf16> to vector<12x5x128xbf16>
    %9 = arith.extf %8 : vector<12x5x128xbf16> to vector<12x5x128xf32>
    %10 = arith.maximumf %6, %9 : vector<12x5x128xf32>
    %11 = vector.shape_cast %10 : vector<12x5x128xf32> to vector<6x2x5x128xf32>
    %12 = vector.extract_strided_slice %11 {offsets = [0, 0, 0, 0], sizes = [5, 1, 5, 128], strides = [1, 1, 1, 1]} : vector<6x2x5x128xf32> to vector<5x1x5x128xf32>
    %13 = vector.shape_cast %12 : vector<5x1x5x128xf32> to vector<5x5x128xf32>
    %14 = vector.extract_strided_slice %11 {offsets = [0, 1, 0, 0], sizes = [5, 1, 5, 128], strides = [1, 1, 1, 1]} : vector<6x2x5x128xf32> to vector<5x1x5x128xf32>
    %15 = vector.shape_cast %14 : vector<5x1x5x128xf32> to vector<5x5x128xf32>
    %16 = arith.maximumf %13, %15 : vector<5x5x128xf32>
    %17 = vector.extract_strided_slice %11 {offsets = [1, 0, 0, 0], sizes = [5, 1, 5, 128], strides = [1, 1, 1, 1]} : vector<6x2x5x128xf32> to vector<5x1x5x128xf32>
    %18 = vector.shape_cast %17 : vector<5x1x5x128xf32> to vector<5x5x128xf32>
    %19 = arith.maximumf %16, %18 : vector<5x5x128xf32>
    %c0_11 = arith.constant 0 : index
    %c0_12 = arith.constant 0 : index
    %20 = vector.load %arg1[%c0_11, %c0_12] : memref<1x128xf32, #tpu.memory_space<vmem>>, vector<1x128xf32>
    %21 = vector.shape_cast %20 : vector<1x128xf32> to vector<1x1x128xf32>
    %22 = vector.broadcast %21 : vector<1x1x128xf32> to vector<5x5x128xf32>
    %23 = arith.mulf %19, %22 : vector<5x5x128xf32>
    %c0_13 = arith.constant 0 : index
    %c0_14 = arith.constant 0 : index
    %24 = vector.load %arg2[%c0_13, %c0_14] : memref<1x128xf32, #tpu.memory_space<vmem>>, vector<1x128xf32>
    %25 = vector.shape_cast %24 : vector<1x128xf32> to vector<1x1x128xf32>
    %26 = vector.broadcast %25 : vector<1x1x128xf32> to vector<5x5x128xf32>
    %27 = arith.addf %23, %26 : vector<5x5x128xf32>
    %cst = arith.constant 0.000000e+00 : f32
    %28 = vector.broadcast %cst : f32 to vector<5x5x128xf32>
    %29 = arith.maximumf %27, %28 : vector<5x5x128xf32>
    %30 = arith.truncf %29 : vector<5x5x128xf32> to vector<5x5x128xbf16>
    %c0_15 = arith.constant 0 : index
    %c0_16 = arith.constant 0 : index
    %c0_17 = arith.constant 0 : index
    %c0_18 = arith.constant 0 : index
    %31 = vector.load %arg6[%c0_15, %c0_16, %c0_17, %c0_18] : memref<1x5x5x128xbf16, #tpu.memory_space<vmem>>, vector<1x5x5x128xbf16>
    %32 = vector.shape_cast %31 : vector<1x5x5x128xbf16> to vector<5x5x128xbf16>
    %33 = vector.shape_cast %30 : vector<5x5x128xbf16> to vector<1x5x5x128xbf16>
    tpu.vector_store %arg6[%c0_15, %c0_16, %c0_17, %c0_18], %33 {strides = array<i32>} : memref<1x5x5x128xbf16, #tpu.memory_space<vmem>>, vector<1x5x5x128xbf16>,
    return
  }
  func.func @transform_0(%arg0: i32) -> (i32, i32) {
    %c0_i32 = arith.constant 0 : i32
    %c0_i32_0 = arith.constant 0 : i32
    %c0_i32_1 = arith.constant 0 : i32
    return %c0_i32, %c0_i32_0 : i32, i32
  }
  func.func @transform_1(%arg0: i32) -> (i32, i32) {
    %c0_i32 = arith.constant 0 : i32
    %c0_i32_0 = arith.constant 0 : i32
    %c0_i32_1 = arith.constant 0 : i32
    return %c0_i32, %c0_i32_0 : i32, i32
  }
  func.func @transform_2(%arg0: i32) -> (i32, i32, i32, i32) {
    %c0_i32 = arith.constant 0 : i32
    %c0_i32_0 = arith.constant 0 : i32
    %c0_i32_1 = arith.constant 0 : i32
    %c0_i32_2 = arith.constant 0 : i32
    return %arg0, %c0_i32, %c0_i32_0, %c0_i32_1 : i32, i32, i32, i32
  }
  func.func @transform_3(%arg0: i32) -> (i32, i32, i32, i32) {
    %c0_i32 = arith.constant 0 : i32
    %c0_i32_0 = arith.constant 0 : i32
    %c0_i32_1 = arith.constant 0 : i32
    %c0_i32_2 = arith.constant 0 : i32
    return %arg0, %c0_i32, %c0_i32_0, %c0_i32_1 : i32, i32, i32, i32
  }
  func.func @transform_4(%arg0: i32) -> (i32, i32, i32, i32) {
    %c0_i32 = arith.constant 0 : i32
    %c0_i32_0 = arith.constant 0 : i32
    %c0_i32_1 = arith.constant 0 : i32
    %c0_i32_2 = arith.constant 0 : i32
    return %arg0, %c0_i32, %c0_i32_0, %c0_i32_1 : i32, i32, i32, i32
  }
  func.func @transform_5(%arg0: i32) -> (i32, i32, i32, i32) {
    %c0_i32 = arith.constant 0 : i32
    %c0_i32_0 = arith.constant 0 : i32
    %c0_i32_1 = arith.constant 0 : i32
    %c0_i32_2 = arith.constant 0 : i32
    return %arg0, %c0_i32, %c0_i32_0, %c0_i32_1 : i32, i32, i32, i32
  }
}

module attributes {stable_mosaic.version = 11 : i64} {
  func.func @_bn_stats_kernel(%arg0: i32, %arg1: memref<128x128xbf16, #tpu.memory_space<vmem>>, %arg2: memref<2x128xf32, #tpu.memory_space<vmem>>) attributes {dimension_semantics = [#tpu.dimension_semantics<arbitrary>], iteration_bounds = array<i64: 1>, scalar_prefetch = 0 : i64, scratch_operands = 0 : i64, tpu.core_type = #tpu.core_type<tc>, window_params = [{transform_indices = @transform_0, window_bounds = array<i64: 128, 128>}, {pipeline_mode = #tpu.pipeline_mode<synchronous>, transform_indices = @transform_1, window_bounds = array<i64: 2, 128>}]} {
    %c0_i32 = arith.constant 0 : i32
    %0 = arith.cmpi eq, %arg0, %c0_i32 : i32
    %1 = arith.extui %0 : i1 to i32
    %c0_i32_0 = arith.constant 0 : i32
    %2 = arith.cmpi ne, %1, %c0_i32_0 : i32
    scf.if %2 {
      %cst_14 = arith.constant 0.000000e+00 : f32
      %27 = vector.broadcast %cst_14 : f32 to vector<2x128xf32>
      %c0_15 = arith.constant 0 : index
      %c0_16 = arith.constant 0 : index
      %28 = vector.load %arg2[%c0_15, %c0_16] : memref<2x128xf32, #tpu.memory_space<vmem>>, vector<2x128xf32>
      tpu.vector_store %arg2[%c0_15, %c0_16], %27 {strides = array<i32>} : memref<2x128xf32, #tpu.memory_space<vmem>>, vector<2x128xf32>,
    } else {
    }
    %c0 = arith.constant 0 : index
    %c0_1 = arith.constant 0 : index
    %3 = vector.load %arg1[%c0, %c0_1] : memref<128x128xbf16, #tpu.memory_space<vmem>>, vector<128x128xbf16>
    %4 = arith.extf %3 : vector<128x128xbf16> to vector<128x128xf32>
    %5 = tpu.iota {dimensions = array<i32: 0>} : vector<128x128xi32>
    %c128_i32 = arith.constant 128 : i32
    %6 = arith.muli %arg0, %c128_i32 : i32
    %7 = vector.broadcast %6 : i32 to vector<128x128xi32>
    %8 = arith.addi %5, %7 : vector<128x128xi32>
    %c128_i32_2 = arith.constant 128 : i32
    %9 = vector.broadcast %c128_i32_2 : i32 to vector<128x128xi32>
    %10 = arith.cmpi slt, %8, %9 : vector<128x128xi32>
    %cst = arith.constant 0.000000e+00 : f32
    %11 = vector.broadcast %cst : f32 to vector<128x128xf32>
    %12 = arith.select %10, %4, %11 : vector<128x128xi1>, vector<128x128xf32>
    %c0_3 = arith.constant 0 : index
    %c0_4 = arith.constant 0 : index
    %13 = vector.load %arg2[%c0_3, %c0_4] : memref<2x128xf32, #tpu.memory_space<vmem>>, vector<1x128xf32>
    %cst_5 = arith.constant dense<0.000000e+00> : vector<128xf32>
    %14 = vector.multi_reduction <add>, %12, %cst_5 [0] : vector<128x128xf32> to vector<128xf32>
    %15 = vector.shape_cast %14 : vector<128xf32> to vector<1x128xf32>
    %16 = arith.addf %13, %15 : vector<1x128xf32>
    %c0_6 = arith.constant 0 : index
    %c0_7 = arith.constant 0 : index
    %17 = vector.load %arg2[%c0_6, %c0_7] : memref<2x128xf32, #tpu.memory_space<vmem>>, vector<1x128xf32>
    tpu.vector_store %arg2[%c0_6, %c0_7], %16 {strides = array<i32>} : memref<2x128xf32, #tpu.memory_space<vmem>>, vector<1x128xf32>,
    %c1 = arith.constant 1 : index
    %c0_8 = arith.constant 0 : index
    %18 = vector.load %arg2[%c1, %c0_8] : memref<2x128xf32, #tpu.memory_space<vmem>>, vector<1x128xf32>
    %19 = arith.mulf %12, %12 : vector<128x128xf32>
    %cst_9 = arith.constant dense<0.000000e+00> : vector<128xf32>
    %20 = vector.multi_reduction <add>, %19, %cst_9 [0] : vector<128x128xf32> to vector<128xf32>
    %21 = vector.shape_cast %20 : vector<128xf32> to vector<1x128xf32>
    %22 = arith.addf %18, %21 : vector<1x128xf32>
    %c1_10 = arith.constant 1 : index
    %c0_11 = arith.constant 0 : index
    %23 = vector.load %arg2[%c1_10, %c0_11] : memref<2x128xf32, #tpu.memory_space<vmem>>, vector<1x128xf32>
    tpu.vector_store %arg2[%c1_10, %c0_11], %22 {strides = array<i32>} : memref<2x128xf32, #tpu.memory_space<vmem>>, vector<1x128xf32>,
    %c0_i32_12 = arith.constant 0 : i32
    %24 = arith.cmpi eq, %arg0, %c0_i32_12 : i32
    %25 = arith.extui %24 : i1 to i32
    %c0_i32_13 = arith.constant 0 : i32
    %26 = arith.cmpi ne, %25, %c0_i32_13 : i32
    scf.if %26 {
      %c0_14 = arith.constant 0 : index
      %c0_15 = arith.constant 0 : index
      %27 = vector.load %arg2[%c0_14, %c0_15] : memref<2x128xf32, #tpu.memory_space<vmem>>, vector<1x128xf32>
      %cst_16 = arith.constant 7.812500e-03 : f32
      %28 = vector.broadcast %cst_16 : f32 to vector<1x128xf32>
      %29 = arith.mulf %27, %28 : vector<1x128xf32>
      %c1_17 = arith.constant 1 : index
      %c0_18 = arith.constant 0 : index
      %30 = vector.load %arg2[%c1_17, %c0_18] : memref<2x128xf32, #tpu.memory_space<vmem>>, vector<1x128xf32>
      %cst_19 = arith.constant 7.812500e-03 : f32
      %31 = vector.broadcast %cst_19 : f32 to vector<1x128xf32>
      %32 = arith.mulf %30, %31 : vector<1x128xf32>
      %33 = arith.mulf %29, %29 : vector<1x128xf32>
      %34 = arith.subf %32, %33 : vector<1x128xf32>
      %cst_20 = arith.constant 9.99999974E-6 : f32
      %35 = vector.broadcast %cst_20 : f32 to vector<1x128xf32>
      %36 = arith.addf %34, %35 : vector<1x128xf32>
      %37 = math.rsqrt %36 : vector<1x128xf32>
      %c0_21 = arith.constant 0 : index
      %c0_22 = arith.constant 0 : index
      %38 = vector.load %arg2[%c0_21, %c0_22] : memref<2x128xf32, #tpu.memory_space<vmem>>, vector<1x128xf32>
      tpu.vector_store %arg2[%c0_21, %c0_22], %37 {strides = array<i32>} : memref<2x128xf32, #tpu.memory_space<vmem>>, vector<1x128xf32>,
      %cst_23 = arith.constant 0.000000e+00 : f32
      %39 = vector.broadcast %cst_23 : f32 to vector<1x128xf32>
      %40 = arith.subf %39, %29 : vector<1x128xf32>
      %41 = arith.mulf %40, %37 : vector<1x128xf32>
      %c1_24 = arith.constant 1 : index
      %c0_25 = arith.constant 0 : index
      %42 = vector.load %arg2[%c1_24, %c0_25] : memref<2x128xf32, #tpu.memory_space<vmem>>, vector<1x128xf32>
      tpu.vector_store %arg2[%c1_24, %c0_25], %41 {strides = array<i32>} : memref<2x128xf32, #tpu.memory_space<vmem>>, vector<1x128xf32>,
    } else {
    }
    return
  }
  func.func @transform_0(%arg0: i32) -> (i32, i32) {
    %c0_i32 = arith.constant 0 : i32
    %c0_i32_0 = arith.constant 0 : i32
    return %arg0, %c0_i32 : i32, i32
  }
  func.func @transform_1(%arg0: i32) -> (i32, i32) {
    %c0_i32 = arith.constant 0 : i32
    %c0_i32_0 = arith.constant 0 : i32
    %c0_i32_1 = arith.constant 0 : i32
    return %c0_i32, %c0_i32_0 : i32, i32
  }
}

module attributes {stable_mosaic.version = 11 : i64} {
  func.func @_mm_plain_kernel(%arg0: i32, %arg1: i32, %arg2: i32, %arg3: memref<50x128xbf16, #tpu.memory_space<vmem>>, %arg4: memref<128x128xbf16, #tpu.memory_space<vmem>>, %arg5: memref<50x128xbf16, #tpu.memory_space<vmem>>, %arg6: memref<50x128xf32, #tpu.memory_space<vmem>>) attributes {dimension_semantics = [#tpu.dimension_semantics<parallel>, #tpu.dimension_semantics<parallel>, #tpu.dimension_semantics<arbitrary>], iteration_bounds = array<i64: 1, 1, 1>, scalar_prefetch = 0 : i64, scratch_operands = 1 : i64, tpu.core_type = #tpu.core_type<tc>, window_params = [{transform_indices = @transform_0, window_bounds = array<i64: 50, 128>}, {transform_indices = @transform_1, window_bounds = array<i64: 128, 128>}, {transform_indices = @transform_2, window_bounds = array<i64: 50, 128>}]} {
    %c0_i32 = arith.constant 0 : i32
    %0 = arith.cmpi eq, %arg2, %c0_i32 : i32
    %1 = arith.extui %0 : i1 to i32
    %c0_i32_0 = arith.constant 0 : i32
    %2 = arith.cmpi ne, %1, %c0_i32_0 : i32
    scf.if %2 {
      %cst_10 = arith.constant 0.000000e+00 : f32
      %12 = vector.broadcast %cst_10 : f32 to vector<50x128xf32>
      %c0_11 = arith.constant 0 : index
      %c0_12 = arith.constant 0 : index
      %13 = vector.load %arg6[%c0_11, %c0_12] : memref<50x128xf32, #tpu.memory_space<vmem>>, vector<50x128xf32>
      tpu.vector_store %arg6[%c0_11, %c0_12], %12 {strides = array<i32>} : memref<50x128xf32, #tpu.memory_space<vmem>>, vector<50x128xf32>,
    } else {
    }
    %c0 = arith.constant 0 : index
    %c0_1 = arith.constant 0 : index
    %3 = vector.load %arg6[%c0, %c0_1] : memref<50x128xf32, #tpu.memory_space<vmem>>, vector<50x128xf32>
    %c0_2 = arith.constant 0 : index
    %c0_3 = arith.constant 0 : index
    %4 = vector.load %arg3[%c0_2, %c0_3] : memref<50x128xbf16, #tpu.memory_space<vmem>>, vector<50x128xbf16>
    %c0_4 = arith.constant 0 : index
    %c0_5 = arith.constant 0 : index
    %5 = vector.load %arg4[%c0_4, %c0_5] : memref<128x128xbf16, #tpu.memory_space<vmem>>, vector<128x128xbf16>
    %cst = arith.constant dense<0.000000e+00> : vector<50x128xf32>
    %6 = tpu.matmul %4, %5, %cst {dimension_numbers = #tpu.dot_dimension_numbers<[1], [0], [0], [1], [0, 0, 1, 1], [], []>} : vector<50x128xbf16>, vector<128x128xbf16>, vector<50x128xf32> -> vector<50x128xf32>
    %7 = arith.addf %3, %6 : vector<50x128xf32>
    %c0_6 = arith.constant 0 : index
    %c0_7 = arith.constant 0 : index
    %8 = vector.load %arg6[%c0_6, %c0_7] : memref<50x128xf32, #tpu.memory_space<vmem>>, vector<50x128xf32>
    tpu.vector_store %arg6[%c0_6, %c0_7], %7 {strides = array<i32>} : memref<50x128xf32, #tpu.memory_space<vmem>>, vector<50x128xf32>,
    %c0_i32_8 = arith.constant 0 : i32
    %9 = arith.cmpi eq, %arg2, %c0_i32_8 : i32
    %10 = arith.extui %9 : i1 to i32
    %c0_i32_9 = arith.constant 0 : i32
    %11 = arith.cmpi ne, %10, %c0_i32_9 : i32
    scf.if %11 {
      %c0_10 = arith.constant 0 : index
      %c0_11 = arith.constant 0 : index
      %12 = vector.load %arg6[%c0_10, %c0_11] : memref<50x128xf32, #tpu.memory_space<vmem>>, vector<50x128xf32>
      %13 = arith.truncf %12 : vector<50x128xf32> to vector<50x128xbf16>
      %c0_12 = arith.constant 0 : index
      %c0_13 = arith.constant 0 : index
      %14 = vector.load %arg5[%c0_12, %c0_13] : memref<50x128xbf16, #tpu.memory_space<vmem>>, vector<50x128xbf16>
      tpu.vector_store %arg5[%c0_12, %c0_13], %13 {strides = array<i32>} : memref<50x128xbf16, #tpu.memory_space<vmem>>, vector<50x128xbf16>,
    } else {
    }
    return
  }
  func.func @transform_0(%arg0: i32, %arg1: i32, %arg2: i32) -> (i32, i32) {
    %c0_i32 = arith.constant 0 : i32
    return %arg0, %arg2 : i32, i32
  }
  func.func @transform_1(%arg0: i32, %arg1: i32, %arg2: i32) -> (i32, i32) {
    %c0_i32 = arith.constant 0 : i32
    return %arg2, %arg1 : i32, i32
  }
  func.func @transform_2(%arg0: i32, %arg1: i32, %arg2: i32) -> (i32, i32) {
    %c0_i32 = arith.constant 0 : i32
    return %arg0, %arg1 : i32, i32
  }
}

module attributes {stable_mosaic.version = 11 : i64} {
  func.func @_mm_affine_kernel(%arg0: i32, %arg1: i32, %arg2: i32, %arg3: memref<1x128xf32, #tpu.memory_space<vmem>>, %arg4: memref<1x128xf32, #tpu.memory_space<vmem>>, %arg5: memref<50x128xbf16, #tpu.memory_space<vmem>>, %arg6: memref<128x256xbf16, #tpu.memory_space<vmem>>, %arg7: memref<50x256xbf16, #tpu.memory_space<vmem>>, %arg8: memref<50x256xf32, #tpu.memory_space<vmem>>) attributes {dimension_semantics = [#tpu.dimension_semantics<parallel>, #tpu.dimension_semantics<parallel>, #tpu.dimension_semantics<arbitrary>], iteration_bounds = array<i64: 1, 1, 1>, scalar_prefetch = 0 : i64, scratch_operands = 1 : i64, tpu.core_type = #tpu.core_type<tc>, window_params = [{transform_indices = @transform_0, window_bounds = array<i64: 1, 128>}, {transform_indices = @transform_1, window_bounds = array<i64: 1, 128>}, {transform_indices = @transform_2, window_bounds = array<i64: 50, 128>}, {transform_indices = @transform_3, window_bounds = array<i64: 128, 256>}, {transform_indices = @transform_4, window_bounds = array<i64: 50, 256>}]} {
    %c0_i32 = arith.constant 0 : i32
    %0 = arith.cmpi eq, %arg2, %c0_i32 : i32
    %1 = arith.extui %0 : i1 to i32
    %c0_i32_0 = arith.constant 0 : i32
    %2 = arith.cmpi ne, %1, %c0_i32_0 : i32
    scf.if %2 {
      %cst_15 = arith.constant 0.000000e+00 : f32
      %22 = vector.broadcast %cst_15 : f32 to vector<50x256xf32>
      %c0_16 = arith.constant 0 : index
      %c0_17 = arith.constant 0 : index
      %23 = vector.load %arg8[%c0_16, %c0_17] : memref<50x256xf32, #tpu.memory_space<vmem>>, vector<50x256xf32>
      tpu.vector_store %arg8[%c0_16, %c0_17], %22 {strides = array<i32>} : memref<50x256xf32, #tpu.memory_space<vmem>>, vector<50x256xf32>,
    } else {
    }
    %c0 = arith.constant 0 : index
    %c0_1 = arith.constant 0 : index
    %3 = vector.load %arg5[%c0, %c0_1] : memref<50x128xbf16, #tpu.memory_space<vmem>>, vector<50x128xbf16>
    %4 = arith.extf %3 : vector<50x128xbf16> to vector<50x128xf32>
    %c0_2 = arith.constant 0 : index
    %c0_3 = arith.constant 0 : index
    %5 = vector.load %arg3[%c0_2, %c0_3] : memref<1x128xf32, #tpu.memory_space<vmem>>, vector<1x128xf32>
    %6 = vector.broadcast %5 : vector<1x128xf32> to vector<50x128xf32>
    %7 = arith.mulf %4, %6 : vector<50x128xf32>
    %c0_4 = arith.constant 0 : index
    %c0_5 = arith.constant 0 : index
    %8 = vector.load %arg4[%c0_4, %c0_5] : memref<1x128xf32, #tpu.memory_space<vmem>>, vector<1x128xf32>
    %9 = vector.broadcast %8 : vector<1x128xf32> to vector<50x128xf32>
    %10 = arith.addf %7, %9 : vector<50x128xf32>
    %cst = arith.constant 0.000000e+00 : f32
    %11 = vector.broadcast %cst : f32 to vector<50x128xf32>
    %12 = arith.maximumf %10, %11 : vector<50x128xf32>
    %c0_6 = arith.constant 0 : index
    %c0_7 = arith.constant 0 : index
    %13 = vector.load %arg8[%c0_6, %c0_7] : memref<50x256xf32, #tpu.memory_space<vmem>>, vector<50x256xf32>
    %14 = arith.truncf %12 : vector<50x128xf32> to vector<50x128xbf16>
    %c0_8 = arith.constant 0 : index
    %c0_9 = arith.constant 0 : index
    %15 = vector.load %arg6[%c0_8, %c0_9] : memref<128x256xbf16, #tpu.memory_space<vmem>>, vector<128x256xbf16>
    %cst_10 = arith.constant dense<0.000000e+00> : vector<50x256xf32>
    %16 = tpu.matmul %14, %15, %cst_10 {dimension_numbers = #tpu.dot_dimension_numbers<[1], [0], [0], [1], [0, 0, 1, 1], [], []>} : vector<50x128xbf16>, vector<128x256xbf16>, vector<50x256xf32> -> vector<50x256xf32>
    %17 = arith.addf %13, %16 : vector<50x256xf32>
    %c0_11 = arith.constant 0 : index
    %c0_12 = arith.constant 0 : index
    %18 = vector.load %arg8[%c0_11, %c0_12] : memref<50x256xf32, #tpu.memory_space<vmem>>, vector<50x256xf32>
    tpu.vector_store %arg8[%c0_11, %c0_12], %17 {strides = array<i32>} : memref<50x256xf32, #tpu.memory_space<vmem>>, vector<50x256xf32>,
    %c0_i32_13 = arith.constant 0 : i32
    %19 = arith.cmpi eq, %arg2, %c0_i32_13 : i32
    %20 = arith.extui %19 : i1 to i32
    %c0_i32_14 = arith.constant 0 : i32
    %21 = arith.cmpi ne, %20, %c0_i32_14 : i32
    scf.if %21 {
      %c0_15 = arith.constant 0 : index
      %c0_16 = arith.constant 0 : index
      %22 = vector.load %arg8[%c0_15, %c0_16] : memref<50x256xf32, #tpu.memory_space<vmem>>, vector<50x256xf32>
      %23 = arith.truncf %22 : vector<50x256xf32> to vector<50x256xbf16>
      %c0_17 = arith.constant 0 : index
      %c0_18 = arith.constant 0 : index
      %24 = vector.load %arg7[%c0_17, %c0_18] : memref<50x256xbf16, #tpu.memory_space<vmem>>, vector<50x256xbf16>
      tpu.vector_store %arg7[%c0_17, %c0_18], %23 {strides = array<i32>} : memref<50x256xbf16, #tpu.memory_space<vmem>>, vector<50x256xbf16>,
    } else {
    }
    return
  }
  func.func @transform_0(%arg0: i32, %arg1: i32, %arg2: i32) -> (i32, i32) {
    %c0_i32 = arith.constant 0 : i32
    %c0_i32_0 = arith.constant 0 : i32
    return %c0_i32, %arg2 : i32, i32
  }
  func.func @transform_1(%arg0: i32, %arg1: i32, %arg2: i32) -> (i32, i32) {
    %c0_i32 = arith.constant 0 : i32
    %c0_i32_0 = arith.constant 0 : i32
    return %c0_i32, %arg2 : i32, i32
  }
  func.func @transform_2(%arg0: i32, %arg1: i32, %arg2: i32) -> (i32, i32) {
    %c0_i32 = arith.constant 0 : i32
    return %arg0, %arg2 : i32, i32
  }
  func.func @transform_3(%arg0: i32, %arg1: i32, %arg2: i32) -> (i32, i32) {
    %c0_i32 = arith.constant 0 : i32
    return %arg2, %arg1 : i32, i32
  }
  func.func @transform_4(%arg0: i32, %arg1: i32, %arg2: i32) -> (i32, i32) {
    %c0_i32 = arith.constant 0 : i32
    return %arg0, %arg1 : i32, i32
  }
}

module attributes {stable_mosaic.version = 11 : i64} {
  func.func @_bn_stats_kernel(%arg0: i32, %arg1: memref<50x128xbf16, #tpu.memory_space<vmem>>, %arg2: memref<2x128xf32, #tpu.memory_space<vmem>>) attributes {dimension_semantics = [#tpu.dimension_semantics<arbitrary>], iteration_bounds = array<i64: 1>, scalar_prefetch = 0 : i64, scratch_operands = 0 : i64, tpu.core_type = #tpu.core_type<tc>, window_params = [{transform_indices = @transform_0, window_bounds = array<i64: 50, 128>}, {pipeline_mode = #tpu.pipeline_mode<synchronous>, transform_indices = @transform_1, window_bounds = array<i64: 2, 128>}]} {
    %c0_i32 = arith.constant 0 : i32
    %0 = arith.cmpi eq, %arg0, %c0_i32 : i32
    %1 = arith.extui %0 : i1 to i32
    %c0_i32_0 = arith.constant 0 : i32
    %2 = arith.cmpi ne, %1, %c0_i32_0 : i32
    scf.if %2 {
      %cst_14 = arith.constant 0.000000e+00 : f32
      %27 = vector.broadcast %cst_14 : f32 to vector<2x128xf32>
      %c0_15 = arith.constant 0 : index
      %c0_16 = arith.constant 0 : index
      %28 = vector.load %arg2[%c0_15, %c0_16] : memref<2x128xf32, #tpu.memory_space<vmem>>, vector<2x128xf32>
      tpu.vector_store %arg2[%c0_15, %c0_16], %27 {strides = array<i32>} : memref<2x128xf32, #tpu.memory_space<vmem>>, vector<2x128xf32>,
    } else {
    }
    %c0 = arith.constant 0 : index
    %c0_1 = arith.constant 0 : index
    %3 = vector.load %arg1[%c0, %c0_1] : memref<50x128xbf16, #tpu.memory_space<vmem>>, vector<50x128xbf16>
    %4 = arith.extf %3 : vector<50x128xbf16> to vector<50x128xf32>
    %5 = tpu.iota {dimensions = array<i32: 0>} : vector<50x128xi32>
    %c50_i32 = arith.constant 50 : i32
    %6 = arith.muli %arg0, %c50_i32 : i32
    %7 = vector.broadcast %6 : i32 to vector<50x128xi32>
    %8 = arith.addi %5, %7 : vector<50x128xi32>
    %c50_i32_2 = arith.constant 50 : i32
    %9 = vector.broadcast %c50_i32_2 : i32 to vector<50x128xi32>
    %10 = arith.cmpi slt, %8, %9 : vector<50x128xi32>
    %cst = arith.constant 0.000000e+00 : f32
    %11 = vector.broadcast %cst : f32 to vector<50x128xf32>
    %12 = arith.select %10, %4, %11 : vector<50x128xi1>, vector<50x128xf32>
    %c0_3 = arith.constant 0 : index
    %c0_4 = arith.constant 0 : index
    %13 = vector.load %arg2[%c0_3, %c0_4] : memref<2x128xf32, #tpu.memory_space<vmem>>, vector<1x128xf32>
    %cst_5 = arith.constant dense<0.000000e+00> : vector<128xf32>
    %14 = vector.multi_reduction <add>, %12, %cst_5 [0] : vector<50x128xf32> to vector<128xf32>
    %15 = vector.shape_cast %14 : vector<128xf32> to vector<1x128xf32>
    %16 = arith.addf %13, %15 : vector<1x128xf32>
    %c0_6 = arith.constant 0 : index
    %c0_7 = arith.constant 0 : index
    %17 = vector.load %arg2[%c0_6, %c0_7] : memref<2x128xf32, #tpu.memory_space<vmem>>, vector<1x128xf32>
    tpu.vector_store %arg2[%c0_6, %c0_7], %16 {strides = array<i32>} : memref<2x128xf32, #tpu.memory_space<vmem>>, vector<1x128xf32>,
    %c1 = arith.constant 1 : index
    %c0_8 = arith.constant 0 : index
    %18 = vector.load %arg2[%c1, %c0_8] : memref<2x128xf32, #tpu.memory_space<vmem>>, vector<1x128xf32>
    %19 = arith.mulf %12, %12 : vector<50x128xf32>
    %cst_9 = arith.constant dense<0.000000e+00> : vector<128xf32>
    %20 = vector.multi_reduction <add>, %19, %cst_9 [0] : vector<50x128xf32> to vector<128xf32>
    %21 = vector.shape_cast %20 : vector<128xf32> to vector<1x128xf32>
    %22 = arith.addf %18, %21 : vector<1x128xf32>
    %c1_10 = arith.constant 1 : index
    %c0_11 = arith.constant 0 : index
    %23 = vector.load %arg2[%c1_10, %c0_11] : memref<2x128xf32, #tpu.memory_space<vmem>>, vector<1x128xf32>
    tpu.vector_store %arg2[%c1_10, %c0_11], %22 {strides = array<i32>} : memref<2x128xf32, #tpu.memory_space<vmem>>, vector<1x128xf32>,
    %c0_i32_12 = arith.constant 0 : i32
    %24 = arith.cmpi eq, %arg0, %c0_i32_12 : i32
    %25 = arith.extui %24 : i1 to i32
    %c0_i32_13 = arith.constant 0 : i32
    %26 = arith.cmpi ne, %25, %c0_i32_13 : i32
    scf.if %26 {
      %c0_14 = arith.constant 0 : index
      %c0_15 = arith.constant 0 : index
      %27 = vector.load %arg2[%c0_14, %c0_15] : memref<2x128xf32, #tpu.memory_space<vmem>>, vector<1x128xf32>
      %cst_16 = arith.constant 2.000000e-02 : f32
      %28 = vector.broadcast %cst_16 : f32 to vector<1x128xf32>
      %29 = arith.mulf %27, %28 : vector<1x128xf32>
      %c1_17 = arith.constant 1 : index
      %c0_18 = arith.constant 0 : index
      %30 = vector.load %arg2[%c1_17, %c0_18] : memref<2x128xf32, #tpu.memory_space<vmem>>, vector<1x128xf32>
      %cst_19 = arith.constant 2.000000e-02 : f32
      %31 = vector.broadcast %cst_19 : f32 to vector<1x128xf32>
      %32 = arith.mulf %30, %31 : vector<1x128xf32>
      %33 = arith.mulf %29, %29 : vector<1x128xf32>
      %34 = arith.subf %32, %33 : vector<1x128xf32>
      %cst_20 = arith.constant 9.99999974E-6 : f32
      %35 = vector.broadcast %cst_20 : f32 to vector<1x128xf32>
      %36 = arith.addf %34, %35 : vector<1x128xf32>
      %37 = math.rsqrt %36 : vector<1x128xf32>
      %c0_21 = arith.constant 0 : index
      %c0_22 = arith.constant 0 : index
      %38 = vector.load %arg2[%c0_21, %c0_22] : memref<2x128xf32, #tpu.memory_space<vmem>>, vector<1x128xf32>
      tpu.vector_store %arg2[%c0_21, %c0_22], %37 {strides = array<i32>} : memref<2x128xf32, #tpu.memory_space<vmem>>, vector<1x128xf32>,
      %cst_23 = arith.constant 0.000000e+00 : f32
      %39 = vector.broadcast %cst_23 : f32 to vector<1x128xf32>
      %40 = arith.subf %39, %29 : vector<1x128xf32>
      %41 = arith.mulf %40, %37 : vector<1x128xf32>
      %c1_24 = arith.constant 1 : index
      %c0_25 = arith.constant 0 : index
      %42 = vector.load %arg2[%c1_24, %c0_25] : memref<2x128xf32, #tpu.memory_space<vmem>>, vector<1x128xf32>
      tpu.vector_store %arg2[%c1_24, %c0_25], %41 {strides = array<i32>} : memref<2x128xf32, #tpu.memory_space<vmem>>, vector<1x128xf32>,
    } else {
    }
    return
  }
  func.func @transform_0(%arg0: i32) -> (i32, i32) {
    %c0_i32 = arith.constant 0 : i32
    %c0_i32_0 = arith.constant 0 : i32
    return %arg0, %c0_i32 : i32, i32
  }
  func.func @transform_1(%arg0: i32) -> (i32, i32) {
    %c0_i32 = arith.constant 0 : i32
    %c0_i32_0 = arith.constant 0 : i32
    %c0_i32_1 = arith.constant 0 : i32
    return %c0_i32, %c0_i32_0 : i32, i32
  }
}

module attributes {stable_mosaic.version = 11 : i64} {
  func.func @_mm_affine_kernel(%arg0: i32, %arg1: i32, %arg2: i32, %arg3: memref<1x384xf32, #tpu.memory_space<vmem>>, %arg4: memref<1x384xf32, #tpu.memory_space<vmem>>, %arg5: memref<50x384xbf16, #tpu.memory_space<vmem>>, %arg6: memref<384x128xbf16, #tpu.memory_space<vmem>>, %arg7: memref<50x128xbf16, #tpu.memory_space<vmem>>, %arg8: memref<50x128xf32, #tpu.memory_space<vmem>>) attributes {dimension_semantics = [#tpu.dimension_semantics<parallel>, #tpu.dimension_semantics<parallel>, #tpu.dimension_semantics<arbitrary>], iteration_bounds = array<i64: 1, 1, 3>, scalar_prefetch = 0 : i64, scratch_operands = 1 : i64, tpu.core_type = #tpu.core_type<tc>, window_params = [{transform_indices = @transform_0, window_bounds = array<i64: 1, 384>}, {transform_indices = @transform_1, window_bounds = array<i64: 1, 384>}, {transform_indices = @transform_2, window_bounds = array<i64: 50, 384>}, {transform_indices = @transform_3, window_bounds = array<i64: 384, 128>}, {transform_indices = @transform_4, window_bounds = array<i64: 50, 128>}]} {
    %c0_i32 = arith.constant 0 : i32
    %0 = arith.cmpi eq, %arg2, %c0_i32 : i32
    %1 = arith.extui %0 : i1 to i32
    %c0_i32_0 = arith.constant 0 : i32
    %2 = arith.cmpi ne, %1, %c0_i32_0 : i32
    scf.if %2 {
      %cst_14 = arith.constant 0.000000e+00 : f32
      %22 = vector.broadcast %cst_14 : f32 to vector<50x128xf32>
      %c0_15 = arith.constant 0 : index
      %c0_16 = arith.constant 0 : index
      %23 = vector.load %arg8[%c0_15, %c0_16] : memref<50x128xf32, #tpu.memory_space<vmem>>, vector<50x128xf32>
      tpu.vector_store %arg8[%c0_15, %c0_16], %22 {strides = array<i32>} : memref<50x128xf32, #tpu.memory_space<vmem>>, vector<50x128xf32>,
    } else {
    }
    %c0 = arith.constant 0 : index
    %c0_1 = arith.constant 0 : index
    %3 = vector.load %arg5[%c0, %c0_1] : memref<50x384xbf16, #tpu.memory_space<vmem>>, vector<50x384xbf16>
    %4 = arith.extf %3 : vector<50x384xbf16> to vector<50x384xf32>
    %c0_2 = arith.constant 0 : index
    %c0_3 = arith.constant 0 : index
    %5 = vector.load %arg3[%c0_2, %c0_3] : memref<1x384xf32, #tpu.memory_space<vmem>>, vector<1x384xf32>
    %6 = vector.broadcast %5 : vector<1x384xf32> to vector<50x384xf32>
    %7 = arith.mulf %4, %6 : vector<50x384xf32>
    %c0_4 = arith.constant 0 : index
    %c0_5 = arith.constant 0 : index
    %8 = vector.load %arg4[%c0_4, %c0_5] : memref<1x384xf32, #tpu.memory_space<vmem>>, vector<1x384xf32>
    %9 = vector.broadcast %8 : vector<1x384xf32> to vector<50x384xf32>
    %10 = arith.addf %7, %9 : vector<50x384xf32>
    %cst = arith.constant 0.000000e+00 : f32
    %11 = vector.broadcast %cst : f32 to vector<50x384xf32>
    %12 = arith.maximumf %10, %11 : vector<50x384xf32>
    %c0_6 = arith.constant 0 : index
    %c0_7 = arith.constant 0 : index
    %13 = vector.load %arg8[%c0_6, %c0_7] : memref<50x128xf32, #tpu.memory_space<vmem>>, vector<50x128xf32>
    %14 = arith.truncf %12 : vector<50x384xf32> to vector<50x384xbf16>
    %c0_8 = arith.constant 0 : index
    %c0_9 = arith.constant 0 : index
    %15 = vector.load %arg6[%c0_8, %c0_9] : memref<384x128xbf16, #tpu.memory_space<vmem>>, vector<384x128xbf16>
    %cst_10 = arith.constant dense<0.000000e+00> : vector<50x128xf32>
    %16 = tpu.matmul %14, %15, %cst_10 {dimension_numbers = #tpu.dot_dimension_numbers<[1], [0], [0], [1], [0, 0, 1, 1], [], []>} : vector<50x384xbf16>, vector<384x128xbf16>, vector<50x128xf32> -> vector<50x128xf32>
    %17 = arith.addf %13, %16 : vector<50x128xf32>
    %c0_11 = arith.constant 0 : index
    %c0_12 = arith.constant 0 : index
    %18 = vector.load %arg8[%c0_11, %c0_12] : memref<50x128xf32, #tpu.memory_space<vmem>>, vector<50x128xf32>
    tpu.vector_store %arg8[%c0_11, %c0_12], %17 {strides = array<i32>} : memref<50x128xf32, #tpu.memory_space<vmem>>, vector<50x128xf32>,
    %c2_i32 = arith.constant 2 : i32
    %19 = arith.cmpi eq, %arg2, %c2_i32 : i32
    %20 = arith.extui %19 : i1 to i32
    %c0_i32_13 = arith.constant 0 : i32
    %21 = arith.cmpi ne, %20, %c0_i32_13 : i32
    scf.if %21 {
      %c0_14 = arith.constant 0 : index
      %c0_15 = arith.constant 0 : index
      %22 = vector.load %arg8[%c0_14, %c0_15] : memref<50x128xf32, #tpu.memory_space<vmem>>, vector<50x128xf32>
      %23 = arith.truncf %22 : vector<50x128xf32> to vector<50x128xbf16>
      %c0_16 = arith.constant 0 : index
      %c0_17 = arith.constant 0 : index
      %24 = vector.load %arg7[%c0_16, %c0_17] : memref<50x128xbf16, #tpu.memory_space<vmem>>, vector<50x128xbf16>
      tpu.vector_store %arg7[%c0_16, %c0_17], %23 {strides = array<i32>} : memref<50x128xbf16, #tpu.memory_space<vmem>>, vector<50x128xbf16>,
    } else {
    }
    return
  }
  func.func @transform_0(%arg0: i32, %arg1: i32, %arg2: i32) -> (i32, i32) {
    %c0_i32 = arith.constant 0 : i32
    %c0_i32_0 = arith.constant 0 : i32
    return %c0_i32, %arg2 : i32, i32
  }
  func.func @transform_1(%arg0: i32, %arg1: i32, %arg2: i32) -> (i32, i32) {
    %c0_i32 = arith.constant 0 : i32
    %c0_i32_0 = arith.constant 0 : i32
    return %c0_i32, %arg2 : i32, i32
  }
  func.func @transform_2(%arg0: i32, %arg1: i32, %arg2: i32) -> (i32, i32) {
    %c0_i32 = arith.constant 0 : i32
    return %arg0, %arg2 : i32, i32
  }
  func.func @transform_3(%arg0: i32, %arg1: i32, %arg2: i32) -> (i32, i32) {
    %c0_i32 = arith.constant 0 : i32
    return %arg2, %arg1 : i32, i32
  }
  func.func @transform_4(%arg0: i32, %arg1: i32, %arg2: i32) -> (i32, i32) {
    %c0_i32 = arith.constant 0 : i32
    return %arg0, %arg1 : i32, i32
  }
}

module attributes {stable_mosaic.version = 11 : i64} {
  func.func @_bn_stats_kernel(%arg0: i32, %arg1: memref<50x256xbf16, #tpu.memory_space<vmem>>, %arg2: memref<2x256xf32, #tpu.memory_space<vmem>>) attributes {dimension_semantics = [#tpu.dimension_semantics<arbitrary>], iteration_bounds = array<i64: 1>, scalar_prefetch = 0 : i64, scratch_operands = 0 : i64, tpu.core_type = #tpu.core_type<tc>, window_params = [{transform_indices = @transform_0, window_bounds = array<i64: 50, 256>}, {pipeline_mode = #tpu.pipeline_mode<synchronous>, transform_indices = @transform_1, window_bounds = array<i64: 2, 256>}]} {
    %c0_i32 = arith.constant 0 : i32
    %0 = arith.cmpi eq, %arg0, %c0_i32 : i32
    %1 = arith.extui %0 : i1 to i32
    %c0_i32_0 = arith.constant 0 : i32
    %2 = arith.cmpi ne, %1, %c0_i32_0 : i32
    scf.if %2 {
      %cst_14 = arith.constant 0.000000e+00 : f32
      %27 = vector.broadcast %cst_14 : f32 to vector<2x256xf32>
      %c0_15 = arith.constant 0 : index
      %c0_16 = arith.constant 0 : index
      %28 = vector.load %arg2[%c0_15, %c0_16] : memref<2x256xf32, #tpu.memory_space<vmem>>, vector<2x256xf32>
      tpu.vector_store %arg2[%c0_15, %c0_16], %27 {strides = array<i32>} : memref<2x256xf32, #tpu.memory_space<vmem>>, vector<2x256xf32>,
    } else {
    }
    %c0 = arith.constant 0 : index
    %c0_1 = arith.constant 0 : index
    %3 = vector.load %arg1[%c0, %c0_1] : memref<50x256xbf16, #tpu.memory_space<vmem>>, vector<50x256xbf16>
    %4 = arith.extf %3 : vector<50x256xbf16> to vector<50x256xf32>
    %5 = tpu.iota {dimensions = array<i32: 0>} : vector<50x256xi32>
    %c50_i32 = arith.constant 50 : i32
    %6 = arith.muli %arg0, %c50_i32 : i32
    %7 = vector.broadcast %6 : i32 to vector<50x256xi32>
    %8 = arith.addi %5, %7 : vector<50x256xi32>
    %c50_i32_2 = arith.constant 50 : i32
    %9 = vector.broadcast %c50_i32_2 : i32 to vector<50x256xi32>
    %10 = arith.cmpi slt, %8, %9 : vector<50x256xi32>
    %cst = arith.constant 0.000000e+00 : f32
    %11 = vector.broadcast %cst : f32 to vector<50x256xf32>
    %12 = arith.select %10, %4, %11 : vector<50x256xi1>, vector<50x256xf32>
    %c0_3 = arith.constant 0 : index
    %c0_4 = arith.constant 0 : index
    %13 = vector.load %arg2[%c0_3, %c0_4] : memref<2x256xf32, #tpu.memory_space<vmem>>, vector<1x256xf32>
    %cst_5 = arith.constant dense<0.000000e+00> : vector<256xf32>
    %14 = vector.multi_reduction <add>, %12, %cst_5 [0] : vector<50x256xf32> to vector<256xf32>
    %15 = vector.shape_cast %14 : vector<256xf32> to vector<1x256xf32>
    %16 = arith.addf %13, %15 : vector<1x256xf32>
    %c0_6 = arith.constant 0 : index
    %c0_7 = arith.constant 0 : index
    %17 = vector.load %arg2[%c0_6, %c0_7] : memref<2x256xf32, #tpu.memory_space<vmem>>, vector<1x256xf32>
    tpu.vector_store %arg2[%c0_6, %c0_7], %16 {strides = array<i32>} : memref<2x256xf32, #tpu.memory_space<vmem>>, vector<1x256xf32>,
    %c1 = arith.constant 1 : index
    %c0_8 = arith.constant 0 : index
    %18 = vector.load %arg2[%c1, %c0_8] : memref<2x256xf32, #tpu.memory_space<vmem>>, vector<1x256xf32>
    %19 = arith.mulf %12, %12 : vector<50x256xf32>
    %cst_9 = arith.constant dense<0.000000e+00> : vector<256xf32>
    %20 = vector.multi_reduction <add>, %19, %cst_9 [0] : vector<50x256xf32> to vector<256xf32>
    %21 = vector.shape_cast %20 : vector<256xf32> to vector<1x256xf32>
    %22 = arith.addf %18, %21 : vector<1x256xf32>
    %c1_10 = arith.constant 1 : index
    %c0_11 = arith.constant 0 : index
    %23 = vector.load %arg2[%c1_10, %c0_11] : memref<2x256xf32, #tpu.memory_space<vmem>>, vector<1x256xf32>
    tpu.vector_store %arg2[%c1_10, %c0_11], %22 {strides = array<i32>} : memref<2x256xf32, #tpu.memory_space<vmem>>, vector<1x256xf32>,
    %c0_i32_12 = arith.constant 0 : i32
    %24 = arith.cmpi eq, %arg0, %c0_i32_12 : i32
    %25 = arith.extui %24 : i1 to i32
    %c0_i32_13 = arith.constant 0 : i32
    %26 = arith.cmpi ne, %25, %c0_i32_13 : i32
    scf.if %26 {
      %c0_14 = arith.constant 0 : index
      %c0_15 = arith.constant 0 : index
      %27 = vector.load %arg2[%c0_14, %c0_15] : memref<2x256xf32, #tpu.memory_space<vmem>>, vector<1x256xf32>
      %cst_16 = arith.constant 2.000000e-02 : f32
      %28 = vector.broadcast %cst_16 : f32 to vector<1x256xf32>
      %29 = arith.mulf %27, %28 : vector<1x256xf32>
      %c1_17 = arith.constant 1 : index
      %c0_18 = arith.constant 0 : index
      %30 = vector.load %arg2[%c1_17, %c0_18] : memref<2x256xf32, #tpu.memory_space<vmem>>, vector<1x256xf32>
      %cst_19 = arith.constant 2.000000e-02 : f32
      %31 = vector.broadcast %cst_19 : f32 to vector<1x256xf32>
      %32 = arith.mulf %30, %31 : vector<1x256xf32>
      %33 = arith.mulf %29, %29 : vector<1x256xf32>
      %34 = arith.subf %32, %33 : vector<1x256xf32>
      %cst_20 = arith.constant 9.99999974E-6 : f32
      %35 = vector.broadcast %cst_20 : f32 to vector<1x256xf32>
      %36 = arith.addf %34, %35 : vector<1x256xf32>
      %37 = math.rsqrt %36 : vector<1x256xf32>
      %c0_21 = arith.constant 0 : index
      %c0_22 = arith.constant 0 : index
      %38 = vector.load %arg2[%c0_21, %c0_22] : memref<2x256xf32, #tpu.memory_space<vmem>>, vector<1x256xf32>
      tpu.vector_store %arg2[%c0_21, %c0_22], %37 {strides = array<i32>} : memref<2x256xf32, #tpu.memory_space<vmem>>, vector<1x256xf32>,
      %cst_23 = arith.constant 0.000000e+00 : f32
      %39 = vector.broadcast %cst_23 : f32 to vector<1x256xf32>
      %40 = arith.subf %39, %29 : vector<1x256xf32>
      %41 = arith.mulf %40, %37 : vector<1x256xf32>
      %c1_24 = arith.constant 1 : index
      %c0_25 = arith.constant 0 : index
      %42 = vector.load %arg2[%c1_24, %c0_25] : memref<2x256xf32, #tpu.memory_space<vmem>>, vector<1x256xf32>
      tpu.vector_store %arg2[%c1_24, %c0_25], %41 {strides = array<i32>} : memref<2x256xf32, #tpu.memory_space<vmem>>, vector<1x256xf32>,
    } else {
    }
    return
  }
  func.func @transform_0(%arg0: i32) -> (i32, i32) {
    %c0_i32 = arith.constant 0 : i32
    %c0_i32_0 = arith.constant 0 : i32
    return %arg0, %c0_i32 : i32, i32
  }
  func.func @transform_1(%arg0: i32) -> (i32, i32) {
    %c0_i32 = arith.constant 0 : i32
    %c0_i32_0 = arith.constant 0 : i32
    %c0_i32_1 = arith.constant 0 : i32
    return %c0_i32, %c0_i32_0 : i32, i32
  }
}

module attributes {stable_mosaic.version = 11 : i64} {
  func.func @_mm_plain_kernel(%arg0: i32, %arg1: i32, %arg2: i32, %arg3: memref<50x128xbf16, #tpu.memory_space<vmem>>, %arg4: memref<128x256xbf16, #tpu.memory_space<vmem>>, %arg5: memref<50x256xbf16, #tpu.memory_space<vmem>>, %arg6: memref<50x256xf32, #tpu.memory_space<vmem>>) attributes {dimension_semantics = [#tpu.dimension_semantics<parallel>, #tpu.dimension_semantics<parallel>, #tpu.dimension_semantics<arbitrary>], iteration_bounds = array<i64: 1, 1, 1>, scalar_prefetch = 0 : i64, scratch_operands = 1 : i64, tpu.core_type = #tpu.core_type<tc>, window_params = [{transform_indices = @transform_0, window_bounds = array<i64: 50, 128>}, {transform_indices = @transform_1, window_bounds = array<i64: 128, 256>}, {transform_indices = @transform_2, window_bounds = array<i64: 50, 256>}]} {
    %c0_i32 = arith.constant 0 : i32
    %0 = arith.cmpi eq, %arg2, %c0_i32 : i32
    %1 = arith.extui %0 : i1 to i32
    %c0_i32_0 = arith.constant 0 : i32
    %2 = arith.cmpi ne, %1, %c0_i32_0 : i32
    scf.if %2 {
      %cst_10 = arith.constant 0.000000e+00 : f32
      %12 = vector.broadcast %cst_10 : f32 to vector<50x256xf32>
      %c0_11 = arith.constant 0 : index
      %c0_12 = arith.constant 0 : index
      %13 = vector.load %arg6[%c0_11, %c0_12] : memref<50x256xf32, #tpu.memory_space<vmem>>, vector<50x256xf32>
      tpu.vector_store %arg6[%c0_11, %c0_12], %12 {strides = array<i32>} : memref<50x256xf32, #tpu.memory_space<vmem>>, vector<50x256xf32>,
    } else {
    }
    %c0 = arith.constant 0 : index
    %c0_1 = arith.constant 0 : index
    %3 = vector.load %arg6[%c0, %c0_1] : memref<50x256xf32, #tpu.memory_space<vmem>>, vector<50x256xf32>
    %c0_2 = arith.constant 0 : index
    %c0_3 = arith.constant 0 : index
    %4 = vector.load %arg3[%c0_2, %c0_3] : memref<50x128xbf16, #tpu.memory_space<vmem>>, vector<50x128xbf16>
    %c0_4 = arith.constant 0 : index
    %c0_5 = arith.constant 0 : index
    %5 = vector.load %arg4[%c0_4, %c0_5] : memref<128x256xbf16, #tpu.memory_space<vmem>>, vector<128x256xbf16>
    %cst = arith.constant dense<0.000000e+00> : vector<50x256xf32>
    %6 = tpu.matmul %4, %5, %cst {dimension_numbers = #tpu.dot_dimension_numbers<[1], [0], [0], [1], [0, 0, 1, 1], [], []>} : vector<50x128xbf16>, vector<128x256xbf16>, vector<50x256xf32> -> vector<50x256xf32>
    %7 = arith.addf %3, %6 : vector<50x256xf32>
    %c0_6 = arith.constant 0 : index
    %c0_7 = arith.constant 0 : index
    %8 = vector.load %arg6[%c0_6, %c0_7] : memref<50x256xf32, #tpu.memory_space<vmem>>, vector<50x256xf32>
    tpu.vector_store %arg6[%c0_6, %c0_7], %7 {strides = array<i32>} : memref<50x256xf32, #tpu.memory_space<vmem>>, vector<50x256xf32>,
    %c0_i32_8 = arith.constant 0 : i32
    %9 = arith.cmpi eq, %arg2, %c0_i32_8 : i32
    %10 = arith.extui %9 : i1 to i32
    %c0_i32_9 = arith.constant 0 : i32
    %11 = arith.cmpi ne, %10, %c0_i32_9 : i32
    scf.if %11 {
      %c0_10 = arith.constant 0 : index
      %c0_11 = arith.constant 0 : index
      %12 = vector.load %arg6[%c0_10, %c0_11] : memref<50x256xf32, #tpu.memory_space<vmem>>, vector<50x256xf32>
      %13 = arith.truncf %12 : vector<50x256xf32> to vector<50x256xbf16>
      %c0_12 = arith.constant 0 : index
      %c0_13 = arith.constant 0 : index
      %14 = vector.load %arg5[%c0_12, %c0_13] : memref<50x256xbf16, #tpu.memory_space<vmem>>, vector<50x256xbf16>
      tpu.vector_store %arg5[%c0_12, %c0_13], %13 {strides = array<i32>} : memref<50x256xbf16, #tpu.memory_space<vmem>>, vector<50x256xbf16>,
    } else {
    }
    return
  }
  func.func @transform_0(%arg0: i32, %arg1: i32, %arg2: i32) -> (i32, i32) {
    %c0_i32 = arith.constant 0 : i32
    return %arg0, %arg2 : i32, i32
  }
  func.func @transform_1(%arg0: i32, %arg1: i32, %arg2: i32) -> (i32, i32) {
    %c0_i32 = arith.constant 0 : i32
    return %arg2, %arg1 : i32, i32
  }
  func.func @transform_2(%arg0: i32, %arg1: i32, %arg2: i32) -> (i32, i32) {
    %c0_i32 = arith.constant 0 : i32
    return %arg0, %arg1 : i32, i32
  }
}

module attributes {stable_mosaic.version = 11 : i64} {
  func.func @_tail_kernel(%arg0: i32, %arg1: memref<1x256xf32, #tpu.memory_space<vmem>>, %arg2: memref<1x256xf32, #tpu.memory_space<vmem>>, %arg3: memref<1x256xf32, #tpu.memory_space<vmem>>, %arg4: memref<1x256xf32, #tpu.memory_space<vmem>>, %arg5: memref<50x256xbf16, #tpu.memory_space<vmem>>, %arg6: memref<50x256xbf16, #tpu.memory_space<vmem>>, %arg7: memref<50x256xbf16, #tpu.memory_space<vmem>>) attributes {dimension_semantics = [#tpu.dimension_semantics<parallel>], iteration_bounds = array<i64: 1>, scalar_prefetch = 0 : i64, scratch_operands = 0 : i64, tpu.core_type = #tpu.core_type<tc>, window_params = [{pipeline_mode = #tpu.pipeline_mode<synchronous>, transform_indices = @transform_0, window_bounds = array<i64: 1, 256>}, {pipeline_mode = #tpu.pipeline_mode<synchronous>, transform_indices = @transform_1, window_bounds = array<i64: 1, 256>}, {pipeline_mode = #tpu.pipeline_mode<synchronous>, transform_indices = @transform_2, window_bounds = array<i64: 1, 256>}, {pipeline_mode = #tpu.pipeline_mode<synchronous>, transform_indices = @transform_3, window_bounds = array<i64: 1, 256>}, {transform_indices = @transform_4, window_bounds = array<i64: 50, 256>}, {transform_indices = @transform_5, window_bounds = array<i64: 50, 256>}, {transform_indices = @transform_6, window_bounds = array<i64: 50, 256>}]} {
    %c0 = arith.constant 0 : index
    %c0_0 = arith.constant 0 : index
    %0 = vector.load %arg5[%c0, %c0_0] : memref<50x256xbf16, #tpu.memory_space<vmem>>, vector<50x256xbf16>
    %1 = arith.extf %0 : vector<50x256xbf16> to vector<50x256xf32>
    %c0_1 = arith.constant 0 : index
    %c0_2 = arith.constant 0 : index
    %2 = vector.load %arg1[%c0_1, %c0_2] : memref<1x256xf32, #tpu.memory_space<vmem>>, vector<1x256xf32>
    %3 = vector.broadcast %2 : vector<1x256xf32> to vector<50x256xf32>
    %4 = arith.mulf %1, %3 : vector<50x256xf32>
    %c0_3 = arith.constant 0 : index
    %c0_4 = arith.constant 0 : index
    %5 = vector.load %arg2[%c0_3, %c0_4] : memref<1x256xf32, #tpu.memory_space<vmem>>, vector<1x256xf32>
    %6 = vector.broadcast %5 : vector<1x256xf32> to vector<50x256xf32>
    %7 = arith.addf %4, %6 : vector<50x256xf32>
    %c0_5 = arith.constant 0 : index
    %c0_6 = arith.constant 0 : index
    %8 = vector.load %arg6[%c0_5, %c0_6] : memref<50x256xbf16, #tpu.memory_space<vmem>>, vector<50x256xbf16>
    %9 = arith.extf %8 : vector<50x256xbf16> to vector<50x256xf32>
    %c0_7 = arith.constant 0 : index
    %c0_8 = arith.constant 0 : index
    %10 = vector.load %arg3[%c0_7, %c0_8] : memref<1x256xf32, #tpu.memory_space<vmem>>, vector<1x256xf32>
    %11 = vector.broadcast %10 : vector<1x256xf32> to vector<50x256xf32>
    %12 = arith.mulf %9, %11 : vector<50x256xf32>
    %c0_9 = arith.constant 0 : index
    %c0_10 = arith.constant 0 : index
    %13 = vector.load %arg4[%c0_9, %c0_10] : memref<1x256xf32, #tpu.memory_space<vmem>>, vector<1x256xf32>
    %14 = vector.broadcast %13 : vector<1x256xf32> to vector<50x256xf32>
    %15 = arith.addf %12, %14 : vector<50x256xf32>
    %16 = arith.addf %7, %15 : vector<50x256xf32>
    %cst = arith.constant 0.000000e+00 : f32
    %17 = vector.broadcast %cst : f32 to vector<50x256xf32>
    %18 = arith.maximumf %16, %17 : vector<50x256xf32>
    %19 = arith.truncf %18 : vector<50x256xf32> to vector<50x256xbf16>
    %c0_11 = arith.constant 0 : index
    %c0_12 = arith.constant 0 : index
    %20 = vector.load %arg7[%c0_11, %c0_12] : memref<50x256xbf16, #tpu.memory_space<vmem>>, vector<50x256xbf16>
    tpu.vector_store %arg7[%c0_11, %c0_12], %19 {strides = array<i32>} : memref<50x256xbf16, #tpu.memory_space<vmem>>, vector<50x256xbf16>,
    return
  }
  func.func @transform_0(%arg0: i32) -> (i32, i32) {
    %c0_i32 = arith.constant 0 : i32
    %c0_i32_0 = arith.constant 0 : i32
    %c0_i32_1 = arith.constant 0 : i32
    return %c0_i32, %c0_i32_0 : i32, i32
  }
  func.func @transform_1(%arg0: i32) -> (i32, i32) {
    %c0_i32 = arith.constant 0 : i32
    %c0_i32_0 = arith.constant 0 : i32
    %c0_i32_1 = arith.constant 0 : i32
    return %c0_i32, %c0_i32_0 : i32, i32
  }
  func.func @transform_2(%arg0: i32) -> (i32, i32) {
    %c0_i32 = arith.constant 0 : i32
    %c0_i32_0 = arith.constant 0 : i32
    %c0_i32_1 = arith.constant 0 : i32
    return %c0_i32, %c0_i32_0 : i32, i32
  }
  func.func @transform_3(%arg0: i32) -> (i32, i32) {
    %c0_i32 = arith.constant 0 : i32
    %c0_i32_0 = arith.constant 0 : i32
    %c0_i32_1 = arith.constant 0 : i32
    return %c0_i32, %c0_i32_0 : i32, i32
  }
  func.func @transform_4(%arg0: i32) -> (i32, i32) {
    %c0_i32 = arith.constant 0 : i32
    %c0_i32_0 = arith.constant 0 : i32
    return %arg0, %c0_i32 : i32, i32
  }
  func.func @transform_5(%arg0: i32) -> (i32, i32) {
    %c0_i32 = arith.constant 0 : i32
    %c0_i32_0 = arith.constant 0 : i32
    return %arg0, %c0_i32 : i32, i32
  }
  func.func @transform_6(%arg0: i32) -> (i32, i32) {
    %c0_i32 = arith.constant 0 : i32
    %c0_i32_0 = arith.constant 0 : i32
    return %arg0, %c0_i32 : i32, i32
  }
}

module attributes {stable_mosaic.version = 11 : i64} {
  func.func @_mm_plain_kernel(%arg0: i32, %arg1: i32, %arg2: i32, %arg3: memref<18x256xbf16, #tpu.memory_space<vmem>>, %arg4: memref<256x128xbf16, #tpu.memory_space<vmem>>, %arg5: memref<18x128xbf16, #tpu.memory_space<vmem>>, %arg6: memref<18x128xf32, #tpu.memory_space<vmem>>) attributes {dimension_semantics = [#tpu.dimension_semantics<parallel>, #tpu.dimension_semantics<parallel>, #tpu.dimension_semantics<arbitrary>], iteration_bounds = array<i64: 1, 1, 1>, scalar_prefetch = 0 : i64, scratch_operands = 1 : i64, tpu.core_type = #tpu.core_type<tc>, window_params = [{transform_indices = @transform_0, window_bounds = array<i64: 18, 256>}, {transform_indices = @transform_1, window_bounds = array<i64: 256, 128>}, {transform_indices = @transform_2, window_bounds = array<i64: 18, 128>}]} {
    %c0_i32 = arith.constant 0 : i32
    %0 = arith.cmpi eq, %arg2, %c0_i32 : i32
    %1 = arith.extui %0 : i1 to i32
    %c0_i32_0 = arith.constant 0 : i32
    %2 = arith.cmpi ne, %1, %c0_i32_0 : i32
    scf.if %2 {
      %cst_10 = arith.constant 0.000000e+00 : f32
      %12 = vector.broadcast %cst_10 : f32 to vector<18x128xf32>
      %c0_11 = arith.constant 0 : index
      %c0_12 = arith.constant 0 : index
      %13 = vector.load %arg6[%c0_11, %c0_12] : memref<18x128xf32, #tpu.memory_space<vmem>>, vector<18x128xf32>
      tpu.vector_store %arg6[%c0_11, %c0_12], %12 {strides = array<i32>} : memref<18x128xf32, #tpu.memory_space<vmem>>, vector<18x128xf32>,
    } else {
    }
    %c0 = arith.constant 0 : index
    %c0_1 = arith.constant 0 : index
    %3 = vector.load %arg6[%c0, %c0_1] : memref<18x128xf32, #tpu.memory_space<vmem>>, vector<18x128xf32>
    %c0_2 = arith.constant 0 : index
    %c0_3 = arith.constant 0 : index
    %4 = vector.load %arg3[%c0_2, %c0_3] : memref<18x256xbf16, #tpu.memory_space<vmem>>, vector<18x256xbf16>
    %c0_4 = arith.constant 0 : index
    %c0_5 = arith.constant 0 : index
    %5 = vector.load %arg4[%c0_4, %c0_5] : memref<256x128xbf16, #tpu.memory_space<vmem>>, vector<256x128xbf16>
    %cst = arith.constant dense<0.000000e+00> : vector<18x128xf32>
    %6 = tpu.matmul %4, %5, %cst {dimension_numbers = #tpu.dot_dimension_numbers<[1], [0], [0], [1], [0, 0, 1, 1], [], []>} : vector<18x256xbf16>, vector<256x128xbf16>, vector<18x128xf32> -> vector<18x128xf32>
    %7 = arith.addf %3, %6 : vector<18x128xf32>
    %c0_6 = arith.constant 0 : index
    %c0_7 = arith.constant 0 : index
    %8 = vector.load %arg6[%c0_6, %c0_7] : memref<18x128xf32, #tpu.memory_space<vmem>>, vector<18x128xf32>
    tpu.vector_store %arg6[%c0_6, %c0_7], %7 {strides = array<i32>} : memref<18x128xf32, #tpu.memory_space<vmem>>, vector<18x128xf32>,
    %c0_i32_8 = arith.constant 0 : i32
    %9 = arith.cmpi eq, %arg2, %c0_i32_8 : i32
    %10 = arith.extui %9 : i1 to i32
    %c0_i32_9 = arith.constant 0 : i32
    %11 = arith.cmpi ne, %10, %c0_i32_9 : i32
    scf.if %11 {
      %c0_10 = arith.constant 0 : index
      %c0_11 = arith.constant 0 : index
      %12 = vector.load %arg6[%c0_10, %c0_11] : memref<18x128xf32, #tpu.memory_space<vmem>>, vector<18x128xf32>
      %13 = arith.truncf %12 : vector<18x128xf32> to vector<18x128xbf16>
      %c0_12 = arith.constant 0 : index
      %c0_13 = arith.constant 0 : index
      %14 = vector.load %arg5[%c0_12, %c0_13] : memref<18x128xbf16, #tpu.memory_space<vmem>>, vector<18x128xbf16>
      tpu.vector_store %arg5[%c0_12, %c0_13], %13 {strides = array<i32>} : memref<18x128xbf16, #tpu.memory_space<vmem>>, vector<18x128xbf16>,
    } else {
    }
    return
  }
  func.func @transform_0(%arg0: i32, %arg1: i32, %arg2: i32) -> (i32, i32) {
    %c0_i32 = arith.constant 0 : i32
    return %arg0, %arg2 : i32, i32
  }
  func.func @transform_1(%arg0: i32, %arg1: i32, %arg2: i32) -> (i32, i32) {
    %c0_i32 = arith.constant 0 : i32
    return %arg2, %arg1 : i32, i32
  }
  func.func @transform_2(%arg0: i32, %arg1: i32, %arg2: i32) -> (i32, i32) {
    %c0_i32 = arith.constant 0 : i32
    return %arg0, %arg1 : i32, i32
  }
}

module attributes {stable_mosaic.version = 11 : i64} {
  func.func @_mm_affine_kernel(%arg0: i32, %arg1: i32, %arg2: i32, %arg3: memref<1x128xf32, #tpu.memory_space<vmem>>, %arg4: memref<1x128xf32, #tpu.memory_space<vmem>>, %arg5: memref<18x128xbf16, #tpu.memory_space<vmem>>, %arg6: memref<128x256xbf16, #tpu.memory_space<vmem>>, %arg7: memref<18x256xbf16, #tpu.memory_space<vmem>>, %arg8: memref<18x256xf32, #tpu.memory_space<vmem>>) attributes {dimension_semantics = [#tpu.dimension_semantics<parallel>, #tpu.dimension_semantics<parallel>, #tpu.dimension_semantics<arbitrary>], iteration_bounds = array<i64: 1, 2, 1>, scalar_prefetch = 0 : i64, scratch_operands = 1 : i64, tpu.core_type = #tpu.core_type<tc>, window_params = [{transform_indices = @transform_0, window_bounds = array<i64: 1, 128>}, {transform_indices = @transform_1, window_bounds = array<i64: 1, 128>}, {transform_indices = @transform_2, window_bounds = array<i64: 18, 128>}, {transform_indices = @transform_3, window_bounds = array<i64: 128, 256>}, {transform_indices = @transform_4, window_bounds = array<i64: 18, 256>}]} {
    %c0_i32 = arith.constant 0 : i32
    %0 = arith.cmpi eq, %arg2, %c0_i32 : i32
    %1 = arith.extui %0 : i1 to i32
    %c0_i32_0 = arith.constant 0 : i32
    %2 = arith.cmpi ne, %1, %c0_i32_0 : i32
    scf.if %2 {
      %cst_15 = arith.constant 0.000000e+00 : f32
      %22 = vector.broadcast %cst_15 : f32 to vector<18x256xf32>
      %c0_16 = arith.constant 0 : index
      %c0_17 = arith.constant 0 : index
      %23 = vector.load %arg8[%c0_16, %c0_17] : memref<18x256xf32, #tpu.memory_space<vmem>>, vector<18x256xf32>
      tpu.vector_store %arg8[%c0_16, %c0_17], %22 {strides = array<i32>} : memref<18x256xf32, #tpu.memory_space<vmem>>, vector<18x256xf32>,
    } else {
    }
    %c0 = arith.constant 0 : index
    %c0_1 = arith.constant 0 : index
    %3 = vector.load %arg5[%c0, %c0_1] : memref<18x128xbf16, #tpu.memory_space<vmem>>, vector<18x128xbf16>
    %4 = arith.extf %3 : vector<18x128xbf16> to vector<18x128xf32>
    %c0_2 = arith.constant 0 : index
    %c0_3 = arith.constant 0 : index
    %5 = vector.load %arg3[%c0_2, %c0_3] : memref<1x128xf32, #tpu.memory_space<vmem>>, vector<1x128xf32>
    %6 = vector.broadcast %5 : vector<1x128xf32> to vector<18x128xf32>
    %7 = arith.mulf %4, %6 : vector<18x128xf32>
    %c0_4 = arith.constant 0 : index
    %c0_5 = arith.constant 0 : index
    %8 = vector.load %arg4[%c0_4, %c0_5] : memref<1x128xf32, #tpu.memory_space<vmem>>, vector<1x128xf32>
    %9 = vector.broadcast %8 : vector<1x128xf32> to vector<18x128xf32>
    %10 = arith.addf %7, %9 : vector<18x128xf32>
    %cst = arith.constant 0.000000e+00 : f32
    %11 = vector.broadcast %cst : f32 to vector<18x128xf32>
    %12 = arith.maximumf %10, %11 : vector<18x128xf32>
    %c0_6 = arith.constant 0 : index
    %c0_7 = arith.constant 0 : index
    %13 = vector.load %arg8[%c0_6, %c0_7] : memref<18x256xf32, #tpu.memory_space<vmem>>, vector<18x256xf32>
    %14 = arith.truncf %12 : vector<18x128xf32> to vector<18x128xbf16>
    %c0_8 = arith.constant 0 : index
    %c0_9 = arith.constant 0 : index
    %15 = vector.load %arg6[%c0_8, %c0_9] : memref<128x256xbf16, #tpu.memory_space<vmem>>, vector<128x256xbf16>
    %cst_10 = arith.constant dense<0.000000e+00> : vector<18x256xf32>
    %16 = tpu.matmul %14, %15, %cst_10 {dimension_numbers = #tpu.dot_dimension_numbers<[1], [0], [0], [1], [0, 0, 1, 1], [], []>} : vector<18x128xbf16>, vector<128x256xbf16>, vector<18x256xf32> -> vector<18x256xf32>
    %17 = arith.addf %13, %16 : vector<18x256xf32>
    %c0_11 = arith.constant 0 : index
    %c0_12 = arith.constant 0 : index
    %18 = vector.load %arg8[%c0_11, %c0_12] : memref<18x256xf32, #tpu.memory_space<vmem>>, vector<18x256xf32>
    tpu.vector_store %arg8[%c0_11, %c0_12], %17 {strides = array<i32>} : memref<18x256xf32, #tpu.memory_space<vmem>>, vector<18x256xf32>,
    %c0_i32_13 = arith.constant 0 : i32
    %19 = arith.cmpi eq, %arg2, %c0_i32_13 : i32
    %20 = arith.extui %19 : i1 to i32
    %c0_i32_14 = arith.constant 0 : i32
    %21 = arith.cmpi ne, %20, %c0_i32_14 : i32
    scf.if %21 {
      %c0_15 = arith.constant 0 : index
      %c0_16 = arith.constant 0 : index
      %22 = vector.load %arg8[%c0_15, %c0_16] : memref<18x256xf32, #tpu.memory_space<vmem>>, vector<18x256xf32>
      %23 = arith.truncf %22 : vector<18x256xf32> to vector<18x256xbf16>
      %c0_17 = arith.constant 0 : index
      %c0_18 = arith.constant 0 : index
      %24 = vector.load %arg7[%c0_17, %c0_18] : memref<18x256xbf16, #tpu.memory_space<vmem>>, vector<18x256xbf16>
      tpu.vector_store %arg7[%c0_17, %c0_18], %23 {strides = array<i32>} : memref<18x256xbf16, #tpu.memory_space<vmem>>, vector<18x256xbf16>,
    } else {
    }
    return
  }
  func.func @transform_0(%arg0: i32, %arg1: i32, %arg2: i32) -> (i32, i32) {
    %c0_i32 = arith.constant 0 : i32
    %c0_i32_0 = arith.constant 0 : i32
    return %c0_i32, %arg2 : i32, i32
  }
  func.func @transform_1(%arg0: i32, %arg1: i32, %arg2: i32) -> (i32, i32) {
    %c0_i32 = arith.constant 0 : i32
    %c0_i32_0 = arith.constant 0 : i32
    return %c0_i32, %arg2 : i32, i32
  }
  func.func @transform_2(%arg0: i32, %arg1: i32, %arg2: i32) -> (i32, i32) {
    %c0_i32 = arith.constant 0 : i32
    return %arg0, %arg2 : i32, i32
  }
  func.func @transform_3(%arg0: i32, %arg1: i32, %arg2: i32) -> (i32, i32) {
    %c0_i32 = arith.constant 0 : i32
    return %arg2, %arg1 : i32, i32
  }
  func.func @transform_4(%arg0: i32, %arg1: i32, %arg2: i32) -> (i32, i32) {
    %c0_i32 = arith.constant 0 : i32
    return %arg0, %arg1 : i32, i32
  }
}

module attributes {stable_mosaic.version = 11 : i64} {
  func.func @_mm_affine_kernel(%arg0: i32, %arg1: i32, %arg2: i32, %arg3: memref<1x384xf32, #tpu.memory_space<vmem>>, %arg4: memref<1x384xf32, #tpu.memory_space<vmem>>, %arg5: memref<18x384xbf16, #tpu.memory_space<vmem>>, %arg6: memref<384x128xbf16, #tpu.memory_space<vmem>>, %arg7: memref<18x128xbf16, #tpu.memory_space<vmem>>, %arg8: memref<18x128xf32, #tpu.memory_space<vmem>>) attributes {dimension_semantics = [#tpu.dimension_semantics<parallel>, #tpu.dimension_semantics<parallel>, #tpu.dimension_semantics<arbitrary>], iteration_bounds = array<i64: 1, 1, 3>, scalar_prefetch = 0 : i64, scratch_operands = 1 : i64, tpu.core_type = #tpu.core_type<tc>, window_params = [{transform_indices = @transform_0, window_bounds = array<i64: 1, 384>}, {transform_indices = @transform_1, window_bounds = array<i64: 1, 384>}, {transform_indices = @transform_2, window_bounds = array<i64: 18, 384>}, {transform_indices = @transform_3, window_bounds = array<i64: 384, 128>}, {transform_indices = @transform_4, window_bounds = array<i64: 18, 128>}]} {
    %c0_i32 = arith.constant 0 : i32
    %0 = arith.cmpi eq, %arg2, %c0_i32 : i32
    %1 = arith.extui %0 : i1 to i32
    %c0_i32_0 = arith.constant 0 : i32
    %2 = arith.cmpi ne, %1, %c0_i32_0 : i32
    scf.if %2 {
      %cst_14 = arith.constant 0.000000e+00 : f32
      %22 = vector.broadcast %cst_14 : f32 to vector<18x128xf32>
      %c0_15 = arith.constant 0 : index
      %c0_16 = arith.constant 0 : index
      %23 = vector.load %arg8[%c0_15, %c0_16] : memref<18x128xf32, #tpu.memory_space<vmem>>, vector<18x128xf32>
      tpu.vector_store %arg8[%c0_15, %c0_16], %22 {strides = array<i32>} : memref<18x128xf32, #tpu.memory_space<vmem>>, vector<18x128xf32>,
    } else {
    }
    %c0 = arith.constant 0 : index
    %c0_1 = arith.constant 0 : index
    %3 = vector.load %arg5[%c0, %c0_1] : memref<18x384xbf16, #tpu.memory_space<vmem>>, vector<18x384xbf16>
    %4 = arith.extf %3 : vector<18x384xbf16> to vector<18x384xf32>
    %c0_2 = arith.constant 0 : index
    %c0_3 = arith.constant 0 : index
    %5 = vector.load %arg3[%c0_2, %c0_3] : memref<1x384xf32, #tpu.memory_space<vmem>>, vector<1x384xf32>
    %6 = vector.broadcast %5 : vector<1x384xf32> to vector<18x384xf32>
    %7 = arith.mulf %4, %6 : vector<18x384xf32>
    %c0_4 = arith.constant 0 : index
    %c0_5 = arith.constant 0 : index
    %8 = vector.load %arg4[%c0_4, %c0_5] : memref<1x384xf32, #tpu.memory_space<vmem>>, vector<1x384xf32>
    %9 = vector.broadcast %8 : vector<1x384xf32> to vector<18x384xf32>
    %10 = arith.addf %7, %9 : vector<18x384xf32>
    %cst = arith.constant 0.000000e+00 : f32
    %11 = vector.broadcast %cst : f32 to vector<18x384xf32>
    %12 = arith.maximumf %10, %11 : vector<18x384xf32>
    %c0_6 = arith.constant 0 : index
    %c0_7 = arith.constant 0 : index
    %13 = vector.load %arg8[%c0_6, %c0_7] : memref<18x128xf32, #tpu.memory_space<vmem>>, vector<18x128xf32>
    %14 = arith.truncf %12 : vector<18x384xf32> to vector<18x384xbf16>
    %c0_8 = arith.constant 0 : index
    %c0_9 = arith.constant 0 : index
    %15 = vector.load %arg6[%c0_8, %c0_9] : memref<384x128xbf16, #tpu.memory_space<vmem>>, vector<384x128xbf16>
    %cst_10 = arith.constant dense<0.000000e+00> : vector<18x128xf32>
    %16 = tpu.matmul %14, %15, %cst_10 {dimension_numbers = #tpu.dot_dimension_numbers<[1], [0], [0], [1], [0, 0, 1, 1], [], []>} : vector<18x384xbf16>, vector<384x128xbf16>, vector<18x128xf32> -> vector<18x128xf32>
    %17 = arith.addf %13, %16 : vector<18x128xf32>
    %c0_11 = arith.constant 0 : index
    %c0_12 = arith.constant 0 : index
    %18 = vector.load %arg8[%c0_11, %c0_12] : memref<18x128xf32, #tpu.memory_space<vmem>>, vector<18x128xf32>
    tpu.vector_store %arg8[%c0_11, %c0_12], %17 {strides = array<i32>} : memref<18x128xf32, #tpu.memory_space<vmem>>, vector<18x128xf32>,
    %c2_i32 = arith.constant 2 : i32
    %19 = arith.cmpi eq, %arg2, %c2_i32 : i32
    %20 = arith.extui %19 : i1 to i32
    %c0_i32_13 = arith.constant 0 : i32
    %21 = arith.cmpi ne, %20, %c0_i32_13 : i32
    scf.if %21 {
      %c0_14 = arith.constant 0 : index
      %c0_15 = arith.constant 0 : index
      %22 = vector.load %arg8[%c0_14, %c0_15] : memref<18x128xf32, #tpu.memory_space<vmem>>, vector<18x128xf32>
      %23 = arith.truncf %22 : vector<18x128xf32> to vector<18x128xbf16>
      %c0_16 = arith.constant 0 : index
      %c0_17 = arith.constant 0 : index
      %24 = vector.load %arg7[%c0_16, %c0_17] : memref<18x128xbf16, #tpu.memory_space<vmem>>, vector<18x128xbf16>
      tpu.vector_store %arg7[%c0_16, %c0_17], %23 {strides = array<i32>} : memref<18x128xbf16, #tpu.memory_space<vmem>>, vector<18x128xbf16>,
    } else {
    }
    return
  }
  func.func @transform_0(%arg0: i32, %arg1: i32, %arg2: i32) -> (i32, i32) {
    %c0_i32 = arith.constant 0 : i32
    %c0_i32_0 = arith.constant 0 : i32
    return %c0_i32, %arg2 : i32, i32
  }
  func.func @transform_1(%arg0: i32, %arg1: i32, %arg2: i32) -> (i32, i32) {
    %c0_i32 = arith.constant 0 : i32
    %c0_i32_0 = arith.constant 0 : i32
    return %c0_i32, %arg2 : i32, i32
  }
  func.func @transform_2(%arg0: i32, %arg1: i32, %arg2: i32) -> (i32, i32) {
    %c0_i32 = arith.constant 0 : i32
    return %arg0, %arg2 : i32, i32
  }
  func.func @transform_3(%arg0: i32, %arg1: i32, %arg2: i32) -> (i32, i32) {
    %c0_i32 = arith.constant 0 : i32
    return %arg2, %arg1 : i32, i32
  }
  func.func @transform_4(%arg0: i32, %arg1: i32, %arg2: i32) -> (i32, i32) {
    %c0_i32 = arith.constant 0 : i32
    return %arg0, %arg1 : i32, i32
  }
}

module attributes {stable_mosaic.version = 11 : i64} {
  func.func @_bn_stats_kernel(%arg0: i32, %arg1: memref<18x512xbf16, #tpu.memory_space<vmem>>, %arg2: memref<2x512xf32, #tpu.memory_space<vmem>>) attributes {dimension_semantics = [#tpu.dimension_semantics<arbitrary>], iteration_bounds = array<i64: 1>, scalar_prefetch = 0 : i64, scratch_operands = 0 : i64, tpu.core_type = #tpu.core_type<tc>, window_params = [{transform_indices = @transform_0, window_bounds = array<i64: 18, 512>}, {pipeline_mode = #tpu.pipeline_mode<synchronous>, transform_indices = @transform_1, window_bounds = array<i64: 2, 512>}]} {
    %c0_i32 = arith.constant 0 : i32
    %0 = arith.cmpi eq, %arg0, %c0_i32 : i32
    %1 = arith.extui %0 : i1 to i32
    %c0_i32_0 = arith.constant 0 : i32
    %2 = arith.cmpi ne, %1, %c0_i32_0 : i32
    scf.if %2 {
      %cst_14 = arith.constant 0.000000e+00 : f32
      %27 = vector.broadcast %cst_14 : f32 to vector<2x512xf32>
      %c0_15 = arith.constant 0 : index
      %c0_16 = arith.constant 0 : index
      %28 = vector.load %arg2[%c0_15, %c0_16] : memref<2x512xf32, #tpu.memory_space<vmem>>, vector<2x512xf32>
      tpu.vector_store %arg2[%c0_15, %c0_16], %27 {strides = array<i32>} : memref<2x512xf32, #tpu.memory_space<vmem>>, vector<2x512xf32>,
    } else {
    }
    %c0 = arith.constant 0 : index
    %c0_1 = arith.constant 0 : index
    %3 = vector.load %arg1[%c0, %c0_1] : memref<18x512xbf16, #tpu.memory_space<vmem>>, vector<18x512xbf16>
    %4 = arith.extf %3 : vector<18x512xbf16> to vector<18x512xf32>
    %5 = tpu.iota {dimensions = array<i32: 0>} : vector<18x512xi32>
    %c18_i32 = arith.constant 18 : i32
    %6 = arith.muli %arg0, %c18_i32 : i32
    %7 = vector.broadcast %6 : i32 to vector<18x512xi32>
    %8 = arith.addi %5, %7 : vector<18x512xi32>
    %c18_i32_2 = arith.constant 18 : i32
    %9 = vector.broadcast %c18_i32_2 : i32 to vector<18x512xi32>
    %10 = arith.cmpi slt, %8, %9 : vector<18x512xi32>
    %cst = arith.constant 0.000000e+00 : f32
    %11 = vector.broadcast %cst : f32 to vector<18x512xf32>
    %12 = arith.select %10, %4, %11 : vector<18x512xi1>, vector<18x512xf32>
    %c0_3 = arith.constant 0 : index
    %c0_4 = arith.constant 0 : index
    %13 = vector.load %arg2[%c0_3, %c0_4] : memref<2x512xf32, #tpu.memory_space<vmem>>, vector<1x512xf32>
    %cst_5 = arith.constant dense<0.000000e+00> : vector<512xf32>
    %14 = vector.multi_reduction <add>, %12, %cst_5 [0] : vector<18x512xf32> to vector<512xf32>
    %15 = vector.shape_cast %14 : vector<512xf32> to vector<1x512xf32>
    %16 = arith.addf %13, %15 : vector<1x512xf32>
    %c0_6 = arith.constant 0 : index
    %c0_7 = arith.constant 0 : index
    %17 = vector.load %arg2[%c0_6, %c0_7] : memref<2x512xf32, #tpu.memory_space<vmem>>, vector<1x512xf32>
    tpu.vector_store %arg2[%c0_6, %c0_7], %16 {strides = array<i32>} : memref<2x512xf32, #tpu.memory_space<vmem>>, vector<1x512xf32>,
    %c1 = arith.constant 1 : index
    %c0_8 = arith.constant 0 : index
    %18 = vector.load %arg2[%c1, %c0_8] : memref<2x512xf32, #tpu.memory_space<vmem>>, vector<1x512xf32>
    %19 = arith.mulf %12, %12 : vector<18x512xf32>
    %cst_9 = arith.constant dense<0.000000e+00> : vector<512xf32>
    %20 = vector.multi_reduction <add>, %19, %cst_9 [0] : vector<18x512xf32> to vector<512xf32>
    %21 = vector.shape_cast %20 : vector<512xf32> to vector<1x512xf32>
    %22 = arith.addf %18, %21 : vector<1x512xf32>
    %c1_10 = arith.constant 1 : index
    %c0_11 = arith.constant 0 : index
    %23 = vector.load %arg2[%c1_10, %c0_11] : memref<2x512xf32, #tpu.memory_space<vmem>>, vector<1x512xf32>
    tpu.vector_store %arg2[%c1_10, %c0_11], %22 {strides = array<i32>} : memref<2x512xf32, #tpu.memory_space<vmem>>, vector<1x512xf32>,
    %c0_i32_12 = arith.constant 0 : i32
    %24 = arith.cmpi eq, %arg0, %c0_i32_12 : i32
    %25 = arith.extui %24 : i1 to i32
    %c0_i32_13 = arith.constant 0 : i32
    %26 = arith.cmpi ne, %25, %c0_i32_13 : i32
    scf.if %26 {
      %c0_14 = arith.constant 0 : index
      %c0_15 = arith.constant 0 : index
      %27 = vector.load %arg2[%c0_14, %c0_15] : memref<2x512xf32, #tpu.memory_space<vmem>>, vector<1x512xf32>
      %cst_16 = arith.constant 0.055555556 : f32
      %28 = vector.broadcast %cst_16 : f32 to vector<1x512xf32>
      %29 = arith.mulf %27, %28 : vector<1x512xf32>
      %c1_17 = arith.constant 1 : index
      %c0_18 = arith.constant 0 : index
      %30 = vector.load %arg2[%c1_17, %c0_18] : memref<2x512xf32, #tpu.memory_space<vmem>>, vector<1x512xf32>
      %cst_19 = arith.constant 0.055555556 : f32
      %31 = vector.broadcast %cst_19 : f32 to vector<1x512xf32>
      %32 = arith.mulf %30, %31 : vector<1x512xf32>
      %33 = arith.mulf %29, %29 : vector<1x512xf32>
      %34 = arith.subf %32, %33 : vector<1x512xf32>
      %cst_20 = arith.constant 9.99999974E-6 : f32
      %35 = vector.broadcast %cst_20 : f32 to vector<1x512xf32>
      %36 = arith.addf %34, %35 : vector<1x512xf32>
      %37 = math.rsqrt %36 : vector<1x512xf32>
      %c0_21 = arith.constant 0 : index
      %c0_22 = arith.constant 0 : index
      %38 = vector.load %arg2[%c0_21, %c0_22] : memref<2x512xf32, #tpu.memory_space<vmem>>, vector<1x512xf32>
      tpu.vector_store %arg2[%c0_21, %c0_22], %37 {strides = array<i32>} : memref<2x512xf32, #tpu.memory_space<vmem>>, vector<1x512xf32>,
      %cst_23 = arith.constant 0.000000e+00 : f32
      %39 = vector.broadcast %cst_23 : f32 to vector<1x512xf32>
      %40 = arith.subf %39, %29 : vector<1x512xf32>
      %41 = arith.mulf %40, %37 : vector<1x512xf32>
      %c1_24 = arith.constant 1 : index
      %c0_25 = arith.constant 0 : index
      %42 = vector.load %arg2[%c1_24, %c0_25] : memref<2x512xf32, #tpu.memory_space<vmem>>, vector<1x512xf32>
      tpu.vector_store %arg2[%c1_24, %c0_25], %41 {strides = array<i32>} : memref<2x512xf32, #tpu.memory_space<vmem>>, vector<1x512xf32>,
    } else {
    }
    return
  }
  func.func @transform_0(%arg0: i32) -> (i32, i32) {
    %c0_i32 = arith.constant 0 : i32
    %c0_i32_0 = arith.constant 0 : i32
    return %arg0, %c0_i32 : i32, i32
  }
  func.func @transform_1(%arg0: i32) -> (i32, i32) {
    %c0_i32 = arith.constant 0 : i32
    %c0_i32_0 = arith.constant 0 : i32
    %c0_i32_1 = arith.constant 0 : i32
    return %c0_i32, %c0_i32_0 : i32, i32
  }
}

module attributes {stable_mosaic.version = 11 : i64} {
  func.func @_mm_plain_kernel(%arg0: i32, %arg1: i32, %arg2: i32, %arg3: memref<18x256xbf16, #tpu.memory_space<vmem>>, %arg4: memref<256x256xbf16, #tpu.memory_space<vmem>>, %arg5: memref<18x256xbf16, #tpu.memory_space<vmem>>, %arg6: memref<18x256xf32, #tpu.memory_space<vmem>>) attributes {dimension_semantics = [#tpu.dimension_semantics<parallel>, #tpu.dimension_semantics<parallel>, #tpu.dimension_semantics<arbitrary>], iteration_bounds = array<i64: 1, 2, 1>, scalar_prefetch = 0 : i64, scratch_operands = 1 : i64, tpu.core_type = #tpu.core_type<tc>, window_params = [{transform_indices = @transform_0, window_bounds = array<i64: 18, 256>}, {transform_indices = @transform_1, window_bounds = array<i64: 256, 256>}, {transform_indices = @transform_2, window_bounds = array<i64: 18, 256>}]} {
    %c0_i32 = arith.constant 0 : i32
    %0 = arith.cmpi eq, %arg2, %c0_i32 : i32
    %1 = arith.extui %0 : i1 to i32
    %c0_i32_0 = arith.constant 0 : i32
    %2 = arith.cmpi ne, %1, %c0_i32_0 : i32
    scf.if %2 {
      %cst_10 = arith.constant 0.000000e+00 : f32
      %12 = vector.broadcast %cst_10 : f32 to vector<18x256xf32>
      %c0_11 = arith.constant 0 : index
      %c0_12 = arith.constant 0 : index
      %13 = vector.load %arg6[%c0_11, %c0_12] : memref<18x256xf32, #tpu.memory_space<vmem>>, vector<18x256xf32>
      tpu.vector_store %arg6[%c0_11, %c0_12], %12 {strides = array<i32>} : memref<18x256xf32, #tpu.memory_space<vmem>>, vector<18x256xf32>,
    } else {
    }
    %c0 = arith.constant 0 : index
    %c0_1 = arith.constant 0 : index
    %3 = vector.load %arg6[%c0, %c0_1] : memref<18x256xf32, #tpu.memory_space<vmem>>, vector<18x256xf32>
    %c0_2 = arith.constant 0 : index
    %c0_3 = arith.constant 0 : index
    %4 = vector.load %arg3[%c0_2, %c0_3] : memref<18x256xbf16, #tpu.memory_space<vmem>>, vector<18x256xbf16>
    %c0_4 = arith.constant 0 : index
    %c0_5 = arith.constant 0 : index
    %5 = vector.load %arg4[%c0_4, %c0_5] : memref<256x256xbf16, #tpu.memory_space<vmem>>, vector<256x256xbf16>
    %cst = arith.constant dense<0.000000e+00> : vector<18x256xf32>
    %6 = tpu.matmul %4, %5, %cst {dimension_numbers = #tpu.dot_dimension_numbers<[1], [0], [0], [1], [0, 0, 1, 1], [], []>} : vector<18x256xbf16>, vector<256x256xbf16>, vector<18x256xf32> -> vector<18x256xf32>
    %7 = arith.addf %3, %6 : vector<18x256xf32>
    %c0_6 = arith.constant 0 : index
    %c0_7 = arith.constant 0 : index
    %8 = vector.load %arg6[%c0_6, %c0_7] : memref<18x256xf32, #tpu.memory_space<vmem>>, vector<18x256xf32>
    tpu.vector_store %arg6[%c0_6, %c0_7], %7 {strides = array<i32>} : memref<18x256xf32, #tpu.memory_space<vmem>>, vector<18x256xf32>,
    %c0_i32_8 = arith.constant 0 : i32
    %9 = arith.cmpi eq, %arg2, %c0_i32_8 : i32
    %10 = arith.extui %9 : i1 to i32
    %c0_i32_9 = arith.constant 0 : i32
    %11 = arith.cmpi ne, %10, %c0_i32_9 : i32
    scf.if %11 {
      %c0_10 = arith.constant 0 : index
      %c0_11 = arith.constant 0 : index
      %12 = vector.load %arg6[%c0_10, %c0_11] : memref<18x256xf32, #tpu.memory_space<vmem>>, vector<18x256xf32>
      %13 = arith.truncf %12 : vector<18x256xf32> to vector<18x256xbf16>
      %c0_12 = arith.constant 0 : index
      %c0_13 = arith.constant 0 : index
      %14 = vector.load %arg5[%c0_12, %c0_13] : memref<18x256xbf16, #tpu.memory_space<vmem>>, vector<18x256xbf16>
      tpu.vector_store %arg5[%c0_12, %c0_13], %13 {strides = array<i32>} : memref<18x256xbf16, #tpu.memory_space<vmem>>, vector<18x256xbf16>,
    } else {
    }
    return
  }
  func.func @transform_0(%arg0: i32, %arg1: i32, %arg2: i32) -> (i32, i32) {
    %c0_i32 = arith.constant 0 : i32
    return %arg0, %arg2 : i32, i32
  }
  func.func @transform_1(%arg0: i32, %arg1: i32, %arg2: i32) -> (i32, i32) {
    %c0_i32 = arith.constant 0 : i32
    return %arg2, %arg1 : i32, i32
  }
  func.func @transform_2(%arg0: i32, %arg1: i32, %arg2: i32) -> (i32, i32) {
    %c0_i32 = arith.constant 0 : i32
    return %arg0, %arg1 : i32, i32
  }
}

module attributes {stable_mosaic.version = 11 : i64} {
  func.func @_bn_stats_kernel(%arg0: i32, %arg1: memref<18x128xbf16, #tpu.memory_space<vmem>>, %arg2: memref<2x128xf32, #tpu.memory_space<vmem>>) attributes {dimension_semantics = [#tpu.dimension_semantics<arbitrary>], iteration_bounds = array<i64: 1>, scalar_prefetch = 0 : i64, scratch_operands = 0 : i64, tpu.core_type = #tpu.core_type<tc>, window_params = [{transform_indices = @transform_0, window_bounds = array<i64: 18, 128>}, {pipeline_mode = #tpu.pipeline_mode<synchronous>, transform_indices = @transform_1, window_bounds = array<i64: 2, 128>}]} {
    %c0_i32 = arith.constant 0 : i32
    %0 = arith.cmpi eq, %arg0, %c0_i32 : i32
    %1 = arith.extui %0 : i1 to i32
    %c0_i32_0 = arith.constant 0 : i32
    %2 = arith.cmpi ne, %1, %c0_i32_0 : i32
    scf.if %2 {
      %cst_14 = arith.constant 0.000000e+00 : f32
      %27 = vector.broadcast %cst_14 : f32 to vector<2x128xf32>
      %c0_15 = arith.constant 0 : index
      %c0_16 = arith.constant 0 : index
      %28 = vector.load %arg2[%c0_15, %c0_16] : memref<2x128xf32, #tpu.memory_space<vmem>>, vector<2x128xf32>
      tpu.vector_store %arg2[%c0_15, %c0_16], %27 {strides = array<i32>} : memref<2x128xf32, #tpu.memory_space<vmem>>, vector<2x128xf32>,
    } else {
    }
    %c0 = arith.constant 0 : index
    %c0_1 = arith.constant 0 : index
    %3 = vector.load %arg1[%c0, %c0_1] : memref<18x128xbf16, #tpu.memory_space<vmem>>, vector<18x128xbf16>
    %4 = arith.extf %3 : vector<18x128xbf16> to vector<18x128xf32>
    %5 = tpu.iota {dimensions = array<i32: 0>} : vector<18x128xi32>
    %c18_i32 = arith.constant 18 : i32
    %6 = arith.muli %arg0, %c18_i32 : i32
    %7 = vector.broadcast %6 : i32 to vector<18x128xi32>
    %8 = arith.addi %5, %7 : vector<18x128xi32>
    %c18_i32_2 = arith.constant 18 : i32
    %9 = vector.broadcast %c18_i32_2 : i32 to vector<18x128xi32>
    %10 = arith.cmpi slt, %8, %9 : vector<18x128xi32>
    %cst = arith.constant 0.000000e+00 : f32
    %11 = vector.broadcast %cst : f32 to vector<18x128xf32>
    %12 = arith.select %10, %4, %11 : vector<18x128xi1>, vector<18x128xf32>
    %c0_3 = arith.constant 0 : index
    %c0_4 = arith.constant 0 : index
    %13 = vector.load %arg2[%c0_3, %c0_4] : memref<2x128xf32, #tpu.memory_space<vmem>>, vector<1x128xf32>
    %cst_5 = arith.constant dense<0.000000e+00> : vector<128xf32>
    %14 = vector.multi_reduction <add>, %12, %cst_5 [0] : vector<18x128xf32> to vector<128xf32>
    %15 = vector.shape_cast %14 : vector<128xf32> to vector<1x128xf32>
    %16 = arith.addf %13, %15 : vector<1x128xf32>
    %c0_6 = arith.constant 0 : index
    %c0_7 = arith.constant 0 : index
    %17 = vector.load %arg2[%c0_6, %c0_7] : memref<2x128xf32, #tpu.memory_space<vmem>>, vector<1x128xf32>
    tpu.vector_store %arg2[%c0_6, %c0_7], %16 {strides = array<i32>} : memref<2x128xf32, #tpu.memory_space<vmem>>, vector<1x128xf32>,
    %c1 = arith.constant 1 : index
    %c0_8 = arith.constant 0 : index
    %18 = vector.load %arg2[%c1, %c0_8] : memref<2x128xf32, #tpu.memory_space<vmem>>, vector<1x128xf32>
    %19 = arith.mulf %12, %12 : vector<18x128xf32>
    %cst_9 = arith.constant dense<0.000000e+00> : vector<128xf32>
    %20 = vector.multi_reduction <add>, %19, %cst_9 [0] : vector<18x128xf32> to vector<128xf32>
    %21 = vector.shape_cast %20 : vector<128xf32> to vector<1x128xf32>
    %22 = arith.addf %18, %21 : vector<1x128xf32>
    %c1_10 = arith.constant 1 : index
    %c0_11 = arith.constant 0 : index
    %23 = vector.load %arg2[%c1_10, %c0_11] : memref<2x128xf32, #tpu.memory_space<vmem>>, vector<1x128xf32>
    tpu.vector_store %arg2[%c1_10, %c0_11], %22 {strides = array<i32>} : memref<2x128xf32, #tpu.memory_space<vmem>>, vector<1x128xf32>,
    %c0_i32_12 = arith.constant 0 : i32
    %24 = arith.cmpi eq, %arg0, %c0_i32_12 : i32
    %25 = arith.extui %24 : i1 to i32
    %c0_i32_13 = arith.constant 0 : i32
    %26 = arith.cmpi ne, %25, %c0_i32_13 : i32
    scf.if %26 {
      %c0_14 = arith.constant 0 : index
      %c0_15 = arith.constant 0 : index
      %27 = vector.load %arg2[%c0_14, %c0_15] : memref<2x128xf32, #tpu.memory_space<vmem>>, vector<1x128xf32>
      %cst_16 = arith.constant 0.055555556 : f32
      %28 = vector.broadcast %cst_16 : f32 to vector<1x128xf32>
      %29 = arith.mulf %27, %28 : vector<1x128xf32>
      %c1_17 = arith.constant 1 : index
      %c0_18 = arith.constant 0 : index
      %30 = vector.load %arg2[%c1_17, %c0_18] : memref<2x128xf32, #tpu.memory_space<vmem>>, vector<1x128xf32>
      %cst_19 = arith.constant 0.055555556 : f32
      %31 = vector.broadcast %cst_19 : f32 to vector<1x128xf32>
      %32 = arith.mulf %30, %31 : vector<1x128xf32>
      %33 = arith.mulf %29, %29 : vector<1x128xf32>
      %34 = arith.subf %32, %33 : vector<1x128xf32>
      %cst_20 = arith.constant 9.99999974E-6 : f32
      %35 = vector.broadcast %cst_20 : f32 to vector<1x128xf32>
      %36 = arith.addf %34, %35 : vector<1x128xf32>
      %37 = math.rsqrt %36 : vector<1x128xf32>
      %c0_21 = arith.constant 0 : index
      %c0_22 = arith.constant 0 : index
      %38 = vector.load %arg2[%c0_21, %c0_22] : memref<2x128xf32, #tpu.memory_space<vmem>>, vector<1x128xf32>
      tpu.vector_store %arg2[%c0_21, %c0_22], %37 {strides = array<i32>} : memref<2x128xf32, #tpu.memory_space<vmem>>, vector<1x128xf32>,
      %cst_23 = arith.constant 0.000000e+00 : f32
      %39 = vector.broadcast %cst_23 : f32 to vector<1x128xf32>
      %40 = arith.subf %39, %29 : vector<1x128xf32>
      %41 = arith.mulf %40, %37 : vector<1x128xf32>
      %c1_24 = arith.constant 1 : index
      %c0_25 = arith.constant 0 : index
      %42 = vector.load %arg2[%c1_24, %c0_25] : memref<2x128xf32, #tpu.memory_space<vmem>>, vector<1x128xf32>
      tpu.vector_store %arg2[%c1_24, %c0_25], %41 {strides = array<i32>} : memref<2x128xf32, #tpu.memory_space<vmem>>, vector<1x128xf32>,
    } else {
    }
    return
  }
  func.func @transform_0(%arg0: i32) -> (i32, i32) {
    %c0_i32 = arith.constant 0 : i32
    %c0_i32_0 = arith.constant 0 : i32
    return %arg0, %c0_i32 : i32, i32
  }
  func.func @transform_1(%arg0: i32) -> (i32, i32) {
    %c0_i32 = arith.constant 0 : i32
    %c0_i32_0 = arith.constant 0 : i32
    %c0_i32_1 = arith.constant 0 : i32
    return %c0_i32, %c0_i32_0 : i32, i32
  }
}

module attributes {stable_mosaic.version = 11 : i64} {
  func.func @_mm_plain_kernel(%arg0: i32, %arg1: i32, %arg2: i32, %arg3: memref<18x512xbf16, #tpu.memory_space<vmem>>, %arg4: memref<512x256xbf16, #tpu.memory_space<vmem>>, %arg5: memref<18x256xbf16, #tpu.memory_space<vmem>>, %arg6: memref<18x256xf32, #tpu.memory_space<vmem>>) attributes {dimension_semantics = [#tpu.dimension_semantics<parallel>, #tpu.dimension_semantics<parallel>, #tpu.dimension_semantics<arbitrary>], iteration_bounds = array<i64: 1, 1, 1>, scalar_prefetch = 0 : i64, scratch_operands = 1 : i64, tpu.core_type = #tpu.core_type<tc>, window_params = [{transform_indices = @transform_0, window_bounds = array<i64: 18, 512>}, {transform_indices = @transform_1, window_bounds = array<i64: 512, 256>}, {transform_indices = @transform_2, window_bounds = array<i64: 18, 256>}]} {
    %c0_i32 = arith.constant 0 : i32
    %0 = arith.cmpi eq, %arg2, %c0_i32 : i32
    %1 = arith.extui %0 : i1 to i32
    %c0_i32_0 = arith.constant 0 : i32
    %2 = arith.cmpi ne, %1, %c0_i32_0 : i32
    scf.if %2 {
      %cst_10 = arith.constant 0.000000e+00 : f32
      %12 = vector.broadcast %cst_10 : f32 to vector<18x256xf32>
      %c0_11 = arith.constant 0 : index
      %c0_12 = arith.constant 0 : index
      %13 = vector.load %arg6[%c0_11, %c0_12] : memref<18x256xf32, #tpu.memory_space<vmem>>, vector<18x256xf32>
      tpu.vector_store %arg6[%c0_11, %c0_12], %12 {strides = array<i32>} : memref<18x256xf32, #tpu.memory_space<vmem>>, vector<18x256xf32>,
    } else {
    }
    %c0 = arith.constant 0 : index
    %c0_1 = arith.constant 0 : index
    %3 = vector.load %arg6[%c0, %c0_1] : memref<18x256xf32, #tpu.memory_space<vmem>>, vector<18x256xf32>
    %c0_2 = arith.constant 0 : index
    %c0_3 = arith.constant 0 : index
    %4 = vector.load %arg3[%c0_2, %c0_3] : memref<18x512xbf16, #tpu.memory_space<vmem>>, vector<18x512xbf16>
    %c0_4 = arith.constant 0 : index
    %c0_5 = arith.constant 0 : index
    %5 = vector.load %arg4[%c0_4, %c0_5] : memref<512x256xbf16, #tpu.memory_space<vmem>>, vector<512x256xbf16>
    %cst = arith.constant dense<0.000000e+00> : vector<18x256xf32>
    %6 = tpu.matmul %4, %5, %cst {dimension_numbers = #tpu.dot_dimension_numbers<[1], [0], [0], [1], [0, 0, 1, 1], [], []>} : vector<18x512xbf16>, vector<512x256xbf16>, vector<18x256xf32> -> vector<18x256xf32>
    %7 = arith.addf %3, %6 : vector<18x256xf32>
    %c0_6 = arith.constant 0 : index
    %c0_7 = arith.constant 0 : index
    %8 = vector.load %arg6[%c0_6, %c0_7] : memref<18x256xf32, #tpu.memory_space<vmem>>, vector<18x256xf32>
    tpu.vector_store %arg6[%c0_6, %c0_7], %7 {strides = array<i32>} : memref<18x256xf32, #tpu.memory_space<vmem>>, vector<18x256xf32>,
    %c0_i32_8 = arith.constant 0 : i32
    %9 = arith.cmpi eq, %arg2, %c0_i32_8 : i32
    %10 = arith.extui %9 : i1 to i32
    %c0_i32_9 = arith.constant 0 : i32
    %11 = arith.cmpi ne, %10, %c0_i32_9 : i32
    scf.if %11 {
      %c0_10 = arith.constant 0 : index
      %c0_11 = arith.constant 0 : index
      %12 = vector.load %arg6[%c0_10, %c0_11] : memref<18x256xf32, #tpu.memory_space<vmem>>, vector<18x256xf32>
      %13 = arith.truncf %12 : vector<18x256xf32> to vector<18x256xbf16>
      %c0_12 = arith.constant 0 : index
      %c0_13 = arith.constant 0 : index
      %14 = vector.load %arg5[%c0_12, %c0_13] : memref<18x256xbf16, #tpu.memory_space<vmem>>, vector<18x256xbf16>
      tpu.vector_store %arg5[%c0_12, %c0_13], %13 {strides = array<i32>} : memref<18x256xbf16, #tpu.memory_space<vmem>>, vector<18x256xbf16>,
    } else {
    }
    return
  }
  func.func @transform_0(%arg0: i32, %arg1: i32, %arg2: i32) -> (i32, i32) {
    %c0_i32 = arith.constant 0 : i32
    return %arg0, %arg2 : i32, i32
  }
  func.func @transform_1(%arg0: i32, %arg1: i32, %arg2: i32) -> (i32, i32) {
    %c0_i32 = arith.constant 0 : i32
    return %arg2, %arg1 : i32, i32
  }
  func.func @transform_2(%arg0: i32, %arg1: i32, %arg2: i32) -> (i32, i32) {
    %c0_i32 = arith.constant 0 : i32
    return %arg0, %arg1 : i32, i32
  }
}

module attributes {stable_mosaic.version = 11 : i64} {
  func.func @_tail_kernel(%arg0: i32, %arg1: memref<1x512xf32, #tpu.memory_space<vmem>>, %arg2: memref<1x512xf32, #tpu.memory_space<vmem>>, %arg3: memref<1x512xf32, #tpu.memory_space<vmem>>, %arg4: memref<1x512xf32, #tpu.memory_space<vmem>>, %arg5: memref<18x512xbf16, #tpu.memory_space<vmem>>, %arg6: memref<18x512xbf16, #tpu.memory_space<vmem>>, %arg7: memref<18x512xbf16, #tpu.memory_space<vmem>>) attributes {dimension_semantics = [#tpu.dimension_semantics<parallel>], iteration_bounds = array<i64: 1>, scalar_prefetch = 0 : i64, scratch_operands = 0 : i64, tpu.core_type = #tpu.core_type<tc>, window_params = [{pipeline_mode = #tpu.pipeline_mode<synchronous>, transform_indices = @transform_0, window_bounds = array<i64: 1, 512>}, {pipeline_mode = #tpu.pipeline_mode<synchronous>, transform_indices = @transform_1, window_bounds = array<i64: 1, 512>}, {pipeline_mode = #tpu.pipeline_mode<synchronous>, transform_indices = @transform_2, window_bounds = array<i64: 1, 512>}, {pipeline_mode = #tpu.pipeline_mode<synchronous>, transform_indices = @transform_3, window_bounds = array<i64: 1, 512>}, {transform_indices = @transform_4, window_bounds = array<i64: 18, 512>}, {transform_indices = @transform_5, window_bounds = array<i64: 18, 512>}, {transform_indices = @transform_6, window_bounds = array<i64: 18, 512>}]} {
    %c0 = arith.constant 0 : index
    %c0_0 = arith.constant 0 : index
    %0 = vector.load %arg5[%c0, %c0_0] : memref<18x512xbf16, #tpu.memory_space<vmem>>, vector<18x512xbf16>
    %1 = arith.extf %0 : vector<18x512xbf16> to vector<18x512xf32>
    %c0_1 = arith.constant 0 : index
    %c0_2 = arith.constant 0 : index
    %2 = vector.load %arg1[%c0_1, %c0_2] : memref<1x512xf32, #tpu.memory_space<vmem>>, vector<1x512xf32>
    %3 = vector.broadcast %2 : vector<1x512xf32> to vector<18x512xf32>
    %4 = arith.mulf %1, %3 : vector<18x512xf32>
    %c0_3 = arith.constant 0 : index
    %c0_4 = arith.constant 0 : index
    %5 = vector.load %arg2[%c0_3, %c0_4] : memref<1x512xf32, #tpu.memory_space<vmem>>, vector<1x512xf32>
    %6 = vector.broadcast %5 : vector<1x512xf32> to vector<18x512xf32>
    %7 = arith.addf %4, %6 : vector<18x512xf32>
    %c0_5 = arith.constant 0 : index
    %c0_6 = arith.constant 0 : index
    %8 = vector.load %arg6[%c0_5, %c0_6] : memref<18x512xbf16, #tpu.memory_space<vmem>>, vector<18x512xbf16>
    %9 = arith.extf %8 : vector<18x512xbf16> to vector<18x512xf32>
    %c0_7 = arith.constant 0 : index
    %c0_8 = arith.constant 0 : index
    %10 = vector.load %arg3[%c0_7, %c0_8] : memref<1x512xf32, #tpu.memory_space<vmem>>, vector<1x512xf32>
    %11 = vector.broadcast %10 : vector<1x512xf32> to vector<18x512xf32>
    %12 = arith.mulf %9, %11 : vector<18x512xf32>
    %c0_9 = arith.constant 0 : index
    %c0_10 = arith.constant 0 : index
    %13 = vector.load %arg4[%c0_9, %c0_10] : memref<1x512xf32, #tpu.memory_space<vmem>>, vector<1x512xf32>
    %14 = vector.broadcast %13 : vector<1x512xf32> to vector<18x512xf32>
    %15 = arith.addf %12, %14 : vector<18x512xf32>
    %16 = arith.addf %7, %15 : vector<18x512xf32>
    %cst = arith.constant 0.000000e+00 : f32
    %17 = vector.broadcast %cst : f32 to vector<18x512xf32>
    %18 = arith.maximumf %16, %17 : vector<18x512xf32>
    %19 = arith.truncf %18 : vector<18x512xf32> to vector<18x512xbf16>
    %c0_11 = arith.constant 0 : index
    %c0_12 = arith.constant 0 : index
    %20 = vector.load %arg7[%c0_11, %c0_12] : memref<18x512xbf16, #tpu.memory_space<vmem>>, vector<18x512xbf16>
    tpu.vector_store %arg7[%c0_11, %c0_12], %19 {strides = array<i32>} : memref<18x512xbf16, #tpu.memory_space<vmem>>, vector<18x512xbf16>,
    return
  }
  func.func @transform_0(%arg0: i32) -> (i32, i32) {
    %c0_i32 = arith.constant 0 : i32
    %c0_i32_0 = arith.constant 0 : i32
    %c0_i32_1 = arith.constant 0 : i32
    return %c0_i32, %c0_i32_0 : i32, i32
  }
  func.func @transform_1(%arg0: i32) -> (i32, i32) {
    %c0_i32 = arith.constant 0 : i32
    %c0_i32_0 = arith.constant 0 : i32
    %c0_i32_1 = arith.constant 0 : i32
    return %c0_i32, %c0_i32_0 : i32, i32
  }
  func.func @transform_2(%arg0: i32) -> (i32, i32) {
    %c0_i32 = arith.constant 0 : i32
    %c0_i32_0 = arith.constant 0 : i32
    %c0_i32_1 = arith.constant 0 : i32
    return %c0_i32, %c0_i32_0 : i32, i32
  }
  func.func @transform_3(%arg0: i32) -> (i32, i32) {
    %c0_i32 = arith.constant 0 : i32
    %c0_i32_0 = arith.constant 0 : i32
    %c0_i32_1 = arith.constant 0 : i32
    return %c0_i32, %c0_i32_0 : i32, i32
  }
  func.func @transform_4(%arg0: i32) -> (i32, i32) {
    %c0_i32 = arith.constant 0 : i32
    %c0_i32_0 = arith.constant 0 : i32
    return %arg0, %c0_i32 : i32, i32
  }
  func.func @transform_5(%arg0: i32) -> (i32, i32) {
    %c0_i32 = arith.constant 0 : i32
    %c0_i32_0 = arith.constant 0 : i32
    return %arg0, %c0_i32 : i32, i32
  }
  func.func @transform_6(%arg0: i32) -> (i32, i32) {
    %c0_i32 = arith.constant 0 : i32
    %c0_i32_0 = arith.constant 0 : i32
    return %arg0, %c0_i32 : i32, i32
  }
}

module attributes {stable_mosaic.version = 11 : i64} {
  func.func @_bn_stats_kernel(%arg0: i32, %arg1: memref<18x256xbf16, #tpu.memory_space<vmem>>, %arg2: memref<2x256xf32, #tpu.memory_space<vmem>>) attributes {dimension_semantics = [#tpu.dimension_semantics<arbitrary>], iteration_bounds = array<i64: 1>, scalar_prefetch = 0 : i64, scratch_operands = 0 : i64, tpu.core_type = #tpu.core_type<tc>, window_params = [{transform_indices = @transform_0, window_bounds = array<i64: 18, 256>}, {pipeline_mode = #tpu.pipeline_mode<synchronous>, transform_indices = @transform_1, window_bounds = array<i64: 2, 256>}]} {
    %c0_i32 = arith.constant 0 : i32
    %0 = arith.cmpi eq, %arg0, %c0_i32 : i32
    %1 = arith.extui %0 : i1 to i32
    %c0_i32_0 = arith.constant 0 : i32
    %2 = arith.cmpi ne, %1, %c0_i32_0 : i32
    scf.if %2 {
      %cst_14 = arith.constant 0.000000e+00 : f32
      %27 = vector.broadcast %cst_14 : f32 to vector<2x256xf32>
      %c0_15 = arith.constant 0 : index
      %c0_16 = arith.constant 0 : index
      %28 = vector.load %arg2[%c0_15, %c0_16] : memref<2x256xf32, #tpu.memory_space<vmem>>, vector<2x256xf32>
      tpu.vector_store %arg2[%c0_15, %c0_16], %27 {strides = array<i32>} : memref<2x256xf32, #tpu.memory_space<vmem>>, vector<2x256xf32>,
    } else {
    }
    %c0 = arith.constant 0 : index
    %c0_1 = arith.constant 0 : index
    %3 = vector.load %arg1[%c0, %c0_1] : memref<18x256xbf16, #tpu.memory_space<vmem>>, vector<18x256xbf16>
    %4 = arith.extf %3 : vector<18x256xbf16> to vector<18x256xf32>
    %5 = tpu.iota {dimensions = array<i32: 0>} : vector<18x256xi32>
    %c18_i32 = arith.constant 18 : i32
    %6 = arith.muli %arg0, %c18_i32 : i32
    %7 = vector.broadcast %6 : i32 to vector<18x256xi32>
    %8 = arith.addi %5, %7 : vector<18x256xi32>
    %c18_i32_2 = arith.constant 18 : i32
    %9 = vector.broadcast %c18_i32_2 : i32 to vector<18x256xi32>
    %10 = arith.cmpi slt, %8, %9 : vector<18x256xi32>
    %cst = arith.constant 0.000000e+00 : f32
    %11 = vector.broadcast %cst : f32 to vector<18x256xf32>
    %12 = arith.select %10, %4, %11 : vector<18x256xi1>, vector<18x256xf32>
    %c0_3 = arith.constant 0 : index
    %c0_4 = arith.constant 0 : index
    %13 = vector.load %arg2[%c0_3, %c0_4] : memref<2x256xf32, #tpu.memory_space<vmem>>, vector<1x256xf32>
    %cst_5 = arith.constant dense<0.000000e+00> : vector<256xf32>
    %14 = vector.multi_reduction <add>, %12, %cst_5 [0] : vector<18x256xf32> to vector<256xf32>
    %15 = vector.shape_cast %14 : vector<256xf32> to vector<1x256xf32>
    %16 = arith.addf %13, %15 : vector<1x256xf32>
    %c0_6 = arith.constant 0 : index
    %c0_7 = arith.constant 0 : index
    %17 = vector.load %arg2[%c0_6, %c0_7] : memref<2x256xf32, #tpu.memory_space<vmem>>, vector<1x256xf32>
    tpu.vector_store %arg2[%c0_6, %c0_7], %16 {strides = array<i32>} : memref<2x256xf32, #tpu.memory_space<vmem>>, vector<1x256xf32>,
    %c1 = arith.constant 1 : index
    %c0_8 = arith.constant 0 : index
    %18 = vector.load %arg2[%c1, %c0_8] : memref<2x256xf32, #tpu.memory_space<vmem>>, vector<1x256xf32>
    %19 = arith.mulf %12, %12 : vector<18x256xf32>
    %cst_9 = arith.constant dense<0.000000e+00> : vector<256xf32>
    %20 = vector.multi_reduction <add>, %19, %cst_9 [0] : vector<18x256xf32> to vector<256xf32>
    %21 = vector.shape_cast %20 : vector<256xf32> to vector<1x256xf32>
    %22 = arith.addf %18, %21 : vector<1x256xf32>
    %c1_10 = arith.constant 1 : index
    %c0_11 = arith.constant 0 : index
    %23 = vector.load %arg2[%c1_10, %c0_11] : memref<2x256xf32, #tpu.memory_space<vmem>>, vector<1x256xf32>
    tpu.vector_store %arg2[%c1_10, %c0_11], %22 {strides = array<i32>} : memref<2x256xf32, #tpu.memory_space<vmem>>, vector<1x256xf32>,
    %c0_i32_12 = arith.constant 0 : i32
    %24 = arith.cmpi eq, %arg0, %c0_i32_12 : i32
    %25 = arith.extui %24 : i1 to i32
    %c0_i32_13 = arith.constant 0 : i32
    %26 = arith.cmpi ne, %25, %c0_i32_13 : i32
    scf.if %26 {
      %c0_14 = arith.constant 0 : index
      %c0_15 = arith.constant 0 : index
      %27 = vector.load %arg2[%c0_14, %c0_15] : memref<2x256xf32, #tpu.memory_space<vmem>>, vector<1x256xf32>
      %cst_16 = arith.constant 0.055555556 : f32
      %28 = vector.broadcast %cst_16 : f32 to vector<1x256xf32>
      %29 = arith.mulf %27, %28 : vector<1x256xf32>
      %c1_17 = arith.constant 1 : index
      %c0_18 = arith.constant 0 : index
      %30 = vector.load %arg2[%c1_17, %c0_18] : memref<2x256xf32, #tpu.memory_space<vmem>>, vector<1x256xf32>
      %cst_19 = arith.constant 0.055555556 : f32
      %31 = vector.broadcast %cst_19 : f32 to vector<1x256xf32>
      %32 = arith.mulf %30, %31 : vector<1x256xf32>
      %33 = arith.mulf %29, %29 : vector<1x256xf32>
      %34 = arith.subf %32, %33 : vector<1x256xf32>
      %cst_20 = arith.constant 9.99999974E-6 : f32
      %35 = vector.broadcast %cst_20 : f32 to vector<1x256xf32>
      %36 = arith.addf %34, %35 : vector<1x256xf32>
      %37 = math.rsqrt %36 : vector<1x256xf32>
      %c0_21 = arith.constant 0 : index
      %c0_22 = arith.constant 0 : index
      %38 = vector.load %arg2[%c0_21, %c0_22] : memref<2x256xf32, #tpu.memory_space<vmem>>, vector<1x256xf32>
      tpu.vector_store %arg2[%c0_21, %c0_22], %37 {strides = array<i32>} : memref<2x256xf32, #tpu.memory_space<vmem>>, vector<1x256xf32>,
      %cst_23 = arith.constant 0.000000e+00 : f32
      %39 = vector.broadcast %cst_23 : f32 to vector<1x256xf32>
      %40 = arith.subf %39, %29 : vector<1x256xf32>
      %41 = arith.mulf %40, %37 : vector<1x256xf32>
      %c1_24 = arith.constant 1 : index
      %c0_25 = arith.constant 0 : index
      %42 = vector.load %arg2[%c1_24, %c0_25] : memref<2x256xf32, #tpu.memory_space<vmem>>, vector<1x256xf32>
      tpu.vector_store %arg2[%c1_24, %c0_25], %41 {strides = array<i32>} : memref<2x256xf32, #tpu.memory_space<vmem>>, vector<1x256xf32>,
    } else {
    }
    return
  }
  func.func @transform_0(%arg0: i32) -> (i32, i32) {
    %c0_i32 = arith.constant 0 : i32
    %c0_i32_0 = arith.constant 0 : i32
    return %arg0, %c0_i32 : i32, i32
  }
  func.func @transform_1(%arg0: i32) -> (i32, i32) {
    %c0_i32 = arith.constant 0 : i32
    %c0_i32_0 = arith.constant 0 : i32
    %c0_i32_1 = arith.constant 0 : i32
    return %c0_i32, %c0_i32_0 : i32, i32
  }
}

module attributes {stable_mosaic.version = 11 : i64} {
  func.func @_mm_affine_kernel(%arg0: i32, %arg1: i32, %arg2: i32, %arg3: memref<1x256xf32, #tpu.memory_space<vmem>>, %arg4: memref<1x256xf32, #tpu.memory_space<vmem>>, %arg5: memref<18x256xbf16, #tpu.memory_space<vmem>>, %arg6: memref<256x256xbf16, #tpu.memory_space<vmem>>, %arg7: memref<18x256xbf16, #tpu.memory_space<vmem>>, %arg8: memref<18x256xf32, #tpu.memory_space<vmem>>) attributes {dimension_semantics = [#tpu.dimension_semantics<parallel>, #tpu.dimension_semantics<parallel>, #tpu.dimension_semantics<arbitrary>], iteration_bounds = array<i64: 1, 4, 1>, scalar_prefetch = 0 : i64, scratch_operands = 1 : i64, tpu.core_type = #tpu.core_type<tc>, window_params = [{transform_indices = @transform_0, window_bounds = array<i64: 1, 256>}, {transform_indices = @transform_1, window_bounds = array<i64: 1, 256>}, {transform_indices = @transform_2, window_bounds = array<i64: 18, 256>}, {transform_indices = @transform_3, window_bounds = array<i64: 256, 256>}, {transform_indices = @transform_4, window_bounds = array<i64: 18, 256>}]} {
    %c0_i32 = arith.constant 0 : i32
    %0 = arith.cmpi eq, %arg2, %c0_i32 : i32
    %1 = arith.extui %0 : i1 to i32
    %c0_i32_0 = arith.constant 0 : i32
    %2 = arith.cmpi ne, %1, %c0_i32_0 : i32
    scf.if %2 {
      %cst_15 = arith.constant 0.000000e+00 : f32
      %22 = vector.broadcast %cst_15 : f32 to vector<18x256xf32>
      %c0_16 = arith.constant 0 : index
      %c0_17 = arith.constant 0 : index
      %23 = vector.load %arg8[%c0_16, %c0_17] : memref<18x256xf32, #tpu.memory_space<vmem>>, vector<18x256xf32>
      tpu.vector_store %arg8[%c0_16, %c0_17], %22 {strides = array<i32>} : memref<18x256xf32, #tpu.memory_space<vmem>>, vector<18x256xf32>,
    } else {
    }
    %c0 = arith.constant 0 : index
    %c0_1 = arith.constant 0 : index
    %3 = vector.load %arg5[%c0, %c0_1] : memref<18x256xbf16, #tpu.memory_space<vmem>>, vector<18x256xbf16>
    %4 = arith.extf %3 : vector<18x256xbf16> to vector<18x256xf32>
    %c0_2 = arith.constant 0 : index
    %c0_3 = arith.constant 0 : index
    %5 = vector.load %arg3[%c0_2, %c0_3] : memref<1x256xf32, #tpu.memory_space<vmem>>, vector<1x256xf32>
    %6 = vector.broadcast %5 : vector<1x256xf32> to vector<18x256xf32>
    %7 = arith.mulf %4, %6 : vector<18x256xf32>
    %c0_4 = arith.constant 0 : index
    %c0_5 = arith.constant 0 : index
    %8 = vector.load %arg4[%c0_4, %c0_5] : memref<1x256xf32, #tpu.memory_space<vmem>>, vector<1x256xf32>
    %9 = vector.broadcast %8 : vector<1x256xf32> to vector<18x256xf32>
    %10 = arith.addf %7, %9 : vector<18x256xf32>
    %cst = arith.constant 0.000000e+00 : f32
    %11 = vector.broadcast %cst : f32 to vector<18x256xf32>
    %12 = arith.maximumf %10, %11 : vector<18x256xf32>
    %c0_6 = arith.constant 0 : index
    %c0_7 = arith.constant 0 : index
    %13 = vector.load %arg8[%c0_6, %c0_7] : memref<18x256xf32, #tpu.memory_space<vmem>>, vector<18x256xf32>
    %14 = arith.truncf %12 : vector<18x256xf32> to vector<18x256xbf16>
    %c0_8 = arith.constant 0 : index
    %c0_9 = arith.constant 0 : index
    %15 = vector.load %arg6[%c0_8, %c0_9] : memref<256x256xbf16, #tpu.memory_space<vmem>>, vector<256x256xbf16>
    %cst_10 = arith.constant dense<0.000000e+00> : vector<18x256xf32>
    %16 = tpu.matmul %14, %15, %cst_10 {dimension_numbers = #tpu.dot_dimension_numbers<[1], [0], [0], [1], [0, 0, 1, 1], [], []>} : vector<18x256xbf16>, vector<256x256xbf16>, vector<18x256xf32> -> vector<18x256xf32>
    %17 = arith.addf %13, %16 : vector<18x256xf32>
    %c0_11 = arith.constant 0 : index
    %c0_12 = arith.constant 0 : index
    %18 = vector.load %arg8[%c0_11, %c0_12] : memref<18x256xf32, #tpu.memory_space<vmem>>, vector<18x256xf32>
    tpu.vector_store %arg8[%c0_11, %c0_12], %17 {strides = array<i32>} : memref<18x256xf32, #tpu.memory_space<vmem>>, vector<18x256xf32>,
    %c0_i32_13 = arith.constant 0 : i32
    %19 = arith.cmpi eq, %arg2, %c0_i32_13 : i32
    %20 = arith.extui %19 : i1 to i32
    %c0_i32_14 = arith.constant 0 : i32
    %21 = arith.cmpi ne, %20, %c0_i32_14 : i32
    scf.if %21 {
      %c0_15 = arith.constant 0 : index
      %c0_16 = arith.constant 0 : index
      %22 = vector.load %arg8[%c0_15, %c0_16] : memref<18x256xf32, #tpu.memory_space<vmem>>, vector<18x256xf32>
      %23 = arith.truncf %22 : vector<18x256xf32> to vector<18x256xbf16>
      %c0_17 = arith.constant 0 : index
      %c0_18 = arith.constant 0 : index
      %24 = vector.load %arg7[%c0_17, %c0_18] : memref<18x256xbf16, #tpu.memory_space<vmem>>, vector<18x256xbf16>
      tpu.vector_store %arg7[%c0_17, %c0_18], %23 {strides = array<i32>} : memref<18x256xbf16, #tpu.memory_space<vmem>>, vector<18x256xbf16>,
    } else {
    }
    return
  }
  func.func @transform_0(%arg0: i32, %arg1: i32, %arg2: i32) -> (i32, i32) {
    %c0_i32 = arith.constant 0 : i32
    %c0_i32_0 = arith.constant 0 : i32
    return %c0_i32, %arg2 : i32, i32
  }
  func.func @transform_1(%arg0: i32, %arg1: i32, %arg2: i32) -> (i32, i32) {
    %c0_i32 = arith.constant 0 : i32
    %c0_i32_0 = arith.constant 0 : i32
    return %c0_i32, %arg2 : i32, i32
  }
  func.func @transform_2(%arg0: i32, %arg1: i32, %arg2: i32) -> (i32, i32) {
    %c0_i32 = arith.constant 0 : i32
    return %arg0, %arg2 : i32, i32
  }
  func.func @transform_3(%arg0: i32, %arg1: i32, %arg2: i32) -> (i32, i32) {
    %c0_i32 = arith.constant 0 : i32
    return %arg2, %arg1 : i32, i32
  }
  func.func @transform_4(%arg0: i32, %arg1: i32, %arg2: i32) -> (i32, i32) {
    %c0_i32 = arith.constant 0 : i32
    return %arg0, %arg1 : i32, i32
  }
}

module attributes {stable_mosaic.version = 11 : i64} {
  func.func @_bn_stats_kernel(%arg0: i32, %arg1: memref<18x1024xbf16, #tpu.memory_space<vmem>>, %arg2: memref<2x1024xf32, #tpu.memory_space<vmem>>) attributes {dimension_semantics = [#tpu.dimension_semantics<arbitrary>], iteration_bounds = array<i64: 1>, scalar_prefetch = 0 : i64, scratch_operands = 0 : i64, tpu.core_type = #tpu.core_type<tc>, window_params = [{transform_indices = @transform_0, window_bounds = array<i64: 18, 1024>}, {pipeline_mode = #tpu.pipeline_mode<synchronous>, transform_indices = @transform_1, window_bounds = array<i64: 2, 1024>}]} {
    %c0_i32 = arith.constant 0 : i32
    %0 = arith.cmpi eq, %arg0, %c0_i32 : i32
    %1 = arith.extui %0 : i1 to i32
    %c0_i32_0 = arith.constant 0 : i32
    %2 = arith.cmpi ne, %1, %c0_i32_0 : i32
    scf.if %2 {
      %cst_14 = arith.constant 0.000000e+00 : f32
      %27 = vector.broadcast %cst_14 : f32 to vector<2x1024xf32>
      %c0_15 = arith.constant 0 : index
      %c0_16 = arith.constant 0 : index
      %28 = vector.load %arg2[%c0_15, %c0_16] : memref<2x1024xf32, #tpu.memory_space<vmem>>, vector<2x1024xf32>
      tpu.vector_store %arg2[%c0_15, %c0_16], %27 {strides = array<i32>} : memref<2x1024xf32, #tpu.memory_space<vmem>>, vector<2x1024xf32>,
    } else {
    }
    %c0 = arith.constant 0 : index
    %c0_1 = arith.constant 0 : index
    %3 = vector.load %arg1[%c0, %c0_1] : memref<18x1024xbf16, #tpu.memory_space<vmem>>, vector<18x1024xbf16>
    %4 = arith.extf %3 : vector<18x1024xbf16> to vector<18x1024xf32>
    %5 = tpu.iota {dimensions = array<i32: 0>} : vector<18x1024xi32>
    %c18_i32 = arith.constant 18 : i32
    %6 = arith.muli %arg0, %c18_i32 : i32
    %7 = vector.broadcast %6 : i32 to vector<18x1024xi32>
    %8 = arith.addi %5, %7 : vector<18x1024xi32>
    %c18_i32_2 = arith.constant 18 : i32
    %9 = vector.broadcast %c18_i32_2 : i32 to vector<18x1024xi32>
    %10 = arith.cmpi slt, %8, %9 : vector<18x1024xi32>
    %cst = arith.constant 0.000000e+00 : f32
    %11 = vector.broadcast %cst : f32 to vector<18x1024xf32>
    %12 = arith.select %10, %4, %11 : vector<18x1024xi1>, vector<18x1024xf32>
    %c0_3 = arith.constant 0 : index
    %c0_4 = arith.constant 0 : index
    %13 = vector.load %arg2[%c0_3, %c0_4] : memref<2x1024xf32, #tpu.memory_space<vmem>>, vector<1x1024xf32>
    %cst_5 = arith.constant dense<0.000000e+00> : vector<1024xf32>
    %14 = vector.multi_reduction <add>, %12, %cst_5 [0] : vector<18x1024xf32> to vector<1024xf32>
    %15 = vector.shape_cast %14 : vector<1024xf32> to vector<1x1024xf32>
    %16 = arith.addf %13, %15 : vector<1x1024xf32>
    %c0_6 = arith.constant 0 : index
    %c0_7 = arith.constant 0 : index
    %17 = vector.load %arg2[%c0_6, %c0_7] : memref<2x1024xf32, #tpu.memory_space<vmem>>, vector<1x1024xf32>
    tpu.vector_store %arg2[%c0_6, %c0_7], %16 {strides = array<i32>} : memref<2x1024xf32, #tpu.memory_space<vmem>>, vector<1x1024xf32>,
    %c1 = arith.constant 1 : index
    %c0_8 = arith.constant 0 : index
    %18 = vector.load %arg2[%c1, %c0_8] : memref<2x1024xf32, #tpu.memory_space<vmem>>, vector<1x1024xf32>
    %19 = arith.mulf %12, %12 : vector<18x1024xf32>
    %cst_9 = arith.constant dense<0.000000e+00> : vector<1024xf32>
    %20 = vector.multi_reduction <add>, %19, %cst_9 [0] : vector<18x1024xf32> to vector<1024xf32>
    %21 = vector.shape_cast %20 : vector<1024xf32> to vector<1x1024xf32>
    %22 = arith.addf %18, %21 : vector<1x1024xf32>
    %c1_10 = arith.constant 1 : index
    %c0_11 = arith.constant 0 : index
    %23 = vector.load %arg2[%c1_10, %c0_11] : memref<2x1024xf32, #tpu.memory_space<vmem>>, vector<1x1024xf32>
    tpu.vector_store %arg2[%c1_10, %c0_11], %22 {strides = array<i32>} : memref<2x1024xf32, #tpu.memory_space<vmem>>, vector<1x1024xf32>,
    %c0_i32_12 = arith.constant 0 : i32
    %24 = arith.cmpi eq, %arg0, %c0_i32_12 : i32
    %25 = arith.extui %24 : i1 to i32
    %c0_i32_13 = arith.constant 0 : i32
    %26 = arith.cmpi ne, %25, %c0_i32_13 : i32
    scf.if %26 {
      %c0_14 = arith.constant 0 : index
      %c0_15 = arith.constant 0 : index
      %27 = vector.load %arg2[%c0_14, %c0_15] : memref<2x1024xf32, #tpu.memory_space<vmem>>, vector<1x1024xf32>
      %cst_16 = arith.constant 0.055555556 : f32
      %28 = vector.broadcast %cst_16 : f32 to vector<1x1024xf32>
      %29 = arith.mulf %27, %28 : vector<1x1024xf32>
      %c1_17 = arith.constant 1 : index
      %c0_18 = arith.constant 0 : index
      %30 = vector.load %arg2[%c1_17, %c0_18] : memref<2x1024xf32, #tpu.memory_space<vmem>>, vector<1x1024xf32>
      %cst_19 = arith.constant 0.055555556 : f32
      %31 = vector.broadcast %cst_19 : f32 to vector<1x1024xf32>
      %32 = arith.mulf %30, %31 : vector<1x1024xf32>
      %33 = arith.mulf %29, %29 : vector<1x1024xf32>
      %34 = arith.subf %32, %33 : vector<1x1024xf32>
      %cst_20 = arith.constant 9.99999974E-6 : f32
      %35 = vector.broadcast %cst_20 : f32 to vector<1x1024xf32>
      %36 = arith.addf %34, %35 : vector<1x1024xf32>
      %37 = math.rsqrt %36 : vector<1x1024xf32>
      %c0_21 = arith.constant 0 : index
      %c0_22 = arith.constant 0 : index
      %38 = vector.load %arg2[%c0_21, %c0_22] : memref<2x1024xf32, #tpu.memory_space<vmem>>, vector<1x1024xf32>
      tpu.vector_store %arg2[%c0_21, %c0_22], %37 {strides = array<i32>} : memref<2x1024xf32, #tpu.memory_space<vmem>>, vector<1x1024xf32>,
      %cst_23 = arith.constant 0.000000e+00 : f32
      %39 = vector.broadcast %cst_23 : f32 to vector<1x1024xf32>
      %40 = arith.subf %39, %29 : vector<1x1024xf32>
      %41 = arith.mulf %40, %37 : vector<1x1024xf32>
      %c1_24 = arith.constant 1 : index
      %c0_25 = arith.constant 0 : index
      %42 = vector.load %arg2[%c1_24, %c0_25] : memref<2x1024xf32, #tpu.memory_space<vmem>>, vector<1x1024xf32>
      tpu.vector_store %arg2[%c1_24, %c0_25], %41 {strides = array<i32>} : memref<2x1024xf32, #tpu.memory_space<vmem>>, vector<1x1024xf32>,
    } else {
    }
    return
  }
  func.func @transform_0(%arg0: i32) -> (i32, i32) {
    %c0_i32 = arith.constant 0 : i32
    %c0_i32_0 = arith.constant 0 : i32
    return %arg0, %c0_i32 : i32, i32
  }
  func.func @transform_1(%arg0: i32) -> (i32, i32) {
    %c0_i32 = arith.constant 0 : i32
    %c0_i32_0 = arith.constant 0 : i32
    %c0_i32_1 = arith.constant 0 : i32
    return %c0_i32, %c0_i32_0 : i32, i32
  }
}

module attributes {stable_mosaic.version = 11 : i64} {
  func.func @_mm_affine_kernel(%arg0: i32, %arg1: i32, %arg2: i32, %arg3: memref<1x384xf32, #tpu.memory_space<vmem>>, %arg4: memref<1x384xf32, #tpu.memory_space<vmem>>, %arg5: memref<18x384xbf16, #tpu.memory_space<vmem>>, %arg6: memref<384x256xbf16, #tpu.memory_space<vmem>>, %arg7: memref<18x256xbf16, #tpu.memory_space<vmem>>, %arg8: memref<18x256xf32, #tpu.memory_space<vmem>>) attributes {dimension_semantics = [#tpu.dimension_semantics<parallel>, #tpu.dimension_semantics<parallel>, #tpu.dimension_semantics<arbitrary>], iteration_bounds = array<i64: 1, 1, 6>, scalar_prefetch = 0 : i64, scratch_operands = 1 : i64, tpu.core_type = #tpu.core_type<tc>, window_params = [{transform_indices = @transform_0, window_bounds = array<i64: 1, 384>}, {transform_indices = @transform_1, window_bounds = array<i64: 1, 384>}, {transform_indices = @transform_2, window_bounds = array<i64: 18, 384>}, {transform_indices = @transform_3, window_bounds = array<i64: 384, 256>}, {transform_indices = @transform_4, window_bounds = array<i64: 18, 256>}]} {
    %c0_i32 = arith.constant 0 : i32
    %0 = arith.cmpi eq, %arg2, %c0_i32 : i32
    %1 = arith.extui %0 : i1 to i32
    %c0_i32_0 = arith.constant 0 : i32
    %2 = arith.cmpi ne, %1, %c0_i32_0 : i32
    scf.if %2 {
      %cst_14 = arith.constant 0.000000e+00 : f32
      %22 = vector.broadcast %cst_14 : f32 to vector<18x256xf32>
      %c0_15 = arith.constant 0 : index
      %c0_16 = arith.constant 0 : index
      %23 = vector.load %arg8[%c0_15, %c0_16] : memref<18x256xf32, #tpu.memory_space<vmem>>, vector<18x256xf32>
      tpu.vector_store %arg8[%c0_15, %c0_16], %22 {strides = array<i32>} : memref<18x256xf32, #tpu.memory_space<vmem>>, vector<18x256xf32>,
    } else {
    }
    %c0 = arith.constant 0 : index
    %c0_1 = arith.constant 0 : index
    %3 = vector.load %arg5[%c0, %c0_1] : memref<18x384xbf16, #tpu.memory_space<vmem>>, vector<18x384xbf16>
    %4 = arith.extf %3 : vector<18x384xbf16> to vector<18x384xf32>
    %c0_2 = arith.constant 0 : index
    %c0_3 = arith.constant 0 : index
    %5 = vector.load %arg3[%c0_2, %c0_3] : memref<1x384xf32, #tpu.memory_space<vmem>>, vector<1x384xf32>
    %6 = vector.broadcast %5 : vector<1x384xf32> to vector<18x384xf32>
    %7 = arith.mulf %4, %6 : vector<18x384xf32>
    %c0_4 = arith.constant 0 : index
    %c0_5 = arith.constant 0 : index
    %8 = vector.load %arg4[%c0_4, %c0_5] : memref<1x384xf32, #tpu.memory_space<vmem>>, vector<1x384xf32>
    %9 = vector.broadcast %8 : vector<1x384xf32> to vector<18x384xf32>
    %10 = arith.addf %7, %9 : vector<18x384xf32>
    %cst = arith.constant 0.000000e+00 : f32
    %11 = vector.broadcast %cst : f32 to vector<18x384xf32>
    %12 = arith.maximumf %10, %11 : vector<18x384xf32>
    %c0_6 = arith.constant 0 : index
    %c0_7 = arith.constant 0 : index
    %13 = vector.load %arg8[%c0_6, %c0_7] : memref<18x256xf32, #tpu.memory_space<vmem>>, vector<18x256xf32>
    %14 = arith.truncf %12 : vector<18x384xf32> to vector<18x384xbf16>
    %c0_8 = arith.constant 0 : index
    %c0_9 = arith.constant 0 : index
    %15 = vector.load %arg6[%c0_8, %c0_9] : memref<384x256xbf16, #tpu.memory_space<vmem>>, vector<384x256xbf16>
    %cst_10 = arith.constant dense<0.000000e+00> : vector<18x256xf32>
    %16 = tpu.matmul %14, %15, %cst_10 {dimension_numbers = #tpu.dot_dimension_numbers<[1], [0], [0], [1], [0, 0, 1, 1], [], []>} : vector<18x384xbf16>, vector<384x256xbf16>, vector<18x256xf32> -> vector<18x256xf32>
    %17 = arith.addf %13, %16 : vector<18x256xf32>
    %c0_11 = arith.constant 0 : index
    %c0_12 = arith.constant 0 : index
    %18 = vector.load %arg8[%c0_11, %c0_12] : memref<18x256xf32, #tpu.memory_space<vmem>>, vector<18x256xf32>
    tpu.vector_store %arg8[%c0_11, %c0_12], %17 {strides = array<i32>} : memref<18x256xf32, #tpu.memory_space<vmem>>, vector<18x256xf32>,
    %c5_i32 = arith.constant 5 : i32
    %19 = arith.cmpi eq, %arg2, %c5_i32 : i32
    %20 = arith.extui %19 : i1 to i32
    %c0_i32_13 = arith.constant 0 : i32
    %21 = arith.cmpi ne, %20, %c0_i32_13 : i32
    scf.if %21 {
      %c0_14 = arith.constant 0 : index
      %c0_15 = arith.constant 0 : index
      %22 = vector.load %arg8[%c0_14, %c0_15] : memref<18x256xf32, #tpu.memory_space<vmem>>, vector<18x256xf32>
      %23 = arith.truncf %22 : vector<18x256xf32> to vector<18x256xbf16>
      %c0_16 = arith.constant 0 : index
      %c0_17 = arith.constant 0 : index
      %24 = vector.load %arg7[%c0_16, %c0_17] : memref<18x256xbf16, #tpu.memory_space<vmem>>, vector<18x256xbf16>
      tpu.vector_store %arg7[%c0_16, %c0_17], %23 {strides = array<i32>} : memref<18x256xbf16, #tpu.memory_space<vmem>>, vector<18x256xbf16>,
    } else {
    }
    return
  }
  func.func @transform_0(%arg0: i32, %arg1: i32, %arg2: i32) -> (i32, i32) {
    %c0_i32 = arith.constant 0 : i32
    %c0_i32_0 = arith.constant 0 : i32
    return %c0_i32, %arg2 : i32, i32
  }
  func.func @transform_1(%arg0: i32, %arg1: i32, %arg2: i32) -> (i32, i32) {
    %c0_i32 = arith.constant 0 : i32
    %c0_i32_0 = arith.constant 0 : i32
    return %c0_i32, %arg2 : i32, i32
  }
  func.func @transform_2(%arg0: i32, %arg1: i32, %arg2: i32) -> (i32, i32) {
    %c0_i32 = arith.constant 0 : i32
    return %arg0, %arg2 : i32, i32
  }
  func.func @transform_3(%arg0: i32, %arg1: i32, %arg2: i32) -> (i32, i32) {
    %c0_i32 = arith.constant 0 : i32
    return %arg2, %arg1 : i32, i32
  }
  func.func @transform_4(%arg0: i32, %arg1: i32, %arg2: i32) -> (i32, i32) {
    %c0_i32 = arith.constant 0 : i32
    return %arg0, %arg1 : i32, i32
  }
}

module attributes {stable_mosaic.version = 11 : i64} {
  func.func @_mm_plain_kernel(%arg0: i32, %arg1: i32, %arg2: i32, %arg3: memref<18x512xbf16, #tpu.memory_space<vmem>>, %arg4: memref<512x256xbf16, #tpu.memory_space<vmem>>, %arg5: memref<18x256xbf16, #tpu.memory_space<vmem>>, %arg6: memref<18x256xf32, #tpu.memory_space<vmem>>) attributes {dimension_semantics = [#tpu.dimension_semantics<parallel>, #tpu.dimension_semantics<parallel>, #tpu.dimension_semantics<arbitrary>], iteration_bounds = array<i64: 1, 4, 1>, scalar_prefetch = 0 : i64, scratch_operands = 1 : i64, tpu.core_type = #tpu.core_type<tc>, window_params = [{transform_indices = @transform_0, window_bounds = array<i64: 18, 512>}, {transform_indices = @transform_1, window_bounds = array<i64: 512, 256>}, {transform_indices = @transform_2, window_bounds = array<i64: 18, 256>}]} {
    %c0_i32 = arith.constant 0 : i32
    %0 = arith.cmpi eq, %arg2, %c0_i32 : i32
    %1 = arith.extui %0 : i1 to i32
    %c0_i32_0 = arith.constant 0 : i32
    %2 = arith.cmpi ne, %1, %c0_i32_0 : i32
    scf.if %2 {
      %cst_10 = arith.constant 0.000000e+00 : f32
      %12 = vector.broadcast %cst_10 : f32 to vector<18x256xf32>
      %c0_11 = arith.constant 0 : index
      %c0_12 = arith.constant 0 : index
      %13 = vector.load %arg6[%c0_11, %c0_12] : memref<18x256xf32, #tpu.memory_space<vmem>>, vector<18x256xf32>
      tpu.vector_store %arg6[%c0_11, %c0_12], %12 {strides = array<i32>} : memref<18x256xf32, #tpu.memory_space<vmem>>, vector<18x256xf32>,
    } else {
    }
    %c0 = arith.constant 0 : index
    %c0_1 = arith.constant 0 : index
    %3 = vector.load %arg6[%c0, %c0_1] : memref<18x256xf32, #tpu.memory_space<vmem>>, vector<18x256xf32>
    %c0_2 = arith.constant 0 : index
    %c0_3 = arith.constant 0 : index
    %4 = vector.load %arg3[%c0_2, %c0_3] : memref<18x512xbf16, #tpu.memory_space<vmem>>, vector<18x512xbf16>
    %c0_4 = arith.constant 0 : index
    %c0_5 = arith.constant 0 : index
    %5 = vector.load %arg4[%c0_4, %c0_5] : memref<512x256xbf16, #tpu.memory_space<vmem>>, vector<512x256xbf16>
    %cst = arith.constant dense<0.000000e+00> : vector<18x256xf32>
    %6 = tpu.matmul %4, %5, %cst {dimension_numbers = #tpu.dot_dimension_numbers<[1], [0], [0], [1], [0, 0, 1, 1], [], []>} : vector<18x512xbf16>, vector<512x256xbf16>, vector<18x256xf32> -> vector<18x256xf32>
    %7 = arith.addf %3, %6 : vector<18x256xf32>
    %c0_6 = arith.constant 0 : index
    %c0_7 = arith.constant 0 : index
    %8 = vector.load %arg6[%c0_6, %c0_7] : memref<18x256xf32, #tpu.memory_space<vmem>>, vector<18x256xf32>
    tpu.vector_store %arg6[%c0_6, %c0_7], %7 {strides = array<i32>} : memref<18x256xf32, #tpu.memory_space<vmem>>, vector<18x256xf32>,
    %c0_i32_8 = arith.constant 0 : i32
    %9 = arith.cmpi eq, %arg2, %c0_i32_8 : i32
    %10 = arith.extui %9 : i1 to i32
    %c0_i32_9 = arith.constant 0 : i32
    %11 = arith.cmpi ne, %10, %c0_i32_9 : i32
    scf.if %11 {
      %c0_10 = arith.constant 0 : index
      %c0_11 = arith.constant 0 : index
      %12 = vector.load %arg6[%c0_10, %c0_11] : memref<18x256xf32, #tpu.memory_space<vmem>>, vector<18x256xf32>
      %13 = arith.truncf %12 : vector<18x256xf32> to vector<18x256xbf16>
      %c0_12 = arith.constant 0 : index
      %c0_13 = arith.constant 0 : index
      %14 = vector.load %arg5[%c0_12, %c0_13] : memref<18x256xbf16, #tpu.memory_space<vmem>>, vector<18x256xbf16>
      tpu.vector_store %arg5[%c0_12, %c0_13], %13 {strides = array<i32>} : memref<18x256xbf16, #tpu.memory_space<vmem>>, vector<18x256xbf16>,
    } else {
    }
    return
  }
  func.func @transform_0(%arg0: i32, %arg1: i32, %arg2: i32) -> (i32, i32) {
    %c0_i32 = arith.constant 0 : i32
    return %arg0, %arg2 : i32, i32
  }
  func.func @transform_1(%arg0: i32, %arg1: i32, %arg2: i32) -> (i32, i32) {
    %c0_i32 = arith.constant 0 : i32
    return %arg2, %arg1 : i32, i32
  }
  func.func @transform_2(%arg0: i32, %arg1: i32, %arg2: i32) -> (i32, i32) {
    %c0_i32 = arith.constant 0 : i32
    return %arg0, %arg1 : i32, i32
  }
}

module attributes {stable_mosaic.version = 11 : i64} {
  func.func @_tail_kernel(%arg0: i32, %arg1: memref<1x1024xf32, #tpu.memory_space<vmem>>, %arg2: memref<1x1024xf32, #tpu.memory_space<vmem>>, %arg3: memref<1x1024xf32, #tpu.memory_space<vmem>>, %arg4: memref<1x1024xf32, #tpu.memory_space<vmem>>, %arg5: memref<18x1024xbf16, #tpu.memory_space<vmem>>, %arg6: memref<18x1024xbf16, #tpu.memory_space<vmem>>, %arg7: memref<18x1024xbf16, #tpu.memory_space<vmem>>) attributes {dimension_semantics = [#tpu.dimension_semantics<parallel>], iteration_bounds = array<i64: 1>, scalar_prefetch = 0 : i64, scratch_operands = 0 : i64, tpu.core_type = #tpu.core_type<tc>, window_params = [{pipeline_mode = #tpu.pipeline_mode<synchronous>, transform_indices = @transform_0, window_bounds = array<i64: 1, 1024>}, {pipeline_mode = #tpu.pipeline_mode<synchronous>, transform_indices = @transform_1, window_bounds = array<i64: 1, 1024>}, {pipeline_mode = #tpu.pipeline_mode<synchronous>, transform_indices = @transform_2, window_bounds = array<i64: 1, 1024>}, {pipeline_mode = #tpu.pipeline_mode<synchronous>, transform_indices = @transform_3, window_bounds = array<i64: 1, 1024>}, {transform_indices = @transform_4, window_bounds = array<i64: 18, 1024>}, {transform_indices = @transform_5, window_bounds = array<i64: 18, 1024>}, {transform_indices = @transform_6, window_bounds = array<i64: 18, 1024>}]} {
    %c0 = arith.constant 0 : index
    %c0_0 = arith.constant 0 : index
    %0 = vector.load %arg5[%c0, %c0_0] : memref<18x1024xbf16, #tpu.memory_space<vmem>>, vector<18x1024xbf16>
    %1 = arith.extf %0 : vector<18x1024xbf16> to vector<18x1024xf32>
    %c0_1 = arith.constant 0 : index
    %c0_2 = arith.constant 0 : index
    %2 = vector.load %arg1[%c0_1, %c0_2] : memref<1x1024xf32, #tpu.memory_space<vmem>>, vector<1x1024xf32>
    %3 = vector.broadcast %2 : vector<1x1024xf32> to vector<18x1024xf32>
    %4 = arith.mulf %1, %3 : vector<18x1024xf32>
    %c0_3 = arith.constant 0 : index
    %c0_4 = arith.constant 0 : index
    %5 = vector.load %arg2[%c0_3, %c0_4] : memref<1x1024xf32, #tpu.memory_space<vmem>>, vector<1x1024xf32>
    %6 = vector.broadcast %5 : vector<1x1024xf32> to vector<18x1024xf32>
    %7 = arith.addf %4, %6 : vector<18x1024xf32>
    %c0_5 = arith.constant 0 : index
    %c0_6 = arith.constant 0 : index
    %8 = vector.load %arg6[%c0_5, %c0_6] : memref<18x1024xbf16, #tpu.memory_space<vmem>>, vector<18x1024xbf16>
    %9 = arith.extf %8 : vector<18x1024xbf16> to vector<18x1024xf32>
    %c0_7 = arith.constant 0 : index
    %c0_8 = arith.constant 0 : index
    %10 = vector.load %arg3[%c0_7, %c0_8] : memref<1x1024xf32, #tpu.memory_space<vmem>>, vector<1x1024xf32>
    %11 = vector.broadcast %10 : vector<1x1024xf32> to vector<18x1024xf32>
    %12 = arith.mulf %9, %11 : vector<18x1024xf32>
    %c0_9 = arith.constant 0 : index
    %c0_10 = arith.constant 0 : index
    %13 = vector.load %arg4[%c0_9, %c0_10] : memref<1x1024xf32, #tpu.memory_space<vmem>>, vector<1x1024xf32>
    %14 = vector.broadcast %13 : vector<1x1024xf32> to vector<18x1024xf32>
    %15 = arith.addf %12, %14 : vector<18x1024xf32>
    %16 = arith.addf %7, %15 : vector<18x1024xf32>
    %cst = arith.constant 0.000000e+00 : f32
    %17 = vector.broadcast %cst : f32 to vector<18x1024xf32>
    %18 = arith.maximumf %16, %17 : vector<18x1024xf32>
    %19 = arith.truncf %18 : vector<18x1024xf32> to vector<18x1024xbf16>
    %c0_11 = arith.constant 0 : index
    %c0_12 = arith.constant 0 : index
    %20 = vector.load %arg7[%c0_11, %c0_12] : memref<18x1024xbf16, #tpu.memory_space<vmem>>, vector<18x1024xbf16>
    tpu.vector_store %arg7[%c0_11, %c0_12], %19 {strides = array<i32>} : memref<18x1024xbf16, #tpu.memory_space<vmem>>, vector<18x1024xbf16>,
    return
  }
  func.func @transform_0(%arg0: i32) -> (i32, i32) {
    %c0_i32 = arith.constant 0 : i32
    %c0_i32_0 = arith.constant 0 : i32
    %c0_i32_1 = arith.constant 0 : i32
    return %c0_i32, %c0_i32_0 : i32, i32
  }
  func.func @transform_1(%arg0: i32) -> (i32, i32) {
    %c0_i32 = arith.constant 0 : i32
    %c0_i32_0 = arith.constant 0 : i32
    %c0_i32_1 = arith.constant 0 : i32
    return %c0_i32, %c0_i32_0 : i32, i32
  }
  func.func @transform_2(%arg0: i32) -> (i32, i32) {
    %c0_i32 = arith.constant 0 : i32
    %c0_i32_0 = arith.constant 0 : i32
    %c0_i32_1 = arith.constant 0 : i32
    return %c0_i32, %c0_i32_0 : i32, i32
  }
  func.func @transform_3(%arg0: i32) -> (i32, i32) {
    %c0_i32 = arith.constant 0 : i32
    %c0_i32_0 = arith.constant 0 : i32
    %c0_i32_1 = arith.constant 0 : i32
    return %c0_i32, %c0_i32_0 : i32, i32
  }
  func.func @transform_4(%arg0: i32) -> (i32, i32) {
    %c0_i32 = arith.constant 0 : i32
    %c0_i32_0 = arith.constant 0 : i32
    return %arg0, %c0_i32 : i32, i32
  }
  func.func @transform_5(%arg0: i32) -> (i32, i32) {
    %c0_i32 = arith.constant 0 : i32
    %c0_i32_0 = arith.constant 0 : i32
    return %arg0, %c0_i32 : i32, i32
  }
  func.func @transform_6(%arg0: i32) -> (i32, i32) {
    %c0_i32 = arith.constant 0 : i32
    %c0_i32_0 = arith.constant 0 : i32
    return %arg0, %c0_i32 : i32, i32
  }
}

</mosaic_0001>

<bundles_post_ra>
// kernel: resnet_forward.31
= control target key start
LH: loop header
LB: loop body
LE: loop exit
PB: predicated region body
PF: predicated region fallthrough
CT: control target
= control target key end

     0   :  { %v237_v0 = vmov 0.0   ;;  %s299_s1 = inlined_call_operand.vmem [shape: f32[2,128], index: 1, kind: output, shape index: {}]   ;;  %s300_s0 = inlined_call_operand.vmem [shape: bf16[128,128], index: 0, kind: input, shape index: {}]  }
   0x1   :  { %12 = vst [vmem:[%s299_s1] sm:$0x3] %v237_v0  ;;  %v196_v1 = vld [vmem:[%s300_s0] sm:$0xff]   ;;  %v227_v2 = vld [vmem:[%s300_s0 + $0x8] sm:$0xff]   ;;  %v228_v6 = vld [vmem:[%s300_s0 + $0x10] sm:$0xff]  }
   0x2   :  { %v197_v3 = vunpack.c.l.bf16 %v196_v1  ;;  %v198_v4 = vunpack.c.h.bf16 %v196_v1  ;;  %v201_v5 = vunpack.c.l.bf16 %v227_v2  ;;  %v202_v7 = vunpack.c.h.bf16 %v227_v2  ;;  %v229_v14 = vld [vmem:[%s300_s0 + $0x18] sm:$0xff]   ;;  %v230_v23 = vld [vmem:[%s300_s0 + $0x20] sm:$0xff]   ;;  %v231_v32 = vld [vmem:[%s300_s0 + $0x28] sm:$0xff]  }
   0x3   :  { %v205_v11 = vunpack.c.l.bf16 %v228_v6  ;;  %v206_v15 = vunpack.c.h.bf16 %v228_v6  ;;  %v209_v19 = vunpack.c.l.bf16 %v229_v14  ;;  %v210_v24 = vunpack.c.h.bf16 %v229_v14  ;;  %v232_v41 = vld [vmem:[%s300_s0 + $0x30] sm:$0xff]   ;;  %v233_v50 = vld [vmem:[%s300_s0 + $0x38] sm:$0xff]  }
   0x4   :  { %v113_v8 = vadd.f32 %v198_v4, %v197_v3  ;;  %v137_v9 = vmul.f32 %v197_v3, %v197_v3  ;;  %v138_v10 = vmul.f32 %v198_v4, %v198_v4  ;;  %v139_v13 = vmul.f32 %v201_v5, %v201_v5 }
   0x5   :  { %v140_v17 = vmul.f32 %v202_v7, %v202_v7  ;;  %v141_v21 = vmul.f32 %v205_v11, %v205_v11  ;;  %v142_v26 = vmul.f32 %v206_v15, %v206_v15  ;;  %v213_v28 = vunpack.c.l.bf16 %v230_v23 }
   0x6   :  { %v114_v12 = vadd.f32 %v201_v5, %v113_v8  ;;  %v153_v18 = vadd.f32 %v138_v10, %v137_v9  ;;  %v143_v30 = vmul.f32 %v209_v19, %v209_v19  ;;  %v214_v33 = vunpack.c.h.bf16 %v230_v23 }
   0x7   :  { %v144_v35 = vmul.f32 %v210_v24, %v210_v24  ;;  %v217_v37 = vunpack.c.l.bf16 %v231_v32  ;;  %v145_v39 = vmul.f32 %v213_v28, %v213_v28  ;;  %v218_v42 = vunpack.c.h.bf16 %v231_v32 }
   0x8   :  { %v115_v16 = vadd.f32 %v202_v7, %v114_v12  ;;  %v154_v22 = vadd.f32 %v153_v18, %v139_v13  ;;  %v146_v44 = vmul.f32 %v214_v33, %v214_v33  ;;  %v221_v46 = vunpack.c.l.bf16 %v232_v41 }
   0x9   :  { %v147_v48 = vmul.f32 %v217_v37, %v217_v37  ;;  %v222_v51 = vunpack.c.h.bf16 %v232_v41  ;;  %v148_v53 = vmul.f32 %v218_v42, %v218_v42  ;;  %v225_v55 = vunpack.c.l.bf16 %v233_v50 }
   0xa   :  { %v116_v20 = vadd.f32 %v205_v11, %v115_v16  ;;  %v155_v27 = vadd.f32 %v154_v22, %v140_v17  ;;  %v149_v57 = vmul.f32 %v221_v46, %v221_v46  ;;  %v226_v59 = vunpack.c.h.bf16 %v233_v50 }
   0xb   :  { %v150_v61 = vmul.f32 %v222_v51, %v222_v51  ;;  %v151_v0 = vmul.f32 %v225_v55, %v225_v55 }
   0xc   :  { %v117_v25 = vadd.f32 %v206_v15, %v116_v20  ;;  %v156_v31 = vadd.f32 %v155_v27, %v141_v21  ;;  %v152_v3 = vmul.f32 %v226_v59, %v226_v59  ;;  %v112_v15 = vld [vmem:[%s299_s1] sm:$0x1]  ;;  %v136_v21 = vld [vmem:[%s299_s1 + $0x1] sm:$0x1] }
   0xe   :  { %v118_v29 = vadd.f32 %v209_v19, %v117_v25  ;;  %v157_v36 = vadd.f32 %v156_v31, %v142_v26 }
  0x10   :  { %v119_v34 = vadd.f32 %v210_v24, %v118_v29  ;;  %v158_v40 = vadd.f32 %v157_v36, %v143_v30 }
  0x12   :  { %v120_v38 = vadd.f32 %v213_v28, %v119_v34  ;;  %v159_v45 = vadd.f32 %v158_v40, %v144_v35 }
  0x14   :  { %v121_v43 = vadd.f32 %v214_v33, %v120_v38  ;;  %v160_v49 = vadd.f32 %v159_v45, %v145_v39 }
  0x16   :  { %v122_v47 = vadd.f32 %v217_v37, %v121_v43  ;;  %v161_v54 = vadd.f32 %v160_v49, %v146_v44 }
  0x18   :  { %v123_v52 = vadd.f32 %v218_v42, %v122_v47  ;;  %v162_v58 = vadd.f32 %v161_v54, %v147_v48 }
  0x1a   :  { %v124_v56 = vadd.f32 %v221_v46, %v123_v52  ;;  %v163_v62 = vadd.f32 %v162_v58, %v148_v53 }
  0x1c   :  { %v125_v60 = vadd.f32 %v222_v51, %v124_v56  ;;  %v164_v1 = vadd.f32 %v163_v62, %v149_v57 }
  0x1e   :  { %v126_v63 = vadd.f32 %v225_v55, %v125_v60  ;;  %v165_v4 = vadd.f32 %v164_v1, %v150_v61 }
  0x20   :  { %v127_v2 = vadd.f32 %v226_v59, %v126_v63  ;;  %v166_v6 = vadd.f32 %v165_v4, %v151_v0 }
  0x22   :  { %v128_v5 = vrot.slane %v127_v2, 4  ;;  %v167_v8 = vadd.f32 %v166_v6, %v152_v3 }
  0x24   :  { %v129_v7 = vadd.f32 %v128_v5, %v127_v2  ;;  %v168_v10 = vrot.slane %v167_v8, 4 }
  0x26   :  { %v130_v9 = vrot.slane %v129_v7, 2  ;;  %v169_v12 = vadd.f32 %v168_v10, %v167_v8 }
  0x28   :  { %v131_v11 = vadd.f32 %v130_v9, %v129_v7  ;;  %v170_v14 = vrot.slane %v169_v12, 2 }
  0x2a   :  { %v132_v13 = vrot.slane %v131_v11, 1  ;;  %v171_v17 = vadd.f32 %v170_v14, %v169_v12 }
  0x2c   :  { %v133_v16 = vadd.f32 %v132_v13, %v131_v11  ;;  %v172_v19 = vrot.slane %v171_v17, 1 }
  0x2e   :  { %v134_v18 = vadd.f32 %v133_v16, %v112_v15  ;;  %v173_v20 = vadd.f32 %v172_v19, %v171_v17 }
  0x30   :  { %135 = vst [vmem:[%s299_s1] sm:$0x1] %v134_v18  ;;  %v174_v22 = vadd.f32 %v173_v20, %v136_v21 }
  0x32   :  { %175 = vst [vmem:[%s299_s1 + $0x1] sm:$0x1] %v174_v22 }
  0x37   :  { %v179_v23 = vld [vmem:[%s299_s1] sm:$0x1] }
  0x38   :  { %v180_v24 = vmul.f32 0.0078125, %v179_v23 }
  0x39   :  { %v181_v26 = vld [vmem:[%s299_s1 + $0x1] sm:$0x1] }
  0x3a   :  { %v183_v25 = vmul.f32 %v180_v24, %v180_v24  ;;  %v182_v27 = vmul.f32 0.0078125, %v181_v26  ;;  %v188_v30 = vsub.f32 0.0, %v180_v24 }
  0x3c   :  { %v184_v28 = vsub.f32 %v182_v27, %v183_v25 }
  0x3e   :  { %v185_v29 = vadd.f32 1e-05, %v184_v28 }
  0x40   :  { %235 = vrsqrt.f32 %v185_v29 }
  0x4a   :  { %v236_v31 = vpop.eup %235 }
  0x4b   :  { %187 = vst [vmem:[%s299_s1] sm:$0x1] %v236_v31  ;;  %v189_v32 = vmul.f32 %v236_v31, %v188_v30 }
  0x4d   :  { %190 = vst [vmem:[%s299_s1 + $0x1] sm:$0x1] %v189_v32 }

// kernel: resnet_forward.32
= control target key start
LH: loop header
LB: loop body
LE: loop exit
PB: predicated region body
PF: predicated region fallthrough
CT: control target
= control target key end

     0   :  { %s555_s18 = smov 0   ;;  %s662_s0 = inlined_call_operand.vmem [shape: f32[1,128], index: 0, kind: input, shape index: {}]   ;;  %s663_s1 = inlined_call_operand.vmem [shape: f32[1,128], index: 1, kind: input, shape index: {}]   ;;  %s664_s2 = inlined_call_operand.vmem [shape: bf16[2,12,5,128], index: 2, kind: input, shape index: {}]   ;;  %s665_s3 = inlined_call_operand.vmem [shape: bf16[2,12,5,128], index: 3, kind: input, shape index: {}]   ;;  %s666_s4 = inlined_call_operand.vmem [shape: bf16[2,12,5,128], index: 4, kind: input, shape index: {}]   ;;  %s667_s5 = inlined_call_operand.vmem [shape: bf16[2,5,5,128], index: 5, kind: output, shape index: {}]  }
   0x1 LB: > { %s494_s19 = sadd.s32 4294967295, %s523_s18   ;;  %p498_p0 = scmp.ge.s32.totalorder %s523_s18, 1  ;;  %s523_s18 = sphi %s555_s18, %s15_s18  }
   0x2   : > { %p207_p1 = scmp.lt.s32.totalorder %s523_s18, 3 }
   0x4   : > { %p208_p2 = pnand %p498_p0, %p207_p1 }
   0x5   : > { %p245_p3 = scmp.lt.s32.totalorder (!%p208_p2), %s494_s19, 1  ;;  %vm397_vm0 = vcmask (!%p208_p2), 1042432   ;;  %vm398_vm1 = vsmask.f32 (!%p208_p2), 2304  ;;  %v603_v40 = vld [vmem:[%s662_s0] ss:$0 sm:$0xff] (!%p208_p2) }
   0x6   : > { %211 = sbr.rel (%p208_p2) target bundleno = 51 (0x33), region = 40  ;;  %vm632_vm2 = vmand (!%p208_p2), %vm397_vm0, %vm398_vm1 }
   0xd   : > { %s671_s19 = smov (!%p245_p3, %s494_s19), 1 }
   0xe   : > { %s507_s20 = smul.u32 48, %s671_s19 }
   0xf   : > { %s508_s7 = smul.u32 20, %s671_s19 }
  0x10   : > { %s569_s23 = scalar_lea.vmem %s664_s2, %s507_s20  ;;  %s574_s26 = scalar_lea.vmem %s665_s3, %s507_s20 }
  0x11   : > { %s579_s29 = scalar_lea.vmem %s666_s4, %s507_s20  ;;  %v265_v0 = vld [vmem:[%s569_s23] sm:$0x7]  ;;  %v266_v1 = vld [vmem:[%s569_s23 + $0x4] sm:$0x7]  ;;  %v267_v2 = vld [vmem:[%s569_s23 + $0x8] sm:$0x7]  ;;  %s626_s12 = scalar_lea.vmem %s667_s5, %s508_s7 }
  0x12   : > { %v276_v3 = vunpack.c.l.bf16 %v265_v0  ;;  %v277_v4 = vunpack.c.l.bf16 %v266_v1  ;;  %v278_v5 = vunpack.c.l.bf16 %v267_v2  ;;  %v287_v6 = vld [vmem:[%s574_s26] sm:$0x7]  ;;  %v288_v7 = vld [vmem:[%s574_s26 + $0x4] sm:$0x7]  ;;  %v289_v8 = vld [vmem:[%s574_s26 + $0x8] sm:$0x7] }
  0x13   : > { %v298_v9 = vunpack.c.l.bf16 %v287_v6  ;;  %v299_v10 = vunpack.c.l.bf16 %v288_v7  ;;  %v300_v11 = vunpack.c.l.bf16 %v289_v8  ;;  %v320_v12 = vld [vmem:[%s579_s29] sm:$0x7]  ;;  %v321_v13 = vld [vmem:[%s579_s29 + $0x4] sm:$0x7]  ;;  %v322_v14 = vld [vmem:[%s579_s29 + $0x8] sm:$0x7] }
  0x14   : > { %v331_v15 = vunpack.c.l.bf16 %v320_v12  ;;  %v332_v16 = vunpack.c.l.bf16 %v321_v13  ;;  %v333_v17 = vunpack.c.l.bf16 %v322_v14  ;;  %v268_v18 = vld [vmem:[%s569_s23 + $0xc] sm:$0x7]  ;;  %v269_v19 = vld [vmem:[%s569_s23 + $0x10] sm:$0x7]  ;;  %v270_v32 = vld [vmem:[%s569_s23 + $0x14] sm:$0x7] }
  0x15   : > { %v309_v20 = vmax.f32 %v276_v3, %v298_v9  ;;  %v310_v21 = vmax.f32 %v277_v4, %v299_v10  ;;  %v311_v22 = vmax.f32 %v278_v5, %v300_v11  ;;  %v279_v23 = vunpack.c.l.bf16 %v268_v18  ;;  %v290_v24 = vld [vmem:[%s574_s26 + $0xc] sm:$0x7]  ;;  %v291_v25 = vld [vmem:[%s574_s26 + $0x10] sm:$0x7]  ;;  %v271_v37 = vld [vmem:[%s569_s23 + $0x18] sm:$0x7] }
  0x16   : > { %v323_v26 = vld [vmem:[%s579_s29 + $0xc] sm:$0x7]  ;;  %v280_v27 = vunpack.c.l.bf16 %v269_v19  ;;  %v301_v28 = vunpack.c.l.bf16 %v290_v24  ;;  %v302_v29 = vunpack.c.l.bf16 %v291_v25  ;;  %v324_v30 = vld [vmem:[%s579_s29 + $0x10] sm:$0x7]  ;;  %v292_v38 = vld [vmem:[%s574_s26 + $0x14] sm:$0x7]  ;;  %v281_v43 = vunpack.c.l.bf16 %v270_v32 }
  0x17   : > { %v334_v31 = vunpack.c.l.bf16 %v323_v26  ;;  %v342_v33 = vmax.f32 %v309_v20, %v331_v15  ;;  %v343_v34 = vmax.f32 %v310_v21, %v332_v16  ;;  %v344_v35 = vmax.f32 %v311_v22, %v333_v17  ;;  %v293_v39 = vld [vmem:[%s574_s26 + $0x18] sm:$0x7]  ;;  %v325_v45 = vld [vmem:[%s579_s29 + $0x14] sm:$0x7]  ;;  %v272_v51 = vld [vmem:[%s569_s23 + $0x1c] sm:$0x7] }
  0x18   : > { %v335_v36 = vunpack.c.l.bf16 %v324_v30  ;;  %v312_v41 = vmax.f32 %v279_v23, %v301_v28  ;;  %v313_v42 = vmax.f32 %v280_v27, %v302_v29  ;;  %v282_v44 = vunpack.c.l.bf16 %v271_v37  ;;  %v326_v46 = vld [vmem:[%s579_s29 + $0x18] sm:$0x7]  ;;  %v273_v52 = vld [vmem:[%s569_s23 + $0x20] sm:$0x7]  ;;  %v294_v53 = vld [vmem:[%s574_s26 + $0x1c] sm:$0x7] }
  0x19   : > { %v353_v47 = vmax.f32 %v342_v33, %v343_v34  ;;  %v303_v48 = vunpack.c.l.bf16 %v292_v38  ;;  %v304_v49 = vunpack.c.l.bf16 %v293_v39  ;;  %v336_v50 = vunpack.c.l.bf16 %v325_v45  ;;  %v295_v58 = vld [vmem:[%s574_s26 + $0x20] sm:$0x7]  ;;  %v327_v59 = vld [vmem:[%s579_s29 + $0x1c] sm:$0x7]  ;;  %v274_v1 = vld [vmem:[%s569_s23 + $0x24] sm:$0x7] }
  0x1a   : > { %v345_v54 = vmax.f32 %v312_v41, %v334_v31  ;;  %v346_v55 = vmax.f32 %v313_v42, %v335_v36  ;;  %v337_v56 = vunpack.c.l.bf16 %v326_v46  ;;  %v283_v57 = vunpack.c.l.bf16 %v272_v51  ;;  %v328_v60 = vld [vmem:[%s579_s29 + $0x20] sm:$0x7]  ;;  %v275_v7 = vld [vmem:[%s569_s23 + $0x28] sm:$0x7]  ;;  %v296_v8 = vld [vmem:[%s574_s26 + $0x24] sm:$0x7] }
  0x1b   : > { %v358_v61 = vmax.f32 %v353_v47, %v344_v35  ;;  %v314_v62 = vmax.f32 %v281_v43, %v303_v48  ;;  %v315_v63 = vmax.f32 %v282_v44, %v304_v49  ;;  %v284_v0 = vunpack.c.l.bf16 %v273_v52  ;;  %v504_v2 = vld [vmem:[%s663_s1] ss:$0 sm:$0xff]  ;;  %v297_v13 = vld [vmem:[%s574_s26 + $0x28] sm:$0x7]  ;;  %v329_v18 = vld [vmem:[%s579_s29 + $0x24] sm:$0x7] }
  0x1c   : > { %v354_v3 = vmax.f32 %v344_v35, %v345_v54  ;;  %v305_v4 = vunpack.c.l.bf16 %v294_v53  ;;  %v306_v5 = vunpack.c.l.bf16 %v295_v58  ;;  %v338_v6 = vunpack.c.l.bf16 %v327_v59  ;;  %v330_v23 = vld [vmem:[%s579_s29 + $0x28] sm:$0x7]  ;;  %v400_v33 = vld [vmem:[%s626_s12] sm:$0x7]  ;;  %v403_v46 = vld [vmem:[%s626_s12 + $0x4] sm:$0x7] }
  0x1d   : > { %v370_v9 = vmul.f32 %v603_v40, %v358_v61  ;;  %v347_v10 = vmax.f32 %v314_v62, %v336_v50  ;;  %v348_v11 = vmax.f32 %v315_v63, %v337_v56  ;;  %v339_v12 = vunpack.c.l.bf16 %v328_v60  ;;  %v406_v54 = vld [vmem:[%s626_s12 + $0x8] sm:$0x7]  ;;  %v409_v60 = vld [vmem:[%s626_s12 + $0xc] sm:$0x7] }
  0x1e   : > { %v359_v14 = vmax.f32 %v354_v3, %v346_v55  ;;  %v316_v15 = vmax.f32 %v283_v57, %v305_v4  ;;  %v317_v16 = vmax.f32 %v284_v0, %v306_v5  ;;  %v285_v17 = vunpack.c.l.bf16 %v274_v1  ;;  %v412_v1 = vld [vmem:[%s626_s12 + $0x10] sm:$0x7] }
  0x1f   : > { %v382_v19 = vadd.f32 %v504_v2, %v370_v9  ;;  %v355_v20 = vmax.f32 %v346_v55, %v347_v10  ;;  %v286_v21 = vunpack.c.l.bf16 %v275_v7  ;;  %v307_v22 = vunpack.c.l.bf16 %v296_v8 }
  0x20   : > { %v371_v24 = vmul.f32 %v603_v40, %v359_v14  ;;  %v349_v25 = vmax.f32 %v316_v15, %v338_v6  ;;  %v350_v26 = vmax.f32 %v317_v16, %v339_v12  ;;  %v308_v27 = vunpack.c.l.bf16 %v297_v13 }
  0x21   : > { %v387_v28 = vmax.f32 %v382_v19, 0.0  ;;  %v360_v29 = vmax.f32 %v355_v20, %v348_v11  ;;  %v318_v30 = vmax.f32 %v285_v17, %v307_v22  ;;  %v340_v31 = vunpack.c.l.bf16 %v329_v18 }
  0x22   : > { %v383_v34 = vadd.f32 %v504_v2, %v371_v24  ;;  %v356_v35 = vmax.f32 %v348_v11, %v349_v25  ;;  %v319_v36 = vmax.f32 %v286_v21, %v308_v27  ;;  %v341_v37 = vunpack.c.l.bf16 %v330_v23 }
  0x23   : > { %v392_v38 = vpack.c.bf16 %v387_v28, %v387_v28  ;;  %v372_v39 = vmul.f32 %v603_v40, %v360_v29  ;;  %v351_v41 = vmax.f32 %v318_v30, %v340_v31 }
  0x24   : > { %v388_v42 = vmax.f32 %v383_v34, 0.0  ;;  %v361_v43 = vmax.f32 %v356_v35, %v350_v26  ;;  %v352_v44 = vmax.f32 %v319_v36, %v341_v37 }
  0x25   : > { %v401_v45 = vsel %vm632_vm2, %v392_v38, %v400_v33  ;;  %v384_v47 = vadd.f32 %v504_v2, %v372_v39  ;;  %v357_v48 = vmax.f32 %v350_v26, %v351_v41 }
  0x26   : > { %402 = vst [vmem:[%s626_s12] sm:$0x7] %v401_v45  ;;  %v393_v49 = vpack.c.bf16 %v388_v42, %v388_v42  ;;  %v373_v50 = vmul.f32 %v603_v40, %v361_v43 }
  0x27   : > { %v389_v51 = vmax.f32 %v384_v47, 0.0  ;;  %v362_v52 = vmax.f32 %v357_v48, %v352_v44 }
  0x28   : > { %v404_v53 = vsel %vm632_vm2, %v393_v49, %v403_v46  ;;  %v385_v55 = vadd.f32 %v504_v2, %v373_v50 }
  0x29   : > { %405 = vst [vmem:[%s626_s12 + $0x4] sm:$0x7] %v404_v53  ;;  %v394_v56 = vpack.c.bf16 %v389_v51, %v389_v51  ;;  %v374_v57 = vmul.f32 %v603_v40, %v362_v52 }
  0x2a   : > { %v390_v58 = vmax.f32 %v385_v55, 0.0 }
  0x2b   : > { %v407_v59 = vsel %vm632_vm2, %v394_v56, %v406_v54  ;;  %v386_v61 = vadd.f32 %v504_v2, %v374_v57 }
  0x2c   : > { %408 = vst [vmem:[%s626_s12 + $0x8] sm:$0x7] %v407_v59  ;;  %v395_v62 = vpack.c.bf16 %v390_v58, %v390_v58 }
  0x2d   : > { %v391_v63 = vmax.f32 %v386_v61, 0.0 }
  0x2e   : > { %v410_v0 = vsel %vm632_vm2, %v395_v62, %v409_v60 }
  0x2f   : > { %411 = vst [vmem:[%s626_s12 + $0xc] sm:$0x7] %v410_v0  ;;  %v396_v3 = vpack.c.bf16 %v391_v63, %v391_v63 }
  0x31   : > { %v413_v4 = vsel %vm632_vm2, %v396_v3, %v412_v1 }
  0x32   : > { %414 = vst [vmem:[%s626_s12 + $0x10] sm:$0x7] %v413_v4 }
  0x33 PF: > { %s15_s18 = sadd.s32 1, %s523_s18  }
  0x34   : > { %p12_p4 = scmp.ge.s32.totalorder %s15_s18, 4  }
  0x36   :  { %14 = sbr.rel (!%p12_p4) target bundleno = 1 (0x1), region = 76 }

// kernel: resnet_forward.30
= control target key start
LH: loop header
LB: loop body
LE: loop exit
PB: predicated region body
PF: predicated region fallthrough
CT: control target
= control target key end

     0   :  { %s870_s1 = inlined_call_operand.vmem [shape: bf16[256,128], index: 1, kind: input, shape index: {}]   ;;  %s871_s0 = inlined_call_operand.vmem [shape: bf16[128,256], index: 0, kind: input, shape index: {}]   ;;  %s872_s2 = inlined_call_operand.vmem [shape: bf16[128,128], index: 2, kind: output, shape index: {}]  }
   0x1   :  { %v695_v0 = vld [vmem:[%s870_s1 + $0x40] sm:$0xff]   ;;  %v697_v2 = vld [vmem:[%s870_s1 + $0x48] sm:$0xff]   ;;  %v699_v4 = vld [vmem:[%s870_s1 + $0x50] sm:$0xff]  }
   0x2   :  { %v696_v1 = vld [vmem:[%s870_s1] sm:$0xff]   ;;  %615 = vmatprep.subr.bf16.mxu0 %v695_v0  ;;  %679 = vmatprep.subr.bf16.mxu1 %v695_v0  ;;  %v698_v3 = vld [vmem:[%s870_s1 + $0x8] sm:$0xff]   ;;  %v700_v5 = vld [vmem:[%s870_s1 + $0x10] sm:$0xff]  }
   0x3   :  { %616 = vmatpush3.bf16.msra.mxu0 %v696_v1  ;;  %687 = vmatpush3.bf16.msra.mxu1 %v696_v1  ;;  %v701_v6 = vld [vmem:[%s870_s1 + $0x58] sm:$0xff]   ;;  %v703_v8 = vld [vmem:[%s870_s1 + $0x60] sm:$0xff]   ;;  %v705_v10 = vld [vmem:[%s870_s1 + $0x68] sm:$0xff]  }
   0x4   :  { %617 = vmatprep.subr.bf16.mxu0 %v697_v2  ;;  %680 = vmatprep.subr.bf16.mxu1 %v697_v2  ;;  %v702_v7 = vld [vmem:[%s870_s1 + $0x18] sm:$0xff]   ;;  %v704_v9 = vld [vmem:[%s870_s1 + $0x20] sm:$0xff]   ;;  %v706_v13 = vld [vmem:[%s870_s1 + $0x28] sm:$0xff]  }
   0x5   :  { %v713_v11 = vld [vmem:[%s871_s0 + $0x4] ss:$8 sps:$4 sm:$0xff]   ;;  %v707_v14 = vld [vmem:[%s870_s1 + $0x70] sm:$0xff]   ;;  %v709_v16 = vld [vmem:[%s870_s1 + $0x78] sm:$0xff]  }
   0x6   :  { %v716_v12 = vld [vmem:[%s871_s0 + $0x44] ss:$8 sps:$4 sm:$0xff]   ;;  %304 = vmatprep.mubr.bf16.mxu0 %v713_v11  ;;  %v708_v15 = vld [vmem:[%s870_s1 + $0x30] sm:$0xff]   ;;  %v710_v17 = vld [vmem:[%s870_s1 + $0x38] sm:$0xff]  }
   0x7   :  { %618 = vmatpush3.bf16.msra.mxu0 %v698_v3  ;;  %688 = vmatpush3.bf16.msra.mxu1 %v698_v3  ;;  %v711_v18 = vld [vmem:[%s871_s0] ss:$8 sps:$4 sm:$0xff]   ;;  %v717_v20 = vld [vmem:[%s871_s0 + $0x14] ss:$8 sps:$4 sm:$0xff]   ;;  %v721_v22 = vld [vmem:[%s871_s0 + $0x10] ss:$8 sps:$4 sm:$0xff]  }
   0x8   :  { %619 = vmatprep.subr.bf16.mxu0 %v699_v4  ;;  %681 = vmatprep.subr.bf16.mxu1 %v699_v4  ;;  %v714_v19 = vld [vmem:[%s871_s0 + $0x40] ss:$8 sps:$4 sm:$0xff]   ;;  %v719_v21 = vld [vmem:[%s871_s0 + $0x54] ss:$8 sps:$4 sm:$0xff]   ;;  %v722_v23 = vld [vmem:[%s871_s0 + $0x50] ss:$8 sps:$4 sm:$0xff]  }
   0x9   :  { %336 = vmatprep.mubr.bf16.mxu1 %v716_v12  ;;  %v723_v24 = vld [vmem:[%s871_s0 + $0x24] ss:$8 sps:$4 sm:$0xff]   ;;  %v727_v26 = vld [vmem:[%s871_s0 + $0x20] ss:$8 sps:$4 sm:$0xff]   ;;  %v729_v28 = vld [vmem:[%s871_s0 + $0x34] ss:$8 sps:$4 sm:$0xff]  }
   0xa   :  { %v725_v25 = vld [vmem:[%s871_s0 + $0x64] ss:$8 sps:$4 sm:$0xff]   ;;  %v728_v27 = vld [vmem:[%s871_s0 + $0x60] ss:$8 sps:$4 sm:$0xff]   ;;  %v731_v29 = vld [vmem:[%s871_s0 + $0x74] ss:$8 sps:$4 sm:$0xff]  }
   0xb   :  { %620 = vmatpush3.bf16.msra.mxu0 %v700_v5  ;;  %689 = vmatpush3.bf16.msra.mxu1 %v700_v5  ;;  %v733_v30 = vld [vmem:[%s871_s0 + $0x30] ss:$8 sps:$4 sm:$0xff]  }
   0xc   :  { %621 = vmatprep.subr.bf16.mxu0 %v701_v6  ;;  %682 = vmatprep.subr.bf16.mxu1 %v701_v6  ;;  %v734_v31 = vld [vmem:[%s871_s0 + $0x70] ss:$8 sps:$4 sm:$0xff]  }
   0xf   :  { %622 = vmatpush3.bf16.msra.mxu0 %v702_v7  ;;  %690 = vmatpush3.bf16.msra.mxu1 %v702_v7 }
  0x10   :  { %623 = vmatprep.subr.bf16.mxu0 %v703_v8  ;;  %683 = vmatprep.subr.bf16.mxu1 %v703_v8 }
  0x13   :  { %624 = vmatpush3.bf16.msra.mxu0 %v704_v9  ;;  %691 = vmatpush3.bf16.msra.mxu1 %v704_v9 }
  0x14   :  { %625 = vmatprep.subr.bf16.mxu0 %v705_v10  ;;  %684 = vmatprep.subr.bf16.mxu1 %v705_v10 }
  0x17   :  { %626 = vmatpush3.bf16.msra.mxu0 %v706_v13  ;;  %692 = vmatpush3.bf16.msra.mxu1 %v706_v13 }
  0x18   :  { %627 = vmatprep.subr.bf16.mxu0 %v707_v14  ;;  %685 = vmatprep.subr.bf16.mxu1 %v707_v14 }
  0x1b   :  { %628 = vmatpush3.bf16.msra.mxu0 %v708_v15  ;;  %693 = vmatpush3.bf16.msra.mxu1 %v708_v15 }
  0x1c   :  { %629 = vmatprep.subr.bf16.mxu0 %v709_v16  ;;  %686 = vmatprep.subr.bf16.mxu1 %v709_v16 }
  0x1f   :  { %630 = vmatpush3.bf16.msra.mxu0 %v710_v17  ;;  %694 = vmatpush3.bf16.msra.mxu1 %v710_v17 }
  0x22   :  { %305 = vmatmul.mubr.bf16.vlgmr.msra.gmra.mrb[0].mxu0 %v711_v18  ;;  %337 = vmatmul.mubr.bf16.vlgmr.msra.gmra.mrb[0].mxu1 %v714_v19 }
  0x23   :  { %312 = vmatprep.mubr.bf16.mxu0 %v717_v20  ;;  %344 = vmatprep.mubr.bf16.mxu1 %v719_v21 }
  0x2a   :  { %313 = vmatmul.mubr.bf16.gmra.mrb[4].mxu0 %v721_v22  ;;  %345 = vmatmul.mubr.bf16.gmra.mrb[4].mxu1 %v722_v23 }
  0x2b   :  { %320 = vmatprep.mubr.bf16.mxu0 %v723_v24  ;;  %352 = vmatprep.mubr.bf16.mxu1 %v725_v25 }
  0x32   :  { %321 = vmatmul.mubr.bf16.gmra.mrb[8].mxu0 %v727_v26  ;;  %353 = vmatmul.mubr.bf16.gmra.mrb[8].mxu1 %v728_v27 }
  0x33   :  { %328 = vmatprep.mubr.bf16.mxu0 %v729_v28  ;;  %360 = vmatprep.mubr.bf16.mxu1 %v731_v29 }
  0x3a   :  { %329 = vmatmul.mubr.bf16.gmra.mrb[12].mxu0 %v733_v30  ;;  %361 = vmatmul.mubr.bf16.gmra.mrb[12].mxu1 %v734_v31 }
  0xf5   :  { %v631_v32 = vpop.f32.mrb[0].mxu0  ;;  %v655_v33 = vpop.f32.mrb[0].mxu1 }
  0xf6   :  { %v632_v34 = vpop.f32.mrb[1].mxu0  ;;  %v656_v35 = vpop.f32.mrb[1].mxu1 }
  0xf7   :  { %v633_v36 = vadd.f32 %v632_v34, %v631_v32  ;;  %v657_v37 = vadd.f32 %v656_v35, %v655_v33  ;;  %v634_v38 = vpop.f32.mrb[2].mxu0  ;;  %v658_v39 = vpop.f32.mrb[2].mxu1 }
  0xf8   :  { %v635_v40 = vpop.f32.mrb[3].mxu0  ;;  %v659_v41 = vpop.f32.mrb[3].mxu1 }
  0xf9   :  { %v636_v42 = vadd.f32 %v635_v40, %v634_v38  ;;  %v660_v43 = vadd.f32 %v659_v41, %v658_v39 }
  0xfb   :  { %v571_v44 = vpack.c.bf16 %v636_v42, %v633_v36  ;;  %v591_v45 = vpack.c.bf16 %v660_v43, %v657_v37 }
  0xfd   :  { %572 = vst [vmem:[%s872_s2] sm:$0xff] %v571_v44   ;;  %611 = vst [vmem:[%s872_s2 + $0x20] sm:$0xff] %v591_v45   ;;  %v637_v46 = vpop.f32.mrb[4].mxu0  ;;  %v661_v47 = vpop.f32.mrb[4].mxu1 }
  0xfe   :  { %v638_v48 = vpop.f32.mrb[5].mxu0  ;;  %v662_v49 = vpop.f32.mrb[5].mxu1 }
  0xff   :  { %v639_v50 = vadd.f32 %v638_v48, %v637_v46  ;;  %v663_v51 = vadd.f32 %v662_v49, %v661_v47  ;;  %v640_v52 = vpop.f32.mrb[6].mxu0  ;;  %v664_v53 = vpop.f32.mrb[6].mxu1 }
 0x100   :  { %v641_v54 = vpop.f32.mrb[7].mxu0  ;;  %v665_v55 = vpop.f32.mrb[7].mxu1 }
 0x101   :  { %v642_v56 = vadd.f32 %v641_v54, %v640_v52  ;;  %v666_v57 = vadd.f32 %v665_v55, %v664_v53 }
 0x103   :  { %v576_v58 = vpack.c.bf16 %v642_v56, %v639_v50  ;;  %v596_v59 = vpack.c.bf16 %v666_v57, %v663_v51 }
 0x105   :  { %608 = vst [vmem:[%s872_s2 + $0x8] sm:$0xff] %v576_v58   ;;  %612 = vst [vmem:[%s872_s2 + $0x28] sm:$0xff] %v596_v59   ;;  %v643_v60 = vpop.f32.mrb[8].mxu0  ;;  %v667_v61 = vpop.f32.mrb[8].mxu1 }
 0x106   :  { %v644_v62 = vpop.f32.mrb[9].mxu0  ;;  %v668_v63 = vpop.f32.mrb[9].mxu1 }
 0x107   :  { %v645_v0 = vadd.f32 %v644_v62, %v643_v60  ;;  %v669_v1 = vadd.f32 %v668_v63, %v667_v61  ;;  %v646_v2 = vpop.f32.mrb[10].mxu0  ;;  %v670_v3 = vpop.f32.mrb[10].mxu1 }
 0x108   :  { %v647_v4 = vpop.f32.mrb[11].mxu0  ;;  %v671_v5 = vpop.f32.mrb[11].mxu1 }
 0x109   :  { %v648_v6 = vadd.f32 %v647_v4, %v646_v2  ;;  %v672_v7 = vadd.f32 %v671_v5, %v670_v3 }
 0x10b   :  { %v581_v8 = vpack.c.bf16 %v648_v6, %v645_v0  ;;  %v601_v9 = vpack.c.bf16 %v672_v7, %v669_v1 }
 0x10d   :  { %609 = vst [vmem:[%s872_s2 + $0x10] sm:$0xff] %v581_v8   ;;  %613 = vst [vmem:[%s872_s2 + $0x30] sm:$0xff] %v601_v9   ;;  %v649_v10 = vpop.f32.mrb[12].mxu0  ;;  %v673_v11 = vpop.f32.mrb[12].mxu1 }
 0x10e   :  { %v650_v12 = vpop.f32.mrb[13].mxu0  ;;  %v674_v13 = vpop.f32.mrb[13].mxu1 }
 0x10f   :  { %v651_v14 = vadd.f32 %v650_v12, %v649_v10  ;;  %v675_v15 = vadd.f32 %v674_v13, %v673_v11  ;;  %v652_v16 = vpop.f32.mrb[14].mxu0  ;;  %v676_v17 = vpop.f32.mrb[14].mxu1 }
 0x110   :  { %v653_v18 = vpop.f32.mrb[15].mxu0  ;;  %v677_v19 = vpop.f32.mrb[15].mxu1 }
 0x111   :  { %v654_v20 = vadd.f32 %v653_v18, %v652_v16  ;;  %v678_v21 = vadd.f32 %v677_v19, %v676_v17 }
 0x113   :  { %v586_v22 = vpack.c.bf16 %v654_v20, %v651_v14  ;;  %v606_v23 = vpack.c.bf16 %v678_v21, %v675_v15 }
 0x115   :  { %610 = vst [vmem:[%s872_s2 + $0x18] sm:$0xff] %v586_v22   ;;  %614 = vst [vmem:[%s872_s2 + $0x38] sm:$0xff] %v606_v23  }

// kernel: resnet_forward.33
= control target key start
LH: loop header
LB: loop body
LE: loop exit
PB: predicated region body
PF: predicated region fallthrough
CT: control target
= control target key end

     0   :  { %v359_v1 = vmov 0.0   ;;  %s423_s1 = inlined_call_operand.vmem [shape: bf16[128,128], index: 1, kind: input, shape index: {}]   ;;  %s424_s0 = inlined_call_operand.vmem [shape: bf16[50,128], index: 0, kind: input, shape index: {}]   ;;  %s425_s2 = inlined_call_operand.vmem [shape: bf16[50,128], index: 2, kind: output, shape index: {}]  }
   0x1   :  { %v347_v0 = vld [vmem:[%s423_s1] sm:$0xff]   ;;  %22 = vst [vmem:[#allocation2 + $0x30] sm:$0x3] %v359_v1  ;;  %v348_v2 = vld [vmem:[%s423_s1 + $0x8] sm:$0xff]   ;;  %v349_v3 = vld [vmem:[%s423_s1 + $0x10] sm:$0xff]  }
   0x2   :  { %306 = vmatprep.subr.bf16.mxu0 %v347_v0  ;;  %330 = vmatprep.subr.bf16.mxu1 %v347_v0  ;;  %v350_v4 = vld [vmem:[%s423_s1 + $0x18] sm:$0xff]   ;;  %v355_v5 = vld [vmem:[%s424_s0] sm:$0xff]   ;;  %v356_v6 = vld [vmem:[%s424_s0 + $0x10] sm:$0xff]  }
   0x3   :  { %307 = vmatpush3.bf16.msra.mxu0 %v347_v0  ;;  %338 = vmatpush3.bf16.msra.mxu1 %v347_v0  ;;  %v351_v7 = vld [vmem:[%s423_s1 + $0x20] sm:$0xff]   ;;  %v352_v8 = vld [vmem:[%s423_s1 + $0x28] sm:$0xff]   ;;  %v353_v9 = vld [vmem:[%s423_s1 + $0x30] sm:$0xff]  }
   0x4   :  { %308 = vmatprep.subr.bf16.mxu0 %v348_v2  ;;  %331 = vmatprep.subr.bf16.mxu1 %v348_v2  ;;  %v354_v10 = vld [vmem:[%s423_s1 + $0x38] sm:$0xff]   ;;  %v357_v11 = vld [vmem:[%s424_s0 + $0x8] sm:$0xff]  }
   0x5   :  { %322 = vmatprep.mubr.bf16.mxu0 %v355_v5  ;;  %326 = vmatprep.mubr.bf16.mxu1 %v356_v6  ;;  %v358_v12 = vld [vmem:[%s424_s0 + $0x18] ss:$0 sps:$4 sm:$0x11]  }
   0x7   :  { %309 = vmatpush3.bf16.msra.mxu0 %v348_v2  ;;  %339 = vmatpush3.bf16.msra.mxu1 %v348_v2 }
   0x8   :  { %310 = vmatprep.subr.bf16.mxu0 %v349_v3  ;;  %332 = vmatprep.subr.bf16.mxu1 %v349_v3  ;;  %v29_v13 = vld [vmem:[#allocation2 + $0x30] sm:$0x3] }
   0xb   :  { %311 = vmatpush3.bf16.msra.mxu0 %v349_v3  ;;  %340 = vmatpush3.bf16.msra.mxu1 %v349_v3 }
   0xc   :  { %312 = vmatprep.subr.bf16.mxu0 %v350_v4  ;;  %333 = vmatprep.subr.bf16.mxu1 %v350_v4 }
   0xf   :  { %313 = vmatpush3.bf16.msra.mxu0 %v350_v4  ;;  %341 = vmatpush3.bf16.msra.mxu1 %v350_v4 }
  0x10   :  { %314 = vmatprep.subr.bf16.mxu0 %v351_v7  ;;  %334 = vmatprep.subr.bf16.mxu1 %v351_v7 }
  0x13   :  { %315 = vmatpush3.bf16.msra.mxu0 %v351_v7  ;;  %342 = vmatpush3.bf16.msra.mxu1 %v351_v7 }
  0x14   :  { %316 = vmatprep.subr.bf16.mxu0 %v352_v8  ;;  %335 = vmatprep.subr.bf16.mxu1 %v352_v8 }
  0x17   :  { %317 = vmatpush3.bf16.msra.mxu0 %v352_v8  ;;  %343 = vmatpush3.bf16.msra.mxu1 %v352_v8 }
  0x18   :  { %318 = vmatprep.subr.bf16.mxu0 %v353_v9  ;;  %336 = vmatprep.subr.bf16.mxu1 %v353_v9 }
  0x1b   :  { %319 = vmatpush3.bf16.msra.mxu0 %v353_v9  ;;  %344 = vmatpush3.bf16.msra.mxu1 %v353_v9 }
  0x1c   :  { %320 = vmatprep.subr.bf16.mxu0 %v354_v10  ;;  %337 = vmatprep.subr.bf16.mxu1 %v354_v10 }
  0x1f   :  { %321 = vmatpush3.bf16.msra.mxu0 %v354_v10  ;;  %345 = vmatpush3.bf16.msra.mxu1 %v354_v10 }
  0x22   :  { %323 = vmatmul.mubr.bf16.vlgmr.msra.gmra.mrb[0].mxu0 %v357_v11  ;;  %327 = vmatmul.mubr.bf16.vlgmr.msra.gmra.mrb[0].mxu1 %v358_v12 }
  0xf5   :  { %v324_v14 = vpop.f32.mrb[0].mxu0  ;;  %v328_v15 = vpop.f32.mrb[0].mxu1 }
  0xf6   :  { %v193_v16 = vadd.f32 %v328_v15, %v29_v13  ;;  %v157_v17 = vpop.f32.mrb[1].mxu0  ;;  %v173_v18 = vpop.f32.mrb[1].mxu1 }
  0xf7   :  { %v325_v19 = vpop.f32.mrb[2].mxu0  ;;  %v329_v20 = vpop.f32.mrb[2].mxu1 }
  0xf8   :  { %200 = vst [vmem:[#allocation2 + $0x30] sm:$0x3] %v193_v16  ;;  %v160_v21 = vpop.f32.mrb[3].mxu0  ;;  %v176_v22 = vpop.f32.mrb[3].mxu1  ;;  %v285_v23 = vpack.c.bf16 %v325_v19, %v324_v14 }
  0xf9   :  { %v280_v24 = vpack.c.bf16 %v160_v21, %v157_v17  ;;  %v290_v25 = vpack.c.bf16 %v176_v22, %v173_v18 }
  0xfa   :  { %292 = vst [vmem:[%s425_s2 + $0x8] sm:$0xff] %v285_v23  }
  0xfb   :  { %281 = vst [vmem:[%s425_s2] sm:$0xff] %v280_v24   ;;  %293 = vst [vmem:[%s425_s2 + $0x10] sm:$0xff] %v290_v25  }
  0xff   :  { %v210_v26 = vld [vmem:[#allocation2 + $0x30] sm:$0x3] }
 0x100   :  { %v276_v27 = vpack.c.bf16 %v210_v26, %v210_v26 }
 0x102   :  { %246 = vst [vmem:[%s425_s2 + $0x18] sm:$0x1] %v276_v27 }

// kernel: resnet_forward.34
= control target key start
LH: loop header
LB: loop body
LE: loop exit
PB: predicated region body
PF: predicated region fallthrough
CT: control target
= control target key end

     0   :  { %v27_v0 = vlaneseq  ;;  %v134_v1 = vmov 0.0   ;;  %vm64_vm1 = vcmask 1041408   ;;  %s184_s1 = inlined_call_operand.vmem [shape: f32[2,128], index: 1, kind: output, shape index: {}]   ;;  %s185_s0 = inlined_call_operand.vmem [shape: bf16[50,128], index: 0, kind: input, shape index: {}]  }
   0x1   :  { %12 = vst [vmem:[%s184_s1] sm:$0x3] %v134_v1  ;;  %v118_v2 = vld [vmem:[%s185_s0] sm:$0xff]   ;;  %v129_v3 = vld [vmem:[%s185_s0 + $0x8] sm:$0xff]   ;;  %v130_v4 = vld [vmem:[%s185_s0 + $0x10] sm:$0xff]  }
   0x2   :  { %v119_v5 = vunpack.c.l.bf16 %v118_v2  ;;  %v120_v6 = vunpack.c.h.bf16 %v118_v2  ;;  %v123_v7 = vunpack.c.l.bf16 %v129_v3  ;;  %v124_v8 = vunpack.c.h.bf16 %v129_v3  ;;  %v19_v9 = vld [vmem:[%s185_s0 + $0x18] sm:$0x1] }
   0x3   :  { %v127_v10 = vunpack.c.l.bf16 %v130_v4  ;;  %v26_v11 = vunpack.c.l.bf16 %v19_v9  ;;  %v28_v12 = vshrl.u32 %v27_v0, 7  ;;  %v128_v18 = vunpack.c.h.bf16 %v130_v4 }
   0x4   :  { %v59_v13 = vadd.f32 %v120_v6, %v119_v5  ;;  %v76_v14 = vmul.f32 %v119_v5, %v119_v5  ;;  %v77_v15 = vmul.f32 %v120_v6, %v120_v6  ;;  %v78_v16 = vmul.f32 %v123_v7, %v123_v7 }
   0x5   :  { %v34_v17 = vadd.s32 48, %v28_v12  ;;  %v79_v20 = vmul.f32 %v124_v8, %v124_v8  ;;  %v80_v24 = vmul.f32 %v127_v10, %v127_v10  ;;  %v81_v28 = vmul.f32 %v128_v18, %v128_v18 }
   0x6   :  { %v60_v19 = vadd.f32 %v123_v7, %v59_v13  ;;  %v83_v21 = vadd.f32 %v77_v15, %v76_v14 }
   0x7   :  { %vm50_vm0 = vcmp.lt.s32.totalorder %v34_v17, 50 }
   0x8   :  { %v57_v22 = vsel %vm50_vm0, %v26_v11, 0.0  ;;  %v61_v23 = vadd.f32 %v124_v8, %v60_v19  ;;  %v84_v25 = vadd.f32 %v83_v21, %v78_v16  ;;  %v58_v46 = vld [vmem:[%s184_s1] sm:$0x1]  ;;  %v75_v51 = vld [vmem:[%s184_s1 + $0x1] sm:$0x1] }
   0x9   :  { %v82_v26 = vmul.f32 %v57_v22, %v57_v22  ;;  %v65_v30 = vsel %vm64_vm1, %v57_v22, 0.0 }
   0xa   :  { %v62_v27 = vadd.f32 %v127_v10, %v61_v23  ;;  %v85_v29 = vadd.f32 %v84_v25, %v79_v20 }
   0xb   :  { %v88_v33 = vsel %vm64_vm1, %v82_v26, 0.0 }
   0xc   :  { %v63_v31 = vadd.f32 %v128_v18, %v62_v27  ;;  %v86_v32 = vadd.f32 %v85_v29, %v80_v24 }
   0xe   :  { %v66_v34 = vadd.f32 %v65_v30, %v63_v31  ;;  %v87_v35 = vadd.f32 %v86_v32, %v81_v28 }
  0x10   :  { %v67_v36 = vrot.slane %v66_v34, 4  ;;  %v89_v37 = vadd.f32 %v88_v33, %v87_v35 }
  0x12   :  { %v68_v38 = vadd.f32 %v67_v36, %v66_v34  ;;  %v90_v39 = vrot.slane %v89_v37, 4 }
  0x14   :  { %v69_v40 = vrot.slane %v68_v38, 2  ;;  %v91_v41 = vadd.f32 %v90_v39, %v89_v37 }
  0x16   :  { %v70_v42 = vadd.f32 %v69_v40, %v68_v38  ;;  %v92_v43 = vrot.slane %v91_v41, 2 }
  0x18   :  { %v71_v44 = vrot.slane %v70_v42, 1  ;;  %v93_v45 = vadd.f32 %v92_v43, %v91_v41 }
  0x1a   :  { %v72_v47 = vadd.f32 %v71_v44, %v70_v42  ;;  %v94_v48 = vrot.slane %v93_v45, 1 }
  0x1c   :  { %v73_v49 = vadd.f32 %v72_v47, %v58_v46  ;;  %v95_v50 = vadd.f32 %v94_v48, %v93_v45 }
  0x1e   :  { %74 = vst [vmem:[%s184_s1] sm:$0x1] %v73_v49  ;;  %v96_v52 = vadd.f32 %v95_v50, %v75_v51 }
  0x20   :  { %97 = vst [vmem:[%s184_s1 + $0x1] sm:$0x1] %v96_v52 }
  0x25   :  { %v101_v53 = vld [vmem:[%s184_s1] sm:$0x1] }
  0x26   :  { %v102_v54 = vmul.f32 0.02, %v101_v53 }
  0x27   :  { %v103_v55 = vld [vmem:[%s184_s1 + $0x1] sm:$0x1] }
  0x28   :  { %v104_v56 = vmul.f32 0.02, %v103_v55  ;;  %v105_v57 = vmul.f32 %v102_v54, %v102_v54  ;;  %v110_v60 = vsub.f32 0.0, %v102_v54 }
  0x2a   :  { %v106_v58 = vsub.f32 %v104_v56, %v105_v57 }
  0x2c   :  { %v107_v59 = vadd.f32 1e-05, %v106_v58 }
  0x2e   :  { %132 = vrsqrt.f32 %v107_v59 }
  0x38   :  { %v133_v61 = vpop.eup %132 }
  0x39   :  { %109 = vst [vmem:[%s184_s1] sm:$0x1] %v133_v61  ;;  %v111_v62 = vmul.f32 %v133_v61, %v110_v60 }
  0x3b   :  { %112 = vst [vmem:[%s184_s1 + $0x1] sm:$0x1] %v111_v62 }

// kernel: resnet_forward.37
= control target key start
LH: loop header
LB: loop body
LE: loop exit
PB: predicated region body
PF: predicated region fallthrough
CT: control target
= control target key end

     0   :  { %v458_v1 = vmov 0   ;;  %v459_v2 = vmov 0.0   ;;  %s576_s3 = inlined_call_operand.vmem [shape: bf16[128,256], index: 3, kind: input, shape index: {}]   ;;  %s577_s2 = inlined_call_operand.vmem [shape: bf16[50,128], index: 2, kind: input, shape index: {}]   ;;  %s578_s0 = inlined_call_operand.vmem [shape: f32[1,128], index: 0, kind: input, shape index: {}]   ;;  %s579_s1 = inlined_call_operand.vmem [shape: f32[1,128], index: 1, kind: input, shape index: {}]   ;;  %s580_s4 = inlined_call_operand.vmem [shape: bf16[50,256], index: 4, kind: output, shape index: {}]  }
   0x1   :  { %v434_v0 = vld [vmem:[%s576_s3 + $0x4] ss:$8 sps:$4 sm:$0xff]   ;;  %231 = vmatprep.mubr.bf16.mxu0 %v458_v1  ;;  %251 = vmatprep.mubr.bf16.mxu1 %v458_v1  ;;  %34 = vst [vmem:[#allocation2 + $0x60] sm:$0x3] %v459_v2  ;;  %35 = vst [vmem:[#allocation2 + $0x68] sm:$0x3] %v459_v2 }
   0x2   :  { %v436_v3 = vld [vmem:[%s576_s3] ss:$8 sps:$4 sm:$0xff]   ;;  %199 = vmatprep.subr.bf16.mxu0 %v434_v0  ;;  %416 = vmatprep.subr.bf16.mxu1 %v434_v0  ;;  %v437_v4 = vld [vmem:[%s576_s3 + $0x14] ss:$8 sps:$4 sm:$0xff]   ;;  %v439_v5 = vld [vmem:[%s576_s3 + $0x10] ss:$8 sps:$4 sm:$0xff]  }
   0x3   :  { %200 = vmatpush1.bf16.msra.mxu0 %v436_v3  ;;  %424 = vmatpush1.bf16.msra.mxu1 %v436_v3  ;;  %v440_v6 = vld [vmem:[%s576_s3 + $0x24] ss:$8 sps:$4 sm:$0xff]   ;;  %v442_v7 = vld [vmem:[%s576_s3 + $0x20] ss:$8 sps:$4 sm:$0xff]   ;;  %v443_v8 = vld [vmem:[%s576_s3 + $0x34] ss:$8 sps:$4 sm:$0xff]  }
   0x4   :  { %201 = vmatprep.subr.bf16.mxu0 %v437_v4  ;;  %417 = vmatprep.subr.bf16.mxu1 %v437_v4  ;;  %v403_v9 = vld [vmem:[%s577_s2] sm:$0xff]   ;;  %v445_v10 = vld [vmem:[%s576_s3 + $0x30] ss:$8 sps:$4 sm:$0xff]   ;;  %v449_v19 = vld [vmem:[%s576_s3 + $0x54] ss:$8 sps:$4 sm:$0xff]  }
   0x5   :  { %v415_v11 = vld [vmem:[%s577_s2 + $0x10] sm:$0xff]   ;;  %v446_v12 = vld [vmem:[%s576_s3 + $0x44] ss:$8 sps:$4 sm:$0xff]   ;;  %v404_v13 = vunpack.c.l.bf16 %v403_v9  ;;  %v405_v14 = vunpack.c.h.bf16 %v403_v9  ;;  %v448_v17 = vld [vmem:[%s576_s3 + $0x40] ss:$8 sps:$4 sm:$0xff]  }
   0x6   :  { %v412_v15 = vunpack.c.l.bf16 %v415_v11  ;;  %v413_v16 = vunpack.c.h.bf16 %v415_v11  ;;  %v370_v18 = vld [vmem:[%s578_s0] ss:$0 sm:$0xff]  ;;  %v414_v24 = vld [vmem:[%s577_s2 + $0x8] sm:$0xff]   ;;  %v451_v25 = vld [vmem:[%s576_s3 + $0x50] ss:$8 sps:$4 sm:$0xff]  }
   0x7   :  { %202 = vmatpush1.bf16.msra.mxu0 %v439_v5  ;;  %425 = vmatpush1.bf16.msra.mxu1 %v439_v5  ;;  %v57_v20 = vmul.f32 %v404_v13, %v370_v18  ;;  %v58_v21 = vmul.f32 %v405_v14, %v370_v18  ;;  %v371_v26 = vld [vmem:[%s579_s1] ss:$0 sm:$0xff]  ;;  %v42_v27 = vld [vmem:[%s577_s2 + $0x18] sm:$0x1]  ;;  %v452_v28 = vld [vmem:[%s576_s3 + $0x64] ss:$8 sps:$4 sm:$0xff]   ;;  %v408_v30 = vunpack.c.l.bf16 %v414_v24  ;;  %v409_v31 = vunpack.c.h.bf16 %v414_v24 }
   0x8   :  { %203 = vmatprep.subr.bf16.mxu0 %v440_v6  ;;  %418 = vmatprep.subr.bf16.mxu1 %v440_v6  ;;  %v61_v22 = vmul.f32 %v412_v15, %v370_v18  ;;  %v62_v23 = vmul.f32 %v413_v16, %v370_v18  ;;  %v49_v35 = vunpack.c.l.bf16 %v42_v27  ;;  %v454_v36 = vld [vmem:[%s576_s3 + $0x60] ss:$8 sps:$4 sm:$0xff]   ;;  %v455_v37 = vld [vmem:[%s576_s3 + $0x74] ss:$8 sps:$4 sm:$0xff]   ;;  %v457_v45 = vld [vmem:[%s576_s3 + $0x70] ss:$8 sps:$4 sm:$0xff]  }
   0x9   :  { %v71_v29 = vadd.f32 %v371_v26, %v57_v20  ;;  %v72_v32 = vadd.f32 %v371_v26, %v58_v21  ;;  %v59_v39 = vmul.f32 %v408_v30, %v370_v18  ;;  %v60_v40 = vmul.f32 %v409_v31, %v370_v18  ;;  %v97_v4 = vld [vmem:[#allocation2 + $0x60] sm:$0x3]  ;;  %v98_v5 = vld [vmem:[#allocation2 + $0x68] sm:$0x3] }
   0xa   :  { %v75_v33 = vadd.f32 %v371_v26, %v61_v22  ;;  %v76_v34 = vadd.f32 %v371_v26, %v62_v23  ;;  %v63_v44 = vmul.f32 %v370_v18, %v49_v35 }
   0xb   :  { %204 = vmatpush1.bf16.msra.mxu0 %v442_v7  ;;  %426 = vmatpush1.bf16.msra.mxu1 %v442_v7  ;;  %v78_v38 = vmax.f32 %v71_v29, 0.0  ;;  %v79_v41 = vmax.f32 %v72_v32, 0.0  ;;  %v73_v46 = vadd.f32 %v371_v26, %v59_v39  ;;  %v74_v49 = vadd.f32 %v371_v26, %v60_v40 }
   0xc   :  { %205 = vmatprep.subr.bf16.mxu0 %v443_v8  ;;  %419 = vmatprep.subr.bf16.mxu1 %v443_v8  ;;  %v82_v42 = vmax.f32 %v75_v33, 0.0  ;;  %v83_v43 = vmax.f32 %v76_v34, 0.0  ;;  %v77_v50 = vadd.f32 %v371_v26, %v63_v44 }
   0xd   :  { %v99_v47 = vpack.c.bf16 %v79_v41, %v78_v38  ;;  %v80_v51 = vmax.f32 %v73_v46, 0.0  ;;  %v81_v52 = vmax.f32 %v74_v49, 0.0 }
   0xe   :  { %v101_v48 = vpack.c.bf16 %v83_v43, %v82_v42  ;;  %v84_v53 = vmax.f32 %v77_v50, 0.0 }
   0xf   :  { %206 = vmatpush1.bf16.msra.mxu0 %v445_v10  ;;  %427 = vmatpush1.bf16.msra.mxu1 %v445_v10  ;;  %v100_v54 = vpack.c.bf16 %v81_v52, %v80_v51 }
  0x10   :  { %207 = vmatprep.subr.bf16.mxu0 %v446_v12  ;;  %420 = vmatprep.subr.bf16.mxu1 %v446_v12  ;;  %v102_v55 = vpack.c.bf16 %v84_v53, %v84_v53 }
  0x13   :  { %208 = vmatpush1.bf16.msra.mxu0 %v448_v17  ;;  %428 = vmatpush1.bf16.msra.mxu1 %v448_v17 }
  0x14   :  { %209 = vmatprep.subr.bf16.mxu0 %v449_v19  ;;  %421 = vmatprep.subr.bf16.mxu1 %v449_v19 }
  0x17   :  { %210 = vmatpush1.bf16.msra.mxu0 %v451_v25  ;;  %429 = vmatpush1.bf16.msra.mxu1 %v451_v25 }
  0x18   :  { %211 = vmatprep.subr.bf16.mxu0 %v452_v28  ;;  %422 = vmatprep.subr.bf16.mxu1 %v452_v28 }
  0x1b   :  { %212 = vmatpush1.bf16.msra.mxu0 %v454_v36  ;;  %430 = vmatpush1.bf16.msra.mxu1 %v454_v36 }
  0x1c   :  { %213 = vmatprep.subr.bf16.mxu0 %v455_v37  ;;  %423 = vmatprep.subr.bf16.mxu1 %v455_v37 }
  0x1f   :  { %214 = vmatpush1.bf16.msra.mxu0 %v457_v45  ;;  %431 = vmatpush1.bf16.msra.mxu1 %v457_v45 }
  0x22   :  { %232 = vmatmul.mubr.bf16.vlgmr.msra.gmra.mrb[0].mxu0 %v99_v47  ;;  %252 = vmatmul.mubr.bf16.vlgmr.msra.gmra.mrb[0].mxu1 %v101_v48 }
  0x23   :  { %241 = vmatprep.mubr.bf16.mxu0 %v458_v1  ;;  %261 = vmatprep.mubr.bf16.mxu1 %v458_v1 }
  0x2a   :  { %242 = vmatmul.mubr.bf16.gmra.mrb[4].mxu0 %v100_v54  ;;  %262 = vmatmul.mubr.bf16.gmra.mrb[4].mxu1 %v102_v55 }
  0xf5   :  { %v233_v56 = vpop.f32.mrb[0].mxu0  ;;  %v253_v57 = vpop.f32.mrb[0].mxu1 }
  0xf6   :  { %v235_v58 = vpop.f32.mrb[1].mxu0  ;;  %v255_v59 = vpop.f32.mrb[1].mxu1 }
  0xf7   :  { %v237_v60 = vpop.f32.mrb[2].mxu0  ;;  %v257_v61 = vpop.f32.mrb[2].mxu1  ;;  %v395_v0 = vpack.c.bf16 %v235_v58, %v233_v56  ;;  %v399_v2 = vpack.c.bf16 %v255_v59, %v253_v57 }
  0xf8   :  { %v239_v62 = vpop.f32.mrb[3].mxu0  ;;  %v259_v63 = vpop.f32.mrb[3].mxu1 }
  0xf9   :  { %359 = vst [vmem:[%s580_s4] sm:$0xff] %v395_v0  ;;  %363 = vst [vmem:[%s580_s4 + $0x20] sm:$0xff] %v399_v2  ;;  %v396_v1 = vpack.c.bf16 %v239_v62, %v237_v60  ;;  %v400_v3 = vpack.c.bf16 %v259_v63, %v257_v61 }
  0xfb   :  { %360 = vst [vmem:[%s580_s4 + $0x8] sm:$0xff] %v396_v1  ;;  %364 = vst [vmem:[%s580_s4 + $0x28] sm:$0xff] %v400_v3 }
  0xfd   :  { %v243_v6 = vpop.f32.mrb[4].mxu0  ;;  %v263_v7 = vpop.f32.mrb[4].mxu1 }
  0xfe   :  { %v282_v8 = vadd.f32 %v263_v7, %v97_v4  ;;  %v245_v9 = vpop.f32.mrb[5].mxu0  ;;  %v265_v10 = vpop.f32.mrb[5].mxu1 }
  0xff   :  { %v283_v11 = vadd.f32 %v265_v10, %v98_v5  ;;  %v247_v12 = vpop.f32.mrb[6].mxu0  ;;  %v267_v13 = vpop.f32.mrb[6].mxu1  ;;  %v397_v16 = vpack.c.bf16 %v245_v9, %v243_v6 }
 0x100   :  { %296 = vst [vmem:[#allocation2 + $0x60] sm:$0x3] %v282_v8  ;;  %v249_v14 = vpop.f32.mrb[7].mxu0  ;;  %v268_v15 = vpop.f32.mrb[7].mxu1 }
 0x101   :  { %297 = vst [vmem:[#allocation2 + $0x68] sm:$0x3] %v283_v11  ;;  %361 = vst [vmem:[%s580_s4 + $0x10] sm:$0xff] %v397_v16  ;;  %v398_v17 = vpack.c.bf16 %v249_v14, %v247_v12 }
 0x103   :  { %362 = vst [vmem:[%s580_s4 + $0x18] sm:$0xff] %v398_v17 }
 0x107   :  { %v313_v18 = vld [vmem:[#allocation2 + $0x60] sm:$0x3] }
 0x108   :  { %v314_v19 = vld [vmem:[#allocation2 + $0x68] sm:$0x3] }
 0x109   :  { %v401_v20 = vpack.c.bf16 %v314_v19, %v313_v18 }
 0x10b   :  { %365 = vst [vmem:[%s580_s4 + $0x30] sm:$0x11] %v401_v20 }

// kernel: resnet_forward.35
= control target key start
LH: loop header
LB: loop body
LE: loop exit
PB: predicated region body
PF: predicated region fallthrough
CT: control target
= control target key end

     0   :  { %s1315_s15 = smov 0   ;;  %s1317_s16 = smov 0   ;;  %s1508_s0 = inlined_call_operand.vmem [shape: f32[1,1152], index: 0, kind: input, shape index: {}]   ;;  %s1509_s1 = inlined_call_operand.vmem [shape: f32[1,1152], index: 1, kind: input, shape index: {}]   ;;  %s1510_s2 = inlined_call_operand.vmem [shape: bf16[50,1152], index: 2, kind: input, shape index: {}]   ;;  %s1511_s3 = inlined_call_operand.vmem [shape: bf16[1152,128], index: 3, kind: input, shape index: {}]   ;;  %s1512_s4 = inlined_call_operand.vmem [shape: bf16[50,128], index: 4, kind: output, shape index: {}]  }
   0x1   :  { %s1319_s17 = smov 0   ;;  %s1321_s18 = smov 0  }
   0x2   :  { %s1323_s19 = smov 0  }
   0x3 LB: > { %s26_s20 = sadd.s32 1, %s1283_s18  ;;  %p101_p1 = scmp.ne.s32.totalorder %s1275_s16, %s1271_s15  ;;  %s1287_s19 = sphi %s1323_s19, %s14_s19   ;;  %s1283_s18 = sphi %s1321_s18, %s1516_s18   ;;  %s1279_s17 = sphi %s1319_s17, %s1515_s17   ;;  %s1275_s16 = sphi %s1317_s16, %s1514_s16   ;;  %s1271_s15 = sphi %s1315_s15, %s1513_s15  }
   0x4   : > { %p27_p0 = scmp.ge.s32.totalorder %s26_s20, 3  ;;  %p102_p2 = scmp.eq.s32.totalorder %s1287_s19, 0 }
   0x5   : > { %s94_s22 = sadd.s32 1, %s1275_s16  ;;  %p1026_p5 = scmp.ge.s32.totalorder %s1287_s19, 3 }
   0x6   : > { %s1518_s20 = smov (%p27_p0, %s26_s20), 0  ;;  %p103_p3 = por %p102_p2, %p101_p1 }
   0x7   : > { %s90_s21 = ssub.s32 %s1283_s18, %s1518_s20  ;;  %183 = sbr.rel (%p1026_p5) target bundleno = 27 (0x1b), region = 16 }
   0x8   : > { %p92_p4 = scmp.eq.s32.totalorder %s90_s21, 0 }
   0xa   : > { %s1350_s23 = scalar_select %p92_p4, %s1275_s16, %s94_s22  }
   0xe   : > { %202 = sbr.rel (!%p103_p3) target bundleno = 27 (0x1b), region = 28  ;;  %s204_s24 = sand.u32 (%p103_p3), 1, %s1275_s16  }
   0xf   : > { %s1081_s25 = smul.u32 (%p103_p3), 12, %s1283_s18 }
  0x10   : > { %s1182_s26 = smul.u32 (%p103_p3), 84, %s204_s24 }
  0x11   : > { %s212_s29 = scalar_lea.vmem (%p103_p3), %s1510_s2, %s1081_s25 }
  0x12   : > { %v227_v0 = vld [vmem:[%s212_s29] sm:$0xff] (%p103_p3)  ;;  %v231_v2 = vld [vmem:[%s212_s29 + $0x48] sm:$0xff] (%p103_p3)  ;;  %s206_s30 = scalar_lea.vmem (%p103_p3), [#allocation3], %s1182_s26  ;;  %v235_v4 = vld [vmem:[%s212_s29 + $0x90] sm:$0xff] (%p103_p3) }
  0x13   : > { %v229_v1 = vld [vmem:[%s212_s29 + $0x24] sm:$0xff] (%p103_p3)  ;;  %228 = vst [vmem:[%s206_s30] sm:$0xff] (%p103_p3), %v227_v0  ;;  %232 = vst [vmem:[%s206_s30 + $0x18] sm:$0xff] (%p103_p3), %v231_v2  ;;  %v233_v3 = vld [vmem:[%s212_s29 + $0x6c] sm:$0xff] (%p103_p3) }
  0x14   : > { %230 = vst [vmem:[%s206_s30 + $0xc] sm:$0xff] (%p103_p3), %v229_v1  ;;  %v237_v5 = vld [vmem:[%s212_s29 + $0xb4] sm:$0xff] (%p103_p3)  ;;  %234 = vst [vmem:[%s206_s30 + $0x24] sm:$0xff] (%p103_p3), %v233_v3  ;;  %v1028_v7 = vld [vmem:[%s212_s29 + $0x8] sm:$0xf] (%p103_p3) }
  0x15   : > { %236 = vst [vmem:[%s206_s30 + $0x30] sm:$0xff] %v235_v4  ;;  %238 = vst [vmem:[%s206_s30 + $0x3c] sm:$0xff] %v237_v5  ;;  %v239_v6 = vld [vmem:[%s212_s29 + $0xd8] sm:$0xff]  ;;  %v1030_v8 = vld [vmem:[%s212_s29 + $0x2c] sm:$0xf] }
  0x16   : > { %240 = vst [vmem:[%s206_s30 + $0x48] sm:$0xff] %v239_v6  ;;  %1029 = vst [vmem:[%s206_s30 + $0x8] sm:$0xf] %v1028_v7  ;;  %v1032_v9 = vld [vmem:[%s212_s29 + $0x50] sm:$0xf] }
  0x17   : > { %1031 = vst [vmem:[%s206_s30 + $0x14] sm:$0xf] %v1030_v8  ;;  %v1034_v10 = vld [vmem:[%s212_s29 + $0x74] sm:$0xf]  ;;  %v1036_v11 = vld [vmem:[%s212_s29 + $0x98] sm:$0xf] }
  0x18   : > { %1033 = vst [vmem:[%s206_s30 + $0x20] sm:$0xf] %v1032_v9  ;;  %1035 = vst [vmem:[%s206_s30 + $0x2c] sm:$0xf] %v1034_v10  ;;  %v1038_v12 = vld [vmem:[%s212_s29 + $0xbc] sm:$0xf] }
  0x19   : > { %1037 = vst [vmem:[%s206_s30 + $0x38] sm:$0xf] %v1036_v11  ;;  %v1040_v13 = vld [vmem:[%s212_s29 + $0xe0] sm:$0xf]  ;;  %1039 = vst [vmem:[%s206_s30 + $0x44] sm:$0xf] %v1038_v12 }
  0x1a   : > { %1041 = vst [vmem:[%s206_s30 + $0x50] sm:$0xf] %v1040_v13 }
  0x1b PF: > { %p1042_p6 = scmp.ge.s32.totalorder %s1287_s19, 1  ;;  %p278_p7 = scmp.lt.s32.totalorder %s1287_s19, 4 }
  0x1d   : > { %p279_p8 = pnand %p1042_p6, %p278_p7 }
  0x1e   : > { %s285_s5 = sand.u32 (!%p279_p8), 1, %s1271_s15   ;;  %s329_s6 = smul.u32 (!%p279_p8), 3, %s1279_s17 }
  0x1f   : > { %282 = sbr.rel (%p279_p8) target bundleno = 334 (0x14e), region = 58  ;;  %p1044_p11 = scmp.ne.s32.totalorder (!%p279_p8), %s1279_s17, 0 }
  0x20   : > { %s1183_s7 = smul.u32 (!%p279_p8), 84, %s285_s5  ;;  %p330_p9 = scmp.lt.s32.totalorder (!%p279_p8), %s329_s6, 8 }
  0x21   : > { %s341_s8 = smul.u32 (!%p279_p8), 48, %s1279_s17 }
  0x22   : > { %s1378_s25 = scalar_lea.vmem (!%p279_p8), [#allocation3], %s1183_s7 }
  0x23   : > { %p342_p10 = scmp.lt.s32.totalorder (!%p279_p8), %s341_s8, 143 }
  0x26   : > { %s1520_s6 = smov (!%p330_p9, %s329_s6), 8  ;;  %s1522_s8 = smov (!%p342_p10, %s341_s8), 143 }
  0x27   : > { %s332_s11 = scalar_lea.vmem %s1508_s0, %s1520_s6  ;;  %s337_s14 = scalar_lea.vmem %s1509_s1, %s1520_s6  ;;  %v1289_v14 = vmov (!%p1044_p11), 0.0  }
  0x28   : > { %s1043_s21 = sshll.u32 %s1522_s8, 2  ;;  %363 = sbr.rel (%p1044_p11) target bundleno = 47 (0x2f), region = 66  ;;  %364 = vst [vmem:[#allocation2] sm:$0xff] (!%p1044_p11), %v1289_v14  ;;  %365 = vst [vmem:[#allocation2 + $0x8] sm:$0xff] (!%p1044_p11), %v1289_v14 }
  0x29   : > { %s1376_s24 = scalar_lea.vmem %s1511_s3, %s1043_s21  ;;  %366 = vst [vmem:[#allocation2 + $0x10] sm:$0xff] (!%p1044_p11), %v1289_v14  ;;  %367 = vst [vmem:[#allocation2 + $0x18] sm:$0xff] (!%p1044_p11), %v1289_v14 }
  0x2a   : > { %368 = vst [vmem:[#allocation2 + $0x20] sm:$0xff] (!%p1044_p11), %v1289_v14  ;;  %369 = vst [vmem:[#allocation2 + $0x28] sm:$0xff] (!%p1044_p11), %v1289_v14 }
  0x2b   : > { %370 = vst [vmem:[#allocation2 + $0x30] sm:$0x3] (!%p1044_p11), %v1289_v14 }
  0x2f PF: > { %v1225_v15 = vld [vmem:[%s1376_s24 + $0x40] sm:$0xff]   ;;  %v1228_v18 = vld [vmem:[%s1376_s24 + $0x48] sm:$0xff]   ;;  %v1231_v21 = vld [vmem:[%s1376_s24 + $0x50] sm:$0xff]   ;;  %v408_v28 = vlaneseq  ;;  %p1069_p12 = scmp.ne.s32.totalorder %s1279_s17, 2 }
  0x30   : > { %v1226_v16 = vld [vmem:[%s1376_s24] sm:$0xff]   ;;  %1106 = vmatprep.subr.bf16.mxu0 %v1225_v15  ;;  %v1229_v19 = vld [vmem:[%s1376_s24 + $0x8] sm:$0xff]   ;;  %v1232_v22 = vld [vmem:[%s1376_s24 + $0x10] sm:$0xff]  }
  0x31   : > { %v1227_v17 = vld [vmem:[%s1376_s24 + $0x80] sm:$0xff]   ;;  %1107 = vmatpush3.bf16.msra.mxu0 %v1226_v16  ;;  %v1230_v20 = vld [vmem:[%s1376_s24 + $0x88] sm:$0xff]   ;;  %v1233_v23 = vld [vmem:[%s1376_s24 + $0x90] sm:$0xff]   ;;  %v409_v32 = vshrl.u32 %v408_v28, 7 }
  0x32   : > { %1158 = vmatprep.subr.bf16.mxu1 %v1227_v17  ;;  %1108 = vmatprep.subr.bf16.mxu0 %v1228_v18  ;;  %v1234_v24 = vld [vmem:[%s1376_s24 + $0x58] sm:$0xff]   ;;  %v1237_v27 = vld [vmem:[%s1376_s24 + $0x60] sm:$0xff]   ;;  %v1240_v31 = vld [vmem:[%s1376_s24 + $0x68] sm:$0xff]  }
  0x33   : > { %1159 = vmatpush3.bf16.msra.mxu1 %v1227_v17  ;;  %v1235_v25 = vld [vmem:[%s1376_s24 + $0x18] sm:$0xff]   ;;  %v1239_v29 = vld [vmem:[%s1376_s24 + $0xa0] sm:$0xff]   ;;  %v1242_v33 = vld [vmem:[%s1376_s24 + $0xa8] sm:$0xff]   ;;  %v414_v37 = vsub.s32 1, %v409_v32  ;;  %v410_v39 = vsub.s32 0, %v409_v32  ;;  %v418_v41 = vsub.s32 2, %v409_v32 }
  0x34   : > { %1160 = vmatprep.subr.bf16.mxu1 %v1230_v20  ;;  %v1236_v26 = vld [vmem:[%s1376_s24 + $0x98] sm:$0xff]   ;;  %v1238_v30 = vld [vmem:[%s1376_s24 + $0x20] sm:$0xff]   ;;  %v1241_v34 = vld [vmem:[%s1376_s24 + $0x28] sm:$0xff]  }
  0x35   : > { %1109 = vmatpush3.bf16.msra.mxu0 %v1229_v19  ;;  %v1243_v35 = vld [vmem:[%s1376_s24 + $0x70] sm:$0xff]   ;;  %v1246_v40 = vld [vmem:[%s1376_s24 + $0x78] sm:$0xff]   ;;  %v406_v44 = vld [vmem:[%s332_s11] sm:$0x7] }
  0x36   : > { %1110 = vmatprep.subr.bf16.mxu0 %v1231_v21  ;;  %v1244_v36 = vld [vmem:[%s1376_s24 + $0x30] sm:$0xff]   ;;  %v373_v43 = vld [vmem:[%s1378_s25 + $0xc] sm:$0xff]  ;;  %v444_v49 = vld [vmem:[%s337_s14] sm:$0x7]  ;;  %v1417_v52 = vrot.slane %v406_v44, %v414_v37  ;;  %v1421_v54 = vrot.slane %v406_v44, %v410_v39  ;;  %v1427_v60 = vrot.slane %v406_v44, %v418_v41 }
  0x37   : > { %1161 = vmatpush3.bf16.msra.mxu1 %v1230_v20  ;;  %v1245_v38 = vld [vmem:[%s1376_s24 + $0xb0] sm:$0xff]   ;;  %v388_v47 = vunpack.c.l.bf16 %v373_v43  ;;  %v389_v48 = vunpack.c.h.bf16 %v373_v43  ;;  %v1248_v51 = vld [vmem:[%s1376_s24 + $0xb8] sm:$0xff]   ;;  %v1419_v53 = vrot.slane %v444_v49, %v414_v37  ;;  %v1423_v55 = vrot.slane %v444_v49, %v410_v39 }
  0x38   : > { %1162 = vmatprep.subr.bf16.mxu1 %v1233_v23  ;;  %v371_v42 = vld [vmem:[%s1378_s25] sm:$0xff]  ;;  %v372_v50 = vld [vmem:[%s1378_s25 + $0x8] ss:$12 sps:$4 sm:$0xff]   ;;  %v1429_v61 = vrot.slane %v444_v49, %v418_v41  ;;  %v375_v14 = vld [vmem:[%s1378_s25 + $0x18] sm:$0xff] }
  0x39   : > { %1111 = vmatpush3.bf16.msra.mxu0 %v1232_v22  ;;  %v385_v45 = vunpack.c.l.bf16 %v371_v42  ;;  %v386_v46 = vunpack.c.h.bf16 %v371_v42  ;;  %v376_v56 = vld [vmem:[%s1378_s25 + $0x20] ss:$12 sps:$4 sm:$0xff]   ;;  %v387_v58 = vunpack.c.l.bf16 %v372_v50  ;;  %v390_v59 = vunpack.c.h.bf16 %v372_v50  ;;  %v377_v15 = vld [vmem:[%s1378_s25 + $0x24] sm:$0xff] }
  0x3a   : > { %1112 = vmatprep.subr.bf16.mxu0 %v1234_v24  ;;  %v1247_v57 = vld [vmem:[%s1376_s24 + $0x38] sm:$0xff]   ;;  %v427_v63 = vmul.f32 %v1417_v52, %v389_v48  ;;  %v426_v1 = vmul.f32 %v1421_v54, %v388_v47  ;;  %v393_v4 = vunpack.c.l.bf16 %v376_v56  ;;  %v396_v5 = vunpack.c.h.bf16 %v376_v56 }
  0x3b   : > { %1163 = vmatpush3.bf16.msra.mxu1 %v1233_v23  ;;  %v424_v62 = vmul.f32 %v1417_v52, %v386_v46  ;;  %v423_v0 = vmul.f32 %v1421_v54, %v385_v45  ;;  %v425_v2 = vmul.f32 %v1427_v60, %v387_v58  ;;  %v428_v3 = vmul.f32 %v1427_v60, %v390_v59  ;;  %v379_v24 = vld [vmem:[%s1378_s25 + $0x30] sm:$0xff]  ;;  %v380_v50 = vld [vmem:[%s1378_s25 + $0x38] ss:$12 sps:$4 sm:$0xff]  }
  0x3c   : > { %1164 = vmatprep.subr.bf16.mxu1 %v1236_v26  ;;  %v465_v7 = vadd.f32 %v1419_v53, %v427_v63  ;;  %v464_v9 = vadd.f32 %v1423_v55, %v426_v1  ;;  %v431_v12 = vmul.f32 %v1427_v60, %v393_v4  ;;  %v434_v13 = vmul.f32 %v1427_v60, %v396_v5  ;;  %v384_v1 = vld [vmem:[%s1378_s25 + $0x50] sm:$0x1] }
  0x3d   : > { %1113 = vmatpush3.bf16.msra.mxu0 %v1235_v25  ;;  %v462_v6 = vadd.f32 %v1419_v53, %v424_v62  ;;  %v461_v8 = vadd.f32 %v1423_v55, %v423_v0  ;;  %v463_v10 = vadd.f32 %v1429_v61, %v425_v2  ;;  %v466_v11 = vadd.f32 %v1429_v61, %v428_v3  ;;  %v383_v2 = vld [vmem:[%s1378_s25 + $0x48] sm:$0x11] }
  0x3e   : > { %1114 = vmatprep.subr.bf16.mxu0 %v1237_v27  ;;  %v486_v17 = vmax.f32 %v465_v7, 0.0  ;;  %v485_v19 = vmax.f32 %v464_v9, 0.0  ;;  %v469_v22 = vadd.f32 %v1429_v61, %v431_v12  ;;  %v472_v23 = vadd.f32 %v1429_v61, %v434_v13 }
  0x3f   : > { %1165 = vmatpush3.bf16.msra.mxu1 %v1236_v26  ;;  %v483_v16 = vmax.f32 %v462_v6, 0.0  ;;  %v482_v18 = vmax.f32 %v461_v8, 0.0  ;;  %v484_v20 = vmax.f32 %v463_v10, 0.0  ;;  %v487_v21 = vmax.f32 %v466_v11, 0.0 }
  0x40   : > { %1166 = vmatprep.subr.bf16.mxu1 %v1239_v29  ;;  %v392_v27 = vunpack.c.h.bf16 %v375_v14  ;;  %v395_v28 = vunpack.c.h.bf16 %v377_v15  ;;  %v493_v32 = vmax.f32 %v472_v23, 0.0  ;;  %v398_v37 = vunpack.c.h.bf16 %v379_v24 }
  0x41   : > { %1115 = vmatpush3.bf16.msra.mxu0 %v1238_v30  ;;  %v511_v25 = vpack.c.bf16 %v486_v17, %v483_v16  ;;  %v510_v26 = vpack.c.bf16 %v485_v19, %v482_v18  ;;  %v512_v30 = vpack.c.bf16 %v487_v21, %v484_v20  ;;  %v397_v41 = vunpack.c.l.bf16 %v379_v24 }
  0x42   : > { %1116 = vmatprep.subr.bf16.mxu0 %v1240_v31  ;;  %v490_v31 = vmax.f32 %v469_v22, 0.0  ;;  %v436_v45 = vmul.f32 %v1417_v52, %v398_v37  ;;  %v399_v6 = vunpack.c.l.bf16 %v380_v50  ;;  %v402_v9 = vunpack.c.h.bf16 %v380_v50 }
  0x43   : > { %1167 = vmatpush3.bf16.msra.mxu1 %v1239_v29  ;;  %v381_v29 = vld [vmem:[%s1378_s25 + $0x3c] sm:$0xff]  ;;  %746 = vmatprep.mubr.bf16.mxu0 %v511_v25  ;;  %v435_v49 = vmul.f32 %v1421_v54, %v397_v41  ;;  %v405_v12 = vunpack.c.l.bf16 %v384_v1  ;;  %v404_v13 = vunpack.c.h.bf16 %v383_v2  ;;  %v403_v17 = vunpack.c.l.bf16 %v383_v2 }
  0x44   : > { %1168 = vmatprep.subr.bf16.mxu1 %v1242_v33  ;;  %1174 = vmatprep.mubr.bf16.mxu1 %v512_v30  ;;  %v400_v48 = vunpack.c.l.bf16 %v381_v29  ;;  %v474_v58 = vadd.f32 %v1419_v53, %v436_v45  ;;  %v437_v11 = vmul.f32 %v1427_v60, %v399_v6  ;;  %v440_v16 = vmul.f32 %v1427_v60, %v402_v9  ;;  %v507_v9 = vld [vmem:[#allocation2 + $0x20] sm:$0xff] }
  0x45   : > { %1117 = vmatpush3.bf16.msra.mxu0 %v1241_v34  ;;  %v430_v34 = vmul.f32 %v1417_v52, %v392_v27  ;;  %v473_v0 = vadd.f32 %v1423_v55, %v435_v49  ;;  %v443_v20 = vmul.f32 %v1427_v60, %v405_v12  ;;  %v442_v21 = vmul.f32 %v1417_v52, %v404_v13  ;;  %v508_v13 = vld [vmem:[#allocation2 + $0x28] sm:$0xff] }
  0x46   : > { %1118 = vmatprep.subr.bf16.mxu0 %v1243_v35  ;;  %v433_v35 = vmul.f32 %v1417_v52, %v395_v28  ;;  %v438_v63 = vmul.f32 %v1421_v54, %v400_v48  ;;  %v495_v5 = vmax.f32 %v474_v58, 0.0  ;;  %v475_v19 = vadd.f32 %v1429_v61, %v437_v11 }
  0x47   : > { %1169 = vmatpush3.bf16.msra.mxu1 %v1242_v33  ;;  %v391_v33 = vunpack.c.l.bf16 %v375_v14  ;;  %v468_v42 = vadd.f32 %v1419_v53, %v430_v34  ;;  %v478_v22 = vadd.f32 %v1429_v61, %v440_v16  ;;  %v441_v23 = vmul.f32 %v1421_v54, %v403_v17 }
  0x48   : > { %1170 = vmatprep.subr.bf16.mxu1 %v1245_v38  ;;  %v471_v43 = vadd.f32 %v1419_v53, %v433_v35  ;;  %v476_v8 = vadd.f32 %v1423_v55, %v438_v63  ;;  %v496_v24 = vmax.f32 %v475_v19, 0.0  ;;  %v481_v25 = vadd.f32 %v1429_v61, %v443_v20 }
  0x49   : > { %1119 = vmatpush3.bf16.msra.mxu0 %v1244_v36  ;;  %v394_v36 = vunpack.c.l.bf16 %v377_v15  ;;  %v429_v39 = vmul.f32 %v1421_v54, %v391_v33  ;;  %v494_v15 = vmax.f32 %v473_v0, 0.0  ;;  %v499_v27 = vmax.f32 %v478_v22, 0.0 }
  0x4a   : > { %1120 = vmatprep.subr.bf16.mxu0 %v1246_v40  ;;  %v401_v40 = vunpack.c.h.bf16 %v381_v29  ;;  %v492_v56 = vmax.f32 %v471_v43, 0.0  ;;  %v497_v18 = vmax.f32 %v476_v8, 0.0  ;;  %v502_v29 = vmax.f32 %v481_v25, 0.0 }
  0x4b   : > { %1171 = vmatpush3.bf16.msra.mxu1 %v1245_v38  ;;  %v515_v38 = vpack.c.bf16 %v493_v32, %v490_v31  ;;  %v432_v44 = vmul.f32 %v1421_v54, %v394_v36  ;;  %v467_v46 = vadd.f32 %v1423_v55, %v429_v39  ;;  %v479_v31 = vadd.f32 %v1423_v55, %v441_v23 }
  0x4c   : > { %1172 = vmatprep.subr.bf16.mxu1 %v1248_v51  ;;  %v439_v47 = vmul.f32 %v1417_v52, %v401_v40  ;;  %v516_v28 = vpack.c.bf16 %v497_v18, %v494_v15  ;;  %v518_v32 = vpack.c.bf16 %v499_v27, %v496_v24  ;;  %v521_v60 = vpack.c.bf16 %v502_v29, %v502_v29 }
  0x4d   : > { %1121 = vmatpush3.bf16.msra.mxu0 %v1247_v57  ;;  %v470_v57 = vadd.f32 %v1423_v55, %v432_v44  ;;  %v488_v59 = vmax.f32 %v467_v46, 0.0  ;;  %v500_v52 = vmax.f32 %v479_v31, 0.0 }
  0x4e   : > { %v477_v62 = vadd.f32 %v1419_v53, %v439_v47 }
  0x4f   : > { %1173 = vmatpush3.bf16.msra.mxu1 %v1248_v51  ;;  %v489_v51 = vmax.f32 %v468_v42, 0.0  ;;  %v491_v4 = vmax.f32 %v470_v57, 0.0  ;;  %v519_v54 = vpack.c.bf16 %v500_v52, %v500_v52  ;;  %v504_v42 = vld [vmem:[#allocation2 + $0x8] sm:$0xff] }
  0x50   : > { %747 = vmatmul.mubr.bf16.vlgmr.msra.gmra.mrb[0].mxu0 %v510_v26  ;;  %v498_v7 = vmax.f32 %v477_v62, 0.0  ;;  %v480_v26 = vadd.f32 %v1419_v53, %v442_v21  ;;  %v509_v21 = vld [vmem:[#allocation2 + $0x30] sm:$0x3] }
  0x51   : > { %v514_v3 = vpack.c.bf16 %v492_v56, %v489_v51  ;;  %v513_v10 = vpack.c.bf16 %v491_v4, %v488_v59  ;;  %v505_v51 = vld [vmem:[#allocation2 + $0x10] sm:$0xff]  ;;  %v506_v59 = vld [vmem:[#allocation2 + $0x18] sm:$0xff] }
  0x52   : > { %1175 = vmatmul.mubr.bf16.vlgmr.msra.gmra.mrb[0].mxu1 %v515_v38  ;;  %v517_v14 = vpack.c.bf16 %v498_v7, %v495_v5  ;;  %v501_v30 = vmax.f32 %v480_v26, 0.0  ;;  %v503_v38 = vld [vmem:[#allocation2] sm:$0xff] }
  0x53   : > { %754 = vmatprep.mubr.bf16.mxu0 %v514_v3  ;;  %1178 = vmatprep.mubr.bf16.mxu1 %v518_v32 }
  0x54   : > { %v520_v33 = vpack.c.bf16 %v501_v30, %v501_v30 }
  0x58   : > { %755 = vmatmul.mubr.bf16.gmra.mrb[4].mxu0 %v513_v10 }
  0x59   : > { %762 = vmatprep.mubr.bf16.mxu0 %v517_v14 }
  0x5a   : > { %1179 = vmatmul.mubr.bf16.gmra.mrb[4].mxu1 %v521_v60 }
  0x60   : > { %763 = vmatmul.mubr.bf16.gmra.mrb[8].mxu0 %v516_v28 }
  0x61   : > { %770 = vmatprep.mubr.bf16.mxu0 %v520_v33 }
  0x68   : > { %771 = vmatmul.mubr.bf16.gmra.mrb[12].mxu0 %v519_v54 }
 0x123   : > { %v1122_v34 = vpop.f32.mrb[0].mxu0 }
 0x124   : > { %v1123_v61 = vpop.f32.mrb[1].mxu0 }
 0x125   : > { %v1124_v35 = vadd.f32 %v1123_v61, %v1122_v34  ;;  %v1125_v53 = vpop.f32.mrb[2].mxu0  ;;  %v1176_v36 = vpop.f32.mrb[0].mxu1 }
 0x126   : > { %v1126_v37 = vpop.f32.mrb[3].mxu0  ;;  %v812_v39 = vpop.f32.mrb[1].mxu1 }
 0x127   : > { %v1127_v40 = vadd.f32 %v1126_v37, %v1125_v53  ;;  %v813_v55 = vadd.f32 %v1124_v35, %v812_v39  ;;  %v1177_v41 = vpop.f32.mrb[2].mxu1 }
 0x128   : > { %v815_v43 = vpop.f32.mrb[3].mxu1 }
 0x129   : > { %v842_v44 = vadd.f32 %v813_v55, %v503_v38  ;;  %v816_v45 = vadd.f32 %v1127_v40, %v815_v43 }
 0x12b   : > { %849 = vst [vmem:[#allocation2] sm:$0xff] %v842_v44  ;;  %v843_v46 = vadd.f32 %v816_v45, %v504_v42  ;;  %v1128_v47 = vpop.f32.mrb[4].mxu0 }
 0x12c   : > { %v1129_v48 = vpop.f32.mrb[5].mxu0 }
 0x12d   : > { %850 = vst [vmem:[#allocation2 + $0x8] sm:$0xff] %v843_v46  ;;  %v1130_v49 = vadd.f32 %v1129_v48, %v1128_v47  ;;  %v1131_v50 = vpop.f32.mrb[6].mxu0  ;;  %v1180_v2 = vpop.f32.mrb[4].mxu1 }
 0x12e   : > { %v1132_v56 = vpop.f32.mrb[7].mxu0  ;;  %v828_v4 = vpop.f32.mrb[5].mxu1 }
 0x12f   : > { %v821_v57 = vadd.f32 %v1176_v36, %v1130_v49  ;;  %v1133_v58 = vadd.f32 %v1132_v56, %v1131_v50  ;;  %v1181_v7 = vpop.f32.mrb[6].mxu1 }
 0x130   : > { %v831_v10 = vpop.f32.mrb[7].mxu1 }
 0x131   : > { %v844_v62 = vadd.f32 %v821_v57, %v505_v51  ;;  %v824_v63 = vadd.f32 %v1177_v41, %v1133_v58 }
 0x132   : > { %v860_v25 = vld [vmem:[#allocation2] sm:$0xff] (!%p1069_p12) }
 0x133   : > { %851 = vst [vmem:[#allocation2 + $0x10] sm:$0xff] %v844_v62  ;;  %v845_v0 = vadd.f32 %v824_v63, %v506_v59  ;;  %v1134_v1 = vpop.f32.mrb[8].mxu0 }
 0x134   : > { %v1135_v3 = vpop.f32.mrb[9].mxu0  ;;  %v861_v26 = vld [vmem:[#allocation2 + $0x8] sm:$0xff] (!%p1069_p12) }
 0x135   : > { %852 = vst [vmem:[#allocation2 + $0x18] sm:$0xff] %v845_v0  ;;  %v1136_v5 = vadd.f32 %v1135_v3, %v1134_v1  ;;  %v1137_v6 = vpop.f32.mrb[10].mxu0  ;;  %v1092_v28 = vpack.c.bf16 (!%p1069_p12), %v861_v26, %v860_v25 }
 0x136   : > { %v1138_v8 = vpop.f32.mrb[11].mxu0 }
 0x137   : > { %v1139_v11 = vadd.f32 %v1138_v8, %v1137_v6  ;;  %v829_v12 = vadd.f32 %v1136_v5, %v828_v4  ;;  %1093 = vst [vmem:[%s1512_s4] sm:$0xff] (!%p1069_p12), %v1092_v28  }
 0x139   : > { %v846_v14 = vadd.f32 %v829_v12, %v507_v9  ;;  %v832_v15 = vadd.f32 %v1139_v11, %v831_v10 }
 0x13a   : > { %v862_v27 = vld [vmem:[#allocation2 + $0x10] sm:$0xff] (!%p1069_p12) }
 0x13b   : > { %853 = vst [vmem:[#allocation2 + $0x20] sm:$0xff] %v846_v14  ;;  %v847_v16 = vadd.f32 %v832_v15, %v508_v13  ;;  %v1140_v17 = vpop.f32.mrb[12].mxu0 }
 0x13c   : > { %v1141_v18 = vpop.f32.mrb[13].mxu0  ;;  %v863_v29 = vld [vmem:[#allocation2 + $0x18] sm:$0xff] (!%p1069_p12) }
 0x13d   : > { %854 = vst [vmem:[#allocation2 + $0x28] sm:$0xff] %v847_v16  ;;  %v1142_v19 = vadd.f32 %v1141_v18, %v1140_v17  ;;  %v1143_v20 = vpop.f32.mrb[14].mxu0  ;;  %859 = sbr.rel (%p1069_p12) target bundleno = 334 (0x14e), region = 70  ;;  %v1097_v32 = vpack.c.bf16 (!%p1069_p12), %v863_v29, %v862_v27 }
 0x13e   : > { %v1144_v22 = vpop.f32.mrb[15].mxu0 }
 0x13f   : > { %v837_v23 = vadd.f32 %v1180_v2, %v1142_v19  ;;  %1104 = vst [vmem:[%s1512_s4 + $0x8] sm:$0xff] (!%p1069_p12), %v1097_v32  }
 0x141   : > { %v848_v24 = vadd.f32 %v837_v23, %v509_v21 }
 0x142   : > { %v864_v30 = vld [vmem:[#allocation2 + $0x20] sm:$0xff] (!%p1069_p12) }
 0x143   : > { %855 = vst [vmem:[#allocation2 + $0x30] sm:$0x3] %v848_v24 }
 0x144   : > { %v865_v31 = vld [vmem:[#allocation2 + $0x28] sm:$0xff] }
 0x145   : > { %v1102_v60 = vpack.c.bf16 %v865_v31, %v864_v30 }
 0x147   : > { %1105 = vst [vmem:[%s1512_s4 + $0x10] sm:$0xff] %v1102_v60  }
 0x14a   : > { %v866_v33 = vld [vmem:[#allocation2 + $0x30] sm:$0x3] }
 0x14b   : > { %v1088_v52 = vpack.c.bf16 %v866_v33, %v866_v33 }
 0x14d   : > { %902 = vst [vmem:[%s1512_s4 + $0x18] sm:$0x1] %v1088_v52 }
 0x14e PF: > { %s14_s19 = sadd.s32 1, %s1287_s19   ;;  %s1513_s15 = smov %s1275_s16 }
 0x14f   : > { %p11_p13 = scmp.ge.s32.totalorder %s14_s19, 5   ;;  %s1514_s16 = smov %s1350_s23 }
 0x150   : > { %s1515_s17 = smov %s1283_s18  ;;  %s1516_s18 = smov %s1518_s20 }
 0x151   :  { %13 = sbr.rel (!%p11_p13) target bundleno = 3 (0x3), region = 120 }

// kernel: resnet_forward.38
= control target key start
LH: loop header
LB: loop body
LE: loop exit
PB: predicated region body
PF: predicated region fallthrough
CT: control target
= control target key end

     0   :  { %v235_v0 = vmov 0.0   ;;  %v34_v4 = vlaneseq  ;;  %vm78_vm0 = vcmask 1041408   ;;  %v236_v47 = vmov 1966171168   ;;  %s319_s1 = inlined_call_operand.vmem [shape: f32[2,256], index: 1, kind: output, shape index: {}]   ;;  %s320_s0 = inlined_call_operand.vmem [shape: bf16[50,256], index: 0, kind: input, shape index: {}]  }
   0x1   :  { %12 = vst [vmem:[%s319_s1] sm:$0xf] %v235_v0  ;;  %v13_v1 = vld [vmem:[%s320_s0] sm:$0xff]  ;;  %v14_v2 = vld [vmem:[%s320_s0 + $0x8] sm:$0xff]  ;;  %v15_v3 = vld [vmem:[%s320_s0 + $0x10] sm:$0xff]  ;;  %v104_v48 = vunpack.c.l.s4 %v236_v47  ;;  %v237_v55 = vmov 1935823168  }
   0x2   :  { %v16_v5 = vld [vmem:[%s320_s0 + $0x18] sm:$0xff]  ;;  %v20_v6 = vunpack.c.l.bf16 %v13_v1  ;;  %v21_v7 = vunpack.c.h.bf16 %v13_v1  ;;  %v22_v8 = vunpack.c.l.bf16 %v14_v2  ;;  %v23_v9 = vunpack.c.h.bf16 %v14_v2  ;;  %v19_v10 = vld [vmem:[%s320_s0 + $0x30] sm:$0x11]  ;;  %v17_v12 = vld [vmem:[%s320_s0 + $0x20] sm:$0xff] }
   0x3   :  { %v24_v11 = vunpack.c.l.bf16 %v15_v3  ;;  %v25_v13 = vunpack.c.h.bf16 %v15_v3  ;;  %v18_v14 = vld [vmem:[%s320_s0 + $0x28] sm:$0xff]  ;;  %v26_v15 = vunpack.c.l.bf16 %v16_v5  ;;  %v273_v16 = vshrl.u32 %v34_v4, 7 }
   0x4   :  { %v73_v17 = vadd.f32 %v22_v8, %v20_v6  ;;  %v27_v18 = vunpack.c.h.bf16 %v16_v5  ;;  %v32_v19 = vunpack.c.l.bf16 %v19_v10  ;;  %v33_v20 = vunpack.c.h.bf16 %v19_v10 }
   0x5   :  { %v87_v21 = vadd.f32 %v23_v9, %v21_v7  ;;  %v28_v22 = vunpack.c.l.bf16 %v17_v12  ;;  %v29_v23 = vunpack.c.h.bf16 %v17_v12  ;;  %v41_v24 = vadd.s32 48, %v273_v16 }
   0x6   :  { %v74_v25 = vadd.f32 %v73_v17, %v24_v11  ;;  %v30_v26 = vunpack.c.l.bf16 %v18_v14  ;;  %v31_v27 = vunpack.c.h.bf16 %v18_v14  ;;  %213 = vmul.bf16.f32.vacc0 %v13_v1, %v13_v1 }
   0x7   :  { %v88_v28 = vadd.f32 %v87_v21, %v25_v13  ;;  %vm57_vm1 = vcmp.lt.s32.totalorder %v41_v24, 50  ;;  %214 = vmac.bf16.f32.vacc0 %v14_v2, %v14_v2  ;;  %v223_v56 = vunpack.c.l.s4 %v237_v55 }
   0x8   :  { %v75_v29 = vadd.f32 %v74_v25, %v26_v15  ;;  %v70_v30 = vsel %vm57_vm1, %v32_v19, 0.0  ;;  %v71_v31 = vsel %vm57_vm1, %v33_v20, 0.0  ;;  %215 = vmac.bf16.f32.vacc0 %v15_v3, %v15_v3  ;;  %v72_v21 = vld [vmem:[%s319_s1] ss:$2 sm:$0x3] }
   0x9   :  { %v89_v32 = vadd.f32 %v88_v28, %v27_v18  ;;  %v79_v34 = vsel %vm78_vm0, %v70_v30, 0.0  ;;  %v92_v37 = vsel %vm78_vm0, %v71_v31, 0.0  ;;  %v138_v41 = vmul.f32 %v70_v30, %v70_v30 }
   0xa   :  { %v76_v33 = vadd.f32 %v75_v29, %v28_v22  ;;  %v139_v43 = vmul.f32 %v71_v31, %v71_v31  ;;  %216 = vmac.bf16.f32.vacc0 %v16_v5, %v16_v5  ;;  %v224_v57 = vunpack.c.0.s8 %v223_v56  ;;  %v205_v31 = vld [vmem:[%s319_s1 + $0x1] ss:$2 sm:$0x3] }
   0xb   :  { %v90_v35 = vadd.f32 %v89_v32, %v29_v23  ;;  %217 = vmac.bf16.f32.vacc0 %v17_v12, %v17_v12  ;;  %v145_v49 = vsel %vm78_vm0, %v138_v41, 0.0  ;;  %v105_v2 = vunpack.c.0.s8 %v104_v48 }
   0xc   :  { %v77_v36 = vadd.f32 %v76_v33, %v30_v26  ;;  %218 = vmac.bf16.f32.vacc0 %v18_v14, %v18_v14  ;;  %v227_v58 = vsub.s32 %v224_v57, %v273_v16  ;;  %v158_v61 = vsel %vm78_vm0, %v139_v43, 0.0 }
   0xd   :  { %v91_v38 = vadd.f32 %v90_v35, %v31_v27  ;;  %v108_v12 = vsub.s32 %v105_v2, %v273_v16  ;;  %vm286_vm2 = vcmp.lt.s32.totalorder %v34_v4, 256 }
   0xe   :  { %v80_v39 = vadd.f32 %v79_v34, %v77_v36  ;;  %v219_v51 = vmovacc.add.low.vacc0 }
   0xf   :  { %v93_v40 = vadd.f32 %v92_v37, %v91_v38  ;;  %v220_v52 = vmovacc.add.high.vacc0 }
  0x10   :  { %v81_v42 = vrot.slane %v80_v39, 4 }
  0x11   :  { %v94_v44 = vrot.slane %v93_v40, 4  ;;  %v221_v53 = vcombine.low %v219_v51, %v220_v52  ;;  %v222_v54 = vcombine.high %v219_v51, %v220_v52 }
  0x12   :  { %v82_v45 = vadd.f32 %v81_v42, %v80_v39 }
  0x13   :  { %v95_v46 = vadd.f32 %v94_v44, %v93_v40  ;;  %v228_v59 = vrot.slane %v221_v53, %v227_v58  ;;  %v234_v60 = vrot.slane %v222_v54, %v227_v58 }
  0x14   :  { %v83_v50 = vrot.slane %v82_v45, 2 }
  0x15   :  { %v96_v62 = vrot.slane %v95_v46, 2  ;;  %v146_v0 = vadd.f32 %v228_v59, %v145_v49  ;;  %v159_v3 = vadd.f32 %v234_v60, %v158_v61 }
  0x16   :  { %v84_v63 = vadd.f32 %v83_v50, %v82_v45 }
  0x17   :  { %v97_v1 = vadd.f32 %v96_v62, %v95_v46  ;;  %v147_v6 = vrot.slane %v146_v0, 4  ;;  %v160_v8 = vrot.slane %v159_v3, 4 }
  0x18   :  { %v85_v5 = vrot.slane %v84_v63, 1 }
  0x19   :  { %v98_v7 = vrot.slane %v97_v1, 1  ;;  %v148_v10 = vadd.f32 %v147_v6, %v146_v0  ;;  %v161_v13 = vadd.f32 %v160_v8, %v159_v3 }
  0x1a   :  { %v86_v9 = vadd.f32 %v85_v5, %v84_v63 }
  0x1b   :  { %v99_v11 = vadd.f32 %v98_v7, %v97_v1  ;;  %v149_v14 = vrot.slane %v148_v10, 2  ;;  %v162_v17 = vrot.slane %v161_v13, 2 }
  0x1d   :  { %v102_v15 = vcombine.low %v86_v9, %v99_v11  ;;  %v150_v18 = vadd.f32 %v149_v14, %v148_v10  ;;  %v163_v20 = vadd.f32 %v162_v17, %v161_v13 }
  0x1f   :  { %v109_v19 = vrot.slane %v102_v15, %v108_v12  ;;  %v151_v22 = vrot.slane %v150_v18, 1  ;;  %v164_v24 = vrot.slane %v163_v20, 1 }
  0x21   :  { %v116_v23 = vrot.slane %v109_v19, %v108_v12  ;;  %v152_v16 = vadd.f32 %v151_v22, %v150_v18  ;;  %v165_v27 = vadd.f32 %v164_v24, %v163_v20 }
  0x23   :  { %v118_v26 = vadd.f32 %v116_v23, %v72_v21  ;;  %v168_v28 = vcombine.low %v152_v16, %v165_v27 }
  0x25   :  { %123 = vst.msk [vmem:[%s319_s1] ss:$2 sm:$0x3] %vm286_vm2, %v118_v26  ;;  %v175_v29 = vrot.slane %v168_v28, %v108_v12 }
  0x27   :  { %v182_v30 = vrot.slane %v175_v29, %v108_v12 }
  0x29   :  { %v184_v4 = vadd.f32 %v205_v31, %v182_v30 }
  0x2b   :  { %206 = vst.msk [vmem:[%s319_s1 + $0x1] ss:$2 sm:$0x3] %vm286_vm2, %v184_v4 }
  0x2c   :  { %v189_v32 = vld [vmem:[%s319_s1] ss:$2 sm:$0x3] }
  0x2d   :  { %v190_v33 = vmul.f32 0.02, %v189_v32 }
  0x2f   :  { %v193_v34 = vmul.f32 %v190_v33, %v190_v33  ;;  %v198_v39 = vsub.f32 0.0, %v190_v33 }
  0x32   :  { %v207_v35 = vld [vmem:[%s319_s1 + $0x1] ss:$2 sm:$0x3] }
  0x33   :  { %v192_v36 = vmul.f32 0.02, %v207_v35 }
  0x35   :  { %v194_v37 = vsub.f32 %v192_v36, %v193_v34 }
  0x37   :  { %v195_v38 = vadd.f32 1e-05, %v194_v37 }
  0x39   :  { %211 = vrsqrt.f32 %v195_v38 }
  0x43   :  { %v212_v40 = vpop.eup %211 }
  0x44   :  { %197 = vst.msk [vmem:[%s319_s1] ss:$2 sm:$0x3] %vm286_vm2, %v212_v40  ;;  %v199_v41 = vmul.f32 %v212_v40, %v198_v39 }
  0x46   :  { %208 = vst.msk [vmem:[%s319_s1 + $0x1] ss:$2 sm:$0x3] %vm286_vm2, %v199_v41 }

// kernel: resnet_forward.39
= control target key start
LH: loop header
LB: loop body
LE: loop exit
PB: predicated region body
PF: predicated region fallthrough
CT: control target
= control target key end

     0   :  { %v420_v1 = vmov 0   ;;  %v421_v2 = vmov 0.0   ;;  %s518_s1 = inlined_call_operand.vmem [shape: bf16[128,256], index: 1, kind: input, shape index: {}]   ;;  %s519_s0 = inlined_call_operand.vmem [shape: bf16[50,128], index: 0, kind: input, shape index: {}]   ;;  %s520_s2 = inlined_call_operand.vmem [shape: bf16[50,256], index: 2, kind: output, shape index: {}]  }
   0x1   :  { %v392_v0 = vld [vmem:[%s518_s1 + $0x4] ss:$8 sps:$4 sm:$0xff]   ;;  %201 = vmatprep.mubr.bf16.mxu0 %v420_v1  ;;  %221 = vmatprep.mubr.bf16.mxu1 %v420_v1  ;;  %28 = vst [vmem:[#allocation2 + $0x60] sm:$0x3] %v421_v2  ;;  %29 = vst [vmem:[#allocation2 + $0x68] sm:$0x3] %v421_v2 }
   0x2   :  { %v394_v3 = vld [vmem:[%s518_s1] ss:$8 sps:$4 sm:$0xff]   ;;  %169 = vmatprep.subr.bf16.mxu0 %v392_v0  ;;  %374 = vmatprep.subr.bf16.mxu1 %v392_v0  ;;  %v395_v4 = vld [vmem:[%s518_s1 + $0x14] ss:$8 sps:$4 sm:$0xff]   ;;  %v397_v5 = vld [vmem:[%s518_s1 + $0x10] ss:$8 sps:$4 sm:$0xff]  }
   0x3   :  { %170 = vmatpush1.bf16.msra.mxu0 %v394_v3  ;;  %382 = vmatpush1.bf16.msra.mxu1 %v394_v3  ;;  %v398_v6 = vld [vmem:[%s518_s1 + $0x24] ss:$8 sps:$4 sm:$0xff]   ;;  %v400_v7 = vld [vmem:[%s518_s1 + $0x20] ss:$8 sps:$4 sm:$0xff]   ;;  %v401_v8 = vld [vmem:[%s518_s1 + $0x34] ss:$8 sps:$4 sm:$0xff]  }
   0x4   :  { %171 = vmatprep.subr.bf16.mxu0 %v395_v4  ;;  %375 = vmatprep.subr.bf16.mxu1 %v395_v4  ;;  %v403_v9 = vld [vmem:[%s518_s1 + $0x30] ss:$8 sps:$4 sm:$0xff]   ;;  %v404_v10 = vld [vmem:[%s518_s1 + $0x44] ss:$8 sps:$4 sm:$0xff]   ;;  %v406_v11 = vld [vmem:[%s518_s1 + $0x40] ss:$8 sps:$4 sm:$0xff]  }
   0x5   :  { %v407_v12 = vld [vmem:[%s518_s1 + $0x54] ss:$8 sps:$4 sm:$0xff]   ;;  %v409_v13 = vld [vmem:[%s518_s1 + $0x50] ss:$8 sps:$4 sm:$0xff]   ;;  %v410_v14 = vld [vmem:[%s518_s1 + $0x64] ss:$8 sps:$4 sm:$0xff]  }
   0x6   :  { %v412_v15 = vld [vmem:[%s518_s1 + $0x60] ss:$8 sps:$4 sm:$0xff]   ;;  %v413_v16 = vld [vmem:[%s518_s1 + $0x74] ss:$8 sps:$4 sm:$0xff]   ;;  %v415_v17 = vld [vmem:[%s518_s1 + $0x70] ss:$8 sps:$4 sm:$0xff]  }
   0x7   :  { %172 = vmatpush1.bf16.msra.mxu0 %v397_v5  ;;  %383 = vmatpush1.bf16.msra.mxu1 %v397_v5  ;;  %v416_v18 = vld [vmem:[%s519_s0] sm:$0xff]   ;;  %v417_v19 = vld [vmem:[%s519_s0 + $0x10] sm:$0xff]   ;;  %v418_v20 = vld [vmem:[%s519_s0 + $0x8] sm:$0xff]  }
   0x8   :  { %173 = vmatprep.subr.bf16.mxu0 %v398_v6  ;;  %376 = vmatprep.subr.bf16.mxu1 %v398_v6  ;;  %v419_v21 = vld [vmem:[%s519_s0 + $0x18] ss:$0 sps:$4 sm:$0x11]   ;;  %v42_v34 = vld [vmem:[#allocation2 + $0x60] sm:$0x3] }
   0x9   :  { %v43_v35 = vld [vmem:[#allocation2 + $0x68] sm:$0x3] }
   0xb   :  { %174 = vmatpush1.bf16.msra.mxu0 %v400_v7  ;;  %384 = vmatpush1.bf16.msra.mxu1 %v400_v7 }
   0xc   :  { %175 = vmatprep.subr.bf16.mxu0 %v401_v8  ;;  %377 = vmatprep.subr.bf16.mxu1 %v401_v8 }
   0xf   :  { %176 = vmatpush1.bf16.msra.mxu0 %v403_v9  ;;  %385 = vmatpush1.bf16.msra.mxu1 %v403_v9 }
  0x10   :  { %177 = vmatprep.subr.bf16.mxu0 %v404_v10  ;;  %378 = vmatprep.subr.bf16.mxu1 %v404_v10 }
  0x13   :  { %178 = vmatpush1.bf16.msra.mxu0 %v406_v11  ;;  %386 = vmatpush1.bf16.msra.mxu1 %v406_v11 }
  0x14   :  { %179 = vmatprep.subr.bf16.mxu0 %v407_v12  ;;  %379 = vmatprep.subr.bf16.mxu1 %v407_v12 }
  0x17   :  { %180 = vmatpush1.bf16.msra.mxu0 %v409_v13  ;;  %387 = vmatpush1.bf16.msra.mxu1 %v409_v13 }
  0x18   :  { %181 = vmatprep.subr.bf16.mxu0 %v410_v14  ;;  %380 = vmatprep.subr.bf16.mxu1 %v410_v14 }
  0x1b   :  { %182 = vmatpush1.bf16.msra.mxu0 %v412_v15  ;;  %388 = vmatpush1.bf16.msra.mxu1 %v412_v15 }
  0x1c   :  { %183 = vmatprep.subr.bf16.mxu0 %v413_v16  ;;  %381 = vmatprep.subr.bf16.mxu1 %v413_v16 }
  0x1f   :  { %184 = vmatpush1.bf16.msra.mxu0 %v415_v17  ;;  %389 = vmatpush1.bf16.msra.mxu1 %v415_v17 }
  0x22   :  { %202 = vmatmul.mubr.bf16.vlgmr.msra.gmra.mrb[0].mxu0 %v416_v18  ;;  %222 = vmatmul.mubr.bf16.vlgmr.msra.gmra.mrb[0].mxu1 %v417_v19 }
  0x23   :  { %211 = vmatprep.mubr.bf16.mxu0 %v420_v1  ;;  %231 = vmatprep.mubr.bf16.mxu1 %v420_v1 }
  0x2a   :  { %212 = vmatmul.mubr.bf16.gmra.mrb[4].mxu0 %v418_v20  ;;  %232 = vmatmul.mubr.bf16.gmra.mrb[4].mxu1 %v419_v21 }
  0xf5   :  { %v203_v22 = vpop.f32.mrb[0].mxu0  ;;  %v223_v23 = vpop.f32.mrb[0].mxu1 }
  0xf6   :  { %v205_v24 = vpop.f32.mrb[1].mxu0  ;;  %v225_v25 = vpop.f32.mrb[1].mxu1 }
  0xf7   :  { %v207_v26 = vpop.f32.mrb[2].mxu0  ;;  %v227_v27 = vpop.f32.mrb[2].mxu1  ;;  %v367_v30 = vpack.c.bf16 %v205_v24, %v203_v22  ;;  %v371_v31 = vpack.c.bf16 %v225_v25, %v223_v23 }
  0xf8   :  { %v209_v28 = vpop.f32.mrb[3].mxu0  ;;  %v229_v29 = vpop.f32.mrb[3].mxu1 }
  0xf9   :  { %329 = vst [vmem:[%s520_s2] sm:$0xff] %v367_v30  ;;  %333 = vst [vmem:[%s520_s2 + $0x20] sm:$0xff] %v371_v31  ;;  %v368_v32 = vpack.c.bf16 %v209_v28, %v207_v26  ;;  %v372_v33 = vpack.c.bf16 %v229_v29, %v227_v27 }
  0xfb   :  { %330 = vst [vmem:[%s520_s2 + $0x8] sm:$0xff] %v368_v32  ;;  %334 = vst [vmem:[%s520_s2 + $0x28] sm:$0xff] %v372_v33 }
  0xfd   :  { %v213_v36 = vpop.f32.mrb[4].mxu0  ;;  %v233_v37 = vpop.f32.mrb[4].mxu1 }
  0xfe   :  { %v252_v38 = vadd.f32 %v233_v37, %v42_v34  ;;  %v215_v39 = vpop.f32.mrb[5].mxu0  ;;  %v235_v40 = vpop.f32.mrb[5].mxu1 }
  0xff   :  { %v253_v41 = vadd.f32 %v235_v40, %v43_v35  ;;  %v217_v42 = vpop.f32.mrb[6].mxu0  ;;  %v237_v43 = vpop.f32.mrb[6].mxu1  ;;  %v369_v46 = vpack.c.bf16 %v215_v39, %v213_v36 }
 0x100   :  { %266 = vst [vmem:[#allocation2 + $0x60] sm:$0x3] %v252_v38  ;;  %v219_v44 = vpop.f32.mrb[7].mxu0  ;;  %v238_v45 = vpop.f32.mrb[7].mxu1 }
 0x101   :  { %267 = vst [vmem:[#allocation2 + $0x68] sm:$0x3] %v253_v41  ;;  %331 = vst [vmem:[%s520_s2 + $0x10] sm:$0xff] %v369_v46  ;;  %v370_v47 = vpack.c.bf16 %v219_v44, %v217_v42 }
 0x103   :  { %332 = vst [vmem:[%s520_s2 + $0x18] sm:$0xff] %v370_v47 }
 0x107   :  { %v283_v48 = vld [vmem:[#allocation2 + $0x60] sm:$0x3] }
 0x108   :  { %v284_v49 = vld [vmem:[#allocation2 + $0x68] sm:$0x3] }
 0x109   :  { %v373_v50 = vpack.c.bf16 %v284_v49, %v283_v48 }
 0x10b   :  { %335 = vst [vmem:[%s520_s2 + $0x30] sm:$0x11] %v373_v50 }

// kernel: resnet_forward.41
= control target key start
LH: loop header
LB: loop body
LE: loop exit
PB: predicated region body
PF: predicated region fallthrough
CT: control target
= control target key end

     0   :  { %v46_v0 = vlaneseq  ;;  %s448_s0 = inlined_call_operand.vmem [shape: f32[1,256], index: 0, kind: input, shape index: {}]   ;;  %s449_s1 = inlined_call_operand.vmem [shape: f32[1,256], index: 1, kind: input, shape index: {}]   ;;  %s450_s4 = inlined_call_operand.vmem [shape: bf16[50,256], index: 4, kind: input, shape index: {}]   ;;  %s451_s5 = inlined_call_operand.vmem [shape: bf16[50,256], index: 5, kind: input, shape index: {}]   ;;  %s452_s2 = inlined_call_operand.vmem [shape: f32[1,256], index: 2, kind: input, shape index: {}]   ;;  %s453_s3 = inlined_call_operand.vmem [shape: f32[1,256], index: 3, kind: input, shape index: {}]   ;;  %s454_s6 = inlined_call_operand.vmem [shape: bf16[50,256], index: 6, kind: output, shape index: {}]  }
   0x1   :  { %v23_v1 = vld [vmem:[%s450_s4] sm:$0xff]  ;;  %v24_v10 = vld [vmem:[%s450_s4 + $0x8] sm:$0xff]  ;;  %v25_v12 = vld [vmem:[%s450_s4 + $0x10] sm:$0xff] }
   0x2   :  { %v44_v2 = vld [vmem:[%s448_s0] sm:$0x3]  ;;  %v47_v3 = vshrl.u32 %v46_v0, 7  ;;  %v30_v6 = vunpack.c.l.bf16 %v23_v1  ;;  %v31_v7 = vunpack.c.h.bf16 %v23_v1  ;;  %v97_v11 = vld [vmem:[%s451_s5 + $0x8] sm:$0xff]  ;;  %v32_v17 = vunpack.c.l.bf16 %v24_v10  ;;  %v98_v39 = vld [vmem:[%s451_s5 + $0x10] sm:$0xff] }
   0x3   :  { %v70_v4 = vld [vmem:[%s449_s1] sm:$0x3]  ;;  %v33_v18 = vunpack.c.h.bf16 %v24_v10  ;;  %v105_v19 = vunpack.c.l.bf16 %v97_v11  ;;  %v106_v20 = vunpack.c.h.bf16 %v97_v11  ;;  %v34_v21 = vunpack.c.l.bf16 %v25_v12  ;;  %v26_v56 = vld [vmem:[%s450_s4 + $0x18] sm:$0xff] }
   0x4   :  { %v96_v5 = vld [vmem:[%s451_s5] sm:$0xff]  ;;  %v48_v13 = vsub.s32 0, %v47_v3  ;;  %v52_v14 = vsub.s32 1, %v47_v3  ;;  %v35_v22 = vunpack.c.h.bf16 %v25_v12  ;;  %v107_v50 = vunpack.c.l.bf16 %v98_v39  ;;  %v99_v61 = vld [vmem:[%s451_s5 + $0x18] sm:$0xff] }
   0x5   :  { %v103_v8 = vunpack.c.l.bf16 %v96_v5  ;;  %v104_v9 = vunpack.c.h.bf16 %v96_v5  ;;  %v117_v15 = vld [vmem:[%s452_s2] sm:$0x3]  ;;  %v108_v51 = vunpack.c.h.bf16 %v98_v39  ;;  %v37_v5 = vunpack.c.h.bf16 %v26_v56 }
   0x6   :  { %v143_v16 = vld [vmem:[%s453_s3] sm:$0x3]  ;;  %v328_v23 = vrot.slane %v44_v2, %v48_v13  ;;  %v330_v24 = vrot.slane %v44_v2, %v52_v14  ;;  %v332_v25 = vrot.slane %v70_v4, %v48_v13  ;;  %v334_v26 = vrot.slane %v70_v4, %v52_v14 }
   0x7   :  { %v336_v27 = vrot.slane %v117_v15, %v48_v13  ;;  %v338_v28 = vrot.slane %v117_v15, %v52_v14  ;;  %v340_v29 = vrot.slane %v143_v16, %v48_v13  ;;  %v342_v30 = vrot.slane %v143_v16, %v52_v14 }
   0x8   :  { %v56_v31 = vmul.f32 %v328_v23, %v30_v6  ;;  %v57_v32 = vmul.f32 %v330_v24, %v31_v7  ;;  %v58_v33 = vmul.f32 %v328_v23, %v32_v17  ;;  %v59_v34 = vmul.f32 %v330_v24, %v33_v18  ;;  %v27_v6 = vld [vmem:[%s450_s4 + $0x20] sm:$0xff] }
   0x9   :  { %v129_v35 = vmul.f32 %v336_v27, %v103_v8  ;;  %v130_v36 = vmul.f32 %v338_v28, %v104_v9  ;;  %v131_v37 = vmul.f32 %v336_v27, %v105_v19  ;;  %v132_v38 = vmul.f32 %v338_v28, %v106_v20  ;;  %v100_v19 = vld [vmem:[%s451_s5 + $0x20] sm:$0xff]  ;;  %v28_v20 = vld [vmem:[%s450_s4 + $0x28] sm:$0xff] }
   0xa   :  { %v82_v40 = vadd.f32 %v332_v25, %v56_v31  ;;  %v83_v41 = vadd.f32 %v334_v26, %v57_v32  ;;  %v84_v42 = vadd.f32 %v332_v25, %v58_v33  ;;  %v85_v43 = vadd.f32 %v334_v26, %v59_v34 }
   0xb   :  { %v155_v44 = vadd.f32 %v340_v29, %v129_v35  ;;  %v156_v45 = vadd.f32 %v342_v30, %v130_v36  ;;  %v157_v46 = vadd.f32 %v340_v29, %v131_v37  ;;  %v158_v47 = vadd.f32 %v342_v30, %v132_v38 }
   0xc   :  { %v60_v48 = vmul.f32 %v328_v23, %v34_v21  ;;  %v61_v49 = vmul.f32 %v330_v24, %v35_v22  ;;  %v133_v59 = vmul.f32 %v336_v27, %v107_v50  ;;  %v134_v60 = vmul.f32 %v338_v28, %v108_v51  ;;  %v29_v50 = vld [vmem:[%s450_s4 + $0x30] sm:$0x11] }
   0xd   :  { %v169_v52 = vadd.f32 %v155_v44, %v82_v40  ;;  %v170_v53 = vadd.f32 %v156_v45, %v83_v41  ;;  %v171_v54 = vadd.f32 %v157_v46, %v84_v42  ;;  %v172_v55 = vadd.f32 %v158_v47, %v85_v43  ;;  %v101_v41 = vld [vmem:[%s451_s5 + $0x28] sm:$0xff] }
   0xe   :  { %v86_v57 = vadd.f32 %v332_v25, %v60_v48  ;;  %v87_v58 = vadd.f32 %v334_v26, %v61_v49  ;;  %v159_v2 = vadd.f32 %v340_v29, %v133_v59  ;;  %v160_v3 = vadd.f32 %v342_v30, %v134_v60  ;;  %v102_v59 = vld [vmem:[%s451_s5 + $0x30] sm:$0x11] }
   0xf   :  { %v183_v62 = vmax.f32 %v169_v52, 0.0  ;;  %v184_v63 = vmax.f32 %v170_v53, 0.0  ;;  %v185_v0 = vmax.f32 %v171_v54, 0.0  ;;  %v186_v1 = vmax.f32 %v172_v55, 0.0 }
  0x10   :  { %v36_v4 = vunpack.c.l.bf16 %v26_v56  ;;  %v109_v9 = vunpack.c.l.bf16 %v99_v61  ;;  %v110_v10 = vunpack.c.h.bf16 %v99_v61  ;;  %v173_v11 = vadd.f32 %v159_v2, %v86_v57 }
  0x11   :  { %v259_v7 = vpack.c.bf16 %v184_v63, %v183_v62  ;;  %v260_v8 = vpack.c.bf16 %v186_v1, %v185_v0  ;;  %v174_v12 = vadd.f32 %v160_v3, %v87_v58  ;;  %v63_v14 = vmul.f32 %v330_v24, %v37_v5 }
  0x12   :  { %v62_v13 = vmul.f32 %v328_v23, %v36_v4  ;;  %v135_v15 = vmul.f32 %v336_v27, %v109_v9  ;;  %v136_v16 = vmul.f32 %v338_v28, %v110_v10  ;;  %v38_v17 = vunpack.c.l.bf16 %v27_v6 }
  0x13   :  { %241 = vst [vmem:[%s454_s6] sm:$0xff] %v259_v7  ;;  %242 = vst [vmem:[%s454_s6 + $0x8] sm:$0xff] %v260_v8  ;;  %v39_v18 = vunpack.c.h.bf16 %v27_v6  ;;  %v187_v21 = vmax.f32 %v173_v11, 0.0  ;;  %v188_v22 = vmax.f32 %v174_v12, 0.0  ;;  %v89_v32 = vadd.f32 %v334_v26, %v63_v14 }
  0x14   :  { %v88_v31 = vadd.f32 %v332_v25, %v62_v13  ;;  %v161_v33 = vadd.f32 %v340_v29, %v135_v15  ;;  %v162_v34 = vadd.f32 %v342_v30, %v136_v16  ;;  %v64_v35 = vmul.f32 %v328_v23, %v38_v17 }
  0x15   :  { %v65_v36 = vmul.f32 %v330_v24, %v39_v18  ;;  %v261_v37 = vpack.c.bf16 %v188_v22, %v187_v21  ;;  %v111_v38 = vunpack.c.l.bf16 %v100_v19  ;;  %v112_v39 = vunpack.c.h.bf16 %v100_v19 }
  0x16   :  { %v40_v40 = vunpack.c.l.bf16 %v28_v20  ;;  %v175_v42 = vadd.f32 %v161_v33, %v88_v31  ;;  %v176_v43 = vadd.f32 %v162_v34, %v89_v32  ;;  %v90_v44 = vadd.f32 %v332_v25, %v64_v35 }
  0x17   :  { %v91_v45 = vadd.f32 %v334_v26, %v65_v36  ;;  %243 = vst [vmem:[%s454_s6 + $0x10] sm:$0xff] %v261_v37  ;;  %v137_v46 = vmul.f32 %v336_v27, %v111_v38  ;;  %v138_v47 = vmul.f32 %v338_v28, %v112_v39  ;;  %v41_v48 = vunpack.c.h.bf16 %v28_v20 }
  0x18   :  { %v66_v49 = vmul.f32 %v328_v23, %v40_v40  ;;  %v189_v51 = vmax.f32 %v175_v42, 0.0  ;;  %v190_v52 = vmax.f32 %v176_v43, 0.0  ;;  %v113_v53 = vunpack.c.l.bf16 %v101_v41 }
  0x19   :  { %v114_v54 = vunpack.c.h.bf16 %v101_v41  ;;  %v163_v55 = vadd.f32 %v340_v29, %v137_v46  ;;  %v164_v56 = vadd.f32 %v342_v30, %v138_v47  ;;  %v67_v57 = vmul.f32 %v330_v24, %v41_v48 }
  0x1a   :  { %v92_v58 = vadd.f32 %v332_v25, %v66_v49  ;;  %v262_v60 = vpack.c.bf16 %v190_v52, %v189_v51  ;;  %v139_v61 = vmul.f32 %v336_v27, %v113_v53  ;;  %v42_v63 = vunpack.c.l.bf16 %v29_v50 }
  0x1b   :  { %v140_v62 = vmul.f32 %v338_v28, %v114_v54  ;;  %v177_v0 = vadd.f32 %v163_v55, %v90_v44  ;;  %v178_v1 = vadd.f32 %v164_v56, %v91_v45  ;;  %v93_v2 = vadd.f32 %v334_v26, %v67_v57 }
  0x1c   :  { %v43_v3 = vunpack.c.h.bf16 %v29_v50  ;;  %244 = vst [vmem:[%s454_s6 + $0x18] sm:$0xff] %v262_v60  ;;  %v165_v4 = vadd.f32 %v340_v29, %v139_v61  ;;  %v68_v6 = vmul.f32 %v328_v23, %v42_v63  ;;  %v115_v7 = vunpack.c.l.bf16 %v102_v59 }
  0x1d   :  { %v166_v5 = vadd.f32 %v342_v30, %v140_v62  ;;  %v191_v8 = vmax.f32 %v177_v0, 0.0  ;;  %v192_v9 = vmax.f32 %v178_v1, 0.0  ;;  %v116_v11 = vunpack.c.h.bf16 %v102_v59 }
  0x1e   :  { %v69_v10 = vmul.f32 %v330_v24, %v43_v3  ;;  %v179_v12 = vadd.f32 %v165_v4, %v92_v58  ;;  %v94_v14 = vadd.f32 %v332_v25, %v68_v6  ;;  %v141_v15 = vmul.f32 %v336_v27, %v115_v7 }
  0x1f   :  { %v180_v13 = vadd.f32 %v166_v5, %v93_v2  ;;  %v263_v16 = vpack.c.bf16 %v192_v9, %v191_v8  ;;  %v142_v18 = vmul.f32 %v338_v28, %v116_v11 }
  0x20   :  { %v95_v17 = vadd.f32 %v334_v26, %v69_v10  ;;  %v193_v19 = vmax.f32 %v179_v12, 0.0  ;;  %v167_v23 = vadd.f32 %v340_v29, %v141_v15 }
  0x21   :  { %v194_v20 = vmax.f32 %v180_v13, 0.0  ;;  %245 = vst [vmem:[%s454_s6 + $0x20] sm:$0xff] %v263_v16  ;;  %v168_v24 = vadd.f32 %v342_v30, %v142_v18 }
  0x22   :  { %v181_v22 = vadd.f32 %v167_v23, %v94_v14 }
  0x23   :  { %v264_v21 = vpack.c.bf16 %v194_v20, %v193_v19  ;;  %v182_v25 = vadd.f32 %v168_v24, %v95_v17 }
  0x24   :  { %v195_v26 = vmax.f32 %v181_v22, 0.0 }
  0x25   :  { %246 = vst [vmem:[%s454_s6 + $0x28] sm:$0xff] %v264_v21  ;;  %v196_v27 = vmax.f32 %v182_v25, 0.0 }
  0x27   :  { %v265_v28 = vpack.c.bf16 %v196_v27, %v195_v26 }
  0x29   :  { %247 = vst [vmem:[%s454_s6 + $0x30] sm:$0x11] %v265_v28 }

// kernel: resnet_forward.42
= control target key start
LH: loop header
LB: loop body
LE: loop exit
PB: predicated region body
PF: predicated region fallthrough
CT: control target
= control target key end

     0   :  { %v347_v21 = vmov 0.0   ;;  %s426_s1 = inlined_call_operand.vmem [shape: bf16[256,128], index: 1, kind: input, shape index: {}]   ;;  %s427_s0 = inlined_call_operand.vmem [shape: bf16[18,256], index: 0, kind: input, shape index: {}]   ;;  %s428_s2 = inlined_call_operand.vmem [shape: bf16[18,128], index: 2, kind: output, shape index: {}]  }
   0x1   :  { %v326_v0 = vld [vmem:[%s426_s1 + $0x40] sm:$0xff]   ;;  %v328_v2 = vld [vmem:[%s426_s1 + $0x48] sm:$0xff]   ;;  %v330_v4 = vld [vmem:[%s426_s1 + $0x50] sm:$0xff]   ;;  %18 = vst [vmem:[#allocation2 + $0x10] sm:$0x3] %v347_v21 }
   0x2   :  { %v327_v1 = vld [vmem:[%s426_s1] sm:$0xff]   ;;  %281 = vmatprep.subr.bf16.mxu0 %v326_v0  ;;  %309 = vmatprep.subr.bf16.mxu1 %v326_v0  ;;  %v329_v3 = vld [vmem:[%s426_s1 + $0x8] sm:$0xff]   ;;  %v331_v5 = vld [vmem:[%s426_s1 + $0x10] sm:$0xff]  }
   0x3   :  { %282 = vmatpush3.bf16.msra.mxu0 %v327_v1  ;;  %317 = vmatpush3.bf16.msra.mxu1 %v327_v1  ;;  %v332_v6 = vld [vmem:[%s426_s1 + $0x58] sm:$0xff]   ;;  %v334_v8 = vld [vmem:[%s426_s1 + $0x60] sm:$0xff]   ;;  %v336_v10 = vld [vmem:[%s426_s1 + $0x68] sm:$0xff]  }
   0x4   :  { %283 = vmatprep.subr.bf16.mxu0 %v328_v2  ;;  %310 = vmatprep.subr.bf16.mxu1 %v328_v2  ;;  %v333_v7 = vld [vmem:[%s426_s1 + $0x18] sm:$0xff]   ;;  %v335_v9 = vld [vmem:[%s426_s1 + $0x20] sm:$0xff]   ;;  %v24_v12 = vld [vmem:[%s427_s0 + $0x10] sm:$0x11] }
   0x5   :  { %v344_v11 = vld [vmem:[%s427_s0 + $0x4] ss:$8 sps:$4 sm:$0xff]   ;;  %v253_v13 = vcombine.high %v24_v12, %v24_v12  ;;  %v338_v15 = vld [vmem:[%s426_s1 + $0x70] sm:$0xff]   ;;  %v340_v17 = vld [vmem:[%s426_s1 + $0x78] sm:$0xff]   ;;  %v252_v20 = vcombine.low %v24_v12, %v24_v12 }
   0x6   :  { %v337_v14 = vld [vmem:[%s426_s1 + $0x28] sm:$0xff]   ;;  %202 = vmatprep.mubr.bf16.mxu0 %v344_v11  ;;  %v339_v16 = vld [vmem:[%s426_s1 + $0x30] sm:$0xff]   ;;  %v341_v18 = vld [vmem:[%s426_s1 + $0x38] sm:$0xff]  }
   0x7   :  { %284 = vmatpush3.bf16.msra.mxu0 %v329_v3  ;;  %318 = vmatpush3.bf16.msra.mxu1 %v329_v3  ;;  %v342_v19 = vld [vmem:[%s427_s0] ss:$8 sps:$4 sm:$0xff]  }
   0x8   :  { %285 = vmatprep.subr.bf16.mxu0 %v330_v4  ;;  %311 = vmatprep.subr.bf16.mxu1 %v330_v4  ;;  %v21_v25 = vld [vmem:[#allocation2 + $0x10] sm:$0x3] }
   0x9   :  { %210 = vmatprep.mubr.bf16.mxu1 %v253_v13 }
   0xb   :  { %286 = vmatpush3.bf16.msra.mxu0 %v331_v5  ;;  %319 = vmatpush3.bf16.msra.mxu1 %v331_v5 }
   0xc   :  { %287 = vmatprep.subr.bf16.mxu0 %v332_v6  ;;  %312 = vmatprep.subr.bf16.mxu1 %v332_v6 }
   0xf   :  { %288 = vmatpush3.bf16.msra.mxu0 %v333_v7  ;;  %320 = vmatpush3.bf16.msra.mxu1 %v333_v7 }
  0x10   :  { %289 = vmatprep.subr.bf16.mxu0 %v334_v8  ;;  %313 = vmatprep.subr.bf16.mxu1 %v334_v8 }
  0x13   :  { %290 = vmatpush3.bf16.msra.mxu0 %v335_v9  ;;  %321 = vmatpush3.bf16.msra.mxu1 %v335_v9 }
  0x14   :  { %291 = vmatprep.subr.bf16.mxu0 %v336_v10  ;;  %314 = vmatprep.subr.bf16.mxu1 %v336_v10 }
  0x17   :  { %292 = vmatpush3.bf16.msra.mxu0 %v337_v14  ;;  %322 = vmatpush3.bf16.msra.mxu1 %v337_v14 }
  0x18   :  { %293 = vmatprep.subr.bf16.mxu0 %v338_v15  ;;  %315 = vmatprep.subr.bf16.mxu1 %v338_v15 }
  0x1b   :  { %294 = vmatpush3.bf16.msra.mxu0 %v339_v16  ;;  %323 = vmatpush3.bf16.msra.mxu1 %v339_v16 }
  0x1c   :  { %295 = vmatprep.subr.bf16.mxu0 %v340_v17  ;;  %316 = vmatprep.subr.bf16.mxu1 %v340_v17 }
  0x1f   :  { %296 = vmatpush3.bf16.msra.mxu0 %v341_v18  ;;  %324 = vmatpush3.bf16.msra.mxu1 %v341_v18 }
  0x22   :  { %203 = vmatmul.mubr.bf16.vlgmr.msra.gmra.mrb[0].mxu0 %v342_v19  ;;  %211 = vmatmul.mubr.bf16.vlgmr.msra.gmra.mrb[0].mxu1 %v252_v20 }
  0xf5   :  { %v297_v22 = vpop.f32.mrb[0].mxu0  ;;  %v303_v23 = vpop.f32.mrb[0].mxu1 }
  0xf6   :  { %v298_v24 = vpop.f32.mrb[1].mxu0  ;;  %v304_v26 = vpop.f32.mrb[1].mxu1 }
  0xf7   :  { %v299_v27 = vadd.f32 %v298_v24, %v297_v22  ;;  %v305_v28 = vadd.f32 %v304_v26, %v303_v23  ;;  %v300_v29 = vpop.f32.mrb[2].mxu0  ;;  %v306_v30 = vpop.f32.mrb[2].mxu1 }
  0xf8   :  { %v301_v31 = vpop.f32.mrb[3].mxu0  ;;  %v307_v32 = vpop.f32.mrb[3].mxu1 }
  0xf9   :  { %v220_v33 = vadd.f32 %v305_v28, %v21_v25  ;;  %v302_v34 = vadd.f32 %v301_v31, %v300_v29 }
  0xfb   :  { %223 = vst [vmem:[#allocation2 + $0x10] sm:$0x3] %v220_v33  ;;  %v279_v35 = vpack.c.bf16 %v302_v34, %v299_v27 }
  0xfd   :  { %280 = vst [vmem:[%s428_s2] sm:$0xff] %v279_v35  }
 0x102   :  { %v229_v36 = vld [vmem:[#allocation2 + $0x10] sm:$0x3] }
 0x103   :  { %v275_v37 = vpack.c.bf16 %v229_v36, %v229_v36 }
 0x105   :  { %245 = vst [vmem:[%s428_s2 + $0x8] sm:$0x1] %v275_v37 }

// kernel: resnet_forward.46
= control target key start
LH: loop header
LB: loop body
LE: loop exit
PB: predicated region body
PF: predicated region fallthrough
CT: control target
= control target key end

     0   :  { %s982_s15 = smov 0   ;;  %s984_s16 = smov 0   ;;  %s1106_s0 = inlined_call_operand.vmem [shape: f32[1,128], index: 0, kind: input, shape index: {}]   ;;  %s1107_s1 = inlined_call_operand.vmem [shape: f32[1,128], index: 1, kind: input, shape index: {}]   ;;  %s1108_s2 = inlined_call_operand.vmem [shape: bf16[18,128], index: 2, kind: input, shape index: {}]   ;;  %s1109_s3 = inlined_call_operand.vmem [shape: bf16[128,512], index: 3, kind: input, shape index: {}]   ;;  %s1110_s4 = inlined_call_operand.vmem [shape: bf16[18,512], index: 4, kind: output, shape index: {}]  }
   0x1   :  { %s986_s17 = smov 0   ;;  %s988_s18 = smov 0  }
   0x2   :  { %s990_s19 = smov 0  }
   0x3 LB: > { %s29_s20 = sadd.s32 1, %s949_s18  ;;  %s786_s21 = sadd.s32 4294967295, %s953_s19   ;;  %s953_s19 = sphi %s990_s19, %s14_s19   ;;  %s949_s18 = sphi %s988_s18, %s1115_s18   ;;  %s945_s17 = sphi %s986_s17, %s1114_s17   ;;  %s941_s16 = sphi %s984_s16, %s1113_s16   ;;  %s937_s15 = sphi %s982_s15, %s1112_s15  }
   0x4   : > { %p31_p0 = scmp.ge.s32.totalorder %s29_s20, 2  ;;  %p129_p1 = scmp.ne.s32.totalorder %s941_s16, %s937_s15 }
   0x5   : > { %p130_p2 = scmp.eq.s32.totalorder %s953_s19, 0  ;;  %p161_p4 = scmp.eq.s32.totalorder %s786_s21, 1 }
   0x6   : > { %s1117_s20 = smov (%p31_p0, %s29_s20), 0  ;;  %s122_s23 = sadd.s32 1, %s941_s16 }
   0x7   : > { %p131_p3 = por %p130_p2, %p129_p1  ;;  %s118_s22 = ssub.s32 %s949_s18, %s1117_s20 }
   0x8   : > { %p120_p5 = scmp.eq.s32.totalorder %s118_s22, 0  ;;  %p1017_p6 = por %p161_p4, %p129_p1 }
   0x9   : > { %p792_p7 = scmp.ge.s32.totalorder %s953_s19, 2 }
   0xa   : > { %s1022_s25 = scalar_select %p120_p5, %s941_s16, %s122_s23  }
   0xb   : > { %207 = sbr.rel (%p792_p7) target bundleno = 30 (0x1e), region = 28 }
  0x12   : > { %210 = sbr.rel (!%p131_p3) target bundleno = 30 (0x1e), region = 32  ;;  %s212_s26 = sand.u32 (%p131_p3), 1, %s941_s16  }
  0x13   : > { %s823_s27 = sshll.u32 (%p131_p3), %s949_s18, 3  ;;  %s793_s28 = sshll.u32 (%p131_p3), %s212_s26, 7 }
  0x14   : > { %s1030_s5 = scalar_lea.vmem (%p131_p3), %s1109_s3, %s823_s27  ;;  %s214_s6 = scalar_lea.vmem (%p131_p3), [#allocation3], %s793_s28 }
  0x15   : > { %v278_v0 = vld [vmem:[%s1030_s5] sm:$0xff] (%p131_p3)  ;;  %v280_v1 = vld [vmem:[%s1030_s5 + $0x10] sm:$0xff] (%p131_p3) }
  0x16   : > { %v282_v2 = vld [vmem:[%s1030_s5 + $0x20] sm:$0xff] (%p131_p3)  ;;  %279 = vst [vmem:[%s214_s6] sm:$0xff] (%p131_p3), %v278_v0  ;;  %281 = vst [vmem:[%s214_s6 + $0x8] sm:$0xff] (%p131_p3), %v280_v1  ;;  %v284_v3 = vld [vmem:[%s1030_s5 + $0x30] sm:$0xff] (%p131_p3) }
  0x17   : > { %283 = vst [vmem:[%s214_s6 + $0x10] sm:$0xff] (%p131_p3), %v282_v2  ;;  %v286_v4 = vld [vmem:[%s1030_s5 + $0x40] sm:$0xff] (%p131_p3)  ;;  %v288_v5 = vld [vmem:[%s1030_s5 + $0x50] sm:$0xff] (%p131_p3)  ;;  %285 = vst [vmem:[%s214_s6 + $0x18] sm:$0xff] (%p131_p3), %v284_v3 }
  0x18   : > { %287 = vst [vmem:[%s214_s6 + $0x20] sm:$0xff] (%p131_p3), %v286_v4  ;;  %289 = vst [vmem:[%s214_s6 + $0x28] sm:$0xff] (%p131_p3), %v288_v5  ;;  %v290_v6 = vld [vmem:[%s1030_s5 + $0x60] sm:$0xff] (%p131_p3)  ;;  %v292_v7 = vld [vmem:[%s1030_s5 + $0x70] sm:$0xff] (%p131_p3) }
  0x19   : > { %v294_v8 = vld [vmem:[%s1030_s5 + $0x80] sm:$0xff]  ;;  %291 = vst [vmem:[%s214_s6 + $0x30] sm:$0xff] %v290_v6  ;;  %293 = vst [vmem:[%s214_s6 + $0x38] sm:$0xff] %v292_v7  ;;  %v296_v9 = vld [vmem:[%s1030_s5 + $0x90] sm:$0xff] }
  0x1a   : > { %295 = vst [vmem:[%s214_s6 + $0x40] sm:$0xff] %v294_v8  ;;  %v298_v10 = vld [vmem:[%s1030_s5 + $0xa0] sm:$0xff]  ;;  %v300_v11 = vld [vmem:[%s1030_s5 + $0xb0] sm:$0xff]  ;;  %297 = vst [vmem:[%s214_s6 + $0x48] sm:$0xff] %v296_v9 }
  0x1b   : > { %299 = vst [vmem:[%s214_s6 + $0x50] sm:$0xff] %v298_v10  ;;  %301 = vst [vmem:[%s214_s6 + $0x58] sm:$0xff] %v300_v11  ;;  %v302_v12 = vld [vmem:[%s1030_s5 + $0xc0] sm:$0xff]  ;;  %v304_v13 = vld [vmem:[%s1030_s5 + $0xd0] sm:$0xff] }
  0x1c   : > { %v306_v14 = vld [vmem:[%s1030_s5 + $0xe0] sm:$0xff]  ;;  %303 = vst [vmem:[%s214_s6 + $0x60] sm:$0xff] %v302_v12  ;;  %305 = vst [vmem:[%s214_s6 + $0x68] sm:$0xff] %v304_v13  ;;  %v308_v15 = vld [vmem:[%s1030_s5 + $0xf0] sm:$0xff] }
  0x1d   : > { %307 = vst [vmem:[%s214_s6 + $0x70] sm:$0xff] %v306_v14  ;;  %309 = vst [vmem:[%s214_s6 + $0x78] sm:$0xff] %v308_v15 }
  0x1e PF: > { %p796_p8 = scmp.ge.s32.totalorder %s953_s19, 1  ;;  %p314_p9 = scmp.lt.s32.totalorder %s953_s19, 3 }
  0x20   : > { %p315_p10 = pnand %p796_p8, %p314_p9 }
  0x21   : > { %s321_s7 = sand.u32 (!%p315_p10), 1, %s937_s15   ;;  %v955_v16 = vmov (!%p315_p10), 0   ;;  %v956_v17 = vmov (!%p315_p10), 0.0   ;;  %v829_v26 = vld [vmem:[%s1108_s2] sm:$0xff] (!%p315_p10)   ;;  %v391_v27 = vld [vmem:[%s1108_s2 + $0x8] sm:$0x1] (!%p315_p10) }
  0x22   : > { %318 = sbr.rel (%p315_p10) target bundleno = 303 (0x12f), region = 70  ;;  %s797_s8 = sshll.u32 (!%p315_p10), %s321_s7, 7  ;;  %554 = vmatprep.mubr.bf16.mxu0 (!%p315_p10), %v955_v16  ;;  %564 = vmatprep.mubr.bf16.mxu1 (!%p315_p10), %v955_v16  ;;  %387 = vst [vmem:[#allocation2 + $0x20] sm:$0x3] (!%p315_p10), %v956_v17  ;;  %388 = vst [vmem:[#allocation2 + $0x28] sm:$0x3] (!%p315_p10), %v956_v17  ;;  %v830_v29 = vunpack.c.l.bf16 (!%p315_p10), %v829_v26  ;;  %v831_v30 = vunpack.c.h.bf16 (!%p315_p10), %v829_v26  ;;  %v394_v31 = vunpack.c.l.bf16 (!%p315_p10), %v391_v27 }
  0x23   : > { %s1053_s9 = scalar_lea.vmem (!%p315_p10), [#allocation3], %s797_s8  ;;  %v798_v33 = vld [vmem:[%s1106_s0] ss:$0 sm:$0xff] (!%p315_p10)  ;;  %s848_s26 = smul.u32 (!%p315_p10), 24, %s321_s7 }
  0x24   : > { %v891_v18 = vld [vmem:[%s1053_s9 + $0x4] ss:$8 sps:$4 sm:$0xff] (!%p315_p10)   ;;  %v893_v19 = vld [vmem:[%s1053_s9] ss:$8 sps:$4 sm:$0xff] (!%p315_p10)   ;;  %v894_v20 = vld [vmem:[%s1053_s9 + $0x14] ss:$8 sps:$4 sm:$0xff] (!%p315_p10)   ;;  %v402_v35 = vmul.f32 (!%p315_p10), %v830_v29, %v798_v33  ;;  %v403_v36 = vmul.f32 (!%p315_p10), %v831_v30, %v798_v33  ;;  %v404_v37 = vmul.f32 (!%p315_p10), %v798_v33, %v394_v31 }
  0x25   : > { %522 = vmatprep.subr.bf16.mxu0 (!%p315_p10), %v891_v18  ;;  %832 = vmatprep.subr.bf16.mxu1 (!%p315_p10), %v891_v18  ;;  %v896_v21 = vld [vmem:[%s1053_s9 + $0x10] ss:$8 sps:$4 sm:$0xff] (!%p315_p10)   ;;  %v897_v22 = vld [vmem:[%s1053_s9 + $0x24] ss:$8 sps:$4 sm:$0xff] (!%p315_p10)   ;;  %v899_v23 = vld [vmem:[%s1053_s9 + $0x20] ss:$8 sps:$4 sm:$0xff] (!%p315_p10)  }
  0x26   : > { %523 = vmatpush1.bf16.msra.mxu0 (!%p315_p10), %v893_v19  ;;  %840 = vmatpush1.bf16.msra.mxu1 (!%p315_p10), %v893_v19  ;;  %v900_v24 = vld [vmem:[%s1053_s9 + $0x34] ss:$8 sps:$4 sm:$0xff] (!%p315_p10)   ;;  %v902_v25 = vld [vmem:[%s1053_s9 + $0x30] ss:$8 sps:$4 sm:$0xff] (!%p315_p10)   ;;  %v903_v28 = vld [vmem:[%s1053_s9 + $0x44] ss:$8 sps:$4 sm:$0xff] (!%p315_p10)  }
  0x27   : > { %524 = vmatprep.subr.bf16.mxu0 (!%p315_p10), %v894_v20  ;;  %833 = vmatprep.subr.bf16.mxu1 (!%p315_p10), %v894_v20  ;;  %v905_v32 = vld [vmem:[%s1053_s9 + $0x40] ss:$8 sps:$4 sm:$0xff] (!%p315_p10)   ;;  %v906_v34 = vld [vmem:[%s1053_s9 + $0x54] ss:$8 sps:$4 sm:$0xff] (!%p315_p10)   ;;  %v908_v38 = vld [vmem:[%s1053_s9 + $0x50] ss:$8 sps:$4 sm:$0xff] (!%p315_p10)  }
  0x28   : > { %v799_v39 = vld [vmem:[%s1107_s1] ss:$0 sm:$0xff] (!%p315_p10)  ;;  %v909_v40 = vld [vmem:[%s1053_s9 + $0x64] ss:$8 sps:$4 sm:$0xff] (!%p315_p10)   ;;  %v911_v44 = vld [vmem:[%s1053_s9 + $0x60] ss:$8 sps:$4 sm:$0xff] (!%p315_p10)  }
  0x29   : > { %v412_v41 = vadd.f32 %v799_v39, %v402_v35  ;;  %v413_v42 = vadd.f32 %v799_v39, %v403_v36  ;;  %v414_v43 = vadd.f32 %v799_v39, %v404_v37  ;;  %v912_v45 = vld [vmem:[%s1053_s9 + $0x74] ss:$8 sps:$4 sm:$0xff]   ;;  %v914_v49 = vld [vmem:[%s1053_s9 + $0x70] ss:$8 sps:$4 sm:$0xff]   ;;  %s358_s27 = scalar_lea.vmem [#allocation4], %s848_s26  ;;  %s827_s15 = sshll.u32 (%p1017_p6), %s945_s17, 3 }
  0x2a   : > { %525 = vmatpush1.bf16.msra.mxu0 %v896_v21  ;;  %841 = vmatpush1.bf16.msra.mxu1 %v896_v21  ;;  %v422_v52 = vld [vmem:[#allocation2 + $0x20] sm:$0x3]  ;;  %v423_v53 = vld [vmem:[#allocation2 + $0x28] sm:$0x3]  ;;  %s629_s30 = scalar_lea.vmem (%p1017_p6), %s1110_s4, %s827_s15 }
  0x2b   : > { %526 = vmatprep.subr.bf16.mxu0 %v897_v22  ;;  %834 = vmatprep.subr.bf16.mxu1 %v897_v22  ;;  %v415_v46 = vmax.f32 %v412_v41, 0.0  ;;  %v416_v47 = vmax.f32 %v413_v42, 0.0  ;;  %v417_v48 = vmax.f32 %v414_v43, 0.0 }
  0x2d   : > { %v424_v50 = vpack.c.bf16 %v416_v47, %v415_v46  ;;  %v425_v51 = vpack.c.bf16 %v417_v48, %v417_v48 }
  0x2e   : > { %527 = vmatpush1.bf16.msra.mxu0 %v899_v23  ;;  %842 = vmatpush1.bf16.msra.mxu1 %v899_v23 }
  0x2f   : > { %528 = vmatprep.subr.bf16.mxu0 %v900_v24  ;;  %835 = vmatprep.subr.bf16.mxu1 %v900_v24 }
  0x32   : > { %529 = vmatpush1.bf16.msra.mxu0 %v902_v25  ;;  %843 = vmatpush1.bf16.msra.mxu1 %v902_v25 }
  0x33   : > { %530 = vmatprep.subr.bf16.mxu0 %v903_v28  ;;  %836 = vmatprep.subr.bf16.mxu1 %v903_v28 }
  0x36   : > { %531 = vmatpush1.bf16.msra.mxu0 %v905_v32  ;;  %844 = vmatpush1.bf16.msra.mxu1 %v905_v32 }
  0x37   : > { %532 = vmatprep.subr.bf16.mxu0 %v906_v34  ;;  %837 = vmatprep.subr.bf16.mxu1 %v906_v34 }
  0x3a   : > { %533 = vmatpush1.bf16.msra.mxu0 %v908_v38  ;;  %845 = vmatpush1.bf16.msra.mxu1 %v908_v38 }
  0x3b   : > { %534 = vmatprep.subr.bf16.mxu0 %v909_v40  ;;  %838 = vmatprep.subr.bf16.mxu1 %v909_v40 }
  0x3e   : > { %535 = vmatpush1.bf16.msra.mxu0 %v911_v44  ;;  %846 = vmatpush1.bf16.msra.mxu1 %v911_v44 }
  0x3f   : > { %536 = vmatprep.subr.bf16.mxu0 %v912_v45  ;;  %839 = vmatprep.subr.bf16.mxu1 %v912_v45 }
  0x42   : > { %537 = vmatpush1.bf16.msra.mxu0 %v914_v49  ;;  %847 = vmatpush1.bf16.msra.mxu1 %v914_v49 }
  0x45   : > { %555 = vmatmul.mubr.bf16.vlgmr.msra.gmra.mrb[0].mxu0 %v424_v50  ;;  %565 = vmatmul.mubr.bf16.vlgmr.msra.gmra.mrb[0].mxu1 %v425_v51 }
 0x118   : > { %v556_v54 = vpop.f32.mrb[0].mxu0  ;;  %v566_v55 = vpop.f32.mrb[0].mxu1 }
 0x119   : > { %v577_v56 = vadd.f32 %v566_v55, %v422_v52  ;;  %v558_v57 = vpop.f32.mrb[1].mxu0  ;;  %v568_v58 = vpop.f32.mrb[1].mxu1 }
 0x11a   : > { %v578_v59 = vadd.f32 %v568_v58, %v423_v53  ;;  %v560_v60 = vpop.f32.mrb[2].mxu0  ;;  %v570_v61 = vpop.f32.mrb[2].mxu1  ;;  %v824_v0 = vpack.c.bf16 %v558_v57, %v556_v54 }
 0x11b   : > { %583 = vst [vmem:[#allocation2 + $0x20] sm:$0x3] %v577_v56  ;;  %v562_v62 = vpop.f32.mrb[3].mxu0  ;;  %v571_v63 = vpop.f32.mrb[3].mxu1 }
 0x11c   : > { %584 = vst [vmem:[#allocation2 + $0x28] sm:$0x3] %v578_v59  ;;  %614 = vst [vmem:[%s358_s27] sm:$0xff] %v824_v0  ;;  %v825_v1 = vpack.c.bf16 %v562_v62, %v560_v60 }
 0x11e   : > { %615 = vst [vmem:[%s358_s27 + $0x8] sm:$0xff] %v825_v1 }
 0x120   : > { %623 = sbr.rel (!%p1017_p6) target bundleno = 303 (0x12f), region = 86 }
 0x122   : > { %v592_v2 = vld [vmem:[#allocation2 + $0x20] sm:$0x3] }
 0x123   : > { %v593_v3 = vld [vmem:[#allocation2 + $0x28] sm:$0x3] }
 0x124   : > { %v826_v4 = vpack.c.bf16 %v593_v3, %v592_v2  ;;  %v661_v5 = vld [vmem:[%s358_s27] sm:$0xff] (%p1017_p6) }
 0x125   : > { %v663_v6 = vld [vmem:[%s358_s27 + $0x8] sm:$0xff] (%p1017_p6)  ;;  %662 = vst [vmem:[%s629_s30] sm:$0xff] (%p1017_p6), %v661_v5 }
 0x126   : > { %616 = vst [vmem:[%s358_s27 + $0x10] sm:$0x11] %v826_v4  ;;  %664 = vst [vmem:[%s629_s30 + $0x10] sm:$0xff] (%p1017_p6), %v663_v6 }
 0x12d   : > { %v665_v7 = vld [vmem:[%s358_s27 + $0x10] sm:$0xff] }
 0x12e   : > { %666 = vst [vmem:[%s629_s30 + $0x20] sm:$0xff] %v665_v7 }
 0x12f PF: > { %s14_s19 = sadd.s32 1, %s953_s19   ;;  %s1112_s15 = smov %s941_s16 }
 0x130   : > { %p11_p11 = scmp.ge.s32.totalorder %s14_s19, 4   ;;  %s1113_s16 = smov %s1022_s25 }
 0x131   : > { %s1114_s17 = smov %s949_s18  ;;  %s1115_s18 = smov %s1117_s20 }
 0x132   :  { %13 = sbr.rel (!%p11_p11) target bundleno = 3 (0x3), region = 164 }

// kernel: resnet_forward.43
= control target key start
LH: loop header
LB: loop body
LE: loop exit
PB: predicated region body
PF: predicated region fallthrough
CT: control target
= control target key end

     0   :  { %v19_v0 = vlaneseq  ;;  %v88_v1 = vmov 0.0   ;;  %vm36_vm0 = vcmask 1041408   ;;  %s132_s1 = inlined_call_operand.vmem [shape: f32[2,128], index: 1, kind: output, shape index: {}]   ;;  %s133_s0 = inlined_call_operand.vmem [shape: bf16[18,128], index: 0, kind: input, shape index: {}]  }
   0x1   :  { %12 = vst [vmem:[%s132_s1] sm:$0x3] %v88_v1  ;;  %v82_v2 = vld [vmem:[%s133_s0] sm:$0xff]   ;;  %v15_v3 = vld [vmem:[%s133_s0 + $0x8] sm:$0x1] }
   0x2   :  { %v83_v4 = vunpack.c.l.bf16 %v82_v2  ;;  %v84_v5 = vunpack.c.h.bf16 %v82_v2  ;;  %v20_v6 = vshrl.u32 %v19_v0, 7  ;;  %v18_v7 = vunpack.c.l.bf16 %v15_v3 }
   0x4   :  { %v22_v8 = vadd.s32 16, %v20_v6  ;;  %v48_v9 = vmul.f32 %v83_v4, %v83_v4  ;;  %v49_v10 = vmul.f32 %v84_v5, %v84_v5  ;;  %v35_v11 = vadd.f32 %v84_v5, %v83_v4 }
   0x6   :  { %vm30_vm1 = vcmp.lt.s32.totalorder %v22_v8, 18  ;;  %v51_v13 = vadd.f32 %v49_v10, %v48_v9 }
   0x7   :  { %v33_v12 = vsel %vm30_vm1, %v18_v7, 0.0 }
   0x8   :  { %v37_v14 = vsel %vm36_vm0, %v33_v12, 0.0  ;;  %v50_v15 = vmul.f32 %v33_v12, %v33_v12  ;;  %v34_v28 = vld [vmem:[%s132_s1] sm:$0x1]  ;;  %v47_v33 = vld [vmem:[%s132_s1 + $0x1] sm:$0x1] }
   0x9   :  { %v38_v16 = vadd.f32 %v37_v14, %v35_v11 }
   0xa   :  { %v52_v17 = vsel %vm36_vm0, %v50_v15, 0.0 }
   0xb   :  { %v39_v18 = vrot.slane %v38_v16, 4  ;;  %v53_v19 = vadd.f32 %v52_v17, %v51_v13 }
   0xd   :  { %v40_v20 = vadd.f32 %v39_v18, %v38_v16  ;;  %v54_v21 = vrot.slane %v53_v19, 4 }
   0xf   :  { %v41_v22 = vrot.slane %v40_v20, 2  ;;  %v55_v23 = vadd.f32 %v54_v21, %v53_v19 }
  0x11   :  { %v42_v24 = vadd.f32 %v41_v22, %v40_v20  ;;  %v56_v25 = vrot.slane %v55_v23, 2 }
  0x13   :  { %v43_v26 = vrot.slane %v42_v24, 1  ;;  %v57_v27 = vadd.f32 %v56_v25, %v55_v23 }
  0x15   :  { %v44_v29 = vadd.f32 %v43_v26, %v42_v24  ;;  %v58_v30 = vrot.slane %v57_v27, 1 }
  0x17   :  { %v45_v31 = vadd.f32 %v44_v29, %v34_v28  ;;  %v59_v32 = vadd.f32 %v58_v30, %v57_v27 }
  0x19   :  { %46 = vst [vmem:[%s132_s1] sm:$0x1] %v45_v31  ;;  %v60_v34 = vadd.f32 %v59_v32, %v47_v33 }
  0x1b   :  { %61 = vst [vmem:[%s132_s1 + $0x1] sm:$0x1] %v60_v34 }
  0x20   :  { %v65_v35 = vld [vmem:[%s132_s1] sm:$0x1] }
  0x21   :  { %v66_v36 = vmul.f32 0.055555556, %v65_v35 }
  0x22   :  { %v67_v37 = vld [vmem:[%s132_s1 + $0x1] sm:$0x1] }
  0x23   :  { %v68_v38 = vmul.f32 0.055555556, %v67_v37  ;;  %v69_v39 = vmul.f32 %v66_v36, %v66_v36  ;;  %v74_v42 = vsub.f32 0.0, %v66_v36 }
  0x25   :  { %v70_v40 = vsub.f32 %v68_v38, %v69_v39 }
  0x27   :  { %v71_v41 = vadd.f32 1e-05, %v70_v40 }
  0x29   :  { %86 = vrsqrt.f32 %v71_v41 }
  0x33   :  { %v87_v43 = vpop.eup %86 }
  0x34   :  { %73 = vst [vmem:[%s132_s1] sm:$0x1] %v87_v43  ;;  %v75_v44 = vmul.f32 %v87_v43, %v74_v42 }
  0x36   :  { %76 = vst [vmem:[%s132_s1 + $0x1] sm:$0x1] %v75_v44 }

// kernel: resnet_forward.48
= control target key start
LH: loop header
LB: loop body
LE: loop exit
PB: predicated region body
PF: predicated region fallthrough
CT: control target
= control target key end

     0   :  { %s1080_s9 = smov 0   ;;  %s1082_s10 = smov 0   ;;  %s1273_s0 = inlined_call_operand.vmem [shape: bf16[18,256], index: 0, kind: input, shape index: {}]   ;;  %s1274_s1 = inlined_call_operand.vmem [shape: bf16[256,512], index: 1, kind: input, shape index: {}]   ;;  %s1275_s2 = inlined_call_operand.vmem [shape: bf16[18,512], index: 2, kind: output, shape index: {}]  }
   0x1   :  { %s1084_s11 = smov 0   ;;  %s1086_s12 = smov 0  }
   0x2   :  { %s1088_s13 = smov 0  }
   0x3 LB: > { %s27_s14 = sadd.s32 1, %s1058_s12  ;;  %s839_s15 = sadd.s32 4294967295, %s1062_s13   ;;  %s1062_s13 = sphi %s1088_s13, %s12_s13   ;;  %s1058_s12 = sphi %s1086_s12, %s1280_s12   ;;  %s1054_s11 = sphi %s1084_s11, %s1279_s11   ;;  %s1050_s10 = sphi %s1082_s10, %s1278_s10   ;;  %s1046_s9 = sphi %s1080_s9, %s1277_s9  }
   0x4   : > { %p29_p0 = scmp.ge.s32.totalorder %s27_s14, 2  ;;  %p75_p1 = scmp.ne.s32.totalorder %s1050_s10, %s1046_s9 }
   0x5   : > { %p76_p2 = scmp.eq.s32.totalorder %s1062_s13, 0  ;;  %p107_p4 = scmp.eq.s32.totalorder %s839_s15, 1 }
   0x6   : > { %s1282_s14 = smov (%p29_p0, %s27_s14), 0  ;;  %s68_s17 = sadd.s32 1, %s1050_s10 }
   0x7   : > { %p77_p3 = por %p76_p2, %p75_p1  ;;  %s64_s16 = ssub.s32 %s1058_s12, %s1282_s14 }
   0x8   : > { %p66_p5 = scmp.eq.s32.totalorder %s64_s16, 0  ;;  %p1115_p6 = por %p107_p4, %p75_p1 }
   0x9   : > { %p843_p7 = scmp.ge.s32.totalorder %s1062_s13, 2 }
   0xa   : > { %s1120_s19 = scalar_select %p66_p5, %s1050_s10, %s68_s17  }
   0xb   : > { %144 = sbr.rel (%p843_p7) target bundleno = 38 (0x26), region = 20 }
  0x12   : > { %147 = sbr.rel (!%p77_p3) target bundleno = 38 (0x26), region = 24  ;;  %s149_s20 = sand.u32 (%p77_p3), 1, %s1050_s10  }
  0x13   : > { %s892_s21 = sshll.u32 (%p77_p3), %s1058_s12, 3  ;;  %s844_s22 = sshll.u32 (%p77_p3), %s149_s20, 8 }
  0x14   : > { %s1128_s25 = scalar_lea.vmem (%p77_p3), %s1274_s1, %s892_s21  ;;  %s1133_s26 = scalar_lea.vmem (%p77_p3), [#allocation3], %s844_s22 }
  0x15   : > { %v247_v0 = vld [vmem:[%s1128_s25] sm:$0xff] (%p77_p3)  ;;  %v249_v1 = vld [vmem:[%s1128_s25 + $0x10] sm:$0xff] (%p77_p3) }
  0x16   : > { %v251_v2 = vld [vmem:[%s1128_s25 + $0x20] sm:$0xff] (%p77_p3)  ;;  %248 = vst [vmem:[%s1133_s26] sm:$0xff] (%p77_p3), %v247_v0  ;;  %250 = vst [vmem:[%s1133_s26 + $0x8] sm:$0xff] (%p77_p3), %v249_v1  ;;  %v253_v3 = vld [vmem:[%s1128_s25 + $0x30] sm:$0xff] (%p77_p3) }
  0x17   : > { %252 = vst [vmem:[%s1133_s26 + $0x10] sm:$0xff] (%p77_p3), %v251_v2  ;;  %v255_v4 = vld [vmem:[%s1128_s25 + $0x40] sm:$0xff] (%p77_p3)  ;;  %v257_v5 = vld [vmem:[%s1128_s25 + $0x50] sm:$0xff] (%p77_p3)  ;;  %254 = vst [vmem:[%s1133_s26 + $0x18] sm:$0xff] (%p77_p3), %v253_v3 }
  0x18   : > { %256 = vst [vmem:[%s1133_s26 + $0x20] sm:$0xff] (%p77_p3), %v255_v4  ;;  %258 = vst [vmem:[%s1133_s26 + $0x28] sm:$0xff] (%p77_p3), %v257_v5  ;;  %v259_v6 = vld [vmem:[%s1128_s25 + $0x60] sm:$0xff] (%p77_p3)  ;;  %v261_v7 = vld [vmem:[%s1128_s25 + $0x70] sm:$0xff] (%p77_p3) }
  0x19   : > { %v263_v8 = vld [vmem:[%s1128_s25 + $0x80] sm:$0xff]  ;;  %260 = vst [vmem:[%s1133_s26 + $0x30] sm:$0xff] %v259_v6  ;;  %262 = vst [vmem:[%s1133_s26 + $0x38] sm:$0xff] %v261_v7  ;;  %v265_v9 = vld [vmem:[%s1128_s25 + $0x90] sm:$0xff] }
  0x1a   : > { %264 = vst [vmem:[%s1133_s26 + $0x40] sm:$0xff] %v263_v8  ;;  %v267_v10 = vld [vmem:[%s1128_s25 + $0xa0] sm:$0xff]  ;;  %v269_v11 = vld [vmem:[%s1128_s25 + $0xb0] sm:$0xff]  ;;  %266 = vst [vmem:[%s1133_s26 + $0x48] sm:$0xff] %v265_v9 }
  0x1b   : > { %268 = vst [vmem:[%s1133_s26 + $0x50] sm:$0xff] %v267_v10  ;;  %270 = vst [vmem:[%s1133_s26 + $0x58] sm:$0xff] %v269_v11  ;;  %v271_v12 = vld [vmem:[%s1128_s25 + $0xc0] sm:$0xff]  ;;  %v273_v13 = vld [vmem:[%s1128_s25 + $0xd0] sm:$0xff] }
  0x1c   : > { %v275_v14 = vld [vmem:[%s1128_s25 + $0xe0] sm:$0xff]  ;;  %272 = vst [vmem:[%s1133_s26 + $0x60] sm:$0xff] %v271_v12  ;;  %274 = vst [vmem:[%s1133_s26 + $0x68] sm:$0xff] %v273_v13  ;;  %v277_v15 = vld [vmem:[%s1128_s25 + $0xf0] sm:$0xff] }
  0x1d   : > { %276 = vst [vmem:[%s1133_s26 + $0x70] sm:$0xff] %v275_v14  ;;  %v279_v16 = vld [vmem:[%s1128_s25 + $0x100] sm:$0xff]  ;;  %v281_v17 = vld [vmem:[%s1128_s25 + $0x110] sm:$0xff]  ;;  %278 = vst [vmem:[%s1133_s26 + $0x78] sm:$0xff] %v277_v15 }
  0x1e   : > { %280 = vst [vmem:[%s1133_s26 + $0x80] sm:$0xff] %v279_v16  ;;  %282 = vst [vmem:[%s1133_s26 + $0x88] sm:$0xff] %v281_v17  ;;  %v283_v18 = vld [vmem:[%s1128_s25 + $0x120] sm:$0xff]  ;;  %v285_v19 = vld [vmem:[%s1128_s25 + $0x130] sm:$0xff] }
  0x1f   : > { %v287_v20 = vld [vmem:[%s1128_s25 + $0x140] sm:$0xff]  ;;  %284 = vst [vmem:[%s1133_s26 + $0x90] sm:$0xff] %v283_v18  ;;  %286 = vst [vmem:[%s1133_s26 + $0x98] sm:$0xff] %v285_v19  ;;  %v289_v21 = vld [vmem:[%s1128_s25 + $0x150] sm:$0xff] }
  0x20   : > { %288 = vst [vmem:[%s1133_s26 + $0xa0] sm:$0xff] %v287_v20  ;;  %v291_v22 = vld [vmem:[%s1128_s25 + $0x160] sm:$0xff]  ;;  %v293_v23 = vld [vmem:[%s1128_s25 + $0x170] sm:$0xff]  ;;  %290 = vst [vmem:[%s1133_s26 + $0xa8] sm:$0xff] %v289_v21 }
  0x21   : > { %292 = vst [vmem:[%s1133_s26 + $0xb0] sm:$0xff] %v291_v22  ;;  %294 = vst [vmem:[%s1133_s26 + $0xb8] sm:$0xff] %v293_v23  ;;  %v295_v24 = vld [vmem:[%s1128_s25 + $0x180] sm:$0xff]  ;;  %v297_v25 = vld [vmem:[%s1128_s25 + $0x190] sm:$0xff] }
  0x22   : > { %v299_v26 = vld [vmem:[%s1128_s25 + $0x1a0] sm:$0xff]  ;;  %296 = vst [vmem:[%s1133_s26 + $0xc0] sm:$0xff] %v295_v24  ;;  %298 = vst [vmem:[%s1133_s26 + $0xc8] sm:$0xff] %v297_v25  ;;  %v301_v27 = vld [vmem:[%s1128_s25 + $0x1b0] sm:$0xff] }
  0x23   : > { %300 = vst [vmem:[%s1133_s26 + $0xd0] sm:$0xff] %v299_v26  ;;  %v303_v28 = vld [vmem:[%s1128_s25 + $0x1c0] sm:$0xff]  ;;  %v305_v29 = vld [vmem:[%s1128_s25 + $0x1d0] sm:$0xff]  ;;  %302 = vst [vmem:[%s1133_s26 + $0xd8] sm:$0xff] %v301_v27 }
  0x24   : > { %304 = vst [vmem:[%s1133_s26 + $0xe0] sm:$0xff] %v303_v28  ;;  %306 = vst [vmem:[%s1133_s26 + $0xe8] sm:$0xff] %v305_v29  ;;  %v307_v30 = vld [vmem:[%s1128_s25 + $0x1e0] sm:$0xff]  ;;  %v309_v31 = vld [vmem:[%s1128_s25 + $0x1f0] sm:$0xff] }
  0x25   : > { %308 = vst [vmem:[%s1133_s26 + $0xf0] sm:$0xff] %v307_v30  ;;  %310 = vst [vmem:[%s1133_s26 + $0xf8] sm:$0xff] %v309_v31 }
  0x26 PF: > { %p847_p8 = scmp.ge.s32.totalorder %s1062_s13, 1  ;;  %p315_p9 = scmp.lt.s32.totalorder %s1062_s13, 3 }
  0x28   : > { %p316_p10 = pnand %p847_p8, %p315_p9 }
  0x29   : > { %s322_s27 = sand.u32 (!%p316_p10), 1, %s1046_s9   ;;  %v1021_v32 = vld [vmem:[%s1273_s0 + $0x4] ss:$8 sps:$4 sm:$0xff] (!%p316_p10)   ;;  %v1207_v33 = vld [vmem:[%s1273_s0 + $0x10] sm:$0x11] (!%p316_p10)  ;;  %v1064_v34 = vmov (!%p316_p10), 0.0  }
  0x2a   : > { %319 = sbr.rel (%p316_p10) target bundleno = 343 (0x157), region = 62  ;;  %s848_s28 = sshll.u32 (!%p316_p10), %s322_s27, 8  ;;  %376 = vst [vmem:[#allocation2 + $0x20] sm:$0x3] (!%p316_p10), %v1064_v34  ;;  %377 = vst [vmem:[#allocation2 + $0x28] sm:$0x3] (!%p316_p10), %v1064_v34  ;;  %v852_v35 = vcombine.high (!%p316_p10), %v1207_v33, %v1207_v33  ;;  %628 = vmatprep.mubr.bf16.mxu0 (!%p316_p10), %v1021_v32  ;;  %v851_v5 = vcombine.low (!%p316_p10), %v1207_v33, %v1207_v33 }
  0x2b   : > { %s1211_s5 = scalar_lea.vmem (!%p316_p10), [#allocation3], %s848_s28  ;;  %v1019_v4 = vld [vmem:[%s1273_s0] ss:$8 sps:$4 sm:$0xff] (!%p316_p10)   ;;  %s929_s8 = smul.u32 (!%p316_p10), 24, %s322_s27 }
  0x2c   : > { %v971_v36 = vld [vmem:[%s1211_s5 + $0x4] ss:$8 sps:$4 sm:$0xff] (!%p316_p10)   ;;  %v973_v37 = vld [vmem:[%s1211_s5] ss:$8 sps:$4 sm:$0xff] (!%p316_p10)   ;;  %638 = vmatprep.mubr.bf16.mxu1 (!%p316_p10), %v852_v35  ;;  %v974_v38 = vld [vmem:[%s1211_s5 + $0x14] ss:$8 sps:$4 sm:$0xff] (!%p316_p10)  }
  0x2d   : > { %596 = vmatprep.subr.bf16.mxu0 (!%p316_p10), %v971_v36  ;;  %897 = vmatprep.subr.bf16.mxu1 (!%p316_p10), %v971_v36  ;;  %v976_v39 = vld [vmem:[%s1211_s5 + $0x10] ss:$8 sps:$4 sm:$0xff] (!%p316_p10)   ;;  %v977_v40 = vld [vmem:[%s1211_s5 + $0x24] ss:$8 sps:$4 sm:$0xff] (!%p316_p10)   ;;  %v979_v41 = vld [vmem:[%s1211_s5 + $0x20] ss:$8 sps:$4 sm:$0xff] (!%p316_p10)  }
  0x2e   : > { %597 = vmatpush1.bf16.msra.mxu0 (!%p316_p10), %v973_v37  ;;  %913 = vmatpush1.bf16.msra.mxu1 (!%p316_p10), %v973_v37  ;;  %v980_v42 = vld [vmem:[%s1211_s5 + $0x34] ss:$8 sps:$4 sm:$0xff] (!%p316_p10)   ;;  %v982_v43 = vld [vmem:[%s1211_s5 + $0x30] ss:$8 sps:$4 sm:$0xff] (!%p316_p10)   ;;  %v983_v44 = vld [vmem:[%s1211_s5 + $0x44] ss:$8 sps:$4 sm:$0xff] (!%p316_p10)  }
  0x2f   : > { %598 = vmatprep.subr.bf16.mxu0 (!%p316_p10), %v974_v38  ;;  %898 = vmatprep.subr.bf16.mxu1 (!%p316_p10), %v974_v38  ;;  %v985_v45 = vld [vmem:[%s1211_s5 + $0x40] ss:$8 sps:$4 sm:$0xff] (!%p316_p10)   ;;  %v986_v46 = vld [vmem:[%s1211_s5 + $0x54] ss:$8 sps:$4 sm:$0xff] (!%p316_p10)   ;;  %v988_v47 = vld [vmem:[%s1211_s5 + $0x50] ss:$8 sps:$4 sm:$0xff] (!%p316_p10)  }
  0x30   : > { %v989_v48 = vld [vmem:[%s1211_s5 + $0x64] ss:$8 sps:$4 sm:$0xff] (!%p316_p10)   ;;  %v991_v49 = vld [vmem:[%s1211_s5 + $0x60] ss:$8 sps:$4 sm:$0xff] (!%p316_p10)   ;;  %v992_v50 = vld [vmem:[%s1211_s5 + $0x74] ss:$8 sps:$4 sm:$0xff] (!%p316_p10)  }
  0x31   : > { %v994_v51 = vld [vmem:[%s1211_s5 + $0x70] ss:$8 sps:$4 sm:$0xff]   ;;  %v995_v52 = vld [vmem:[%s1211_s5 + $0x84] ss:$8 sps:$4 sm:$0xff]   ;;  %v997_v53 = vld [vmem:[%s1211_s5 + $0x80] ss:$8 sps:$4 sm:$0xff]  }
  0x32   : > { %599 = vmatpush1.bf16.msra.mxu0 %v976_v39  ;;  %914 = vmatpush1.bf16.msra.mxu1 %v976_v39  ;;  %v998_v54 = vld [vmem:[%s1211_s5 + $0x94] ss:$8 sps:$4 sm:$0xff]   ;;  %v1000_v55 = vld [vmem:[%s1211_s5 + $0x90] ss:$8 sps:$4 sm:$0xff]   ;;  %v1001_v56 = vld [vmem:[%s1211_s5 + $0xa4] ss:$8 sps:$4 sm:$0xff]  }
  0x33   : > { %600 = vmatprep.subr.bf16.mxu0 %v977_v40  ;;  %899 = vmatprep.subr.bf16.mxu1 %v977_v40  ;;  %v1003_v57 = vld [vmem:[%s1211_s5 + $0xa0] ss:$8 sps:$4 sm:$0xff]   ;;  %v1004_v58 = vld [vmem:[%s1211_s5 + $0xb4] ss:$8 sps:$4 sm:$0xff]   ;;  %v1006_v59 = vld [vmem:[%s1211_s5 + $0xb0] ss:$8 sps:$4 sm:$0xff]  }
  0x34   : > { %v1007_v60 = vld [vmem:[%s1211_s5 + $0xc4] ss:$8 sps:$4 sm:$0xff]   ;;  %v1009_v61 = vld [vmem:[%s1211_s5 + $0xc0] ss:$8 sps:$4 sm:$0xff]   ;;  %v1010_v62 = vld [vmem:[%s1211_s5 + $0xd4] ss:$8 sps:$4 sm:$0xff]  }
  0x35   : > { %v1012_v63 = vld [vmem:[%s1211_s5 + $0xd0] ss:$8 sps:$4 sm:$0xff]   ;;  %v1013_v0 = vld [vmem:[%s1211_s5 + $0xe4] ss:$8 sps:$4 sm:$0xff]   ;;  %v1015_v1 = vld [vmem:[%s1211_s5 + $0xe0] ss:$8 sps:$4 sm:$0xff]  }
  0x36   : > { %601 = vmatpush1.bf16.msra.mxu0 %v979_v41  ;;  %915 = vmatpush1.bf16.msra.mxu1 %v979_v41  ;;  %v1016_v2 = vld [vmem:[%s1211_s5 + $0xf4] ss:$8 sps:$4 sm:$0xff]   ;;  %v1018_v3 = vld [vmem:[%s1211_s5 + $0xf0] ss:$8 sps:$4 sm:$0xff]   ;;  %s351_s15 = scalar_lea.vmem [#allocation4], %s929_s8  ;;  %s896_s9 = sshll.u32 (%p1115_p6), %s1054_s11, 3 }
  0x37   : > { %602 = vmatprep.subr.bf16.mxu0 %v980_v42  ;;  %900 = vmatprep.subr.bf16.mxu1 %v980_v42  ;;  %v382_v6 = vld [vmem:[#allocation2 + $0x20] sm:$0x3]  ;;  %v383_v7 = vld [vmem:[#allocation2 + $0x28] sm:$0x3]  ;;  %s703_s20 = scalar_lea.vmem (%p1115_p6), %s1275_s2, %s896_s9 }
  0x3a   : > { %603 = vmatpush1.bf16.msra.mxu0 %v982_v43  ;;  %916 = vmatpush1.bf16.msra.mxu1 %v982_v43 }
  0x3b   : > { %604 = vmatprep.subr.bf16.mxu0 %v983_v44  ;;  %901 = vmatprep.subr.bf16.mxu1 %v983_v44 }
  0x3e   : > { %605 = vmatpush1.bf16.msra.mxu0 %v985_v45  ;;  %917 = vmatpush1.bf16.msra.mxu1 %v985_v45 }
  0x3f   : > { %606 = vmatprep.subr.bf16.mxu0 %v986_v46  ;;  %902 = vmatprep.subr.bf16.mxu1 %v986_v46 }
  0x42   : > { %607 = vmatpush1.bf16.msra.mxu0 %v988_v47  ;;  %918 = vmatpush1.bf16.msra.mxu1 %v988_v47 }
  0x43   : > { %608 = vmatprep.subr.bf16.mxu0 %v989_v48  ;;  %903 = vmatprep.subr.bf16.mxu1 %v989_v48 }
  0x46   : > { %609 = vmatpush1.bf16.msra.mxu0 %v991_v49  ;;  %919 = vmatpush1.bf16.msra.mxu1 %v991_v49 }
  0x47   : > { %610 = vmatprep.subr.bf16.mxu0 %v992_v50  ;;  %904 = vmatprep.subr.bf16.mxu1 %v992_v50 }
  0x4a   : > { %611 = vmatpush1.bf16.msra.mxu0 %v994_v51  ;;  %920 = vmatpush1.bf16.msra.mxu1 %v994_v51 }
  0x4b   : > { %612 = vmatprep.subr.bf16.mxu0 %v995_v52  ;;  %905 = vmatprep.subr.bf16.mxu1 %v995_v52 }
  0x4e   : > { %613 = vmatpush1.bf16.msra.mxu0 %v997_v53  ;;  %921 = vmatpush1.bf16.msra.mxu1 %v997_v53 }
  0x4f   : > { %614 = vmatprep.subr.bf16.mxu0 %v998_v54  ;;  %906 = vmatprep.subr.bf16.mxu1 %v998_v54 }
  0x52   : > { %615 = vmatpush1.bf16.msra.mxu0 %v1000_v55  ;;  %922 = vmatpush1.bf16.msra.mxu1 %v1000_v55 }
  0x53   : > { %616 = vmatprep.subr.bf16.mxu0 %v1001_v56  ;;  %907 = vmatprep.subr.bf16.mxu1 %v1001_v56 }
  0x56   : > { %617 = vmatpush1.bf16.msra.mxu0 %v1003_v57  ;;  %923 = vmatpush1.bf16.msra.mxu1 %v1003_v57 }
  0x57   : > { %618 = vmatprep.subr.bf16.mxu0 %v1004_v58  ;;  %908 = vmatprep.subr.bf16.mxu1 %v1004_v58 }
  0x5a   : > { %619 = vmatpush1.bf16.msra.mxu0 %v1006_v59  ;;  %924 = vmatpush1.bf16.msra.mxu1 %v1006_v59 }
  0x5b   : > { %620 = vmatprep.subr.bf16.mxu0 %v1007_v60  ;;  %909 = vmatprep.subr.bf16.mxu1 %v1007_v60 }
  0x5e   : > { %621 = vmatpush1.bf16.msra.mxu0 %v1009_v61  ;;  %925 = vmatpush1.bf16.msra.mxu1 %v1009_v61 }
  0x5f   : > { %622 = vmatprep.subr.bf16.mxu0 %v1010_v62  ;;  %910 = vmatprep.subr.bf16.mxu1 %v1010_v62 }
  0x62   : > { %623 = vmatpush1.bf16.msra.mxu0 %v1012_v63  ;;  %926 = vmatpush1.bf16.msra.mxu1 %v1012_v63 }
  0x63   : > { %624 = vmatprep.subr.bf16.mxu0 %v1013_v0  ;;  %911 = vmatprep.subr.bf16.mxu1 %v1013_v0 }
  0x66   : > { %625 = vmatpush1.bf16.msra.mxu0 %v1015_v1  ;;  %927 = vmatpush1.bf16.msra.mxu1 %v1015_v1 }
  0x67   : > { %626 = vmatprep.subr.bf16.mxu0 %v1016_v2  ;;  %912 = vmatprep.subr.bf16.mxu1 %v1016_v2 }
  0x6a   : > { %627 = vmatpush1.bf16.msra.mxu0 %v1018_v3  ;;  %928 = vmatpush1.bf16.msra.mxu1 %v1018_v3 }
  0x6d   : > { %629 = vmatmul.mubr.bf16.vlgmr.msra.gmra.mrb[0].mxu0 %v1019_v4  ;;  %639 = vmatmul.mubr.bf16.vlgmr.msra.gmra.mrb[0].mxu1 %v851_v5 }
 0x140   : > { %v630_v8 = vpop.f32.mrb[0].mxu0  ;;  %v640_v9 = vpop.f32.mrb[0].mxu1 }
 0x141   : > { %v651_v10 = vadd.f32 %v640_v9, %v382_v6  ;;  %v632_v11 = vpop.f32.mrb[1].mxu0  ;;  %v642_v12 = vpop.f32.mrb[1].mxu1 }
 0x142   : > { %v652_v13 = vadd.f32 %v642_v12, %v383_v7  ;;  %v634_v14 = vpop.f32.mrb[2].mxu0  ;;  %v644_v15 = vpop.f32.mrb[2].mxu1  ;;  %v893_v18 = vpack.c.bf16 %v632_v11, %v630_v8 }
 0x143   : > { %657 = vst [vmem:[#allocation2 + $0x20] sm:$0x3] %v651_v10  ;;  %v636_v16 = vpop.f32.mrb[3].mxu0  ;;  %v645_v17 = vpop.f32.mrb[3].mxu1 }
 0x144   : > { %658 = vst [vmem:[#allocation2 + $0x28] sm:$0x3] %v652_v13  ;;  %688 = vst [vmem:[%s351_s15] sm:$0xff] %v893_v18  ;;  %v894_v19 = vpack.c.bf16 %v636_v16, %v634_v14 }
 0x146   : > { %689 = vst [vmem:[%s351_s15 + $0x8] sm:$0xff] %v894_v19 }
 0x148   : > { %697 = sbr.rel (!%p1115_p6) target bundleno = 343 (0x157), region = 78 }
 0x14a   : > { %v666_v20 = vld [vmem:[#allocation2 + $0x20] sm:$0x3] }
 0x14b   : > { %v667_v21 = vld [vmem:[#allocation2 + $0x28] sm:$0x3] }
 0x14c   : > { %v895_v22 = vpack.c.bf16 %v667_v21, %v666_v20  ;;  %v735_v23 = vld [vmem:[%s351_s15] sm:$0xff] (%p1115_p6) }
 0x14d   : > { %v737_v24 = vld [vmem:[%s351_s15 + $0x8] sm:$0xff] (%p1115_p6)  ;;  %736 = vst [vmem:[%s703_s20] sm:$0xff] (%p1115_p6), %v735_v23 }
 0x14e   : > { %690 = vst [vmem:[%s351_s15 + $0x10] sm:$0x11] %v895_v22  ;;  %738 = vst [vmem:[%s703_s20 + $0x10] sm:$0xff] (%p1115_p6), %v737_v24 }
 0x155   : > { %v739_v25 = vld [vmem:[%s351_s15 + $0x10] sm:$0xff] }
 0x156   : > { %740 = vst [vmem:[%s703_s20 + $0x20] sm:$0xff] %v739_v25 }
 0x157 PF: > { %s12_s13 = sadd.s32 1, %s1062_s13   ;;  %s1277_s9 = smov %s1050_s10 }
 0x158   : > { %p9_p11 = scmp.ge.s32.totalorder %s12_s13, 4   ;;  %s1278_s10 = smov %s1120_s19 }
 0x159   : > { %s1279_s11 = smov %s1058_s12  ;;  %s1280_s12 = smov %s1282_s14 }
 0x15a   :  { %11 = sbr.rel (!%p9_p11) target bundleno = 3 (0x3), region = 150 }

// kernel: resnet_forward.44
= control target key start
LH: loop header
LB: loop body
LE: loop exit
PB: predicated region body
PF: predicated region fallthrough
CT: control target
= control target key end

     0   :  { %s1119_s15 = smov 0   ;;  %s1121_s16 = smov 0   ;;  %s1246_s0 = inlined_call_operand.vmem [shape: f32[1,1152], index: 0, kind: input, shape index: {}]   ;;  %s1247_s1 = inlined_call_operand.vmem [shape: f32[1,1152], index: 1, kind: input, shape index: {}]   ;;  %s1248_s2 = inlined_call_operand.vmem [shape: bf16[18,1152], index: 2, kind: input, shape index: {}]   ;;  %s1249_s3 = inlined_call_operand.vmem [shape: bf16[1152,128], index: 3, kind: input, shape index: {}]   ;;  %s1250_s4 = inlined_call_operand.vmem [shape: bf16[18,128], index: 4, kind: output, shape index: {}]  }
   0x1   :  { %s1123_s17 = smov 0   ;;  %s1125_s18 = smov 0  }
   0x2   :  { %s1127_s19 = smov 0  }
   0x3 LB: > { %s26_s20 = sadd.s32 1, %s1087_s18  ;;  %p101_p1 = scmp.ne.s32.totalorder %s1079_s16, %s1075_s15  ;;  %s1091_s19 = sphi %s1127_s19, %s14_s19   ;;  %s1087_s18 = sphi %s1125_s18, %s1254_s18   ;;  %s1083_s17 = sphi %s1123_s17, %s1253_s17   ;;  %s1079_s16 = sphi %s1121_s16, %s1252_s16   ;;  %s1075_s15 = sphi %s1119_s15, %s1251_s15  }
   0x4   : > { %p27_p0 = scmp.ge.s32.totalorder %s26_s20, 3  ;;  %p102_p2 = scmp.eq.s32.totalorder %s1091_s19, 0 }
   0x5   : > { %s94_s22 = sadd.s32 1, %s1079_s16  ;;  %p876_p5 = scmp.ge.s32.totalorder %s1091_s19, 3 }
   0x6   : > { %s1256_s20 = smov (%p27_p0, %s26_s20), 0  ;;  %p103_p3 = por %p102_p2, %p101_p1 }
   0x7   : > { %s90_s21 = ssub.s32 %s1087_s18, %s1256_s20  ;;  %183 = sbr.rel (%p876_p5) target bundleno = 22 (0x16), region = 16 }
   0x8   : > { %p92_p4 = scmp.eq.s32.totalorder %s90_s21, 0 }
   0xa   : > { %s1154_s23 = scalar_select %p92_p4, %s1079_s16, %s94_s22  }
   0xe   : > { %202 = sbr.rel (!%p103_p3) target bundleno = 22 (0x16), region = 28  ;;  %s204_s24 = sand.u32 (%p103_p3), 1, %s1079_s16  }
   0xf   : > { %s919_s25 = smul.u32 (%p103_p3), 12, %s1087_s18 }
  0x10   : > { %s986_s26 = smul.u32 (%p103_p3), 36, %s204_s24 }
  0x11   : > { %s212_s29 = scalar_lea.vmem (%p103_p3), %s1248_s2, %s919_s25 }
  0x12   : > { %v227_v0 = vld [vmem:[%s212_s29] sm:$0xff] (%p103_p3)  ;;  %v231_v2 = vld [vmem:[%s212_s29 + $0x48] sm:$0xff] (%p103_p3)  ;;  %s206_s30 = scalar_lea.vmem (%p103_p3), [#allocation3], %s986_s26  ;;  %v882_v5 = vld [vmem:[%s212_s29 + $0x50] sm:$0xf] (%p103_p3) }
  0x13   : > { %v229_v1 = vld [vmem:[%s212_s29 + $0x24] sm:$0xff] (%p103_p3)  ;;  %228 = vst [vmem:[%s206_s30] sm:$0xff] (%p103_p3), %v227_v0  ;;  %232 = vst [vmem:[%s206_s30 + $0x18] sm:$0xff] (%p103_p3), %v231_v2  ;;  %v880_v4 = vld [vmem:[%s212_s29 + $0x2c] sm:$0xf] (%p103_p3) }
  0x14   : > { %230 = vst [vmem:[%s206_s30 + $0xc] sm:$0xff] (%p103_p3), %v229_v1  ;;  %v878_v3 = vld [vmem:[%s212_s29 + $0x8] sm:$0xf] (%p103_p3)  ;;  %881 = vst [vmem:[%s206_s30 + $0x14] sm:$0xf] (%p103_p3), %v880_v4 }
  0x15   : > { %879 = vst [vmem:[%s206_s30 + $0x8] sm:$0xf] %v878_v3  ;;  %883 = vst [vmem:[%s206_s30 + $0x20] sm:$0xf] %v882_v5 }
  0x16 PF: > { %p884_p6 = scmp.ge.s32.totalorder %s1091_s19, 1  ;;  %p262_p7 = scmp.lt.s32.totalorder %s1091_s19, 4 }
  0x18   : > { %p263_p8 = pnand %p884_p6, %p262_p7 }
  0x19   : > { %s269_s5 = sand.u32 (!%p263_p8), 1, %s1075_s15   ;;  %s313_s6 = smul.u32 (!%p263_p8), 3, %s1083_s17 }
  0x1a   : > { %266 = sbr.rel (%p263_p8) target bundleno = 313 (0x139), region = 58  ;;  %p886_p11 = scmp.ne.s32.totalorder (!%p263_p8), %s1083_s17, 0 }
  0x1b   : > { %s987_s7 = smul.u32 (!%p263_p8), 36, %s269_s5  ;;  %p314_p9 = scmp.lt.s32.totalorder (!%p263_p8), %s313_s6, 8 }
  0x1c   : > { %s325_s8 = smul.u32 (!%p263_p8), 48, %s1083_s17 }
  0x1d   : > { %s1182_s25 = scalar_lea.vmem (!%p263_p8), [#allocation3], %s987_s7 }
  0x1e   : > { %p326_p10 = scmp.lt.s32.totalorder (!%p263_p8), %s325_s8, 143 }
  0x21   : > { %s1258_s6 = smov (!%p314_p9, %s313_s6), 8  ;;  %s1260_s8 = smov (!%p326_p10, %s325_s8), 143 }
  0x22   : > { %s316_s11 = scalar_lea.vmem %s1246_s0, %s1258_s6  ;;  %s321_s14 = scalar_lea.vmem %s1247_s1, %s1258_s6  ;;  %v1093_v6 = vmov (!%p886_p11), 0.0  }
  0x23   : > { %s885_s21 = sshll.u32 %s1260_s8, 2  ;;  %347 = sbr.rel (%p886_p11) target bundleno = 42 (0x2a), region = 66  ;;  %348 = vst [vmem:[#allocation2] sm:$0xff] (!%p886_p11), %v1093_v6  ;;  %349 = vst [vmem:[#allocation2 + $0x8] sm:$0xff] (!%p886_p11), %v1093_v6 }
  0x24   : > { %s1180_s24 = scalar_lea.vmem %s1249_s3, %s885_s21  ;;  %350 = vst [vmem:[#allocation2 + $0x10] sm:$0x3] (!%p886_p11), %v1093_v6 }
  0x2a PF: > { %v1029_v7 = vld [vmem:[%s1180_s24 + $0x40] sm:$0xff]   ;;  %v1032_v10 = vld [vmem:[%s1180_s24 + $0x48] sm:$0xff]   ;;  %v1035_v13 = vld [vmem:[%s1180_s24 + $0x50] sm:$0xff]   ;;  %v368_v20 = vlaneseq  ;;  %p911_p12 = scmp.ne.s32.totalorder %s1083_s17, 2 }
  0x2b   : > { %v1030_v8 = vld [vmem:[%s1180_s24] sm:$0xff]   ;;  %928 = vmatprep.subr.bf16.mxu0 %v1029_v7  ;;  %v1033_v11 = vld [vmem:[%s1180_s24 + $0x8] sm:$0xff]   ;;  %v1036_v14 = vld [vmem:[%s1180_s24 + $0x10] sm:$0xff]  }
  0x2c   : > { %v1031_v9 = vld [vmem:[%s1180_s24 + $0x80] sm:$0xff]   ;;  %929 = vmatpush3.bf16.msra.mxu0 %v1030_v8  ;;  %v1034_v12 = vld [vmem:[%s1180_s24 + $0x88] sm:$0xff]   ;;  %v1037_v15 = vld [vmem:[%s1180_s24 + $0x90] sm:$0xff]   ;;  %v369_v24 = vshrl.u32 %v368_v20, 7 }
  0x2d   : > { %966 = vmatprep.subr.bf16.mxu1 %v1031_v9  ;;  %930 = vmatprep.subr.bf16.mxu0 %v1032_v10  ;;  %v1038_v16 = vld [vmem:[%s1180_s24 + $0x58] sm:$0xff]   ;;  %v1041_v19 = vld [vmem:[%s1180_s24 + $0x60] sm:$0xff]   ;;  %v1044_v23 = vld [vmem:[%s1180_s24 + $0x68] sm:$0xff]  }
  0x2e   : > { %967 = vmatpush3.bf16.msra.mxu1 %v1031_v9  ;;  %v1039_v17 = vld [vmem:[%s1180_s24 + $0x18] sm:$0xff]   ;;  %v1043_v21 = vld [vmem:[%s1180_s24 + $0xa0] sm:$0xff]   ;;  %v1046_v25 = vld [vmem:[%s1180_s24 + $0xa8] sm:$0xff]   ;;  %v374_v29 = vsub.s32 1, %v369_v24  ;;  %v370_v31 = vsub.s32 0, %v369_v24  ;;  %v378_v33 = vsub.s32 2, %v369_v24 }
  0x2f   : > { %968 = vmatprep.subr.bf16.mxu1 %v1034_v12  ;;  %v1040_v18 = vld [vmem:[%s1180_s24 + $0x98] sm:$0xff]   ;;  %v1042_v22 = vld [vmem:[%s1180_s24 + $0x20] sm:$0xff]   ;;  %v1045_v26 = vld [vmem:[%s1180_s24 + $0x28] sm:$0xff]  }
  0x30   : > { %931 = vmatpush3.bf16.msra.mxu0 %v1033_v11  ;;  %v1047_v27 = vld [vmem:[%s1180_s24 + $0x70] sm:$0xff]   ;;  %v1050_v32 = vld [vmem:[%s1180_s24 + $0x78] sm:$0xff]   ;;  %v353_v35 = vld [vmem:[%s1182_s25 + $0xc] sm:$0xff] }
  0x31   : > { %932 = vmatprep.subr.bf16.mxu0 %v1035_v13  ;;  %v1048_v28 = vld [vmem:[%s1180_s24 + $0x30] sm:$0xff]   ;;  %v351_v34 = vld [vmem:[%s1182_s25] sm:$0xff]  ;;  %v360_v39 = vunpack.c.l.bf16 %v353_v35  ;;  %v361_v40 = vunpack.c.h.bf16 %v353_v35 }
  0x32   : > { %969 = vmatpush3.bf16.msra.mxu1 %v1034_v12  ;;  %v1049_v30 = vld [vmem:[%s1180_s24 + $0xb0] sm:$0xff]   ;;  %v366_v36 = vld [vmem:[%s316_s11] sm:$0x7]  ;;  %v357_v37 = vunpack.c.l.bf16 %v351_v34  ;;  %v358_v38 = vunpack.c.h.bf16 %v351_v34  ;;  %v1052_v43 = vld [vmem:[%s1180_s24 + $0xb8] sm:$0xff]  }
  0x33   : > { %970 = vmatprep.subr.bf16.mxu1 %v1037_v15  ;;  %v392_v41 = vld [vmem:[%s321_s14] sm:$0x7]  ;;  %v375_v44 = vrot.slane %v366_v36, %v374_v29  ;;  %v371_v46 = vrot.slane %v366_v36, %v370_v31  ;;  %v356_v48 = vld [vmem:[%s1182_s25 + $0x20] sm:$0x1]  ;;  %v355_v49 = vld [vmem:[%s1182_s25 + $0x18] sm:$0x11]  ;;  %v379_v53 = vrot.slane %v366_v36, %v378_v33 }
  0x34   : > { %933 = vmatpush3.bf16.msra.mxu0 %v1036_v14  ;;  %v352_v42 = vld [vmem:[%s1182_s25 + $0x8] ss:$12 sps:$4 sm:$0xff]   ;;  %v401_v45 = vrot.slane %v392_v41, %v374_v29  ;;  %v397_v47 = vrot.slane %v392_v41, %v370_v31  ;;  %v1051_v50 = vld [vmem:[%s1180_s24 + $0x38] sm:$0xff]   ;;  %v405_v54 = vrot.slane %v392_v41, %v378_v33  ;;  %v365_v61 = vunpack.c.l.bf16 %v356_v48 }
  0x35   : > { %934 = vmatprep.subr.bf16.mxu0 %v1038_v16  ;;  %v359_v51 = vunpack.c.l.bf16 %v352_v42  ;;  %v362_v52 = vunpack.c.h.bf16 %v352_v42  ;;  %v384_v55 = vmul.f32 %v375_v44, %v358_v38  ;;  %v387_v56 = vmul.f32 %v375_v44, %v361_v40  ;;  %v427_v33 = vld [vmem:[#allocation2] sm:$0xff]  ;;  %v428_v38 = vld [vmem:[#allocation2 + $0x8] sm:$0xff] }
  0x36   : > { %971 = vmatpush3.bf16.msra.mxu1 %v1037_v15  ;;  %v383_v57 = vmul.f32 %v371_v46, %v357_v37  ;;  %v386_v58 = vmul.f32 %v371_v46, %v360_v39  ;;  %v364_v62 = vunpack.c.h.bf16 %v355_v49  ;;  %v391_v5 = vmul.f32 %v379_v53, %v365_v61 }
  0x37   : > { %972 = vmatprep.subr.bf16.mxu1 %v1040_v18  ;;  %v385_v59 = vmul.f32 %v379_v53, %v359_v51  ;;  %v388_v60 = vmul.f32 %v379_v53, %v362_v52  ;;  %v410_v63 = vadd.f32 %v401_v45, %v384_v55  ;;  %v413_v0 = vadd.f32 %v401_v45, %v387_v56 }
  0x38   : > { %935 = vmatpush3.bf16.msra.mxu0 %v1039_v17  ;;  %v409_v1 = vadd.f32 %v397_v47, %v383_v57  ;;  %v412_v2 = vadd.f32 %v397_v47, %v386_v58  ;;  %v390_v6 = vmul.f32 %v375_v44, %v364_v62  ;;  %v417_v13 = vadd.f32 %v405_v54, %v391_v5 }
  0x39   : > { %936 = vmatprep.subr.bf16.mxu0 %v1041_v19  ;;  %v411_v3 = vadd.f32 %v405_v54, %v385_v59  ;;  %v414_v4 = vadd.f32 %v405_v54, %v388_v60  ;;  %v419_v7 = vmax.f32 %v410_v63, 0.0  ;;  %v422_v8 = vmax.f32 %v413_v0, 0.0 }
  0x3a   : > { %973 = vmatpush3.bf16.msra.mxu1 %v1040_v18  ;;  %v418_v9 = vmax.f32 %v409_v1, 0.0  ;;  %v421_v10 = vmax.f32 %v412_v2, 0.0  ;;  %v416_v14 = vadd.f32 %v401_v45, %v390_v6  ;;  %v363_v17 = vunpack.c.l.bf16 %v355_v49 }
  0x3b   : > { %974 = vmatprep.subr.bf16.mxu1 %v1043_v21  ;;  %v420_v11 = vmax.f32 %v411_v3, 0.0  ;;  %v423_v12 = vmax.f32 %v414_v4, 0.0  ;;  %v431_v15 = vpack.c.bf16 %v422_v8, %v419_v7  ;;  %v426_v19 = vmax.f32 %v417_v13, 0.0 }
  0x3c   : > { %937 = vmatpush3.bf16.msra.mxu0 %v1042_v22  ;;  %v430_v16 = vpack.c.bf16 %v421_v10, %v418_v9  ;;  %v425_v20 = vmax.f32 %v416_v14, 0.0 }
  0x3d   : > { %938 = vmatprep.subr.bf16.mxu0 %v1044_v23  ;;  %v432_v18 = vpack.c.bf16 %v423_v12, %v420_v11  ;;  %660 = vmatprep.mubr.bf16.mxu0 %v431_v15  ;;  %v435_v22 = vpack.c.bf16 %v426_v19, %v426_v19 }
  0x3e   : > { %975 = vmatpush3.bf16.msra.mxu1 %v1043_v21  ;;  %v389_v21 = vmul.f32 %v371_v46, %v363_v17  ;;  %v434_v23 = vpack.c.bf16 %v425_v20, %v425_v20 }
  0x3f   : > { %976 = vmatprep.subr.bf16.mxu1 %v1046_v25  ;;  %982 = vmatprep.mubr.bf16.mxu1 %v432_v18 }
  0x40   : > { %939 = vmatpush3.bf16.msra.mxu0 %v1045_v26  ;;  %v415_v24 = vadd.f32 %v397_v47, %v389_v21  ;;  %v429_v47 = vld [vmem:[#allocation2 + $0x10] sm:$0x3] }
  0x41   : > { %940 = vmatprep.subr.bf16.mxu0 %v1047_v27 }
  0x42   : > { %977 = vmatpush3.bf16.msra.mxu1 %v1046_v25  ;;  %v424_v25 = vmax.f32 %v415_v24, 0.0 }
  0x43   : > { %978 = vmatprep.subr.bf16.mxu1 %v1049_v30 }
  0x44   : > { %941 = vmatpush3.bf16.msra.mxu0 %v1048_v28  ;;  %v433_v26 = vpack.c.bf16 %v424_v25, %v424_v25 }
  0x45   : > { %942 = vmatprep.subr.bf16.mxu0 %v1050_v32 }
  0x46   : > { %979 = vmatpush3.bf16.msra.mxu1 %v1049_v30 }
  0x47   : > { %980 = vmatprep.subr.bf16.mxu1 %v1052_v43 }
  0x48   : > { %943 = vmatpush3.bf16.msra.mxu0 %v1051_v50 }
  0x4a   : > { %981 = vmatpush3.bf16.msra.mxu1 %v1052_v43 }
  0x4b   : > { %661 = vmatmul.mubr.bf16.vlgmr.msra.gmra.mrb[0].mxu0 %v430_v16 }
  0x4c   : > { %668 = vmatprep.mubr.bf16.mxu0 %v434_v23 }
  0x4d   : > { %983 = vmatmul.mubr.bf16.vlgmr.msra.gmra.mrb[0].mxu1 %v435_v22 }
  0x53   : > { %669 = vmatmul.mubr.bf16.gmra.mrb[4].mxu0 %v433_v26 }
 0x11e   : > { %v944_v27 = vpop.f32.mrb[0].mxu0 }
 0x11f   : > { %v945_v28 = vpop.f32.mrb[1].mxu0 }
 0x120   : > { %v946_v29 = vadd.f32 %v945_v28, %v944_v27  ;;  %v947_v30 = vpop.f32.mrb[2].mxu0  ;;  %v984_v31 = vpop.f32.mrb[0].mxu1 }
 0x121   : > { %v948_v32 = vpop.f32.mrb[3].mxu0  ;;  %v710_v34 = vpop.f32.mrb[1].mxu1 }
 0x122   : > { %v949_v35 = vadd.f32 %v948_v32, %v947_v30  ;;  %v711_v36 = vadd.f32 %v946_v29, %v710_v34  ;;  %v985_v37 = vpop.f32.mrb[2].mxu1 }
 0x123   : > { %v713_v39 = vpop.f32.mrb[3].mxu1 }
 0x124   : > { %v724_v40 = vadd.f32 %v711_v36, %v427_v33  ;;  %v714_v41 = vadd.f32 %v949_v35, %v713_v39 }
 0x126   : > { %727 = vst [vmem:[#allocation2] sm:$0xff] %v724_v40  ;;  %v725_v42 = vadd.f32 %v714_v41, %v428_v38  ;;  %v950_v43 = vpop.f32.mrb[4].mxu0 }
 0x127   : > { %v951_v44 = vpop.f32.mrb[5].mxu0 }
 0x128   : > { %728 = vst [vmem:[#allocation2 + $0x8] sm:$0xff] %v725_v42  ;;  %v952_v45 = vadd.f32 %v951_v44, %v950_v43  ;;  %v953_v46 = vpop.f32.mrb[6].mxu0  ;;  %733 = sbr.rel (%p911_p12) target bundleno = 313 (0x139), region = 70 }
 0x129   : > { %v954_v48 = vpop.f32.mrb[7].mxu0 }
 0x12a   : > { %v719_v49 = vadd.f32 %v984_v31, %v952_v45 }
 0x12c   : > { %v726_v50 = vadd.f32 %v719_v49, %v429_v47 }
 0x12d   : > { %v734_v51 = vld [vmem:[#allocation2] sm:$0xff] (!%p911_p12) }
 0x12e   : > { %729 = vst [vmem:[#allocation2 + $0x10] sm:$0x3] %v726_v50 }
 0x12f   : > { %v735_v52 = vld [vmem:[#allocation2 + $0x8] sm:$0xff] }
 0x130   : > { %v926_v54 = vpack.c.bf16 %v735_v52, %v734_v51 }
 0x132   : > { %927 = vst [vmem:[%s1250_s4] sm:$0xff] %v926_v54  }
 0x135   : > { %v736_v53 = vld [vmem:[#allocation2 + $0x10] sm:$0x3] }
 0x136   : > { %v922_v55 = vpack.c.bf16 %v736_v53, %v736_v53 }
 0x138   : > { %752 = vst [vmem:[%s1250_s4 + $0x8] sm:$0x1] %v922_v55 }
 0x139 PF: > { %s14_s19 = sadd.s32 1, %s1091_s19   ;;  %s1251_s15 = smov %s1079_s16 }
 0x13a   : > { %p11_p13 = scmp.ge.s32.totalorder %s14_s19, 5   ;;  %s1252_s16 = smov %s1154_s23 }
 0x13b   : > { %s1253_s17 = smov %s1087_s18  ;;  %s1254_s18 = smov %s1256_s20 }
 0x13c   :  { %13 = sbr.rel (!%p11_p13) target bundleno = 3 (0x3), region = 120 }

// kernel: resnet_forward.47
= control target key start
LH: loop header
LB: loop body
LE: loop exit
PB: predicated region body
PF: predicated region fallthrough
CT: control target
= control target key end

     0   :  { %v236_v0 = vmov 0.0   ;;  %v31_v4 = vlaneseq  ;;  %v237_v5 = vmov 1966171168   ;;  %vm57_vm0 = vcmask 1041408   ;;  %s323_s1 = inlined_call_operand.vmem [shape: f32[2,512], index: 1, kind: output, shape index: {}]   ;;  %s324_s0 = inlined_call_operand.vmem [shape: bf16[18,512], index: 0, kind: input, shape index: {}]  }
   0x1   :  { %12 = vst [vmem:[%s323_s1] sm:$0xff] %v236_v0  ;;  %v13_v1 = vld [vmem:[%s324_s0] sm:$0xff]  ;;  %v14_v2 = vld [vmem:[%s324_s0 + $0x8] sm:$0xff]  ;;  %v15_v3 = vld [vmem:[%s324_s0 + $0x10] sm:$0xff]  ;;  %v100_v6 = vunpack.c.l.s4 %v237_v5 }
   0x2   :  { %v16_v7 = vld [vmem:[%s324_s0 + $0x18] sm:$0xff]  ;;  %v17_v8 = vld [vmem:[%s324_s0 + $0x20] sm:$0x11]  ;;  %v18_v9 = vld [vmem:[%s324_s0 + $0x28] sm:$0x11]  ;;  %v19_v10 = vunpack.c.l.bf16 %v13_v1  ;;  %v20_v11 = vunpack.c.h.bf16 %v13_v1  ;;  %v21_v12 = vunpack.c.l.bf16 %v14_v2  ;;  %v22_v13 = vunpack.c.h.bf16 %v14_v2 }
   0x3   :  { %v23_v14 = vunpack.c.l.bf16 %v15_v3  ;;  %v24_v15 = vunpack.c.h.bf16 %v15_v3  ;;  %v25_v16 = vunpack.c.l.bf16 %v16_v7  ;;  %v26_v17 = vunpack.c.h.bf16 %v16_v7 }
   0x4   :  { %v27_v18 = vunpack.c.l.bf16 %v17_v8  ;;  %v28_v19 = vunpack.c.h.bf16 %v17_v8  ;;  %v29_v20 = vunpack.c.l.bf16 %v18_v9  ;;  %v30_v21 = vunpack.c.h.bf16 %v18_v9 }
   0x5   :  { %v32_v22 = vshrl.u32 %v31_v4, 7  ;;  %v56_v23 = vadd.f32 %v23_v14, %v19_v10  ;;  %v66_v24 = vadd.f32 %v24_v15, %v20_v11  ;;  %v75_v25 = vadd.f32 %v25_v16, %v21_v12 }
   0x6   :  { %v101_v26 = vunpack.c.0.s8 %v100_v6  ;;  %v84_v28 = vadd.f32 %v26_v17, %v22_v13  ;;  %v130_v29 = vmul.f32 %v19_v10, %v19_v10  ;;  %v131_v30 = vmul.f32 %v20_v11, %v20_v11 }
   0x7   :  { %v34_v27 = vadd.s32 16, %v32_v22  ;;  %v132_v32 = vmul.f32 %v21_v12, %v21_v12  ;;  %v133_v33 = vmul.f32 %v22_v13, %v22_v13  ;;  %v134_v34 = vmul.f32 %v23_v14, %v23_v14 }
   0x8   :  { %v270_v31 = vsub.s32 %v101_v26, %v32_v22  ;;  %v135_v35 = vmul.f32 %v24_v15, %v24_v15  ;;  %v136_v36 = vmul.f32 %v25_v16, %v25_v16  ;;  %v137_v37 = vmul.f32 %v26_v17, %v26_v17 }
   0x9   :  { %vm42_vm1 = vcmp.lt.s32.totalorder %v34_v27, 18  ;;  %v142_v58 = vadd.f32 %v134_v34, %v130_v29  ;;  %vm287_vm2 = vcmp.lt.s32.totalorder %v31_v4, 512 }
   0xa   :  { %v51_v38 = vsel %vm42_vm1, %v27_v18, 0.0  ;;  %v52_v39 = vsel %vm42_vm1, %v28_v19, 0.0  ;;  %v53_v40 = vsel %vm42_vm1, %v29_v20, 0.0  ;;  %v54_v41 = vsel %vm42_vm1, %v30_v21, 0.0 }
   0xb   :  { %v58_v42 = vsel %vm57_vm0, %v51_v38, 0.0  ;;  %v67_v43 = vsel %vm57_vm0, %v52_v39, 0.0  ;;  %v76_v44 = vsel %vm57_vm0, %v53_v40, 0.0  ;;  %v85_v45 = vsel %vm57_vm0, %v54_v41, 0.0 }
   0xc   :  { %v59_v46 = vadd.f32 %v58_v42, %v56_v23  ;;  %v68_v47 = vadd.f32 %v67_v43, %v66_v24  ;;  %v77_v48 = vadd.f32 %v76_v44, %v75_v25  ;;  %v86_v49 = vadd.f32 %v85_v45, %v84_v28 }
   0xd   :  { %v138_v50 = vmul.f32 %v51_v38, %v51_v38  ;;  %v139_v51 = vmul.f32 %v52_v39, %v52_v39  ;;  %v140_v52 = vmul.f32 %v53_v40, %v53_v40  ;;  %v141_v53 = vmul.f32 %v54_v41, %v54_v41 }
   0xe   :  { %v60_v54 = vrot.slane %v59_v46, 4  ;;  %v69_v55 = vrot.slane %v68_v47, 4  ;;  %v78_v56 = vrot.slane %v77_v48, 4  ;;  %v87_v57 = vrot.slane %v86_v49, 4 }
   0xf   :  { %v143_v59 = vsel %vm57_vm0, %v138_v50, 0.0  ;;  %v151_v60 = vadd.f32 %v135_v35, %v131_v30  ;;  %v152_v61 = vsel %vm57_vm0, %v139_v51, 0.0  ;;  %v160_v5 = vadd.f32 %v136_v36, %v132_v32 }
  0x10   :  { %v61_v62 = vadd.f32 %v60_v54, %v59_v46  ;;  %v70_v63 = vadd.f32 %v69_v55, %v68_v47  ;;  %v79_v0 = vadd.f32 %v78_v56, %v77_v48  ;;  %v88_v1 = vadd.f32 %v87_v57, %v86_v49 }
  0x11   :  { %v144_v2 = vadd.f32 %v143_v59, %v142_v58  ;;  %v153_v3 = vadd.f32 %v152_v61, %v151_v60  ;;  %v161_v6 = vsel %vm57_vm0, %v140_v52, 0.0  ;;  %v169_v14 = vadd.f32 %v137_v37, %v133_v33 }
  0x12   :  { %v62_v7 = vrot.slane %v61_v62, 2  ;;  %v71_v8 = vrot.slane %v70_v63, 2  ;;  %v80_v9 = vrot.slane %v79_v0, 2  ;;  %v89_v10 = vrot.slane %v88_v1, 2 }
  0x13   :  { %v145_v11 = vrot.slane %v144_v2, 4  ;;  %v154_v12 = vrot.slane %v153_v3, 4  ;;  %v162_v13 = vadd.f32 %v161_v6, %v160_v5  ;;  %v170_v20 = vsel %vm57_vm0, %v141_v53, 0.0  ;;  %v55_v53 = vld [vmem:[%s323_s1] ss:$2 sm:$0xf] }
  0x14   :  { %v63_v15 = vadd.f32 %v62_v7, %v61_v62  ;;  %v72_v16 = vadd.f32 %v71_v8, %v70_v63  ;;  %v81_v17 = vadd.f32 %v80_v9, %v79_v0  ;;  %v90_v18 = vadd.f32 %v89_v10, %v88_v1 }
  0x15   :  { %v163_v19 = vrot.slane %v162_v13, 4  ;;  %v146_v21 = vadd.f32 %v145_v11, %v144_v2  ;;  %v155_v22 = vadd.f32 %v154_v12, %v153_v3  ;;  %v171_v27 = vadd.f32 %v170_v20, %v169_v14  ;;  %v228_v2 = vld [vmem:[%s323_s1 + $0x1] ss:$2 sm:$0xf] }
  0x16   :  { %v64_v23 = vrot.slane %v63_v15, 1  ;;  %v73_v24 = vrot.slane %v72_v16, 1  ;;  %v82_v25 = vrot.slane %v81_v17, 1  ;;  %v91_v26 = vrot.slane %v90_v18, 1 }
  0x17   :  { %v147_v28 = vrot.slane %v146_v21, 2  ;;  %v156_v29 = vrot.slane %v155_v22, 2  ;;  %v164_v30 = vadd.f32 %v163_v19, %v162_v13  ;;  %v172_v36 = vrot.slane %v171_v27, 4 }
  0x18   :  { %v65_v32 = vadd.f32 %v64_v23, %v63_v15  ;;  %v74_v34 = vadd.f32 %v73_v24, %v72_v16  ;;  %v83_v33 = vadd.f32 %v82_v25, %v81_v17  ;;  %v92_v35 = vadd.f32 %v91_v26, %v90_v18 }
  0x19   :  { %v148_v37 = vadd.f32 %v147_v28, %v146_v21  ;;  %v157_v38 = vadd.f32 %v156_v29, %v155_v22  ;;  %v165_v39 = vrot.slane %v164_v30, 2  ;;  %v173_v45 = vadd.f32 %v172_v36, %v171_v27 }
  0x1a   :  { %v97_v40 = vcombine.low %v65_v32, %v74_v34  ;;  %v98_v41 = vcombine.low %v83_v33, %v92_v35 }
  0x1b   :  { %v149_v42 = vrot.slane %v148_v37, 1  ;;  %v158_v43 = vrot.slane %v157_v38, 1  ;;  %v166_v44 = vadd.f32 %v165_v39, %v164_v30  ;;  %v174_v51 = vrot.slane %v173_v45, 2 }
  0x1c   :  { %v105_v46 = vrot.slane %v97_v40, %v270_v31  ;;  %v112_v47 = vrot.slane %v98_v41, %v270_v31 }
  0x1d   :  { %v150_v48 = vadd.f32 %v149_v42, %v148_v37  ;;  %v159_v49 = vadd.f32 %v158_v43, %v157_v38  ;;  %v167_v50 = vrot.slane %v166_v44, 1  ;;  %v175_v54 = vadd.f32 %v174_v51, %v173_v45 }
  0x1e   :  { %v113_v52 = vcombine.low %v105_v46, %v112_v47 }
  0x1f   :  { %v168_v57 = vadd.f32 %v167_v50, %v166_v44  ;;  %v176_v58 = vrot.slane %v175_v54, 1  ;;  %v182_v59 = vcombine.low %v150_v48, %v159_v49 }
  0x20   :  { %v120_v55 = vrot.slane %v113_v52, %v270_v31 }
  0x21   :  { %v177_v61 = vadd.f32 %v176_v58, %v175_v54  ;;  %v190_v63 = vrot.slane %v182_v59, %v270_v31 }
  0x22   :  { %v122_v60 = vadd.f32 %v120_v55, %v55_v53 }
  0x23   :  { %v183_v62 = vcombine.low %v168_v57, %v177_v61 }
  0x24   :  { %127 = vst.msk [vmem:[%s323_s1] ss:$2 sm:$0xf] %vm287_vm2, %v122_v60 }
  0x25   :  { %v197_v0 = vrot.slane %v183_v62, %v270_v31 }
  0x27   :  { %v198_v4 = vcombine.low %v190_v63, %v197_v0 }
  0x29   :  { %v205_v1 = vrot.slane %v198_v4, %v270_v31 }
  0x2b   :  { %v207_v3 = vadd.f32 %v228_v2, %v205_v1  ;;  %v212_v5 = vld [vmem:[%s323_s1] ss:$2 sm:$0xf] }
  0x2c   :  { %v213_v6 = vmul.f32 0.055555556, %v212_v5 }
  0x2d   :  { %229 = vst.msk [vmem:[%s323_s1 + $0x1] ss:$2 sm:$0xf] %vm287_vm2, %v207_v3 }
  0x2e   :  { %v216_v7 = vmul.f32 %v213_v6, %v213_v6  ;;  %v221_v11 = vsub.f32 0.0, %v213_v6 }
  0x34   :  { %v230_v31 = vld [vmem:[%s323_s1 + $0x1] ss:$2 sm:$0xf] }
  0x35   :  { %v215_v8 = vmul.f32 0.055555556, %v230_v31 }
  0x37   :  { %v217_v9 = vsub.f32 %v215_v8, %v216_v7 }
  0x39   :  { %v218_v10 = vadd.f32 1e-05, %v217_v9 }
  0x3b   :  { %234 = vrsqrt.f32 %v218_v10 }
  0x45   :  { %v235_v12 = vpop.eup %234 }
  0x46   :  { %220 = vst.msk [vmem:[%s323_s1] ss:$2 sm:$0xf] %vm287_vm2, %v235_v12  ;;  %v222_v13 = vmul.f32 %v235_v12, %v221_v11 }
  0x48   :  { %231 = vst.msk [vmem:[%s323_s1 + $0x1] ss:$2 sm:$0xf] %vm287_vm2, %v222_v13 }

// kernel: resnet_forward.50
= control target key start
LH: loop header
LB: loop body
LE: loop exit
PB: predicated region body
PF: predicated region fallthrough
CT: control target
= control target key end

     0   :  { %v43_v0 = vlaneseq  ;;  %s462_s0 = inlined_call_operand.vmem [shape: f32[1,512], index: 0, kind: input, shape index: {}]   ;;  %s463_s1 = inlined_call_operand.vmem [shape: f32[1,512], index: 1, kind: input, shape index: {}]   ;;  %s464_s4 = inlined_call_operand.vmem [shape: bf16[18,512], index: 4, kind: input, shape index: {}]   ;;  %s465_s5 = inlined_call_operand.vmem [shape: bf16[18,512], index: 5, kind: input, shape index: {}]   ;;  %s466_s2 = inlined_call_operand.vmem [shape: f32[1,512], index: 2, kind: input, shape index: {}]   ;;  %s467_s3 = inlined_call_operand.vmem [shape: f32[1,512], index: 3, kind: input, shape index: {}]   ;;  %s468_s6 = inlined_call_operand.vmem [shape: bf16[18,512], index: 6, kind: output, shape index: {}]  }
   0x1   :  { %v23_v1 = vld [vmem:[%s464_s4] sm:$0xff]  ;;  %v24_v10 = vld [vmem:[%s464_s4 + $0x8] sm:$0xff]  ;;  %v25_v46 = vld [vmem:[%s464_s4 + $0x10] sm:$0xff] }
   0x2   :  { %v41_v2 = vld [vmem:[%s462_s0] sm:$0xf]  ;;  %v44_v3 = vshrl.u32 %v43_v0, 7  ;;  %v29_v5 = vunpack.c.l.bf16 %v23_v1  ;;  %v30_v6 = vunpack.c.h.bf16 %v23_v1  ;;  %v110_v11 = vld [vmem:[%s465_s5 + $0x8] sm:$0xff]  ;;  %v31_v16 = vunpack.c.l.bf16 %v24_v10  ;;  %v111_v47 = vld [vmem:[%s465_s5 + $0x10] sm:$0xff] }
   0x3   :  { %v109_v4 = vld [vmem:[%s465_s5] sm:$0xff]  ;;  %v32_v17 = vunpack.c.h.bf16 %v24_v10  ;;  %v117_v20 = vunpack.c.l.bf16 %v110_v11  ;;  %v118_v21 = vunpack.c.h.bf16 %v110_v11  ;;  %v33_v56 = vunpack.c.l.bf16 %v25_v46  ;;  %v26_v60 = vld [vmem:[%s464_s4 + $0x18] sm:$0xff] }
   0x4   :  { %v75_v7 = vld [vmem:[%s463_s1] sm:$0xf]  ;;  %v115_v8 = vunpack.c.l.bf16 %v109_v4  ;;  %v116_v9 = vunpack.c.h.bf16 %v109_v4  ;;  %v45_v12 = vsub.s32 0, %v44_v3  ;;  %v49_v13 = vsub.s32 1, %v44_v3 }
   0x5   :  { %v127_v14 = vld [vmem:[%s466_s2] sm:$0xf]  ;;  %v53_v18 = vsub.s32 2, %v44_v3  ;;  %v57_v19 = vsub.s32 3, %v44_v3  ;;  %v34_v57 = vunpack.c.h.bf16 %v25_v46  ;;  %v119_v58 = vunpack.c.l.bf16 %v111_v47  ;;  %v28_v46 = vld [vmem:[%s464_s4 + $0x28] sm:$0x11] }
   0x6   :  { %v161_v15 = vld [vmem:[%s467_s3] sm:$0xf]  ;;  %v340_v22 = vrot.slane %v41_v2, %v45_v12  ;;  %v342_v23 = vrot.slane %v41_v2, %v49_v13  ;;  %v344_v24 = vrot.slane %v75_v7, %v45_v12  ;;  %v346_v25 = vrot.slane %v75_v7, %v49_v13 }
   0x7   :  { %v348_v26 = vrot.slane %v127_v14, %v45_v12  ;;  %v350_v27 = vrot.slane %v127_v14, %v49_v13  ;;  %v352_v28 = vrot.slane %v161_v15, %v45_v12  ;;  %v354_v29 = vrot.slane %v161_v15, %v49_v13 }
   0x8   :  { %v63_v30 = vmul.f32 %v340_v22, %v29_v5  ;;  %v64_v31 = vmul.f32 %v342_v23, %v30_v6  ;;  %v358_v32 = vrot.slane %v41_v2, %v53_v18  ;;  %v360_v33 = vrot.slane %v41_v2, %v57_v19 }
   0x9   :  { %v149_v34 = vmul.f32 %v348_v26, %v115_v8  ;;  %v150_v35 = vmul.f32 %v350_v27, %v116_v9  ;;  %v364_v36 = vrot.slane %v75_v7, %v53_v18  ;;  %v366_v37 = vrot.slane %v75_v7, %v57_v19  ;;  %v112_v9 = vld [vmem:[%s465_s5 + $0x18] sm:$0xff] }
   0xa   :  { %v97_v38 = vadd.f32 %v344_v24, %v63_v30  ;;  %v98_v39 = vadd.f32 %v346_v25, %v64_v31  ;;  %v65_v40 = vmul.f32 %v358_v32, %v31_v16  ;;  %v66_v41 = vmul.f32 %v360_v33, %v32_v17  ;;  %v113_v31 = vld [vmem:[%s465_s5 + $0x20] sm:$0x11] }
   0xb   :  { %v183_v42 = vadd.f32 %v352_v28, %v149_v34  ;;  %v184_v43 = vadd.f32 %v354_v29, %v150_v35  ;;  %v374_v44 = vrot.slane %v127_v14, %v53_v18  ;;  %v376_v45 = vrot.slane %v127_v14, %v57_v19  ;;  %v27_v14 = vld [vmem:[%s464_s4 + $0x20] sm:$0x11] }
   0xc   :  { %v99_v48 = vadd.f32 %v364_v36, %v65_v40  ;;  %v100_v49 = vadd.f32 %v366_v37, %v66_v41  ;;  %v386_v50 = vrot.slane %v161_v15, %v53_v18  ;;  %v388_v51 = vrot.slane %v161_v15, %v57_v19 }
   0xd   :  { %v195_v52 = vadd.f32 %v183_v42, %v97_v38  ;;  %v196_v53 = vadd.f32 %v184_v43, %v98_v39  ;;  %v151_v54 = vmul.f32 %v374_v44, %v117_v20  ;;  %v152_v55 = vmul.f32 %v376_v45, %v118_v21 }
   0xe   :  { %v120_v59 = vunpack.c.h.bf16 %v111_v47  ;;  %v67_v1 = vmul.f32 %v340_v22, %v33_v56  ;;  %v68_v2 = vmul.f32 %v342_v23, %v34_v57  ;;  %v153_v3 = vmul.f32 %v348_v26, %v119_v58  ;;  %v114_v57 = vld [vmem:[%s465_s5 + $0x28] sm:$0x11] }
   0xf   :  { %v207_v61 = vmax.f32 %v195_v52, 0.0  ;;  %v208_v62 = vmax.f32 %v196_v53, 0.0  ;;  %v185_v63 = vadd.f32 %v386_v50, %v151_v54  ;;  %v186_v0 = vadd.f32 %v388_v51, %v152_v55 }
  0x10   :  { %v154_v4 = vmul.f32 %v350_v27, %v120_v59  ;;  %v35_v8 = vunpack.c.l.bf16 %v26_v60  ;;  %v101_v10 = vadd.f32 %v344_v24, %v67_v1  ;;  %v102_v11 = vadd.f32 %v346_v25, %v68_v2 }
  0x11   :  { %v275_v5 = vpack.c.bf16 %v208_v62, %v207_v61  ;;  %v197_v6 = vadd.f32 %v185_v63, %v99_v48  ;;  %v198_v7 = vadd.f32 %v186_v0, %v100_v49  ;;  %v187_v12 = vadd.f32 %v352_v28, %v153_v3 }
  0x12   :  { %v188_v13 = vadd.f32 %v354_v29, %v154_v4  ;;  %v36_v17 = vunpack.c.h.bf16 %v26_v60  ;;  %v69_v18 = vmul.f32 %v358_v32, %v35_v8  ;;  %v121_v21 = vunpack.c.l.bf16 %v112_v9 }
  0x13   :  { %259 = vst [vmem:[%s468_s6] sm:$0xff] %v275_v5  ;;  %v209_v15 = vmax.f32 %v197_v6, 0.0  ;;  %v210_v16 = vmax.f32 %v198_v7, 0.0  ;;  %v199_v19 = vadd.f32 %v187_v12, %v101_v10  ;;  %v122_v30 = vunpack.c.h.bf16 %v112_v9 }
  0x14   :  { %v200_v20 = vadd.f32 %v188_v13, %v102_v11  ;;  %v70_v35 = vmul.f32 %v360_v33, %v36_v17  ;;  %v103_v38 = vadd.f32 %v364_v36, %v69_v18  ;;  %v37_v39 = vunpack.c.l.bf16 %v27_v14 }
  0x15   :  { %v276_v34 = vpack.c.bf16 %v210_v16, %v209_v15  ;;  %v211_v40 = vmax.f32 %v199_v19, 0.0  ;;  %v155_v42 = vmul.f32 %v374_v44, %v121_v21  ;;  %v156_v43 = vmul.f32 %v376_v45, %v122_v30 }
  0x16   :  { %v212_v41 = vmax.f32 %v200_v20, 0.0  ;;  %v104_v47 = vadd.f32 %v366_v37, %v70_v35  ;;  %v38_v48 = vunpack.c.h.bf16 %v27_v14  ;;  %v71_v49 = vmul.f32 %v340_v22, %v37_v39 }
  0x17   :  { %260 = vst [vmem:[%s468_s6 + $0x8] sm:$0xff] %v276_v34  ;;  %v123_v52 = vunpack.c.l.bf16 %v113_v31  ;;  %v189_v54 = vadd.f32 %v386_v50, %v155_v42  ;;  %v190_v55 = vadd.f32 %v388_v51, %v156_v43  ;;  %v124_v56 = vunpack.c.h.bf16 %v113_v31 }
  0x18   :  { %v277_v53 = vpack.c.bf16 %v212_v41, %v211_v40  ;;  %v72_v58 = vmul.f32 %v342_v23, %v38_v48  ;;  %v105_v59 = vadd.f32 %v344_v24, %v71_v49  ;;  %v39_v61 = vunpack.c.l.bf16 %v28_v46 }
  0x19   :  { %v157_v60 = vmul.f32 %v348_v26, %v123_v52  ;;  %v201_v22 = vadd.f32 %v189_v54, %v103_v38  ;;  %v202_v62 = vadd.f32 %v190_v55, %v104_v47  ;;  %v158_v63 = vmul.f32 %v350_v27, %v124_v56 }
  0x1a   :  { %261 = vst [vmem:[%s468_s6 + $0x10] sm:$0xff] %v277_v53  ;;  %v40_v0 = vunpack.c.h.bf16 %v28_v46  ;;  %v106_v1 = vadd.f32 %v346_v25, %v72_v58  ;;  %v73_v23 = vmul.f32 %v358_v32, %v39_v61  ;;  %v125_v3 = vunpack.c.l.bf16 %v114_v57 }
  0x1b   :  { %v191_v2 = vadd.f32 %v352_v28, %v157_v60  ;;  %v213_v24 = vmax.f32 %v201_v22, 0.0  ;;  %v214_v4 = vmax.f32 %v202_v62, 0.0  ;;  %v192_v26 = vadd.f32 %v354_v29, %v158_v63 }
  0x1c   :  { %v74_v5 = vmul.f32 %v360_v33, %v40_v0  ;;  %v107_v7 = vadd.f32 %v364_v36, %v73_v23  ;;  %v126_v8 = vunpack.c.h.bf16 %v114_v57  ;;  %v159_v27 = vmul.f32 %v374_v44, %v125_v3 }
  0x1d   :  { %v203_v6 = vadd.f32 %v191_v2, %v105_v59  ;;  %v278_v9 = vpack.c.bf16 %v214_v4, %v213_v24  ;;  %v204_v10 = vadd.f32 %v192_v26, %v106_v1 }
  0x1e   :  { %v108_v28 = vadd.f32 %v366_v37, %v74_v5  ;;  %v160_v32 = vmul.f32 %v376_v45, %v126_v8  ;;  %v193_v11 = vadd.f32 %v386_v50, %v159_v27 }
  0x1f   :  { %v215_v25 = vmax.f32 %v203_v6, 0.0  ;;  %262 = vst [vmem:[%s468_s6 + $0x18] sm:$0xff] %v278_v9  ;;  %v216_v29 = vmax.f32 %v204_v10, 0.0 }
  0x20   :  { %v194_v33 = vadd.f32 %v388_v51, %v160_v32  ;;  %v205_v36 = vadd.f32 %v193_v11, %v107_v7 }
  0x21   :  { %v279_v12 = vpack.c.bf16 %v216_v29, %v215_v25 }
  0x22   :  { %v206_v13 = vadd.f32 %v194_v33, %v108_v28  ;;  %v217_v44 = vmax.f32 %v205_v36, 0.0 }
  0x23   :  { %263 = vst [vmem:[%s468_s6 + $0x20] sm:$0x11] %v279_v12 }
  0x24   :  { %v218_v37 = vmax.f32 %v206_v13, 0.0 }
  0x26   :  { %v280_v14 = vpack.c.bf16 %v218_v37, %v217_v44 }
  0x28   :  { %264 = vst [vmem:[%s468_s6 + $0x28] sm:$0x11] %v280_v14 }

// kernel: resnet_forward.51
= control target key start
LH: loop header
LB: loop body
LE: loop exit
PB: predicated region body
PF: predicated region fallthrough
CT: control target
= control target key end

     0   :  { %s1025_s1 = inlined_call_operand.vmem [shape: bf16[512,256], index: 1, kind: input, shape index: {}]   ;;  %s1026_s0 = inlined_call_operand.vmem [shape: bf16[18,512], index: 0, kind: input, shape index: {}]   ;;  %s1027_s2 = inlined_call_operand.vmem [shape: bf16[18,256], index: 2, kind: output, shape index: {}]  }
   0x1   :  { %v684_v0 = vld [vmem:[%s1025_s1 + $0x4] ss:$8 sps:$4 sm:$0xff]   ;;  %v688_v2 = vld [vmem:[%s1025_s1] ss:$8 sps:$4 sm:$0xff]   ;;  %v690_v4 = vld [vmem:[%s1025_s1 + $0x14] ss:$8 sps:$4 sm:$0xff]  }
   0x2   :  { %v686_v1 = vld [vmem:[%s1025_s1 + $0x104] ss:$8 sps:$4 sm:$0xff]   ;;  %451 = vmatprep.subr.bf16.mxu1 %v684_v0  ;;  %v689_v3 = vld [vmem:[%s1025_s1 + $0x100] ss:$8 sps:$4 sm:$0xff]   ;;  %v692_v5 = vld [vmem:[%s1025_s1 + $0x114] ss:$8 sps:$4 sm:$0xff]  }
   0x3   :  { %502 = vmatprep.subr.bf16.mxu0 %v686_v1  ;;  %452 = vmatpush1.bf16.msra.mxu1 %v688_v2  ;;  %v694_v6 = vld [vmem:[%s1025_s1 + $0x10] ss:$8 sps:$4 sm:$0xff]   ;;  %v696_v8 = vld [vmem:[%s1025_s1 + $0x24] ss:$8 sps:$4 sm:$0xff]   ;;  %v700_v10 = vld [vmem:[%s1025_s1 + $0x20] ss:$8 sps:$4 sm:$0xff]  }
   0x4   :  { %503 = vmatpush1.bf16.msra.mxu0 %v689_v3  ;;  %453 = vmatprep.subr.bf16.mxu1 %v690_v4  ;;  %v695_v7 = vld [vmem:[%s1025_s1 + $0x110] ss:$8 sps:$4 sm:$0xff]   ;;  %v698_v9 = vld [vmem:[%s1025_s1 + $0x124] ss:$8 sps:$4 sm:$0xff]   ;;  %v701_v11 = vld [vmem:[%s1025_s1 + $0x120] ss:$8 sps:$4 sm:$0xff]  }
   0x5   :  { %504 = vmatprep.subr.bf16.mxu0 %v692_v5  ;;  %v702_v12 = vld [vmem:[%s1025_s1 + $0x34] ss:$8 sps:$4 sm:$0xff]   ;;  %v706_v14 = vld [vmem:[%s1025_s1 + $0x30] ss:$8 sps:$4 sm:$0xff]   ;;  %v708_v16 = vld [vmem:[%s1025_s1 + $0x44] ss:$8 sps:$4 sm:$0xff]  }
   0x6   :  { %v704_v13 = vld [vmem:[%s1025_s1 + $0x134] ss:$8 sps:$4 sm:$0xff]   ;;  %v707_v15 = vld [vmem:[%s1025_s1 + $0x130] ss:$8 sps:$4 sm:$0xff]   ;;  %v710_v17 = vld [vmem:[%s1025_s1 + $0x144] ss:$8 sps:$4 sm:$0xff]  }
   0x7   :  { %454 = vmatpush1.bf16.msra.mxu1 %v694_v6  ;;  %v712_v18 = vld [vmem:[%s1025_s1 + $0x40] ss:$8 sps:$4 sm:$0xff]   ;;  %v714_v20 = vld [vmem:[%s1025_s1 + $0x54] ss:$8 sps:$4 sm:$0xff]   ;;  %v718_v22 = vld [vmem:[%s1025_s1 + $0x50] ss:$8 sps:$4 sm:$0xff]  }
   0x8   :  { %505 = vmatpush1.bf16.msra.mxu0 %v695_v7  ;;  %455 = vmatprep.subr.bf16.mxu1 %v696_v8  ;;  %v713_v19 = vld [vmem:[%s1025_s1 + $0x140] ss:$8 sps:$4 sm:$0xff]   ;;  %v716_v21 = vld [vmem:[%s1025_s1 + $0x154] ss:$8 sps:$4 sm:$0xff]   ;;  %v719_v23 = vld [vmem:[%s1025_s1 + $0x150] ss:$8 sps:$4 sm:$0xff]  }
   0x9   :  { %506 = vmatprep.subr.bf16.mxu0 %v698_v9  ;;  %v720_v24 = vld [vmem:[%s1025_s1 + $0x64] ss:$8 sps:$4 sm:$0xff]   ;;  %v724_v26 = vld [vmem:[%s1025_s1 + $0x60] ss:$8 sps:$4 sm:$0xff]   ;;  %v726_v28 = vld [vmem:[%s1025_s1 + $0x74] ss:$8 sps:$4 sm:$0xff]  }
   0xa   :  { %v722_v25 = vld [vmem:[%s1025_s1 + $0x164] ss:$8 sps:$4 sm:$0xff]   ;;  %v725_v27 = vld [vmem:[%s1025_s1 + $0x160] ss:$8 sps:$4 sm:$0xff]   ;;  %v728_v29 = vld [vmem:[%s1025_s1 + $0x174] ss:$8 sps:$4 sm:$0xff]  }
   0xb   :  { %456 = vmatpush1.bf16.msra.mxu1 %v700_v10  ;;  %v730_v30 = vld [vmem:[%s1025_s1 + $0x70] ss:$8 sps:$4 sm:$0xff]   ;;  %v732_v32 = vld [vmem:[%s1025_s1 + $0x84] ss:$8 sps:$4 sm:$0xff]   ;;  %v736_v34 = vld [vmem:[%s1025_s1 + $0x80] ss:$8 sps:$4 sm:$0xff]  }
   0xc   :  { %507 = vmatpush1.bf16.msra.mxu0 %v701_v11  ;;  %457 = vmatprep.subr.bf16.mxu1 %v702_v12  ;;  %v731_v31 = vld [vmem:[%s1025_s1 + $0x170] ss:$8 sps:$4 sm:$0xff]   ;;  %v734_v33 = vld [vmem:[%s1025_s1 + $0x184] ss:$8 sps:$4 sm:$0xff]   ;;  %v737_v35 = vld [vmem:[%s1025_s1 + $0x180] ss:$8 sps:$4 sm:$0xff]  }
   0xd   :  { %508 = vmatprep.subr.bf16.mxu0 %v704_v13  ;;  %v738_v36 = vld [vmem:[%s1025_s1 + $0x94] ss:$8 sps:$4 sm:$0xff]   ;;  %v742_v38 = vld [vmem:[%s1025_s1 + $0x90] ss:$8 sps:$4 sm:$0xff]   ;;  %v744_v40 = vld [vmem:[%s1025_s1 + $0xa4] ss:$8 sps:$4 sm:$0xff]  }
   0xe   :  { %v740_v37 = vld [vmem:[%s1025_s1 + $0x194] ss:$8 sps:$4 sm:$0xff]   ;;  %v743_v39 = vld [vmem:[%s1025_s1 + $0x190] ss:$8 sps:$4 sm:$0xff]   ;;  %v746_v41 = vld [vmem:[%s1025_s1 + $0x1a4] ss:$8 sps:$4 sm:$0xff]  }
   0xf   :  { %458 = vmatpush1.bf16.msra.mxu1 %v706_v14  ;;  %v748_v42 = vld [vmem:[%s1025_s1 + $0xa0] ss:$8 sps:$4 sm:$0xff]   ;;  %v750_v44 = vld [vmem:[%s1025_s1 + $0xb4] ss:$8 sps:$4 sm:$0xff]   ;;  %v754_v46 = vld [vmem:[%s1025_s1 + $0xb0] ss:$8 sps:$4 sm:$0xff]  }
  0x10   :  { %509 = vmatpush1.bf16.msra.mxu0 %v707_v15  ;;  %459 = vmatprep.subr.bf16.mxu1 %v708_v16  ;;  %v749_v43 = vld [vmem:[%s1025_s1 + $0x1a0] ss:$8 sps:$4 sm:$0xff]   ;;  %v752_v45 = vld [vmem:[%s1025_s1 + $0x1b4] ss:$8 sps:$4 sm:$0xff]   ;;  %v755_v48 = vld [vmem:[%s1025_s1 + $0x1b0] ss:$8 sps:$4 sm:$0xff]  }
  0x11   :  { %510 = vmatprep.subr.bf16.mxu0 %v710_v17  ;;  %v782_v47 = vld [vmem:[%s1026_s0 + $0x4] ss:$16 sps:$4 sm:$0xff]   ;;  %v785_v51 = vld [vmem:[%s1026_s0 + $0xc] ss:$16 sps:$4 sm:$0xff]   ;;  %v760_v52 = vld [vmem:[%s1025_s1 + $0xc0] ss:$8 sps:$4 sm:$0xff]  }
  0x12   :  { %v756_v49 = vld [vmem:[%s1025_s1 + $0xc4] ss:$8 sps:$4 sm:$0xff]   ;;  %483 = vmatprep.mubr.bf16.mxu1 %v782_v47  ;;  %534 = vmatprep.mubr.bf16.mxu0 %v785_v51  ;;  %v761_v53 = vld [vmem:[%s1025_s1 + $0x1c0] ss:$8 sps:$4 sm:$0xff]   ;;  %v762_v54 = vld [vmem:[%s1025_s1 + $0xd4] ss:$8 sps:$4 sm:$0xff]  }
  0x13   :  { %460 = vmatpush1.bf16.msra.mxu1 %v712_v18  ;;  %v758_v50 = vld [vmem:[%s1025_s1 + $0x1c4] ss:$8 sps:$4 sm:$0xff]   ;;  %v764_v55 = vld [vmem:[%s1025_s1 + $0x1d4] ss:$8 sps:$4 sm:$0xff]   ;;  %v766_v56 = vld [vmem:[%s1025_s1 + $0xd0] ss:$8 sps:$4 sm:$0xff]  }
  0x14   :  { %511 = vmatpush1.bf16.msra.mxu0 %v713_v19  ;;  %461 = vmatprep.subr.bf16.mxu1 %v714_v20  ;;  %v767_v57 = vld [vmem:[%s1025_s1 + $0x1d0] ss:$8 sps:$4 sm:$0xff]   ;;  %v768_v58 = vld [vmem:[%s1025_s1 + $0xe4] ss:$8 sps:$4 sm:$0xff]   ;;  %v772_v60 = vld [vmem:[%s1025_s1 + $0xe0] ss:$8 sps:$4 sm:$0xff]  }
  0x15   :  { %512 = vmatprep.subr.bf16.mxu0 %v716_v21  ;;  %v770_v59 = vld [vmem:[%s1025_s1 + $0x1e4] ss:$8 sps:$4 sm:$0xff]   ;;  %v773_v61 = vld [vmem:[%s1025_s1 + $0x1e0] ss:$8 sps:$4 sm:$0xff]   ;;  %v774_v62 = vld [vmem:[%s1025_s1 + $0xf4] ss:$8 sps:$4 sm:$0xff]  }
  0x16   :  { %v776_v63 = vld [vmem:[%s1025_s1 + $0x1f4] ss:$8 sps:$4 sm:$0xff]   ;;  %v778_v0 = vld [vmem:[%s1025_s1 + $0xf0] ss:$8 sps:$4 sm:$0xff]   ;;  %v31_v2 = vld [vmem:[%s1026_s0 + $0x20] sm:$0x11] }
  0x17   :  { %462 = vmatpush1.bf16.msra.mxu1 %v718_v22  ;;  %v779_v1 = vld [vmem:[%s1025_s1 + $0x1f0] ss:$8 sps:$4 sm:$0xff]   ;;  %v32_v3 = vld [vmem:[%s1026_s0 + $0x28] sm:$0x11]  ;;  %v606_v6 = vcombine.high %v31_v2, %v31_v2  ;;  %v605_v8 = vcombine.low %v31_v2, %v31_v2  ;;  %v790_v10 = vmov 0.0  }
  0x18   :  { %513 = vmatpush1.bf16.msra.mxu0 %v719_v23  ;;  %463 = vmatprep.subr.bf16.mxu1 %v720_v24  ;;  %v780_v4 = vld [vmem:[%s1026_s0] ss:$16 sps:$4 sm:$0xff]   ;;  %v783_v5 = vld [vmem:[%s1026_s0 + $0x8] ss:$16 sps:$4 sm:$0xff]   ;;  %v608_v7 = vcombine.high %v32_v3, %v32_v3  ;;  %v607_v9 = vcombine.low %v32_v3, %v32_v3  ;;  %19 = vst [vmem:[#allocation2 + $0x20] sm:$0x3] %v790_v10 }
  0x19   :  { %514 = vmatprep.subr.bf16.mxu0 %v722_v25  ;;  %20 = vst [vmem:[#allocation2 + $0x28] sm:$0x3] %v790_v10 }
  0x1b   :  { %464 = vmatpush1.bf16.msra.mxu1 %v724_v26 }
  0x1c   :  { %515 = vmatpush1.bf16.msra.mxu0 %v725_v27  ;;  %465 = vmatprep.subr.bf16.mxu1 %v726_v28 }
  0x1d   :  { %516 = vmatprep.subr.bf16.mxu0 %v728_v29 }
  0x1f   :  { %466 = vmatpush1.bf16.msra.mxu1 %v730_v30  ;;  %v25_v26 = vld [vmem:[#allocation2 + $0x20] sm:$0x3] }
  0x20   :  { %517 = vmatpush1.bf16.msra.mxu0 %v731_v31  ;;  %467 = vmatprep.subr.bf16.mxu1 %v732_v32  ;;  %v26_v30 = vld [vmem:[#allocation2 + $0x28] sm:$0x3] }
  0x21   :  { %518 = vmatprep.subr.bf16.mxu0 %v734_v33 }
  0x23   :  { %468 = vmatpush1.bf16.msra.mxu1 %v736_v34 }
  0x24   :  { %519 = vmatpush1.bf16.msra.mxu0 %v737_v35  ;;  %469 = vmatprep.subr.bf16.mxu1 %v738_v36 }
  0x25   :  { %520 = vmatprep.subr.bf16.mxu0 %v740_v37 }
  0x27   :  { %470 = vmatpush1.bf16.msra.mxu1 %v742_v38 }
  0x28   :  { %521 = vmatpush1.bf16.msra.mxu0 %v743_v39  ;;  %471 = vmatprep.subr.bf16.mxu1 %v744_v40 }
  0x29   :  { %522 = vmatprep.subr.bf16.mxu0 %v746_v41 }
  0x2b   :  { %472 = vmatpush1.bf16.msra.mxu1 %v748_v42 }
  0x2c   :  { %523 = vmatpush1.bf16.msra.mxu0 %v749_v43  ;;  %473 = vmatprep.subr.bf16.mxu1 %v750_v44 }
  0x2d   :  { %524 = vmatprep.subr.bf16.mxu0 %v752_v45 }
  0x2f   :  { %474 = vmatpush1.bf16.msra.mxu1 %v754_v46 }
  0x30   :  { %525 = vmatpush1.bf16.msra.mxu0 %v755_v48  ;;  %475 = vmatprep.subr.bf16.mxu1 %v756_v49 }
  0x31   :  { %526 = vmatprep.subr.bf16.mxu0 %v758_v50 }
  0x33   :  { %476 = vmatpush1.bf16.msra.mxu1 %v760_v52 }
  0x34   :  { %527 = vmatpush1.bf16.msra.mxu0 %v761_v53  ;;  %477 = vmatprep.subr.bf16.mxu1 %v762_v54 }
  0x35   :  { %528 = vmatprep.subr.bf16.mxu0 %v764_v55 }
  0x37   :  { %478 = vmatpush1.bf16.msra.mxu1 %v766_v56 }
  0x38   :  { %529 = vmatpush1.bf16.msra.mxu0 %v767_v57  ;;  %479 = vmatprep.subr.bf16.mxu1 %v768_v58 }
  0x39   :  { %530 = vmatprep.subr.bf16.mxu0 %v770_v59 }
  0x3b   :  { %480 = vmatpush1.bf16.msra.mxu1 %v772_v60 }
  0x3c   :  { %531 = vmatpush1.bf16.msra.mxu0 %v773_v61  ;;  %481 = vmatprep.subr.bf16.mxu1 %v774_v62 }
  0x3d   :  { %532 = vmatprep.subr.bf16.mxu0 %v776_v63 }
  0x3f   :  { %482 = vmatpush1.bf16.msra.mxu1 %v778_v0 }
  0x40   :  { %533 = vmatpush1.bf16.msra.mxu0 %v779_v1 }
  0x42   :  { %484 = vmatmul.mubr.bf16.vlgmr.msra.gmra.mrb[0].mxu1 %v780_v4 }
  0x43   :  { %535 = vmatmul.mubr.bf16.vlgmr.msra.gmra.mrb[0].mxu0 %v783_v5  ;;  %493 = vmatprep.mubr.bf16.mxu1 %v606_v6 }
  0x44   :  { %544 = vmatprep.mubr.bf16.mxu0 %v608_v7 }
  0x4a   :  { %494 = vmatmul.mubr.bf16.gmra.mrb[4].mxu1 %v605_v8 }
  0x4b   :  { %545 = vmatmul.mubr.bf16.gmra.mrb[4].mxu0 %v607_v9 }
 0x115   :  { %v485_v11 = vpop.f32.mrb[0].mxu1 }
 0x116   :  { %v536_v12 = vpop.f32.mrb[0].mxu0  ;;  %v487_v14 = vpop.f32.mrb[1].mxu1 }
 0x117   :  { %v537_v13 = vadd.f32 %v536_v12, %v485_v11  ;;  %v538_v15 = vpop.f32.mrb[1].mxu0  ;;  %v489_v17 = vpop.f32.mrb[2].mxu1 }
 0x118   :  { %v539_v16 = vadd.f32 %v538_v15, %v487_v14  ;;  %v540_v18 = vpop.f32.mrb[2].mxu0  ;;  %v491_v20 = vpop.f32.mrb[3].mxu1 }
 0x119   :  { %v541_v19 = vadd.f32 %v540_v18, %v489_v17  ;;  %v542_v21 = vpop.f32.mrb[3].mxu0 }
 0x11a   :  { %v543_v22 = vadd.f32 %v542_v21, %v491_v20  ;;  %v676_v23 = vpack.c.bf16 %v539_v16, %v537_v13 }
 0x11c   :  { %594 = vst [vmem:[%s1027_s2] sm:$0xff] %v676_v23  ;;  %v677_v24 = vpack.c.bf16 %v543_v22, %v541_v19 }
 0x11d   :  { %v495_v25 = vpop.f32.mrb[4].mxu1 }
 0x11e   :  { %v546_v27 = vpop.f32.mrb[4].mxu0  ;;  %v497_v29 = vpop.f32.mrb[5].mxu1  ;;  %595 = vst [vmem:[%s1027_s2 + $0x8] sm:$0xff] %v677_v24 }
 0x11f   :  { %v547_v28 = vadd.f32 %v546_v27, %v495_v25  ;;  %v548_v31 = vpop.f32.mrb[5].mxu0  ;;  %v499_v33 = vpop.f32.mrb[6].mxu1 }
 0x120   :  { %v549_v32 = vadd.f32 %v548_v31, %v497_v29  ;;  %v550_v34 = vpop.f32.mrb[6].mxu0  ;;  %v500_v36 = vpop.f32.mrb[7].mxu1 }
 0x121   :  { %v557_v35 = vadd.f32 %v547_v28, %v25_v26  ;;  %v551_v37 = vpop.f32.mrb[7].mxu0 }
 0x122   :  { %v558_v38 = vadd.f32 %v549_v32, %v26_v30 }
 0x123   :  { %563 = vst [vmem:[#allocation2 + $0x20] sm:$0x3] %v557_v35 }
 0x124   :  { %564 = vst [vmem:[#allocation2 + $0x28] sm:$0x3] %v558_v38 }
 0x12a   :  { %v572_v39 = vld [vmem:[#allocation2 + $0x20] sm:$0x3] }
 0x12b   :  { %v573_v40 = vld [vmem:[#allocation2 + $0x28] sm:$0x3] }
 0x12c   :  { %v678_v41 = vpack.c.bf16 %v573_v40, %v572_v39 }
 0x12e   :  { %596 = vst [vmem:[%s1027_s2 + $0x10] sm:$0x11] %v678_v41 }

// kernel: resnet_forward.52
= control target key start
LH: loop header
LB: loop body
LE: loop exit
PB: predicated region body
PF: predicated region fallthrough
CT: control target
= control target key end

     0   :  { %v22_v0 = vlaneseq  ;;  %v157_v1 = vmov 0.0   ;;  %vm42_vm0 = vcmask 1041408   ;;  %v158_v35 = vmov 1966171168   ;;  %s219_s1 = inlined_call_operand.vmem [shape: f32[2,256], index: 1, kind: output, shape index: {}]   ;;  %s220_s0 = inlined_call_operand.vmem [shape: bf16[18,256], index: 0, kind: input, shape index: {}]  }
   0x1   :  { %12 = vst [vmem:[%s219_s1] sm:$0xf] %v157_v1  ;;  %v13_v2 = vld [vmem:[%s220_s0] sm:$0xff]  ;;  %v14_v3 = vld [vmem:[%s220_s0 + $0x8] sm:$0xff]  ;;  %v15_v4 = vld [vmem:[%s220_s0 + $0x10] sm:$0x11]  ;;  %v64_v36 = vunpack.c.l.s4 %v158_v35 }
   0x2   :  { %v16_v5 = vunpack.c.l.bf16 %v13_v2  ;;  %v17_v6 = vunpack.c.h.bf16 %v13_v2  ;;  %v18_v7 = vunpack.c.l.bf16 %v14_v3  ;;  %v19_v8 = vunpack.c.h.bf16 %v14_v3 }
   0x3   :  { %v23_v9 = vshrl.u32 %v22_v0, 7  ;;  %v20_v10 = vunpack.c.l.bf16 %v15_v4  ;;  %v21_v11 = vunpack.c.h.bf16 %v15_v4  ;;  %v65_v45 = vunpack.c.0.s8 %v64_v36 }
   0x4   :  { %v86_v12 = vmul.f32 %v16_v5, %v16_v5  ;;  %v87_v14 = vmul.f32 %v17_v6, %v17_v6  ;;  %v88_v15 = vmul.f32 %v18_v7, %v18_v7  ;;  %v41_v16 = vadd.f32 %v18_v7, %v16_v5 }
   0x5   :  { %v25_v13 = vadd.s32 16, %v23_v9  ;;  %v51_v17 = vadd.f32 %v19_v8, %v17_v6  ;;  %v89_v18 = vmul.f32 %v19_v8, %v19_v8  ;;  %v68_v54 = vsub.s32 %v65_v45, %v23_v9 }
   0x6   :  { %v92_v21 = vadd.f32 %v88_v15, %v86_v12  ;;  %vm186_vm2 = vcmp.lt.s32.totalorder %v22_v0, 256 }
   0x7   :  { %vm33_vm1 = vcmp.lt.s32.totalorder %v25_v13, 18  ;;  %v101_v22 = vadd.f32 %v89_v18, %v87_v14 }
   0x8   :  { %v38_v19 = vsel %vm33_vm1, %v20_v10, 0.0  ;;  %v39_v20 = vsel %vm33_vm1, %v21_v11, 0.0  ;;  %v40_v1 = vld [vmem:[%s219_s1] ss:$2 sm:$0x3] }
   0x9   :  { %v43_v23 = vsel %vm42_vm0, %v38_v19, 0.0  ;;  %v52_v24 = vsel %vm42_vm0, %v39_v20, 0.0  ;;  %v90_v25 = vmul.f32 %v38_v19, %v38_v19  ;;  %v91_v26 = vmul.f32 %v39_v20, %v39_v20  ;;  %v149_v7 = vld [vmem:[%s219_s1 + $0x1] ss:$2 sm:$0x3] }
   0xa   :  { %v44_v27 = vadd.f32 %v43_v23, %v41_v16  ;;  %v53_v28 = vadd.f32 %v52_v24, %v51_v17 }
   0xb   :  { %v93_v29 = vsel %vm42_vm0, %v90_v25, 0.0  ;;  %v102_v30 = vsel %vm42_vm0, %v91_v26, 0.0 }
   0xc   :  { %v45_v31 = vrot.slane %v44_v27, 4  ;;  %v54_v32 = vrot.slane %v53_v28, 4  ;;  %v94_v33 = vadd.f32 %v93_v29, %v92_v21  ;;  %v103_v34 = vadd.f32 %v102_v30, %v101_v22 }
   0xe   :  { %v46_v37 = vadd.f32 %v45_v31, %v44_v27  ;;  %v55_v38 = vadd.f32 %v54_v32, %v53_v28  ;;  %v95_v39 = vrot.slane %v94_v33, 4  ;;  %v104_v40 = vrot.slane %v103_v34, 4 }
  0x10   :  { %v47_v41 = vrot.slane %v46_v37, 2  ;;  %v56_v42 = vrot.slane %v55_v38, 2  ;;  %v96_v43 = vadd.f32 %v95_v39, %v94_v33  ;;  %v105_v44 = vadd.f32 %v104_v40, %v103_v34 }
  0x12   :  { %v48_v46 = vadd.f32 %v47_v41, %v46_v37  ;;  %v57_v47 = vadd.f32 %v56_v42, %v55_v38  ;;  %v97_v48 = vrot.slane %v96_v43, 2  ;;  %v106_v49 = vrot.slane %v105_v44, 2 }
  0x14   :  { %v49_v50 = vrot.slane %v48_v46, 1  ;;  %v58_v51 = vrot.slane %v57_v47, 1  ;;  %v98_v52 = vadd.f32 %v97_v48, %v96_v43  ;;  %v107_v53 = vadd.f32 %v106_v49, %v105_v44 }
  0x16   :  { %v50_v55 = vadd.f32 %v49_v50, %v48_v46  ;;  %v59_v56 = vadd.f32 %v58_v51, %v57_v47  ;;  %v99_v57 = vrot.slane %v98_v52, 1  ;;  %v108_v58 = vrot.slane %v107_v53, 1 }
  0x18   :  { %v62_v59 = vcombine.low %v50_v55, %v59_v56  ;;  %v100_v60 = vadd.f32 %v99_v57, %v98_v52  ;;  %v109_v61 = vadd.f32 %v108_v58, %v107_v53 }
  0x1a   :  { %v69_v62 = vrot.slane %v62_v59, %v68_v54  ;;  %v112_v63 = vcombine.low %v100_v60, %v109_v61 }
  0x1c   :  { %v76_v2 = vrot.slane %v69_v62, %v68_v54  ;;  %v119_v3 = vrot.slane %v112_v63, %v68_v54 }
  0x1e   :  { %v78_v5 = vadd.f32 %v76_v2, %v40_v1  ;;  %v126_v6 = vrot.slane %v119_v3, %v68_v54 }
  0x20   :  { %83 = vst.msk [vmem:[%s219_s1] ss:$2 sm:$0x3] %vm186_vm2, %v78_v5  ;;  %v128_v8 = vadd.f32 %v149_v7, %v126_v6 }
  0x22   :  { %150 = vst.msk [vmem:[%s219_s1 + $0x1] ss:$2 sm:$0x3] %vm186_vm2, %v128_v8 }
  0x27   :  { %v133_v0 = vld [vmem:[%s219_s1] ss:$2 sm:$0x3] }
  0x28   :  { %v134_v9 = vmul.f32 0.055555556, %v133_v0 }
  0x29   :  { %v151_v10 = vld [vmem:[%s219_s1 + $0x1] ss:$2 sm:$0x3] }
  0x2a   :  { %v136_v11 = vmul.f32 0.055555556, %v151_v10  ;;  %v137_v12 = vmul.f32 %v134_v9, %v134_v9  ;;  %v142_v15 = vsub.f32 0.0, %v134_v9 }
  0x2c   :  { %v138_v13 = vsub.f32 %v136_v11, %v137_v12 }
  0x2e   :  { %v139_v14 = vadd.f32 1e-05, %v138_v13 }
  0x30   :  { %155 = vrsqrt.f32 %v139_v14 }
  0x3a   :  { %v156_v16 = vpop.eup %155 }
  0x3b   :  { %141 = vst.msk [vmem:[%s219_s1] ss:$2 sm:$0x3] %vm186_vm2, %v156_v16  ;;  %v143_v17 = vmul.f32 %v156_v16, %v142_v15 }
  0x3d   :  { %152 = vst.msk [vmem:[%s219_s1 + $0x1] ss:$2 sm:$0x3] %vm186_vm2, %v143_v17 }

// kernel: resnet_forward.56
= control target key start
LH: loop header
LB: loop body
LE: loop exit
PB: predicated region body
PF: predicated region fallthrough
CT: control target
= control target key end

     0   :  { %v405_v0 = vmov 0.0   ;;  %v50_v4 = vlaneseq  ;;  %v406_v5 = vmov 1966171168   ;;  %vm88_vm0 = vcmask 1041408   ;;  %s622_s1 = inlined_call_operand.vmem [shape: f32[2,1024], index: 1, kind: output, shape index: {}]   ;;  %s623_s0 = inlined_call_operand.vmem [shape: bf16[18,1024], index: 0, kind: input, shape index: {}]  }
   0x1   :  { %12 = vst [vmem:[%s622_s1] sm:$0xff] %v405_v0  ;;  %13 = vst [vmem:[%s622_s1 + $0x8] sm:$0xff] %v405_v0  ;;  %v14_v1 = vld [vmem:[%s623_s0] sm:$0xff]  ;;  %v15_v2 = vld [vmem:[%s623_s0 + $0x8] sm:$0xff]  ;;  %v173_v6 = vunpack.c.l.s4 %v406_v5 }
   0x2   :  { %v16_v3 = vld [vmem:[%s623_s0 + $0x10] sm:$0xff]  ;;  %v17_v7 = vld [vmem:[%s623_s0 + $0x18] sm:$0xff]  ;;  %v18_v8 = vld [vmem:[%s623_s0 + $0x20] sm:$0xff]  ;;  %v26_v10 = vunpack.c.l.bf16 %v14_v1  ;;  %v27_v11 = vunpack.c.h.bf16 %v14_v1  ;;  %v28_v12 = vunpack.c.l.bf16 %v15_v2  ;;  %v29_v13 = vunpack.c.h.bf16 %v15_v2 }
   0x3   :  { %v19_v9 = vld [vmem:[%s623_s0 + $0x28] sm:$0xff]  ;;  %v20_v14 = vld [vmem:[%s623_s0 + $0x30] sm:$0xff]  ;;  %v21_v15 = vld [vmem:[%s623_s0 + $0x38] sm:$0xff]  ;;  %v30_v17 = vunpack.c.l.bf16 %v16_v3  ;;  %v31_v18 = vunpack.c.h.bf16 %v16_v3  ;;  %v32_v19 = vunpack.c.l.bf16 %v17_v7  ;;  %v450_v20 = vunpack.c.h.bf16 %v17_v7 }
   0x4   :  { %v22_v16 = vld [vmem:[%s623_s0 + $0x40] sm:$0x11]  ;;  %v23_v21 = vld [vmem:[%s623_s0 + $0x48] sm:$0x11]  ;;  %v24_v22 = vld [vmem:[%s623_s0 + $0x50] sm:$0x11]  ;;  %v461_v24 = vunpack.c.l.bf16 %v18_v8  ;;  %v463_v25 = vunpack.c.h.bf16 %v18_v8  ;;  %v465_v26 = vunpack.c.l.bf16 %v19_v9  ;;  %v467_v27 = vunpack.c.h.bf16 %v19_v9 }
   0x5   :  { %v25_v23 = vld [vmem:[%s623_s0 + $0x58] sm:$0x11]  ;;  %v469_v28 = vunpack.c.l.bf16 %v20_v14  ;;  %v471_v29 = vunpack.c.h.bf16 %v20_v14  ;;  %v473_v30 = vunpack.c.l.bf16 %v21_v15  ;;  %v475_v31 = vunpack.c.h.bf16 %v21_v15 }
   0x6   :  { %v42_v32 = vunpack.c.l.bf16 %v22_v16  ;;  %v43_v33 = vunpack.c.h.bf16 %v22_v16  ;;  %v44_v34 = vunpack.c.l.bf16 %v23_v21  ;;  %v45_v35 = vunpack.c.h.bf16 %v23_v21 }
   0x7   :  { %v46_v36 = vunpack.c.l.bf16 %v24_v22  ;;  %v47_v37 = vunpack.c.h.bf16 %v24_v22  ;;  %v48_v38 = vunpack.c.l.bf16 %v25_v23  ;;  %v49_v39 = vunpack.c.h.bf16 %v25_v23 }
   0x8   :  { %v51_v40 = vshrl.u32 %v50_v4, 7  ;;  %v87_v41 = vadd.f32 %v461_v24, %v26_v10  ;;  %v97_v42 = vadd.f32 %v463_v25, %v27_v11  ;;  %v106_v43 = vadd.f32 %v465_v26, %v28_v12 }
   0x9   :  { %v115_v44 = vadd.f32 %v467_v27, %v29_v13  ;;  %v124_v45 = vadd.f32 %v469_v28, %v30_v17  ;;  %v133_v46 = vadd.f32 %v471_v29, %v31_v18  ;;  %v142_v47 = vadd.f32 %v473_v30, %v32_v19 }
   0xa   :  { %v53_v48 = vadd.s32 16, %v51_v40  ;;  %v151_v49 = vadd.f32 %v475_v31, %v450_v20  ;;  %v174_v50 = vunpack.c.0.s8 %v173_v6  ;;  %v486_v51 = vmul.f32 %v26_v10, %v26_v10 }
   0xb   :  { %v488_v52 = vmul.f32 %v27_v11, %v27_v11  ;;  %v490_v53 = vmul.f32 %v28_v12, %v28_v12  ;;  %v492_v54 = vmul.f32 %v29_v13, %v29_v13  ;;  %v494_v55 = vmul.f32 %v30_v17, %v30_v17 }
   0xc   :  { %vm61_vm1 = vcmp.lt.s32.totalorder %v53_v48, 18  ;;  %v496_v56 = vsub.s32 %v174_v50, %v51_v40  ;;  %v498_v57 = vmul.f32 %v31_v18, %v31_v18  ;;  %v500_v58 = vmul.f32 %v32_v19, %v32_v19 }
   0xd   :  { %v502_v59 = vsel %vm61_vm1, %v42_v32, 0.0  ;;  %v504_v60 = vsel %vm61_vm1, %v43_v33, 0.0  ;;  %v506_v61 = vsel %vm61_vm1, %v44_v34, 0.0  ;;  %v508_v62 = vsel %vm61_vm1, %v45_v35, 0.0 }
   0xe   :  { %v510_v63 = vsel %vm61_vm1, %v46_v36, 0.0  ;;  %v512_v0 = vsel %vm61_vm1, %v47_v37, 0.0  ;;  %v514_v1 = vsel %vm61_vm1, %v48_v38, 0.0  ;;  %v516_v2 = vsel %vm61_vm1, %v49_v39, 0.0 }
   0xf   :  { %v89_v3 = vsel %vm88_vm0, %v502_v59, 0.0  ;;  %v98_v4 = vsel %vm88_vm0, %v504_v60, 0.0  ;;  %v107_v5 = vsel %vm88_vm0, %v506_v61, 0.0  ;;  %v116_v6 = vsel %vm88_vm0, %v508_v62, 0.0 }
  0x10   :  { %v90_v7 = vadd.f32 %v89_v3, %v87_v41  ;;  %v99_v8 = vadd.f32 %v98_v4, %v97_v42  ;;  %v108_v9 = vadd.f32 %v107_v5, %v106_v43  ;;  %v117_v10 = vadd.f32 %v116_v6, %v115_v44 }
  0x11   :  { %v125_v11 = vsel %vm88_vm0, %v510_v63, 0.0  ;;  %v134_v12 = vsel %vm88_vm0, %v512_v0, 0.0  ;;  %v143_v13 = vsel %vm88_vm0, %v514_v1, 0.0  ;;  %v152_v14 = vsel %vm88_vm0, %v516_v2, 0.0 }
  0x12   :  { %v91_v15 = vrot.slane %v90_v7, 4  ;;  %v100_v16 = vrot.slane %v99_v8, 4  ;;  %v109_v17 = vrot.slane %v108_v9, 4  ;;  %v118_v18 = vrot.slane %v117_v10, 4 }
  0x13   :  { %v126_v19 = vadd.f32 %v125_v11, %v124_v45  ;;  %v135_v21 = vadd.f32 %v134_v12, %v133_v46  ;;  %v144_v22 = vadd.f32 %v143_v13, %v142_v47  ;;  %v153_v23 = vadd.f32 %v152_v14, %v151_v49 }
  0x14   :  { %v92_v32 = vadd.f32 %v91_v15, %v90_v7  ;;  %v101_v33 = vadd.f32 %v100_v16, %v99_v8  ;;  %v110_v34 = vadd.f32 %v109_v17, %v108_v9  ;;  %v119_v35 = vadd.f32 %v118_v18, %v117_v10 }
  0x15   :  { %v127_v36 = vrot.slane %v126_v19, 4  ;;  %v136_v37 = vrot.slane %v135_v21, 4  ;;  %v145_v38 = vrot.slane %v144_v22, 4  ;;  %v154_v39 = vrot.slane %v153_v23, 4 }
  0x16   :  { %v93_v40 = vrot.slane %v92_v32, 2  ;;  %v102_v41 = vrot.slane %v101_v33, 2  ;;  %v111_v42 = vrot.slane %v110_v34, 2  ;;  %v120_v43 = vrot.slane %v119_v35, 2 }
  0x17   :  { %v128_v44 = vadd.f32 %v127_v36, %v126_v19  ;;  %v137_v48 = vadd.f32 %v136_v37, %v135_v21  ;;  %v146_v50 = vadd.f32 %v145_v38, %v144_v22  ;;  %v155_v3 = vadd.f32 %v154_v39, %v153_v23 }
  0x18   :  { %v94_v45 = vadd.f32 %v93_v40, %v92_v32  ;;  %v103_v46 = vadd.f32 %v102_v41, %v101_v33  ;;  %v112_v47 = vadd.f32 %v111_v42, %v110_v34  ;;  %v121_v49 = vadd.f32 %v120_v43, %v119_v35 }
  0x19   :  { %v129_v4 = vrot.slane %v128_v44, 2  ;;  %v138_v5 = vrot.slane %v137_v48, 2  ;;  %v147_v6 = vrot.slane %v146_v50, 2  ;;  %v156_v7 = vrot.slane %v155_v3, 2 }
  0x1a   :  { %v95_v8 = vrot.slane %v94_v45, 1  ;;  %v104_v9 = vrot.slane %v103_v46, 1  ;;  %v113_v10 = vrot.slane %v112_v47, 1  ;;  %v122_v11 = vrot.slane %v121_v49, 1 }
  0x1b   :  { %v130_v12 = vadd.f32 %v129_v4, %v128_v44  ;;  %v139_v13 = vadd.f32 %v138_v5, %v137_v48  ;;  %v148_v14 = vadd.f32 %v147_v6, %v146_v50  ;;  %v157_v15 = vadd.f32 %v156_v7, %v155_v3 }
  0x1c   :  { %v96_v16 = vadd.f32 %v95_v8, %v94_v45  ;;  %v105_v17 = vadd.f32 %v104_v9, %v103_v46  ;;  %v114_v18 = vadd.f32 %v113_v10, %v112_v47  ;;  %v123_v19 = vadd.f32 %v122_v11, %v121_v49 }
  0x1d   :  { %v131_v21 = vrot.slane %v130_v12, 1  ;;  %v140_v22 = vrot.slane %v139_v13, 1  ;;  %v149_v23 = vrot.slane %v148_v14, 1  ;;  %v158_v32 = vrot.slane %v157_v15, 1 }
  0x1e   :  { %v168_v33 = vcombine.low %v96_v16, %v105_v17  ;;  %v169_v34 = vcombine.low %v114_v18, %v123_v19  ;;  %v536_v35 = vmul.f32 %v450_v20, %v450_v20  ;;  %v230_v36 = vmul.f32 %v461_v24, %v461_v24 }
  0x1f   :  { %v132_v37 = vadd.f32 %v131_v21, %v130_v12  ;;  %v141_v38 = vadd.f32 %v140_v22, %v139_v13  ;;  %v150_v39 = vadd.f32 %v149_v23, %v148_v14  ;;  %v159_v40 = vadd.f32 %v158_v32, %v157_v15 }
  0x20   :  { %v178_v41 = vrot.slane %v168_v33, %v496_v56  ;;  %v185_v42 = vrot.slane %v169_v34, %v496_v56  ;;  %v231_v43 = vmul.f32 %v463_v25, %v463_v25  ;;  %v232_v44 = vmul.f32 %v465_v26, %v465_v26 }
  0x21   :  { %v170_v48 = vcombine.low %v132_v37, %v141_v38  ;;  %v171_v20 = vcombine.low %v150_v39, %v159_v40  ;;  %v233_v50 = vmul.f32 %v467_v27, %v467_v27  ;;  %v234_v24 = vmul.f32 %v469_v28, %v469_v28 }
  0x22   :  { %v200_v3 = vcombine.low %v178_v41, %v185_v42  ;;  %v235_v45 = vmul.f32 %v471_v29, %v471_v29  ;;  %v236_v46 = vmul.f32 %v473_v30, %v473_v30  ;;  %v237_v25 = vmul.f32 %v475_v31, %v475_v31 }
  0x23   :  { %v192_v26 = vrot.slane %v170_v48, %v496_v56  ;;  %v199_v47 = vrot.slane %v171_v20, %v496_v56  ;;  %v238_v27 = vmul.f32 %v502_v59, %v502_v59  ;;  %v239_v28 = vmul.f32 %v504_v60, %v504_v60 }
  0x24   :  { %v208_v49 = vrot.slane %v200_v3, %v496_v56  ;;  %v240_v29 = vmul.f32 %v506_v61, %v506_v61  ;;  %v241_v30 = vmul.f32 %v508_v62, %v508_v62  ;;  %v242_v31 = vmul.f32 %v510_v63, %v510_v63 }
  0x25   :  { %v201_v4 = vcombine.low %v192_v26, %v199_v47  ;;  %v243_v5 = vmul.f32 %v512_v0, %v512_v0  ;;  %v244_v59 = vmul.f32 %v514_v1, %v514_v1  ;;  %v245_v60 = vmul.f32 %v516_v2, %v516_v2  ;;  %v86_v1 = vld [vmem:[%s622_s1] ss:$2 sm:$0xff] }
  0x26   :  { %v246_v6 = vadd.f32 %v230_v36, %v486_v51  ;;  %v247_v61 = vsel %vm88_vm0, %v238_v27, 0.0  ;;  %v255_v7 = vadd.f32 %v231_v43, %v488_v52  ;;  %v256_v62 = vsel %vm88_vm0, %v239_v28, 0.0 }
  0x27   :  { %v215_v63 = vrot.slane %v201_v4, %v496_v56  ;;  %v264_v8 = vadd.f32 %v232_v44, %v490_v53  ;;  %v265_v0 = vsel %vm88_vm0, %v240_v29, 0.0  ;;  %v273_v9 = vadd.f32 %v233_v50, %v492_v54 }
  0x28   :  { %v248_v2 = vadd.f32 %v247_v61, %v246_v6  ;;  %v257_v51 = vadd.f32 %v256_v62, %v255_v7  ;;  %v274_v10 = vsel %vm88_vm0, %v241_v30, 0.0  ;;  %v282_v52 = vadd.f32 %v234_v24, %v494_v55 }
  0x29   :  { %v216_v11 = vcombine.low %v208_v49, %v215_v63  ;;  %v266_v12 = vadd.f32 %v265_v0, %v264_v8  ;;  %v275_v13 = vadd.f32 %v274_v10, %v273_v9  ;;  %v283_v14 = vsel %vm88_vm0, %v242_v31, 0.0 }
  0x2a   :  { %v249_v53 = vrot.slane %v248_v2, 4  ;;  %v258_v15 = vrot.slane %v257_v51, 4  ;;  %v284_v16 = vadd.f32 %v283_v14, %v282_v52  ;;  %v291_v54 = vadd.f32 %v235_v45, %v498_v57 }
  0x2b   :  { %v218_v17 = vadd.f32 %v216_v11, %v86_v1  ;;  %v267_v18 = vrot.slane %v266_v12, 4  ;;  %v276_v19 = vrot.slane %v275_v13, 4  ;;  %v292_v21 = vsel %vm88_vm0, %v243_v5, 0.0 }
  0x2c   :  { %v250_v22 = vadd.f32 %v249_v53, %v248_v2  ;;  %v259_v23 = vadd.f32 %v258_v15, %v257_v51  ;;  %v285_v32 = vrot.slane %v284_v16, 4  ;;  %v293_v33 = vadd.f32 %v292_v21, %v291_v54 }
  0x2d   :  { %219 = vst [vmem:[%s622_s1] ss:$2 sm:$0xff] %v218_v17  ;;  %v268_v55 = vadd.f32 %v267_v18, %v266_v12  ;;  %v277_v34 = vadd.f32 %v276_v19, %v275_v13  ;;  %v300_v36 = vadd.f32 %v236_v46, %v500_v58  ;;  %v301_v37 = vsel %vm88_vm0, %v244_v59, 0.0 }
  0x2e   :  { %v251_v57 = vrot.slane %v250_v22, 2  ;;  %v260_v38 = vrot.slane %v259_v23, 2  ;;  %v286_v39 = vadd.f32 %v285_v32, %v284_v16  ;;  %v294_v40 = vrot.slane %v293_v33, 4 }
  0x2f   :  { %v269_v41 = vrot.slane %v268_v55, 2  ;;  %v278_v42 = vrot.slane %v277_v34, 2  ;;  %v302_v43 = vadd.f32 %v301_v37, %v300_v36  ;;  %v309_v44 = vadd.f32 %v237_v25, %v536_v35 }
  0x30   :  { %v252_v48 = vadd.f32 %v251_v57, %v250_v22  ;;  %v261_v20 = vadd.f32 %v260_v38, %v259_v23  ;;  %v287_v50 = vrot.slane %v286_v39, 2  ;;  %v295_v24 = vadd.f32 %v294_v40, %v293_v33  ;;  %v397_v23 = vld [vmem:[%s622_s1 + $0x1] ss:$2 sm:$0xff] }
  0x31   :  { %v270_v3 = vadd.f32 %v269_v41, %v268_v55  ;;  %v279_v45 = vadd.f32 %v278_v42, %v277_v34  ;;  %v303_v26 = vrot.slane %v302_v43, 4  ;;  %v310_v58 = vsel %vm88_vm0, %v245_v60, 0.0 }
  0x32   :  { %v253_v46 = vrot.slane %v252_v48, 1  ;;  %v262_v47 = vrot.slane %v261_v20, 1  ;;  %v288_v27 = vadd.f32 %v287_v50, %v286_v39  ;;  %v296_v28 = vrot.slane %v295_v24, 2 }
  0x33   :  { %v271_v49 = vrot.slane %v270_v3, 1  ;;  %v280_v29 = vrot.slane %v279_v45, 1  ;;  %v304_v30 = vadd.f32 %v303_v26, %v302_v43  ;;  %v311_v31 = vadd.f32 %v310_v58, %v309_v44 }
  0x34   :  { %v254_v4 = vadd.f32 %v253_v46, %v252_v48  ;;  %v263_v5 = vadd.f32 %v262_v47, %v261_v20  ;;  %v289_v35 = vrot.slane %v288_v27, 1  ;;  %v297_v25 = vadd.f32 %v296_v28, %v295_v24  ;;  %v381_v33 = vld [vmem:[%s622_s1] ss:$2 sm:$0xff] }
  0x35   :  { %v272_v59 = vadd.f32 %v271_v49, %v270_v3  ;;  %v281_v6 = vadd.f32 %v280_v29, %v279_v45  ;;  %v305_v61 = vrot.slane %v304_v30, 2  ;;  %v312_v7 = vrot.slane %v311_v31, 4 }
  0x36   :  { %v298_v62 = vrot.slane %v297_v25, 1  ;;  %v290_v60 = vadd.f32 %v289_v35, %v288_v27  ;;  %v326_v0 = vcombine.low %v254_v4, %v263_v5  ;;  %v382_v55 = vmul.f32 0.055555556, %v381_v33 }
  0x37   :  { %v306_v63 = vadd.f32 %v305_v61, %v304_v30  ;;  %v313_v8 = vadd.f32 %v312_v7, %v311_v31  ;;  %v327_v51 = vcombine.low %v272_v59, %v281_v6 }
  0x38   :  { %v299_v9 = vadd.f32 %v298_v62, %v297_v25  ;;  %v336_v52 = vrot.slane %v326_v0, %v496_v56  ;;  %v385_v34 = vmul.f32 %v382_v55, %v382_v55  ;;  %v390_v38 = vsub.f32 0.0, %v382_v55 }
  0x39   :  { %v307_v1 = vrot.slane %v306_v63, 1  ;;  %v314_v2 = vrot.slane %v313_v8, 2  ;;  %v343_v14 = vrot.slane %v327_v51, %v496_v56 }
  0x3a   :  { %v328_v13 = vcombine.low %v290_v60, %v299_v9 }
  0x3b   :  { %v315_v10 = vadd.f32 %v314_v2, %v313_v8  ;;  %v308_v11 = vadd.f32 %v307_v1, %v306_v63  ;;  %v358_v54 = vcombine.low %v336_v52, %v343_v14 }
  0x3c   :  { %v350_v16 = vrot.slane %v328_v13, %v496_v56 }
  0x3d   :  { %v316_v12 = vrot.slane %v315_v10, 1  ;;  %v366_v19 = vrot.slane %v358_v54, %v496_v56 }
  0x3f   :  { %v317_v53 = vadd.f32 %v316_v12, %v315_v10 }
  0x41   :  { %v329_v15 = vcombine.low %v308_v11, %v317_v53 }
  0x43   :  { %v357_v17 = vrot.slane %v329_v15, %v496_v56 }
  0x45   :  { %v359_v18 = vcombine.low %v350_v16, %v357_v17 }
  0x47   :  { %v373_v21 = vrot.slane %v359_v18, %v496_v56 }
  0x49   :  { %v374_v22 = vcombine.low %v366_v19, %v373_v21 }
  0x4b   :  { %v376_v32 = vadd.f32 %v397_v23, %v374_v22 }
  0x4d   :  { %398 = vst [vmem:[%s622_s1 + $0x1] ss:$2 sm:$0xff] %v376_v32 }
  0x54   :  { %v399_v56 = vld [vmem:[%s622_s1 + $0x1] ss:$2 sm:$0xff] }
  0x55   :  { %v384_v36 = vmul.f32 0.055555556, %v399_v56 }
  0x57   :  { %v386_v37 = vsub.f32 %v384_v36, %v385_v34 }
  0x59   :  { %v387_v57 = vadd.f32 1e-05, %v386_v37 }
  0x5b   :  { %403 = vrsqrt.f32 %v387_v57 }
  0x65   :  { %v404_v39 = vpop.eup %403 }
  0x66   :  { %389 = vst [vmem:[%s622_s1] ss:$2 sm:$0xff] %v404_v39  ;;  %v391_v40 = vmul.f32 %v404_v39, %v390_v38 }
  0x68   :  { %400 = vst [vmem:[%s622_s1 + $0x1] ss:$2 sm:$0xff] %v391_v40 }

// kernel: resnet_forward.55
= control target key start
LH: loop header
LB: loop body
LE: loop exit
PB: predicated region body
PF: predicated region fallthrough
CT: control target
= control target key end

     0   :  { %s1234_s15 = smov 0   ;;  %s1236_s16 = smov 0   ;;  %s1451_s0 = inlined_call_operand.vmem [shape: f32[1,256], index: 0, kind: input, shape index: {}]   ;;  %s1452_s1 = inlined_call_operand.vmem [shape: f32[1,256], index: 1, kind: input, shape index: {}]   ;;  %s1453_s2 = inlined_call_operand.vmem [shape: bf16[18,256], index: 2, kind: input, shape index: {}]   ;;  %s1454_s3 = inlined_call_operand.vmem [shape: bf16[256,1024], index: 3, kind: input, shape index: {}]   ;;  %s1455_s4 = inlined_call_operand.vmem [shape: bf16[18,1024], index: 4, kind: output, shape index: {}]  }
   0x1   :  { %s1238_s17 = smov 0   ;;  %s1240_s18 = smov 0  }
   0x2   :  { %s1242_s19 = smov 0  }
   0x3 LB: > { %s29_s20 = sadd.s32 1, %s1202_s18  ;;  %s990_s21 = sadd.s32 4294967295, %s1206_s19   ;;  %s1206_s19 = sphi %s1242_s19, %s14_s19   ;;  %s1202_s18 = sphi %s1240_s18, %s1460_s18   ;;  %s1198_s17 = sphi %s1238_s17, %s1459_s17   ;;  %s1194_s16 = sphi %s1236_s16, %s1458_s16   ;;  %s1190_s15 = sphi %s1234_s15, %s1457_s15  }
   0x4   : > { %p31_p0 = scmp.ge.s32.totalorder %s29_s20, 4  ;;  %p129_p1 = scmp.ne.s32.totalorder %s1194_s16, %s1190_s15 }
   0x5   : > { %p130_p2 = scmp.eq.s32.totalorder %s1206_s19, 0  ;;  %p161_p4 = scmp.eq.s32.totalorder %s990_s21, 3 }
   0x6   : > { %s1462_s20 = smov (%p31_p0, %s29_s20), 0  ;;  %s122_s23 = sadd.s32 1, %s1194_s16 }
   0x7   : > { %p131_p3 = por %p130_p2, %p129_p1  ;;  %s118_s22 = ssub.s32 %s1202_s18, %s1462_s20 }
   0x8   : > { %p120_p5 = scmp.eq.s32.totalorder %s118_s22, 0  ;;  %p1269_p6 = por %p161_p4, %p129_p1 }
   0x9   : > { %p996_p7 = scmp.ge.s32.totalorder %s1206_s19, 4 }
   0xa   : > { %s1274_s25 = scalar_select %p120_p5, %s1194_s16, %s122_s23  }
   0xb   : > { %214 = sbr.rel (%p996_p7) target bundleno = 54 (0x36), region = 28 }
  0x12   : > { %217 = sbr.rel (!%p131_p3) target bundleno = 54 (0x36), region = 32  ;;  %s219_s26 = sand.u32 (%p131_p3), 1, %s1194_s16  }
  0x13   : > { %s1041_s27 = sshll.u32 (%p131_p3), %s1202_s18, 3  ;;  %s997_s28 = sshll.u32 (%p131_p3), %s219_s26, 8 }
  0x14   : > { %s1282_s5 = scalar_lea.vmem (%p131_p3), %s1454_s3, %s1041_s27  ;;  %s1287_s6 = scalar_lea.vmem (%p131_p3), [#allocation3], %s997_s28 }
  0x15   : > { %v317_v0 = vld [vmem:[%s1282_s5] sm:$0xff] (%p131_p3) }
  0x16   : > { %v319_v1 = vld [vmem:[%s1282_s5 + $0x20] sm:$0xff] (%p131_p3)  ;;  %318 = vst [vmem:[%s1287_s6] sm:$0xff] (%p131_p3), %v317_v0 }
  0x17   : > { %v321_v2 = vld [vmem:[%s1282_s5 + $0x40] sm:$0xff] (%p131_p3)  ;;  %320 = vst [vmem:[%s1287_s6 + $0x8] sm:$0xff] (%p131_p3), %v319_v1 }
  0x18   : > { %322 = vst [vmem:[%s1287_s6 + $0x10] sm:$0xff] (%p131_p3), %v321_v2  ;;  %v323_v3 = vld [vmem:[%s1282_s5 + $0x60] sm:$0xff] (%p131_p3) }
  0x19   : > { %v325_v4 = vld [vmem:[%s1282_s5 + $0x80] sm:$0xff]  ;;  %324 = vst [vmem:[%s1287_s6 + $0x18] sm:$0xff] %v323_v3 }
  0x1a   : > { %v327_v5 = vld [vmem:[%s1282_s5 + $0xa0] sm:$0xff]  ;;  %326 = vst [vmem:[%s1287_s6 + $0x20] sm:$0xff] %v325_v4 }
  0x1b   : > { %328 = vst [vmem:[%s1287_s6 + $0x28] sm:$0xff] %v327_v5  ;;  %v329_v6 = vld [vmem:[%s1282_s5 + $0xc0] sm:$0xff] }
  0x1c   : > { %v331_v7 = vld [vmem:[%s1282_s5 + $0xe0] sm:$0xff]  ;;  %330 = vst [vmem:[%s1287_s6 + $0x30] sm:$0xff] %v329_v6 }
  0x1d   : > { %v333_v8 = vld [vmem:[%s1282_s5 + $0x100] sm:$0xff]  ;;  %332 = vst [vmem:[%s1287_s6 + $0x38] sm:$0xff] %v331_v7 }
  0x1e   : > { %334 = vst [vmem:[%s1287_s6 + $0x40] sm:$0xff] %v333_v8  ;;  %v335_v9 = vld [vmem:[%s1282_s5 + $0x120] sm:$0xff] }
  0x1f   : > { %v337_v10 = vld [vmem:[%s1282_s5 + $0x140] sm:$0xff]  ;;  %336 = vst [vmem:[%s1287_s6 + $0x48] sm:$0xff] %v335_v9 }
  0x20   : > { %v339_v11 = vld [vmem:[%s1282_s5 + $0x160] sm:$0xff]  ;;  %338 = vst [vmem:[%s1287_s6 + $0x50] sm:$0xff] %v337_v10 }
  0x21   : > { %340 = vst [vmem:[%s1287_s6 + $0x58] sm:$0xff] %v339_v11  ;;  %v341_v12 = vld [vmem:[%s1282_s5 + $0x180] sm:$0xff] }
  0x22   : > { %v343_v13 = vld [vmem:[%s1282_s5 + $0x1a0] sm:$0xff]  ;;  %342 = vst [vmem:[%s1287_s6 + $0x60] sm:$0xff] %v341_v12 }
  0x23   : > { %v345_v14 = vld [vmem:[%s1282_s5 + $0x1c0] sm:$0xff]  ;;  %344 = vst [vmem:[%s1287_s6 + $0x68] sm:$0xff] %v343_v13 }
  0x24   : > { %346 = vst [vmem:[%s1287_s6 + $0x70] sm:$0xff] %v345_v14  ;;  %v347_v15 = vld [vmem:[%s1282_s5 + $0x1e0] sm:$0xff] }
  0x25   : > { %v349_v16 = vld [vmem:[%s1282_s5 + $0x200] sm:$0xff]  ;;  %348 = vst [vmem:[%s1287_s6 + $0x78] sm:$0xff] %v347_v15 }
  0x26   : > { %v351_v17 = vld [vmem:[%s1282_s5 + $0x220] sm:$0xff]  ;;  %350 = vst [vmem:[%s1287_s6 + $0x80] sm:$0xff] %v349_v16 }
  0x27   : > { %352 = vst [vmem:[%s1287_s6 + $0x88] sm:$0xff] %v351_v17  ;;  %v353_v18 = vld [vmem:[%s1282_s5 + $0x240] sm:$0xff] }
  0x28   : > { %v355_v19 = vld [vmem:[%s1282_s5 + $0x260] sm:$0xff]  ;;  %354 = vst [vmem:[%s1287_s6 + $0x90] sm:$0xff] %v353_v18 }
  0x29   : > { %v357_v20 = vld [vmem:[%s1282_s5 + $0x280] sm:$0xff]  ;;  %356 = vst [vmem:[%s1287_s6 + $0x98] sm:$0xff] %v355_v19 }
  0x2a   : > { %358 = vst [vmem:[%s1287_s6 + $0xa0] sm:$0xff] %v357_v20  ;;  %v359_v21 = vld [vmem:[%s1282_s5 + $0x2a0] sm:$0xff] }
  0x2b   : > { %v361_v22 = vld [vmem:[%s1282_s5 + $0x2c0] sm:$0xff]  ;;  %360 = vst [vmem:[%s1287_s6 + $0xa8] sm:$0xff] %v359_v21 }
  0x2c   : > { %v363_v23 = vld [vmem:[%s1282_s5 + $0x2e0] sm:$0xff]  ;;  %362 = vst [vmem:[%s1287_s6 + $0xb0] sm:$0xff] %v361_v22 }
  0x2d   : > { %364 = vst [vmem:[%s1287_s6 + $0xb8] sm:$0xff] %v363_v23  ;;  %v365_v24 = vld [vmem:[%s1282_s5 + $0x300] sm:$0xff] }
  0x2e   : > { %v367_v25 = vld [vmem:[%s1282_s5 + $0x320] sm:$0xff]  ;;  %366 = vst [vmem:[%s1287_s6 + $0xc0] sm:$0xff] %v365_v24 }
  0x2f   : > { %v369_v26 = vld [vmem:[%s1282_s5 + $0x340] sm:$0xff]  ;;  %368 = vst [vmem:[%s1287_s6 + $0xc8] sm:$0xff] %v367_v25 }
  0x30   : > { %370 = vst [vmem:[%s1287_s6 + $0xd0] sm:$0xff] %v369_v26  ;;  %v371_v27 = vld [vmem:[%s1282_s5 + $0x360] sm:$0xff] }
  0x31   : > { %v373_v28 = vld [vmem:[%s1282_s5 + $0x380] sm:$0xff]  ;;  %372 = vst [vmem:[%s1287_s6 + $0xd8] sm:$0xff] %v371_v27 }
  0x32   : > { %v375_v29 = vld [vmem:[%s1282_s5 + $0x3a0] sm:$0xff]  ;;  %374 = vst [vmem:[%s1287_s6 + $0xe0] sm:$0xff] %v373_v28 }
  0x33   : > { %376 = vst [vmem:[%s1287_s6 + $0xe8] sm:$0xff] %v375_v29  ;;  %v377_v30 = vld [vmem:[%s1282_s5 + $0x3c0] sm:$0xff] }
  0x34   : > { %v379_v31 = vld [vmem:[%s1282_s5 + $0x3e0] sm:$0xff]  ;;  %378 = vst [vmem:[%s1287_s6 + $0xf0] sm:$0xff] %v377_v30 }
  0x35   : > { %380 = vst [vmem:[%s1287_s6 + $0xf8] sm:$0xff] %v379_v31 }
  0x36 PF: > { %p1000_p8 = scmp.ge.s32.totalorder %s1206_s19, 1  ;;  %p385_p9 = scmp.lt.s32.totalorder %s1206_s19, 5 }
  0x38   : > { %p386_p10 = pnand %p1000_p8, %p385_p9 }
  0x39   : > { %s392_s7 = sand.u32 (!%p386_p10), 1, %s1190_s15   ;;  %v481_v32 = vlaneseq (!%p386_p10)  ;;  %v1358_v33 = vld [vmem:[%s1453_s2] sm:$0xff] (!%p386_p10)  ;;  %v1363_v34 = vld [vmem:[%s1453_s2 + $0x8] sm:$0xff] (!%p386_p10)  ;;  %v1368_v35 = vld [vmem:[%s1453_s2 + $0x10] sm:$0x11] (!%p386_p10)  ;;  %v1208_v36 = vmov (!%p386_p10), 0.0  }
  0x3a   : > { %389 = sbr.rel (%p386_p10) target bundleno = 359 (0x167), region = 70  ;;  %s1001_s8 = sshll.u32 (!%p386_p10), %s392_s7, 8  ;;  %468 = vst [vmem:[#allocation2 + $0x20] sm:$0x3] (!%p386_p10), %v1208_v36  ;;  %469 = vst [vmem:[#allocation2 + $0x28] sm:$0x3] (!%p386_p10), %v1208_v36  ;;  %v474_v42 = vunpack.c.h.bf16 (!%p386_p10), %v1358_v33  ;;  %v476_v43 = vunpack.c.h.bf16 (!%p386_p10), %v1363_v34  ;;  %v478_v45 = vunpack.c.h.bf16 (!%p386_p10), %v1368_v35  ;;  %v473_v19 = vunpack.c.l.bf16 (!%p386_p10), %v1358_v33 }
  0x3b   : > { %v1373_v37 = vld [vmem:[%s1451_s0] sm:$0x3] (!%p386_p10)  ;;  %v1375_v38 = vshrl.u32 (!%p386_p10), %v481_v32, 7  ;;  %s1382_s27 = scalar_lea.vmem (!%p386_p10), [#allocation3], %s1001_s8  ;;  %v475_v20 = vunpack.c.l.bf16 (!%p386_p10), %v1363_v34  ;;  %v477_v22 = vunpack.c.l.bf16 (!%p386_p10), %v1368_v35  ;;  %s1078_s28 = smul.u32 (!%p386_p10), 24, %s392_s7 }
  0x3c   : > { %v1380_v39 = vld [vmem:[%s1452_s1] sm:$0x3] (!%p386_p10)  ;;  %v1120_v40 = vld [vmem:[%s1382_s27 + $0x4] ss:$8 sps:$4 sm:$0xff] (!%p386_p10)   ;;  %v1122_v41 = vld [vmem:[%s1382_s27] ss:$8 sps:$4 sm:$0xff] (!%p386_p10)  }
  0x3d   : > { %v487_v44 = vsub.s32 (!%p386_p10), 1, %v1375_v38  ;;  %723 = vmatprep.subr.bf16.mxu0 (!%p386_p10), %v1120_v40  ;;  %1046 = vmatprep.subr.bf16.mxu1 (!%p386_p10), %v1120_v40  ;;  %v1123_v46 = vld [vmem:[%s1382_s27 + $0x14] ss:$8 sps:$4 sm:$0xff] (!%p386_p10)   ;;  %v1125_v47 = vld [vmem:[%s1382_s27 + $0x10] ss:$8 sps:$4 sm:$0xff] (!%p386_p10)   ;;  %v483_v16 = vsub.s32 (!%p386_p10), 0, %v1375_v38 }
  0x3e   : > { %724 = vmatpush1.bf16.msra.mxu0 (!%p386_p10), %v1122_v41  ;;  %1062 = vmatpush1.bf16.msra.mxu1 (!%p386_p10), %v1122_v41  ;;  %v1126_v49 = vld [vmem:[%s1382_s27 + $0x24] ss:$8 sps:$4 sm:$0xff] (!%p386_p10)   ;;  %v1128_v54 = vld [vmem:[%s1382_s27 + $0x20] ss:$8 sps:$4 sm:$0xff] (!%p386_p10)   ;;  %v1129_v58 = vld [vmem:[%s1382_s27 + $0x34] ss:$8 sps:$4 sm:$0xff] (!%p386_p10)  }
  0x3f   : > { %v488_v48 = vrot.slane (!%p386_p10), %v1373_v37, %v487_v44  ;;  %725 = vmatprep.subr.bf16.mxu0 (!%p386_p10), %v1123_v46  ;;  %1047 = vmatprep.subr.bf16.mxu1 (!%p386_p10), %v1123_v46  ;;  %v506_v50 = vrot.slane (!%p386_p10), %v1380_v39, %v487_v44  ;;  %v1131_v62 = vld [vmem:[%s1382_s27 + $0x30] ss:$8 sps:$4 sm:$0xff] (!%p386_p10)   ;;  %v1132_v0 = vld [vmem:[%s1382_s27 + $0x44] ss:$8 sps:$4 sm:$0xff] (!%p386_p10)   ;;  %v1134_v2 = vld [vmem:[%s1382_s27 + $0x40] ss:$8 sps:$4 sm:$0xff] (!%p386_p10)   ;;  %v484_v21 = vrot.slane (!%p386_p10), %v1373_v37, %v483_v16 }
  0x40   : > { %v1135_v3 = vld [vmem:[%s1382_s27 + $0x54] ss:$8 sps:$4 sm:$0xff] (!%p386_p10)   ;;  %v1137_v4 = vld [vmem:[%s1382_s27 + $0x50] ss:$8 sps:$4 sm:$0xff] (!%p386_p10)   ;;  %v1138_v5 = vld [vmem:[%s1382_s27 + $0x64] ss:$8 sps:$4 sm:$0xff] (!%p386_p10)   ;;  %v502_v25 = vrot.slane (!%p386_p10), %v1380_v39, %v483_v16 }
  0x41   : > { %v492_v51 = vmul.f32 %v488_v48, %v474_v42  ;;  %v494_v52 = vmul.f32 %v488_v48, %v476_v43  ;;  %v496_v53 = vmul.f32 %v488_v48, %v478_v45  ;;  %v1140_v6 = vld [vmem:[%s1382_s27 + $0x60] ss:$8 sps:$4 sm:$0xff]   ;;  %v1141_v7 = vld [vmem:[%s1382_s27 + $0x74] ss:$8 sps:$4 sm:$0xff]   ;;  %v1143_v8 = vld [vmem:[%s1382_s27 + $0x70] ss:$8 sps:$4 sm:$0xff]   ;;  %v491_v26 = vmul.f32 %v484_v21, %v473_v19 }
  0x42   : > { %726 = vmatpush1.bf16.msra.mxu0 %v1125_v47  ;;  %1063 = vmatpush1.bf16.msra.mxu1 %v1125_v47  ;;  %v1144_v9 = vld [vmem:[%s1382_s27 + $0x84] ss:$8 sps:$4 sm:$0xff]   ;;  %v1146_v10 = vld [vmem:[%s1382_s27 + $0x80] ss:$8 sps:$4 sm:$0xff]   ;;  %v1147_v11 = vld [vmem:[%s1382_s27 + $0x94] ss:$8 sps:$4 sm:$0xff]   ;;  %v493_v27 = vmul.f32 %v484_v21, %v475_v20  ;;  %v495_v28 = vmul.f32 %v484_v21, %v477_v22 }
  0x43   : > { %v510_v55 = vadd.f32 %v506_v50, %v492_v51  ;;  %v512_v56 = vadd.f32 %v506_v50, %v494_v52  ;;  %v514_v57 = vadd.f32 %v506_v50, %v496_v53  ;;  %727 = vmatprep.subr.bf16.mxu0 %v1126_v49  ;;  %1048 = vmatprep.subr.bf16.mxu1 %v1126_v49  ;;  %v1149_v12 = vld [vmem:[%s1382_s27 + $0x90] ss:$8 sps:$4 sm:$0xff]   ;;  %v1150_v13 = vld [vmem:[%s1382_s27 + $0xa4] ss:$8 sps:$4 sm:$0xff]   ;;  %v1152_v14 = vld [vmem:[%s1382_s27 + $0xa0] ss:$8 sps:$4 sm:$0xff]  }
  0x44   : > { %v1153_v15 = vld [vmem:[%s1382_s27 + $0xb4] ss:$8 sps:$4 sm:$0xff]   ;;  %v1155_v17 = vld [vmem:[%s1382_s27 + $0xb0] ss:$8 sps:$4 sm:$0xff]   ;;  %v1156_v18 = vld [vmem:[%s1382_s27 + $0xc4] ss:$8 sps:$4 sm:$0xff]   ;;  %v509_v31 = vadd.f32 %v502_v25, %v491_v26  ;;  %v511_v32 = vadd.f32 %v502_v25, %v493_v27  ;;  %v513_v33 = vadd.f32 %v502_v25, %v495_v28 }
  0x45   : > { %v516_v59 = vmax.f32 %v510_v55, 0.0  ;;  %v518_v60 = vmax.f32 %v512_v56, 0.0  ;;  %v520_v61 = vmax.f32 %v514_v57, 0.0  ;;  %v1158_v23 = vld [vmem:[%s1382_s27 + $0xc0] ss:$8 sps:$4 sm:$0xff]   ;;  %s433_s29 = scalar_lea.vmem [#allocation4], %s1078_s28 }
  0x46   : > { %728 = vmatpush1.bf16.msra.mxu0 %v1128_v54  ;;  %1064 = vmatpush1.bf16.msra.mxu1 %v1128_v54  ;;  %v1159_v24 = vld [vmem:[%s1382_s27 + $0xd4] ss:$8 sps:$4 sm:$0xff]   ;;  %v1161_v29 = vld [vmem:[%s1382_s27 + $0xd0] ss:$8 sps:$4 sm:$0xff]   ;;  %v1162_v30 = vld [vmem:[%s1382_s27 + $0xe4] ss:$8 sps:$4 sm:$0xff]  }
  0x47   : > { %v528_v63 = vpack.c.bf16 %v518_v60, %v516_v59  ;;  %729 = vmatprep.subr.bf16.mxu0 %v1129_v58  ;;  %1049 = vmatprep.subr.bf16.mxu1 %v1129_v58  ;;  %v530_v1 = vpack.c.bf16 %v520_v61, %v520_v61  ;;  %v1164_v34 = vld [vmem:[%s1382_s27 + $0xe0] ss:$8 sps:$4 sm:$0xff]   ;;  %v1165_v35 = vld [vmem:[%s1382_s27 + $0xf4] ss:$8 sps:$4 sm:$0xff]   ;;  %v515_v36 = vmax.f32 %v509_v31, 0.0  ;;  %v517_v37 = vmax.f32 %v511_v32, 0.0 }
  0x48   : > { %v519_v38 = vmax.f32 %v513_v33, 0.0  ;;  %v1167_v39 = vld [vmem:[%s1382_s27 + $0xf0] ss:$8 sps:$4 sm:$0xff]   ;;  %s1045_s15 = sshll.u32 (%p1269_p6), %s1198_s17, 3 }
  0x49   : > { %755 = vmatprep.mubr.bf16.mxu0 %v528_v63  ;;  %765 = vmatprep.mubr.bf16.mxu1 %v530_v1  ;;  %v527_v40 = vpack.c.bf16 %v517_v37, %v515_v36  ;;  %v525_v42 = vld [vmem:[#allocation2 + $0x20] sm:$0x3]  ;;  %v526_v43 = vld [vmem:[#allocation2 + $0x28] sm:$0x3]  ;;  %s830_s6 = scalar_lea.vmem (%p1269_p6), %s1455_s4, %s1045_s15 }
  0x4a   : > { %730 = vmatpush1.bf16.msra.mxu0 %v1131_v62  ;;  %1065 = vmatpush1.bf16.msra.mxu1 %v1131_v62  ;;  %v529_v41 = vpack.c.bf16 %v519_v38, %v519_v38 }
  0x4b   : > { %731 = vmatprep.subr.bf16.mxu0 %v1132_v0  ;;  %1050 = vmatprep.subr.bf16.mxu1 %v1132_v0 }
  0x4e   : > { %732 = vmatpush1.bf16.msra.mxu0 %v1134_v2  ;;  %1066 = vmatpush1.bf16.msra.mxu1 %v1134_v2 }
  0x4f   : > { %733 = vmatprep.subr.bf16.mxu0 %v1135_v3  ;;  %1051 = vmatprep.subr.bf16.mxu1 %v1135_v3 }
  0x52   : > { %734 = vmatpush1.bf16.msra.mxu0 %v1137_v4  ;;  %1067 = vmatpush1.bf16.msra.mxu1 %v1137_v4 }
  0x53   : > { %735 = vmatprep.subr.bf16.mxu0 %v1138_v5  ;;  %1052 = vmatprep.subr.bf16.mxu1 %v1138_v5 }
  0x56   : > { %736 = vmatpush1.bf16.msra.mxu0 %v1140_v6  ;;  %1068 = vmatpush1.bf16.msra.mxu1 %v1140_v6 }
  0x57   : > { %737 = vmatprep.subr.bf16.mxu0 %v1141_v7  ;;  %1053 = vmatprep.subr.bf16.mxu1 %v1141_v7 }
  0x5a   : > { %738 = vmatpush1.bf16.msra.mxu0 %v1143_v8  ;;  %1069 = vmatpush1.bf16.msra.mxu1 %v1143_v8 }
  0x5b   : > { %739 = vmatprep.subr.bf16.mxu0 %v1144_v9  ;;  %1054 = vmatprep.subr.bf16.mxu1 %v1144_v9 }
  0x5e   : > { %740 = vmatpush1.bf16.msra.mxu0 %v1146_v10  ;;  %1070 = vmatpush1.bf16.msra.mxu1 %v1146_v10 }
  0x5f   : > { %741 = vmatprep.subr.bf16.mxu0 %v1147_v11  ;;  %1055 = vmatprep.subr.bf16.mxu1 %v1147_v11 }
  0x62   : > { %742 = vmatpush1.bf16.msra.mxu0 %v1149_v12  ;;  %1071 = vmatpush1.bf16.msra.mxu1 %v1149_v12 }
  0x63   : > { %743 = vmatprep.subr.bf16.mxu0 %v1150_v13  ;;  %1056 = vmatprep.subr.bf16.mxu1 %v1150_v13 }
  0x66   : > { %744 = vmatpush1.bf16.msra.mxu0 %v1152_v14  ;;  %1072 = vmatpush1.bf16.msra.mxu1 %v1152_v14 }
  0x67   : > { %745 = vmatprep.subr.bf16.mxu0 %v1153_v15  ;;  %1057 = vmatprep.subr.bf16.mxu1 %v1153_v15 }
  0x6a   : > { %746 = vmatpush1.bf16.msra.mxu0 %v1155_v17  ;;  %1073 = vmatpush1.bf16.msra.mxu1 %v1155_v17 }
  0x6b   : > { %747 = vmatprep.subr.bf16.mxu0 %v1156_v18  ;;  %1058 = vmatprep.subr.bf16.mxu1 %v1156_v18 }
  0x6e   : > { %748 = vmatpush1.bf16.msra.mxu0 %v1158_v23  ;;  %1074 = vmatpush1.bf16.msra.mxu1 %v1158_v23 }
  0x6f   : > { %749 = vmatprep.subr.bf16.mxu0 %v1159_v24  ;;  %1059 = vmatprep.subr.bf16.mxu1 %v1159_v24 }
  0x72   : > { %750 = vmatpush1.bf16.msra.mxu0 %v1161_v29  ;;  %1075 = vmatpush1.bf16.msra.mxu1 %v1161_v29 }
  0x73   : > { %751 = vmatprep.subr.bf16.mxu0 %v1162_v30  ;;  %1060 = vmatprep.subr.bf16.mxu1 %v1162_v30 }
  0x76   : > { %752 = vmatpush1.bf16.msra.mxu0 %v1164_v34  ;;  %1076 = vmatpush1.bf16.msra.mxu1 %v1164_v34 }
  0x77   : > { %753 = vmatprep.subr.bf16.mxu0 %v1165_v35  ;;  %1061 = vmatprep.subr.bf16.mxu1 %v1165_v35 }
  0x7a   : > { %754 = vmatpush1.bf16.msra.mxu0 %v1167_v39  ;;  %1077 = vmatpush1.bf16.msra.mxu1 %v1167_v39 }
  0x7d   : > { %756 = vmatmul.mubr.bf16.vlgmr.msra.gmra.mrb[0].mxu0 %v527_v40  ;;  %766 = vmatmul.mubr.bf16.vlgmr.msra.gmra.mrb[0].mxu1 %v529_v41 }
 0x150   : > { %v757_v44 = vpop.f32.mrb[0].mxu0  ;;  %v767_v45 = vpop.f32.mrb[0].mxu1 }
 0x151   : > { %v778_v46 = vadd.f32 %v767_v45, %v525_v42  ;;  %v759_v47 = vpop.f32.mrb[1].mxu0  ;;  %v769_v48 = vpop.f32.mrb[1].mxu1 }
 0x152   : > { %v779_v49 = vadd.f32 %v769_v48, %v526_v43  ;;  %v761_v50 = vpop.f32.mrb[2].mxu0  ;;  %v771_v51 = vpop.f32.mrb[2].mxu1  ;;  %v1042_v54 = vpack.c.bf16 %v759_v47, %v757_v44 }
 0x153   : > { %784 = vst [vmem:[#allocation2 + $0x20] sm:$0x3] %v778_v46  ;;  %v763_v52 = vpop.f32.mrb[3].mxu0  ;;  %v772_v53 = vpop.f32.mrb[3].mxu1 }
 0x154   : > { %785 = vst [vmem:[#allocation2 + $0x28] sm:$0x3] %v779_v49  ;;  %815 = vst [vmem:[%s433_s29] sm:$0xff] %v1042_v54  ;;  %v1043_v55 = vpack.c.bf16 %v763_v52, %v761_v50 }
 0x156   : > { %816 = vst [vmem:[%s433_s29 + $0x8] sm:$0xff] %v1043_v55 }
 0x158   : > { %824 = sbr.rel (!%p1269_p6) target bundleno = 359 (0x167), region = 86 }
 0x15a   : > { %v793_v56 = vld [vmem:[#allocation2 + $0x20] sm:$0x3] }
 0x15b   : > { %v794_v57 = vld [vmem:[#allocation2 + $0x28] sm:$0x3] }
 0x15c   : > { %v1044_v58 = vpack.c.bf16 %v794_v57, %v793_v56  ;;  %v862_v59 = vld [vmem:[%s433_s29] sm:$0xff] (%p1269_p6) }
 0x15d   : > { %v864_v60 = vld [vmem:[%s433_s29 + $0x8] sm:$0xff] (%p1269_p6)  ;;  %863 = vst [vmem:[%s830_s6] sm:$0xff] (%p1269_p6), %v862_v59 }
 0x15e   : > { %817 = vst [vmem:[%s433_s29 + $0x10] sm:$0x11] %v1044_v58  ;;  %865 = vst [vmem:[%s830_s6 + $0x20] sm:$0xff] (%p1269_p6), %v864_v60 }
 0x165   : > { %v866_v61 = vld [vmem:[%s433_s29 + $0x10] sm:$0xff] }
 0x166   : > { %867 = vst [vmem:[%s830_s6 + $0x40] sm:$0xff] %v866_v61 }
 0x167 PF: > { %s14_s19 = sadd.s32 1, %s1206_s19   ;;  %s1457_s15 = smov %s1194_s16 }
 0x168   : > { %p11_p11 = scmp.ge.s32.totalorder %s14_s19, 6   ;;  %s1458_s16 = smov %s1274_s25 }
 0x169   : > { %s1459_s17 = smov %s1202_s18  ;;  %s1460_s18 = smov %s1462_s20 }
 0x16a   :  { %13 = sbr.rel (!%p11_p11) target bundleno = 3 (0x3), region = 164 }

// kernel: resnet_forward.53
= control target key start
LH: loop header
LB: loop body
LE: loop exit
PB: predicated region body
PF: predicated region fallthrough
CT: control target
= control target key end

     0   :  { %s1285_s15 = smov 0   ;;  %s1287_s16 = smov 0   ;;  %s1451_s0 = inlined_call_operand.vmem [shape: f32[1,2304], index: 0, kind: input, shape index: {}]   ;;  %s1452_s1 = inlined_call_operand.vmem [shape: f32[1,2304], index: 1, kind: input, shape index: {}]   ;;  %s1453_s2 = inlined_call_operand.vmem [shape: bf16[18,2304], index: 2, kind: input, shape index: {}]   ;;  %s1454_s3 = inlined_call_operand.vmem [shape: bf16[2304,256], index: 3, kind: input, shape index: {}]   ;;  %s1455_s4 = inlined_call_operand.vmem [shape: bf16[18,256], index: 4, kind: output, shape index: {}]  }
   0x1   :  { %s1289_s17 = smov 0   ;;  %s1291_s18 = smov 0  }
   0x2   :  { %s1293_s19 = smov 0  }
   0x3 LB: > { %s26_s20 = sadd.s32 1, %s1252_s18  ;;  %p101_p1 = scmp.ne.s32.totalorder %s1244_s16, %s1240_s15  ;;  %s1256_s19 = sphi %s1293_s19, %s14_s19   ;;  %s1252_s18 = sphi %s1291_s18, %s1459_s18   ;;  %s1248_s17 = sphi %s1289_s17, %s1458_s17   ;;  %s1244_s16 = sphi %s1287_s16, %s1457_s16   ;;  %s1240_s15 = sphi %s1285_s15, %s1456_s15  }
   0x4   : > { %p27_p0 = scmp.ge.s32.totalorder %s26_s20, 6  ;;  %p102_p2 = scmp.eq.s32.totalorder %s1256_s19, 0 }
   0x5   : > { %s94_s22 = sadd.s32 1, %s1244_s16  ;;  %p1025_p5 = scmp.ge.s32.totalorder %s1256_s19, 6 }
   0x6   : > { %s1461_s20 = smov (%p27_p0, %s26_s20), 0  ;;  %p103_p3 = por %p102_p2, %p101_p1 }
   0x7   : > { %s90_s21 = ssub.s32 %s1252_s18, %s1461_s20  ;;  %183 = sbr.rel (%p1025_p5) target bundleno = 22 (0x16), region = 16 }
   0x8   : > { %p92_p4 = scmp.eq.s32.totalorder %s90_s21, 0 }
   0xa   : > { %s1320_s23 = scalar_select %p92_p4, %s1244_s16, %s94_s22  }
   0xe   : > { %202 = sbr.rel (!%p103_p3) target bundleno = 22 (0x16), region = 28  ;;  %s204_s24 = sand.u32 (%p103_p3), 1, %s1244_s16  }
   0xf   : > { %s1093_s25 = smul.u32 (%p103_p3), 12, %s1252_s18 }
  0x10   : > { %s1102_s26 = smul.u32 (%p103_p3), 36, %s204_s24 }
  0x11   : > { %s212_s29 = scalar_lea.vmem (%p103_p3), %s1453_s2, %s1093_s25 }
  0x12   : > { %v227_v0 = vld [vmem:[%s212_s29] sm:$0xff] (%p103_p3)  ;;  %v229_v1 = vld [vmem:[%s212_s29 + $0x48] sm:$0xff] (%p103_p3)  ;;  %v231_v2 = vld [vmem:[%s212_s29 + $0x90] sm:$0xff] (%p103_p3)  ;;  %s206_s30 = scalar_lea.vmem (%p103_p3), [#allocation3], %s1102_s26 }
  0x13   : > { %228 = vst [vmem:[%s206_s30] sm:$0xff] (%p103_p3), %v227_v0  ;;  %230 = vst [vmem:[%s206_s30 + $0xc] sm:$0xff] (%p103_p3), %v229_v1  ;;  %v1027_v3 = vld [vmem:[%s212_s29 + $0x8] sm:$0xf] (%p103_p3)  ;;  %v1029_v4 = vld [vmem:[%s212_s29 + $0x50] sm:$0xf] (%p103_p3) }
  0x14   : > { %232 = vst [vmem:[%s206_s30 + $0x18] sm:$0xff] (%p103_p3), %v231_v2  ;;  %v1031_v5 = vld [vmem:[%s212_s29 + $0x98] sm:$0xf] (%p103_p3)  ;;  %1028 = vst [vmem:[%s206_s30 + $0x8] sm:$0xf] (%p103_p3), %v1027_v3 }
  0x15   : > { %1030 = vst [vmem:[%s206_s30 + $0x14] sm:$0xf] %v1029_v4  ;;  %1032 = vst [vmem:[%s206_s30 + $0x20] sm:$0xf] %v1031_v5 }
  0x16 PF: > { %p1033_p6 = scmp.ge.s32.totalorder %s1256_s19, 1  ;;  %p265_p7 = scmp.lt.s32.totalorder %s1256_s19, 7 }
  0x18   : > { %p266_p8 = pnand %p1033_p6, %p265_p7 }
  0x19   : > { %s272_s5 = sand.u32 (!%p266_p8), 1, %s1240_s15   ;;  %s320_s6 = smul.u32 (!%p266_p8), 3, %s1248_s17 }
  0x1a   : > { %269 = sbr.rel (%p266_p8) target bundleno = 343 (0x157), region = 58  ;;  %p1036_p11 = scmp.ne.s32.totalorder (!%p266_p8), %s1248_s17, 0 }
  0x1b   : > { %s1103_s7 = smul.u32 (!%p266_p8), 36, %s272_s5  ;;  %p321_p9 = scmp.lt.s32.totalorder (!%p266_p8), %s320_s6, 17 }
  0x1c   : > { %s332_s8 = smul.u32 (!%p266_p8), 48, %s1248_s17 }
  0x1d   : > { %s1348_s25 = scalar_lea.vmem (!%p266_p8), [#allocation3], %s1103_s7 }
  0x1e   : > { %p334_p10 = scmp.lt.s32.totalorder (!%p266_p8), %s332_s8, 287 }
  0x21   : > { %s1463_s6 = smov (!%p321_p9, %s320_s6), 17  ;;  %s1465_s8 = smov (!%p334_p10, %s332_s8), 287 }
  0x22   : > { %s323_s11 = scalar_lea.vmem %s1451_s0, %s1463_s6  ;;  %s328_s14 = scalar_lea.vmem %s1452_s1, %s1463_s6  ;;  %v1258_v6 = vmov (!%p1036_p11), 0.0  }
  0x23   : > { %s1094_s21 = sshll.u32 %s1465_s8, 3  ;;  %360 = sbr.rel (%p1036_p11) target bundleno = 42 (0x2a), region = 66  ;;  %361 = vst [vmem:[#allocation2] sm:$0xff] (!%p1036_p11), %v1258_v6  ;;  %362 = vst [vmem:[#allocation2 + $0x8] sm:$0xff] (!%p1036_p11), %v1258_v6 }
  0x24   : > { %s1346_s24 = scalar_lea.vmem %s1454_s3, %s1094_s21  ;;  %363 = vst [vmem:[#allocation2 + $0x10] sm:$0xff] (!%p1036_p11), %v1258_v6  ;;  %364 = vst [vmem:[#allocation2 + $0x18] sm:$0xff] (!%p1036_p11), %v1258_v6 }
  0x25   : > { %365 = vst [vmem:[#allocation2 + $0x20] sm:$0x3] (!%p1036_p11), %v1258_v6  ;;  %366 = vst [vmem:[#allocation2 + $0x28] sm:$0x3] (!%p1036_p11), %v1258_v6 }
  0x2a PF: > { %v1146_v7 = vld [vmem:[%s1346_s24 + $0x4] ss:$8 sps:$4 sm:$0xff]   ;;  %v1148_v8 = vld [vmem:[%s1346_s24] ss:$8 sps:$4 sm:$0xff]   ;;  %v1259_v9 = vmov 0   ;;  %v384_v28 = vlaneseq  ;;  %v367_v51 = vld [vmem:[%s1348_s25] sm:$0xff] }
  0x2b   : > { %826 = vmatprep.mubr.bf16.mxu0 %v1259_v9  ;;  %743 = vmatprep.subr.bf16.mxu1 %v1146_v7  ;;  %v1149_v10 = vld [vmem:[%s1346_s24 + $0x14] ss:$8 sps:$4 sm:$0xff]   ;;  %v1151_v11 = vld [vmem:[%s1346_s24 + $0x10] ss:$8 sps:$4 sm:$0xff]   ;;  %v1152_v12 = vld [vmem:[%s1346_s24 + $0x24] ss:$8 sps:$4 sm:$0xff]   ;;  %v374_v55 = vunpack.c.h.bf16 %v367_v51 }
  0x2c   : > { %744 = vmatpush1.bf16.msra.mxu1 %v1148_v8  ;;  %v1154_v13 = vld [vmem:[%s1346_s24 + $0x20] ss:$8 sps:$4 sm:$0xff]   ;;  %v1155_v14 = vld [vmem:[%s1346_s24 + $0x34] ss:$8 sps:$4 sm:$0xff]   ;;  %v1157_v15 = vld [vmem:[%s1346_s24 + $0x30] ss:$8 sps:$4 sm:$0xff]  }
  0x2d   : > { %745 = vmatprep.subr.bf16.mxu1 %v1149_v10  ;;  %v1170_v16 = vld [vmem:[%s1346_s24 + $0x104] ss:$8 sps:$4 sm:$0xff]   ;;  %v1172_v17 = vld [vmem:[%s1346_s24 + $0x100] ss:$8 sps:$4 sm:$0xff]   ;;  %v1176_v19 = vld [vmem:[%s1346_s24 + $0x114] ss:$8 sps:$4 sm:$0xff]  }
  0x2e   : > { %v1158_v18 = vld [vmem:[%s1346_s24 + $0x44] ss:$8 sps:$4 sm:$0xff]   ;;  %794 = vmatprep.subr.bf16.mxu0 %v1170_v16  ;;  %v1178_v20 = vld [vmem:[%s1346_s24 + $0x110] ss:$8 sps:$4 sm:$0xff]   ;;  %v1160_v21 = vld [vmem:[%s1346_s24 + $0x40] ss:$8 sps:$4 sm:$0xff]  }
  0x2f   : > { %795 = vmatpush1.bf16.msra.mxu0 %v1172_v17  ;;  %v1161_v22 = vld [vmem:[%s1346_s24 + $0x54] ss:$8 sps:$4 sm:$0xff]   ;;  %v1182_v23 = vld [vmem:[%s1346_s24 + $0x124] ss:$8 sps:$4 sm:$0xff]   ;;  %v1184_v24 = vld [vmem:[%s1346_s24 + $0x120] ss:$8 sps:$4 sm:$0xff]  }
  0x30   : > { %746 = vmatpush1.bf16.msra.mxu1 %v1151_v11  ;;  %796 = vmatprep.subr.bf16.mxu0 %v1176_v19  ;;  %v1163_v25 = vld [vmem:[%s1346_s24 + $0x50] ss:$8 sps:$4 sm:$0xff]   ;;  %v1188_v26 = vld [vmem:[%s1346_s24 + $0x134] ss:$8 sps:$4 sm:$0xff]   ;;  %v1164_v27 = vld [vmem:[%s1346_s24 + $0x64] ss:$8 sps:$4 sm:$0xff]  }
  0x31   : > { %747 = vmatprep.subr.bf16.mxu1 %v1152_v12  ;;  %v1190_v29 = vld [vmem:[%s1346_s24 + $0x130] ss:$8 sps:$4 sm:$0xff]   ;;  %v1166_v30 = vld [vmem:[%s1346_s24 + $0x60] ss:$8 sps:$4 sm:$0xff]   ;;  %v1194_v31 = vld [vmem:[%s1346_s24 + $0x144] ss:$8 sps:$4 sm:$0xff]  }
  0x32   : > { %v1167_v32 = vld [vmem:[%s1346_s24 + $0x74] ss:$8 sps:$4 sm:$0xff]   ;;  %v1376_v33 = vshrl.u32 %v384_v28, 7  ;;  %v1196_v34 = vld [vmem:[%s1346_s24 + $0x140] ss:$8 sps:$4 sm:$0xff]   ;;  %p1085_p12 = scmp.ne.s32.totalorder %s1248_s17, 5 }
  0x33   : > { %797 = vmatpush1.bf16.msra.mxu0 %v1178_v20  ;;  %v1169_v35 = vld [vmem:[%s1346_s24 + $0x70] ss:$8 sps:$4 sm:$0xff]   ;;  %v1200_v36 = vld [vmem:[%s1346_s24 + $0x154] ss:$8 sps:$4 sm:$0xff]   ;;  %v1173_v37 = vld [vmem:[%s1346_s24 + $0x84] ss:$8 sps:$4 sm:$0xff]  }
  0x34   : > { %748 = vmatpush1.bf16.msra.mxu1 %v1154_v13  ;;  %798 = vmatprep.subr.bf16.mxu0 %v1182_v23  ;;  %v394_v38 = vsub.s32 2, %v1376_v33  ;;  %v1175_v39 = vld [vmem:[%s1346_s24 + $0x80] ss:$8 sps:$4 sm:$0xff]   ;;  %v1202_v40 = vld [vmem:[%s1346_s24 + $0x150] ss:$8 sps:$4 sm:$0xff]   ;;  %v390_v43 = vsub.s32 1, %v1376_v33 }
  0x35   : > { %749 = vmatprep.subr.bf16.mxu1 %v1155_v14  ;;  %v1179_v41 = vld [vmem:[%s1346_s24 + $0x94] ss:$8 sps:$4 sm:$0xff]   ;;  %v1206_v42 = vld [vmem:[%s1346_s24 + $0x164] ss:$8 sps:$4 sm:$0xff]   ;;  %v382_v45 = vld [vmem:[%s323_s11] sm:$0x7] }
  0x36   : > { %v368_v44 = vld [vmem:[%s1348_s25 + $0x8] ss:$12 sps:$4 sm:$0xff]   ;;  %v1399_v46 = vld [vmem:[%s328_s14] sm:$0x7]  ;;  %v395_v49 = vrot.slane %v382_v45, %v394_v38  ;;  %v372_v53 = vld [vmem:[%s1348_s25 + $0x20] sm:$0x1]  ;;  %v391_v61 = vrot.slane %v382_v45, %v390_v43 }
  0x37   : > { %799 = vmatpush1.bf16.msra.mxu0 %v1184_v24  ;;  %v375_v47 = vunpack.c.l.bf16 %v368_v44  ;;  %v378_v48 = vunpack.c.h.bf16 %v368_v44  ;;  %v421_v50 = vrot.slane %v1399_v46, %v394_v38  ;;  %v369_v52 = vld [vmem:[%s1348_s25 + $0xc] sm:$0xff]  ;;  %v1181_v57 = vld [vmem:[%s1346_s24 + $0x90] ss:$8 sps:$4 sm:$0xff]   ;;  %v381_v62 = vunpack.c.l.bf16 %v372_v53 }
  0x38   : > { %750 = vmatpush1.bf16.msra.mxu1 %v1157_v15  ;;  %800 = vmatprep.subr.bf16.mxu0 %v1188_v26  ;;  %v1208_v54 = vld [vmem:[%s1346_s24 + $0x160] ss:$8 sps:$4 sm:$0xff]   ;;  %v377_v56 = vunpack.c.h.bf16 %v369_v52  ;;  %v1212_v58 = vld [vmem:[%s1346_s24 + $0x174] ss:$8 sps:$4 sm:$0xff]   ;;  %v1185_v63 = vld [vmem:[%s1346_s24 + $0xa4] ss:$8 sps:$4 sm:$0xff]   ;;  %v417_v0 = vrot.slane %v1399_v46, %v390_v43  ;;  %v400_v3 = vmul.f32 %v391_v61, %v374_v55  ;;  %v373_v24 = vunpack.c.l.bf16 %v367_v51 }
  0x39   : > { %751 = vmatprep.subr.bf16.mxu1 %v1158_v18  ;;  %v401_v59 = vmul.f32 %v395_v49, %v375_v47  ;;  %v404_v60 = vmul.f32 %v395_v49, %v378_v48  ;;  %v1214_v5 = vld [vmem:[%s1346_s24 + $0x170] ss:$8 sps:$4 sm:$0xff]   ;;  %v407_v6 = vmul.f32 %v395_v49, %v381_v62  ;;  %v1187_v7 = vld [vmem:[%s1346_s24 + $0xa0] ss:$8 sps:$4 sm:$0xff]   ;;  %v1191_v13 = vld [vmem:[%s1346_s24 + $0xb4] ss:$8 sps:$4 sm:$0xff]  }
  0x3a   : > { %v403_v4 = vmul.f32 %v391_v61, %v377_v56  ;;  %v426_v11 = vadd.f32 %v417_v0, %v400_v3  ;;  %v386_v18 = vsub.s32 0, %v1376_v33  ;;  %v1193_v19 = vld [vmem:[%s1346_s24 + $0xb0] ss:$8 sps:$4 sm:$0xff]  }
  0x3b   : > { %801 = vmatpush1.bf16.msra.mxu0 %v1190_v29  ;;  %v427_v1 = vadd.f32 %v421_v50, %v401_v59  ;;  %v430_v2 = vadd.f32 %v421_v50, %v404_v60  ;;  %v433_v17 = vadd.f32 %v421_v50, %v407_v6  ;;  %v1203_v29 = vld [vmem:[%s1346_s24 + $0xd4] ss:$8 sps:$4 sm:$0xff]   ;;  %v443_v60 = vld [vmem:[#allocation2] sm:$0xff] }
  0x3c   : > { %752 = vmatpush1.bf16.msra.mxu1 %v1160_v21  ;;  %802 = vmatprep.subr.bf16.mxu0 %v1194_v31  ;;  %v429_v12 = vadd.f32 %v417_v0, %v403_v4  ;;  %v435_v15 = vmax.f32 %v426_v11, 0.0  ;;  %v1197_v21 = vld [vmem:[%s1346_s24 + $0xc4] ss:$8 sps:$4 sm:$0xff]   ;;  %v387_v26 = vrot.slane %v382_v45, %v386_v18  ;;  %v413_v33 = vrot.slane %v1399_v46, %v386_v18  ;;  %v1217_v45 = vld [vmem:[%s1346_s24 + $0xf0] ss:$8 sps:$4 sm:$0xff]  }
  0x3d   : > { %753 = vmatprep.subr.bf16.mxu1 %v1161_v22  ;;  %v436_v8 = vmax.f32 %v427_v1, 0.0  ;;  %v439_v10 = vmax.f32 %v430_v2, 0.0  ;;  %v371_v22 = vld [vmem:[%s1348_s25 + $0x18] sm:$0x11]  ;;  %v442_v23 = vmax.f32 %v433_v17, 0.0  ;;  %v446_v6 = vld [vmem:[#allocation2 + $0x18] sm:$0xff] }
  0x3e   : > { %v438_v16 = vmax.f32 %v429_v12, 0.0  ;;  %v380_v28 = vunpack.c.h.bf16 %v371_v22  ;;  %v399_v31 = vmul.f32 %v387_v26, %v373_v24  ;;  %v379_v38 = vunpack.c.l.bf16 %v371_v22  ;;  %v445_v2 = vld [vmem:[#allocation2 + $0x10] sm:$0xff] }
  0x3f   : > { %803 = vmatpush1.bf16.msra.mxu0 %v1196_v34  ;;  %v451_v14 = vpack.c.bf16 %v439_v10, %v436_v8  ;;  %v1205_v34 = vld [vmem:[%s1346_s24 + $0xd0] ss:$8 sps:$4 sm:$0xff]  }
  0x40   : > { %754 = vmatpush1.bf16.msra.mxu1 %v1163_v25  ;;  %804 = vmatprep.subr.bf16.mxu0 %v1200_v36  ;;  %v450_v20 = vpack.c.bf16 %v438_v16, %v435_v15  ;;  %v376_v25 = vunpack.c.l.bf16 %v369_v52  ;;  %v1209_v36 = vld [vmem:[%s1346_s24 + $0xe4] ss:$8 sps:$4 sm:$0xff]   ;;  %v405_v44 = vmul.f32 %v387_v26, %v379_v38  ;;  %v448_v16 = vld [vmem:[#allocation2 + $0x28] sm:$0x3] }
  0x41   : > { %755 = vmatprep.subr.bf16.mxu1 %v1164_v27  ;;  %v1199_v27 = vld [vmem:[%s1346_s24 + $0xc0] ss:$8 sps:$4 sm:$0xff]  }
  0x42   : > { %775 = vmatprep.mubr.bf16.mxu1 %v450_v20  ;;  %v431_v48 = vadd.f32 %v413_v33, %v405_v44 }
  0x43   : > { %805 = vmatpush1.bf16.msra.mxu0 %v1202_v40 }
  0x44   : > { %756 = vmatpush1.bf16.msra.mxu1 %v1166_v30  ;;  %806 = vmatprep.subr.bf16.mxu0 %v1206_v42  ;;  %v454_v30 = vpack.c.bf16 %v442_v23, %v442_v23  ;;  %v440_v50 = vmax.f32 %v431_v48, 0.0 }
  0x45   : > { %757 = vmatprep.subr.bf16.mxu1 %v1167_v32  ;;  %v402_v32 = vmul.f32 %v387_v26, %v376_v25 }
  0x46   : > { %v452_v51 = vpack.c.bf16 %v440_v50, %v440_v50 }
  0x47   : > { %807 = vmatpush1.bf16.msra.mxu0 %v1208_v54 }
  0x48   : > { %758 = vmatpush1.bf16.msra.mxu1 %v1169_v35  ;;  %808 = vmatprep.subr.bf16.mxu0 %v1212_v58  ;;  %v406_v35 = vmul.f32 %v391_v61, %v380_v28 }
  0x49   : > { %759 = vmatprep.subr.bf16.mxu1 %v1173_v37  ;;  %v428_v37 = vadd.f32 %v413_v33, %v402_v32 }
  0x4a   : > { %v432_v40 = vadd.f32 %v417_v0, %v406_v35 }
  0x4b   : > { %809 = vmatpush1.bf16.msra.mxu0 %v1214_v5  ;;  %v437_v43 = vmax.f32 %v428_v37, 0.0 }
  0x4c   : > { %760 = vmatpush1.bf16.msra.mxu1 %v1175_v39  ;;  %v1211_v39 = vld [vmem:[%s1346_s24 + $0xe0] ss:$8 sps:$4 sm:$0xff]   ;;  %v441_v46 = vmax.f32 %v432_v40, 0.0 }
  0x4d   : > { %761 = vmatprep.subr.bf16.mxu1 %v1179_v41  ;;  %v1215_v41 = vld [vmem:[%s1346_s24 + $0xf4] ss:$8 sps:$4 sm:$0xff]  }
  0x4e   : > { %827 = vmatmul.mubr.bf16.vlgmr.msra.gmra.mrb[0].mxu0 %v451_v14  ;;  %v453_v49 = vpack.c.bf16 %v441_v46, %v441_v46 }
  0x4f   : > { %836 = vmatprep.mubr.bf16.mxu0 %v1259_v9  ;;  %v425_v9 = vadd.f32 %v413_v33, %v399_v31 }
  0x50   : > { %762 = vmatpush1.bf16.msra.mxu1 %v1181_v57 }
  0x51   : > { %763 = vmatprep.subr.bf16.mxu1 %v1185_v63  ;;  %v434_v42 = vmax.f32 %v425_v9, 0.0  ;;  %v444_v63 = vld [vmem:[#allocation2 + $0x8] sm:$0xff] }
  0x53   : > { %v449_v47 = vpack.c.bf16 %v437_v43, %v434_v42 }
  0x54   : > { %764 = vmatpush1.bf16.msra.mxu1 %v1187_v7 }
  0x55   : > { %765 = vmatprep.subr.bf16.mxu1 %v1191_v13  ;;  %v447_v13 = vld [vmem:[#allocation2 + $0x20] sm:$0x3] }
  0x56   : > { %837 = vmatmul.mubr.bf16.gmra.mrb[4].mxu0 %v454_v30 }
  0x58   : > { %766 = vmatpush1.bf16.msra.mxu1 %v1193_v19 }
  0x59   : > { %767 = vmatprep.subr.bf16.mxu1 %v1197_v21 }
  0x5c   : > { %768 = vmatpush1.bf16.msra.mxu1 %v1199_v27 }
  0x5d   : > { %769 = vmatprep.subr.bf16.mxu1 %v1203_v29 }
  0x60   : > { %770 = vmatpush1.bf16.msra.mxu1 %v1205_v34 }
  0x61   : > { %771 = vmatprep.subr.bf16.mxu1 %v1209_v36 }
  0x64   : > { %772 = vmatpush1.bf16.msra.mxu1 %v1211_v39 }
  0x65   : > { %773 = vmatprep.subr.bf16.mxu1 %v1215_v41 }
  0x68   : > { %774 = vmatpush1.bf16.msra.mxu1 %v1217_v45 }
  0x6b   : > { %776 = vmatmul.mubr.bf16.vlgmr.msra.gmra.mrb[0].mxu1 %v449_v47 }
  0x6c   : > { %785 = vmatprep.mubr.bf16.mxu1 %v453_v49 }
  0x73   : > { %786 = vmatmul.mubr.bf16.gmra.mrb[4].mxu1 %v452_v51 }
 0x121   : > { %v828_v52 = vpop.f32.mrb[0].mxu0 }
 0x122   : > { %v830_v53 = vpop.f32.mrb[1].mxu0 }
 0x123   : > { %v832_v54 = vpop.f32.mrb[2].mxu0 }
 0x124   : > { %v834_v55 = vpop.f32.mrb[3].mxu0 }
 0x129   : > { %v838_v56 = vpop.f32.mrb[4].mxu0 }
 0x12a   : > { %v840_v57 = vpop.f32.mrb[5].mxu0 }
 0x12b   : > { %v842_v58 = vpop.f32.mrb[6].mxu0 }
 0x12c   : > { %v843_v59 = vpop.f32.mrb[7].mxu0 }
 0x13e   : > { %v777_v61 = vpop.f32.mrb[0].mxu1 }
 0x13f   : > { %v829_v62 = vadd.f32 %v828_v52, %v777_v61  ;;  %v779_v0 = vpop.f32.mrb[1].mxu1 }
 0x140   : > { %v831_v1 = vadd.f32 %v830_v53, %v779_v0  ;;  %v781_v3 = vpop.f32.mrb[2].mxu1 }
 0x141   : > { %v845_v4 = vadd.f32 %v829_v62, %v443_v60  ;;  %v833_v5 = vadd.f32 %v832_v54, %v781_v3  ;;  %v783_v7 = vpop.f32.mrb[3].mxu1 }
 0x142   : > { %v846_v8 = vadd.f32 %v831_v1, %v444_v63  ;;  %v835_v10 = vadd.f32 %v834_v55, %v783_v7 }
 0x143   : > { %851 = vst [vmem:[#allocation2] sm:$0xff] %v845_v4  ;;  %v847_v11 = vadd.f32 %v833_v5, %v445_v2 }
 0x144   : > { %852 = vst [vmem:[#allocation2 + $0x8] sm:$0xff] %v846_v8  ;;  %v848_v12 = vadd.f32 %v835_v10, %v446_v6 }
 0x145   : > { %853 = vst [vmem:[#allocation2 + $0x10] sm:$0xff] %v847_v11 }
 0x146   : > { %854 = vst [vmem:[#allocation2 + $0x18] sm:$0xff] %v848_v12  ;;  %v787_v14 = vpop.f32.mrb[4].mxu1  ;;  %860 = sbr.rel (%p1085_p12) target bundleno = 343 (0x157), region = 70 }
 0x147   : > { %v839_v15 = vadd.f32 %v838_v56, %v787_v14  ;;  %v789_v17 = vpop.f32.mrb[5].mxu1 }
 0x148   : > { %v841_v18 = vadd.f32 %v840_v57, %v789_v17  ;;  %v791_v19 = vpop.f32.mrb[6].mxu1 }
 0x149   : > { %v849_v20 = vadd.f32 %v839_v15, %v447_v13  ;;  %v792_v21 = vpop.f32.mrb[7].mxu1 }
 0x14a   : > { %v850_v22 = vadd.f32 %v841_v18, %v448_v16  ;;  %v861_v23 = vld [vmem:[#allocation2] sm:$0xff] (!%p1085_p12) }
 0x14b   : > { %855 = vst [vmem:[#allocation2 + $0x20] sm:$0x3] %v849_v20  ;;  %v862_v24 = vld [vmem:[#allocation2 + $0x8] sm:$0xff] (!%p1085_p12) }
 0x14c   : > { %856 = vst [vmem:[#allocation2 + $0x28] sm:$0x3] %v850_v22  ;;  %v863_v25 = vld [vmem:[#allocation2 + $0x10] sm:$0xff] (!%p1085_p12)  ;;  %v1095_v26 = vpack.c.bf16 (!%p1085_p12), %v862_v24, %v861_v23 }
 0x14d   : > { %v864_v27 = vld [vmem:[#allocation2 + $0x18] sm:$0xff] }
 0x14e   : > { %v1096_v30 = vpack.c.bf16 %v864_v27, %v863_v25  ;;  %887 = vst [vmem:[%s1455_s4] sm:$0xff] %v1095_v26 }
 0x150   : > { %888 = vst [vmem:[%s1455_s4 + $0x8] sm:$0xff] %v1096_v30 }
 0x152   : > { %v865_v28 = vld [vmem:[#allocation2 + $0x20] sm:$0x3] }
 0x153   : > { %v866_v29 = vld [vmem:[#allocation2 + $0x28] sm:$0x3] }
 0x154   : > { %v1097_v31 = vpack.c.bf16 %v866_v29, %v865_v28 }
 0x156   : > { %889 = vst [vmem:[%s1455_s4 + $0x10] sm:$0x11] %v1097_v31 }
 0x157 PF: > { %s14_s19 = sadd.s32 1, %s1256_s19   ;;  %s1456_s15 = smov %s1244_s16 }
 0x158   : > { %p11_p13 = scmp.ge.s32.totalorder %s14_s19, 8   ;;  %s1457_s16 = smov %s1320_s23 }
 0x159   : > { %s1458_s17 = smov %s1252_s18  ;;  %s1459_s18 = smov %s1461_s20 }
 0x15a   :  { %13 = sbr.rel (!%p11_p13) target bundleno = 3 (0x3), region = 120 }

// kernel: resnet_forward.59
= control target key start
LH: loop header
LB: loop body
LE: loop exit
PB: predicated region body
PF: predicated region fallthrough
CT: control target
= control target key end

     0   :  { %v61_v0 = vlaneseq  ;;  %s892_s0 = inlined_call_operand.vmem [shape: f32[1,1024], index: 0, kind: input, shape index: {}]   ;;  %s893_s1 = inlined_call_operand.vmem [shape: f32[1,1024], index: 1, kind: input, shape index: {}]   ;;  %s894_s4 = inlined_call_operand.vmem [shape: bf16[18,1024], index: 4, kind: input, shape index: {}]   ;;  %s895_s5 = inlined_call_operand.vmem [shape: bf16[18,1024], index: 5, kind: input, shape index: {}]   ;;  %s896_s2 = inlined_call_operand.vmem [shape: f32[1,1024], index: 2, kind: input, shape index: {}]   ;;  %s897_s3 = inlined_call_operand.vmem [shape: f32[1,1024], index: 3, kind: input, shape index: {}]   ;;  %s898_s6 = inlined_call_operand.vmem [shape: bf16[18,1024], index: 6, kind: output, shape index: {}]  }
   0x1   :  { %v23_v1 = vld [vmem:[%s894_s4] sm:$0xff]  ;;  %v24_v10 = vld [vmem:[%s894_s4 + $0x8] sm:$0xff]  ;;  %v25_v46 = vld [vmem:[%s894_s4 + $0x10] sm:$0xff] }
   0x2   :  { %v568_v2 = vld [vmem:[%s892_s0] sm:$0xff]  ;;  %v570_v3 = vshrl.u32 %v61_v0, 7  ;;  %v35_v5 = vunpack.c.l.bf16 %v23_v1  ;;  %v36_v6 = vunpack.c.h.bf16 %v23_v1  ;;  %v192_v11 = vld [vmem:[%s895_s5 + $0x8] sm:$0xff]  ;;  %v37_v16 = vunpack.c.l.bf16 %v24_v10  ;;  %v193_v59 = vld [vmem:[%s895_s5 + $0x10] sm:$0xff] }
   0x3   :  { %v191_v4 = vld [vmem:[%s895_s5] sm:$0xff]  ;;  %v38_v17 = vunpack.c.h.bf16 %v24_v10  ;;  %v205_v20 = vunpack.c.l.bf16 %v192_v11  ;;  %v206_v21 = vunpack.c.h.bf16 %v192_v11  ;;  %v39_v55 = vunpack.c.l.bf16 %v25_v46 }
   0x4   :  { %v578_v7 = vld [vmem:[%s893_s1] sm:$0xff]  ;;  %v203_v8 = vunpack.c.l.bf16 %v191_v4  ;;  %v204_v9 = vunpack.c.h.bf16 %v191_v4  ;;  %v63_v12 = vsub.s32 0, %v570_v3  ;;  %v67_v13 = vsub.s32 1, %v570_v3 }
   0x5   :  { %v591_v14 = vld [vmem:[%s896_s2] sm:$0xff]  ;;  %v71_v18 = vsub.s32 2, %v570_v3  ;;  %v75_v19 = vsub.s32 3, %v570_v3  ;;  %v40_v56 = vunpack.c.h.bf16 %v25_v46  ;;  %v79_v57 = vsub.s32 4, %v570_v3 }
   0x6   :  { %v596_v15 = vld [vmem:[%s897_s3] sm:$0xff]  ;;  %v601_v22 = vrot.slane %v568_v2, %v63_v12  ;;  %v604_v23 = vrot.slane %v568_v2, %v67_v13  ;;  %v607_v24 = vrot.slane %v578_v7, %v63_v12  ;;  %v610_v25 = vrot.slane %v578_v7, %v67_v13 }
   0x7   :  { %v613_v26 = vrot.slane %v591_v14, %v63_v12  ;;  %v616_v27 = vrot.slane %v591_v14, %v67_v13  ;;  %v619_v28 = vrot.slane %v596_v15, %v63_v12  ;;  %v622_v29 = vrot.slane %v596_v15, %v67_v13 }
   0x8   :  { %v101_v30 = vmul.f32 %v601_v22, %v35_v5  ;;  %v102_v31 = vmul.f32 %v604_v23, %v36_v6  ;;  %v627_v32 = vrot.slane %v568_v2, %v71_v18  ;;  %v630_v33 = vrot.slane %v568_v2, %v75_v19 }
   0x9   :  { %v269_v34 = vmul.f32 %v613_v26, %v203_v8  ;;  %v270_v35 = vmul.f32 %v616_v27, %v204_v9  ;;  %v635_v36 = vrot.slane %v578_v7, %v71_v18  ;;  %v638_v37 = vrot.slane %v578_v7, %v75_v19 }
   0xa   :  { %v167_v38 = vadd.f32 %v607_v24, %v101_v30  ;;  %v168_v39 = vadd.f32 %v610_v25, %v102_v31  ;;  %v103_v40 = vmul.f32 %v627_v32, %v37_v16  ;;  %v104_v41 = vmul.f32 %v630_v33, %v38_v17  ;;  %v26_v17 = vld [vmem:[%s894_s4 + $0x18] sm:$0xff] }
   0xb   :  { %v335_v42 = vadd.f32 %v619_v28, %v269_v34  ;;  %v336_v43 = vadd.f32 %v622_v29, %v270_v35  ;;  %v647_v44 = vrot.slane %v591_v14, %v71_v18  ;;  %v650_v45 = vrot.slane %v591_v14, %v75_v19  ;;  %v194_v30 = vld [vmem:[%s895_s5 + $0x18] sm:$0xff] }
   0xc   :  { %v169_v47 = vadd.f32 %v635_v36, %v103_v40  ;;  %v170_v48 = vadd.f32 %v638_v37, %v104_v41  ;;  %v658_v49 = vrot.slane %v596_v15, %v71_v18  ;;  %v661_v50 = vrot.slane %v596_v15, %v75_v19 }
   0xd   :  { %v359_v51 = vadd.f32 %v335_v42, %v167_v38  ;;  %v360_v52 = vadd.f32 %v336_v43, %v168_v39  ;;  %v271_v53 = vmul.f32 %v647_v44, %v205_v20  ;;  %v272_v54 = vmul.f32 %v650_v45, %v206_v21  ;;  %v27_v39 = vld [vmem:[%s894_s4 + $0x20] sm:$0xff] }
   0xe   :  { %v83_v58 = vsub.s32 5, %v570_v3  ;;  %v673_v0 = vrot.slane %v568_v2, %v79_v57  ;;  %v679_v4 = vrot.slane %v578_v7, %v79_v57  ;;  %v207_v10 = vunpack.c.l.bf16 %v193_v59 }
   0xf   :  { %v383_v60 = vmax.f32 %v359_v51, 0.0  ;;  %v384_v61 = vmax.f32 %v360_v52, 0.0  ;;  %v337_v62 = vadd.f32 %v658_v49, %v271_v53  ;;  %v338_v63 = vadd.f32 %v661_v50, %v272_v54 }
  0x10   :  { %v676_v1 = vrot.slane %v568_v2, %v83_v58  ;;  %v682_v5 = vrot.slane %v578_v7, %v83_v58  ;;  %v105_v11 = vmul.f32 %v673_v0, %v39_v55  ;;  %v208_v13 = vunpack.c.h.bf16 %v193_v59 }
  0x11   :  { %v515_v6 = vpack.c.bf16 %v384_v61, %v383_v60  ;;  %v361_v8 = vadd.f32 %v337_v62, %v169_v47  ;;  %v362_v9 = vadd.f32 %v338_v63, %v170_v48  ;;  %v687_v16 = vrot.slane %v591_v14, %v79_v57 }
  0x12   :  { %v106_v12 = vmul.f32 %v676_v1, %v40_v56  ;;  %v696_v20 = vrot.slane %v591_v14, %v83_v58  ;;  %v699_v21 = vrot.slane %v596_v15, %v79_v57  ;;  %v171_v31 = vadd.f32 %v679_v4, %v105_v11 }
  0x13   :  { %487 = vst [vmem:[%s898_s6] sm:$0xff] %v515_v6  ;;  %v385_v18 = vmax.f32 %v361_v8, 0.0  ;;  %v386_v19 = vmax.f32 %v362_v9, 0.0  ;;  %v273_v35 = vmul.f32 %v687_v16, %v207_v10  ;;  %v708_v38 = vrot.slane %v596_v15, %v83_v58  ;;  %v195_v9 = vld [vmem:[%s895_s5 + $0x20] sm:$0xff] }
  0x14   :  { %v172_v34 = vadd.f32 %v682_v5, %v106_v12  ;;  %v274_v41 = vmul.f32 %v696_v20, %v208_v13  ;;  %v41_v42 = vunpack.c.l.bf16 %v26_v17  ;;  %v42_v43 = vunpack.c.h.bf16 %v26_v17  ;;  %v28_v12 = vld [vmem:[%s894_s4 + $0x28] sm:$0xff] }
  0x15   :  { %v516_v40 = vpack.c.bf16 %v386_v19, %v385_v18  ;;  %v339_v46 = vadd.f32 %v699_v21, %v273_v35  ;;  %v87_v47 = vsub.s32 6, %v570_v3  ;;  %v91_v48 = vsub.s32 7, %v570_v3 }
  0x16   :  { %v209_v51 = vunpack.c.l.bf16 %v194_v30  ;;  %v340_v52 = vadd.f32 %v708_v38, %v274_v41  ;;  %v210_v53 = vunpack.c.h.bf16 %v194_v30  ;;  %v43_v54 = vunpack.c.l.bf16 %v27_v39 }
  0x17   :  { %488 = vst [vmem:[%s898_s6 + $0x8] sm:$0xff] %v516_v40  ;;  %v44_v55 = vunpack.c.h.bf16 %v27_v39  ;;  %v363_v56 = vadd.f32 %v339_v46, %v171_v31  ;;  %v722_v57 = vrot.slane %v568_v2, %v87_v47  ;;  %v725_v58 = vrot.slane %v568_v2, %v91_v48 }
  0x18   :  { %v728_v59 = vrot.slane %v578_v7, %v87_v47  ;;  %v364_v3 = vadd.f32 %v340_v52, %v172_v34  ;;  %v731_v60 = vrot.slane %v578_v7, %v91_v48  ;;  %v734_v61 = vrot.slane %v591_v14, %v87_v47 }
  0x19   :  { %v737_v62 = vrot.slane %v591_v14, %v91_v48  ;;  %v387_v63 = vmax.f32 %v363_v56, 0.0  ;;  %v107_v6 = vmul.f32 %v722_v57, %v41_v42  ;;  %v108_v8 = vmul.f32 %v725_v58, %v42_v43 }
  0x1a   :  { %v742_v2 = vrot.slane %v596_v15, %v87_v47  ;;  %v388_v7 = vmax.f32 %v364_v3, 0.0  ;;  %v275_v10 = vmul.f32 %v734_v61, %v209_v51  ;;  %v750_v14 = vrot.slane %v596_v15, %v91_v48  ;;  %v196_v15 = vld [vmem:[%s895_s5 + $0x28] sm:$0xff] }
  0x1b   :  { %v276_v11 = vmul.f32 %v737_v62, %v210_v53  ;;  %v173_v13 = vadd.f32 %v728_v59, %v107_v6  ;;  %v174_v17 = vadd.f32 %v731_v60, %v108_v8  ;;  %v109_v18 = vmul.f32 %v601_v22, %v43_v54 }
  0x1c   :  { %v110_v19 = vmul.f32 %v604_v23, %v44_v55  ;;  %v517_v30 = vpack.c.bf16 %v388_v7, %v387_v63  ;;  %v341_v31 = vadd.f32 %v742_v2, %v275_v10  ;;  %v211_v35 = vunpack.c.l.bf16 %v195_v9  ;;  %v29_v55 = vld [vmem:[%s894_s4 + $0x30] sm:$0xff] }
  0x1d   :  { %v342_v34 = vadd.f32 %v750_v14, %v276_v11  ;;  %v175_v39 = vadd.f32 %v607_v24, %v109_v18  ;;  %v212_v41 = vunpack.c.h.bf16 %v195_v9  ;;  %v45_v42 = vunpack.c.l.bf16 %v28_v12  ;;  %v197_v11 = vld [vmem:[%s895_s5 + $0x30] sm:$0xff] }
  0x1e   :  { %v176_v40 = vadd.f32 %v610_v25, %v110_v19  ;;  %489 = vst [vmem:[%s898_s6 + $0x10] sm:$0xff] %v517_v30  ;;  %v365_v43 = vadd.f32 %v341_v31, %v173_v13  ;;  %v277_v47 = vmul.f32 %v613_v26, %v211_v35  ;;  %v46_v48 = vunpack.c.h.bf16 %v28_v12  ;;  %v30_v35 = vld [vmem:[%s894_s4 + $0x38] sm:$0xff] }
  0x1f   :  { %v366_v46 = vadd.f32 %v342_v34, %v174_v17  ;;  %v278_v51 = vmul.f32 %v616_v27, %v212_v41  ;;  %v111_v52 = vmul.f32 %v627_v32, %v45_v42  ;;  %v213_v53 = vunpack.c.l.bf16 %v196_v15 }
  0x20   :  { %v214_v54 = vunpack.c.h.bf16 %v196_v15  ;;  %v389_v56 = vmax.f32 %v365_v43, 0.0  ;;  %v343_v63 = vadd.f32 %v619_v28, %v277_v47  ;;  %v112_v6 = vmul.f32 %v630_v33, %v46_v48 }
  0x21   :  { %v390_v3 = vmax.f32 %v366_v46, 0.0  ;;  %v344_v8 = vadd.f32 %v622_v29, %v278_v51  ;;  %v177_v9 = vadd.f32 %v635_v36, %v111_v52  ;;  %v279_v7 = vmul.f32 %v647_v44, %v213_v53 }
  0x22   :  { %v280_v10 = vmul.f32 %v650_v45, %v214_v54  ;;  %v367_v13 = vadd.f32 %v343_v63, %v175_v39  ;;  %v178_v17 = vadd.f32 %v638_v37, %v112_v6  ;;  %v47_v18 = vunpack.c.l.bf16 %v29_v55  ;;  %v198_v54 = vld [vmem:[%s895_s5 + $0x38] sm:$0xff] }
  0x23   :  { %v518_v12 = vpack.c.bf16 %v390_v3, %v389_v56  ;;  %v368_v19 = vadd.f32 %v344_v8, %v176_v40  ;;  %v345_v30 = vadd.f32 %v658_v49, %v279_v7  ;;  %v48_v34 = vunpack.c.h.bf16 %v29_v55  ;;  %v31_v55 = vld [vmem:[%s894_s4 + $0x40] sm:$0x11] }
  0x24   :  { %v346_v31 = vadd.f32 %v661_v50, %v280_v10  ;;  %v391_v15 = vmax.f32 %v367_v13, 0.0  ;;  %v113_v39 = vmul.f32 %v673_v0, %v47_v18  ;;  %v215_v41 = vunpack.c.l.bf16 %v197_v11  ;;  %v199_v18 = vld [vmem:[%s895_s5 + $0x40] sm:$0x11] }
  0x25   :  { %490 = vst [vmem:[%s898_s6 + $0x18] sm:$0xff] %v518_v12  ;;  %v216_v42 = vunpack.c.h.bf16 %v197_v11  ;;  %v392_v43 = vmax.f32 %v368_v19, 0.0  ;;  %v369_v40 = vadd.f32 %v345_v30, %v177_v9  ;;  %v114_v47 = vmul.f32 %v676_v1, %v48_v34 }
  0x26   :  { %v370_v46 = vadd.f32 %v346_v31, %v178_v17  ;;  %v179_v48 = vadd.f32 %v679_v4, %v113_v39  ;;  %v281_v51 = vmul.f32 %v687_v16, %v215_v41  ;;  %v49_v53 = vunpack.c.l.bf16 %v30_v35 }
  0x27   :  { %v282_v52 = vmul.f32 %v696_v20, %v216_v42  ;;  %v519_v56 = vpack.c.bf16 %v392_v43, %v391_v15  ;;  %v393_v3 = vmax.f32 %v369_v40, 0.0  ;;  %v180_v6 = vadd.f32 %v682_v5, %v114_v47  ;;  %v32_v42 = vld [vmem:[%s894_s4 + $0x48] sm:$0x11] }
  0x28   :  { %v394_v63 = vmax.f32 %v370_v46, 0.0  ;;  %v347_v8 = vadd.f32 %v699_v21, %v281_v51  ;;  %v50_v7 = vunpack.c.h.bf16 %v30_v35  ;;  %v115_v10 = vmul.f32 %v722_v57, %v49_v53 }
  0x29   :  { %v348_v9 = vadd.f32 %v708_v38, %v282_v52  ;;  %491 = vst [vmem:[%s898_s6 + $0x20] sm:$0xff] %v519_v56  ;;  %v217_v12 = vunpack.c.l.bf16 %v198_v54  ;;  %v218_v13 = vunpack.c.h.bf16 %v198_v54  ;;  %v51_v17 = vunpack.c.l.bf16 %v31_v55 }
  0x2a   :  { %v520_v11 = vpack.c.bf16 %v394_v63, %v393_v3  ;;  %v371_v19 = vadd.f32 %v347_v8, %v179_v48  ;;  %v116_v31 = vmul.f32 %v725_v58, %v50_v7  ;;  %v181_v34 = vadd.f32 %v728_v59, %v115_v10 }
  0x2b   :  { %v372_v30 = vadd.f32 %v348_v9, %v180_v6  ;;  %v283_v35 = vmul.f32 %v734_v61, %v217_v12  ;;  %v284_v15 = vmul.f32 %v737_v62, %v218_v13  ;;  %v52_v39 = vunpack.c.h.bf16 %v31_v55 }
  0x2c   :  { %492 = vst [vmem:[%s898_s6 + $0x28] sm:$0xff] %v520_v11  ;;  %v117_v41 = vmul.f32 %v601_v22, %v51_v17  ;;  %v395_v43 = vmax.f32 %v371_v19, 0.0  ;;  %v182_v46 = vadd.f32 %v731_v60, %v116_v31  ;;  %v219_v47 = vunpack.c.l.bf16 %v199_v18  ;;  %v200_v22 = vld [vmem:[%s895_s5 + $0x48] sm:$0x11] }
  0x2d   :  { %v396_v40 = vmax.f32 %v372_v30, 0.0  ;;  %v349_v48 = vadd.f32 %v742_v2, %v283_v35  ;;  %v350_v51 = vadd.f32 %v750_v14, %v284_v15  ;;  %v118_v52 = vmul.f32 %v604_v23, %v52_v39 }
  0x2e   :  { %v183_v53 = vadd.f32 %v607_v24, %v117_v41  ;;  %v220_v55 = vunpack.c.h.bf16 %v199_v18  ;;  %v285_v56 = vmul.f32 %v613_v26, %v219_v47  ;;  %v53_v3 = vunpack.c.l.bf16 %v32_v42  ;;  %v33_v26 = vld [vmem:[%s894_s4 + $0x50] sm:$0x11] }
  0x2f   :  { %v521_v54 = vpack.c.bf16 %v396_v40, %v395_v43  ;;  %v373_v63 = vadd.f32 %v349_v48, %v181_v34  ;;  %v374_v6 = vadd.f32 %v350_v51, %v182_v46  ;;  %v184_v8 = vadd.f32 %v610_v25, %v118_v52 }
  0x30   :  { %v54_v9 = vunpack.c.h.bf16 %v32_v42  ;;  %v286_v23 = vmul.f32 %v616_v27, %v220_v55  ;;  %v351_v24 = vadd.f32 %v619_v28, %v285_v56  ;;  %v119_v7 = vmul.f32 %v627_v32, %v53_v3  ;;  %v201_v28 = vld [vmem:[%s895_s5 + $0x50] sm:$0x11] }
  0x31   :  { %493 = vst [vmem:[%s898_s6 + $0x30] sm:$0xff] %v521_v54  ;;  %v221_v10 = vunpack.c.l.bf16 %v200_v22  ;;  %v397_v11 = vmax.f32 %v373_v63, 0.0  ;;  %v398_v12 = vmax.f32 %v374_v6, 0.0  ;;  %v222_v13 = vunpack.c.h.bf16 %v200_v22 }
  0x32   :  { %v120_v25 = vmul.f32 %v630_v33, %v54_v9  ;;  %v352_v17 = vadd.f32 %v622_v29, %v286_v23  ;;  %v375_v18 = vadd.f32 %v351_v24, %v183_v53  ;;  %v185_v19 = vadd.f32 %v635_v36, %v119_v7  ;;  %v34_v33 = vld [vmem:[%s894_s4 + $0x58] sm:$0x11] }
  0x33   :  { %v287_v27 = vmul.f32 %v647_v44, %v221_v10  ;;  %v522_v32 = vpack.c.bf16 %v398_v12, %v397_v11  ;;  %v288_v31 = vmul.f32 %v650_v45, %v222_v13  ;;  %v55_v34 = vunpack.c.l.bf16 %v33_v26 }
  0x34   :  { %v186_v30 = vadd.f32 %v638_v37, %v120_v25  ;;  %v376_v29 = vadd.f32 %v352_v17, %v184_v8  ;;  %v399_v35 = vmax.f32 %v375_v18, 0.0  ;;  %v56_v15 = vunpack.c.h.bf16 %v33_v26 }
  0x35   :  { %v353_v36 = vadd.f32 %v658_v49, %v287_v27  ;;  %494 = vst [vmem:[%s898_s6 + $0x38] sm:$0xff] %v522_v32  ;;  %v354_v44 = vadd.f32 %v661_v50, %v288_v31  ;;  %v121_v37 = vmul.f32 %v673_v0, %v55_v34  ;;  %v223_v39 = vunpack.c.l.bf16 %v201_v28  ;;  %v202_v50 = vld [vmem:[%s895_s5 + $0x58] sm:$0x11] }
  0x36   :  { %v224_v45 = vunpack.c.h.bf16 %v201_v28  ;;  %v400_v41 = vmax.f32 %v376_v29, 0.0  ;;  %v122_v43 = vmul.f32 %v676_v1, %v56_v15  ;;  %v57_v40 = vunpack.c.l.bf16 %v34_v33 }
  0x37   :  { %v377_v42 = vadd.f32 %v353_v36, %v185_v19  ;;  %v378_v46 = vadd.f32 %v354_v44, %v186_v30  ;;  %v187_v47 = vadd.f32 %v679_v4, %v121_v37  ;;  %v289_v49 = vmul.f32 %v687_v16, %v223_v39 }
  0x38   :  { %v290_v48 = vmul.f32 %v696_v20, %v224_v45  ;;  %v523_v51 = vpack.c.bf16 %v400_v41, %v399_v35  ;;  %v188_v52 = vadd.f32 %v682_v5, %v122_v43  ;;  %v58_v53 = vunpack.c.h.bf16 %v34_v33 }
  0x39   :  { %v401_v0 = vmax.f32 %v377_v42, 0.0  ;;  %v402_v22 = vmax.f32 %v378_v46, 0.0  ;;  %v355_v1 = vadd.f32 %v699_v21, %v289_v49  ;;  %v123_v4 = vmul.f32 %v722_v57, %v57_v40 }
  0x3a   :  { %v356_v54 = vadd.f32 %v708_v38, %v290_v48  ;;  %495 = vst [vmem:[%s898_s6 + $0x40] sm:$0x11] %v523_v51  ;;  %v124_v16 = vmul.f32 %v725_v58, %v58_v53  ;;  %v225_v20 = vunpack.c.l.bf16 %v202_v50  ;;  %v226_v55 = vunpack.c.h.bf16 %v202_v50 }
  0x3b   :  { %v524_v56 = vpack.c.bf16 %v402_v22, %v401_v0  ;;  %v379_v3 = vadd.f32 %v355_v1, %v187_v47  ;;  %v189_v5 = vadd.f32 %v728_v59, %v123_v4 }
  0x3c   :  { %v380_v63 = vadd.f32 %v356_v54, %v188_v52  ;;  %v190_v6 = vadd.f32 %v731_v60, %v124_v16  ;;  %v291_v21 = vmul.f32 %v734_v61, %v225_v20  ;;  %v292_v38 = vmul.f32 %v737_v62, %v226_v55 }
  0x3d   :  { %496 = vst [vmem:[%s898_s6 + $0x48] sm:$0x11] %v524_v56  ;;  %v403_v57 = vmax.f32 %v379_v3, 0.0 }
  0x3e   :  { %v404_v8 = vmax.f32 %v380_v63, 0.0  ;;  %v357_v58 = vadd.f32 %v742_v2, %v291_v21  ;;  %v358_v9 = vadd.f32 %v750_v14, %v292_v38 }
  0x40   :  { %v525_v23 = vpack.c.bf16 %v404_v8, %v403_v57  ;;  %v381_v24 = vadd.f32 %v357_v58, %v189_v5  ;;  %v382_v7 = vadd.f32 %v358_v9, %v190_v6 }
  0x42   :  { %497 = vst [vmem:[%s898_s6 + $0x50] sm:$0x11] %v525_v23  ;;  %v405_v59 = vmax.f32 %v381_v24, 0.0  ;;  %v406_v60 = vmax.f32 %v382_v7, 0.0 }
  0x44   :  { %v526_v61 = vpack.c.bf16 %v406_v60, %v405_v59 }
  0x46   :  { %498 = vst [vmem:[%s898_s6 + $0x58] sm:$0x11] %v526_v61 }

// kernel: resnet_forward.57
= control target key start
LH: loop header
LB: loop body
LE: loop exit
PB: predicated region body
PF: predicated region fallthrough
CT: control target
= control target key end

     0   :  { %s1532_s9 = smov 0   ;;  %s1534_s10 = smov 0   ;;  %s1824_s0 = inlined_call_operand.vmem [shape: bf16[18,512], index: 0, kind: input, shape index: {}]   ;;  %s1825_s1 = inlined_call_operand.vmem [shape: bf16[512,1024], index: 1, kind: input, shape index: {}]   ;;  %s1826_s2 = inlined_call_operand.vmem [shape: bf16[18,1024], index: 2, kind: output, shape index: {}]  }
   0x1   :  { %s1536_s11 = smov 0   ;;  %s1538_s12 = smov 0  }
   0x2   :  { %s1540_s13 = smov 0  }
   0x3 LB: > { %s27_s14 = sadd.s32 1, %s1510_s12  ;;  %s1230_s15 = sadd.s32 4294967295, %s1514_s13   ;;  %s1514_s13 = sphi %s1540_s13, %s12_s13   ;;  %s1510_s12 = sphi %s1538_s12, %s1831_s12   ;;  %s1506_s11 = sphi %s1536_s11, %s1830_s11   ;;  %s1502_s10 = sphi %s1534_s10, %s1829_s10   ;;  %s1498_s9 = sphi %s1532_s9, %s1828_s9  }
   0x4   : > { %p29_p0 = scmp.ge.s32.totalorder %s27_s14, 4  ;;  %p75_p1 = scmp.ne.s32.totalorder %s1502_s10, %s1498_s9 }
   0x5   : > { %p76_p2 = scmp.eq.s32.totalorder %s1514_s13, 0  ;;  %p107_p4 = scmp.eq.s32.totalorder %s1230_s15, 3 }
   0x6   : > { %s1833_s14 = smov (%p29_p0, %s27_s14), 0  ;;  %s68_s17 = sadd.s32 1, %s1502_s10 }
   0x7   : > { %p77_p3 = por %p76_p2, %p75_p1  ;;  %s64_s16 = ssub.s32 %s1510_s12, %s1833_s14 }
   0x8   : > { %p66_p5 = scmp.eq.s32.totalorder %s64_s16, 0  ;;  %p1567_p6 = por %p107_p4, %p75_p1 }
   0x9   : > { %p1234_p7 = scmp.ge.s32.totalorder %s1514_s13, 4 }
   0xa   : > { %s1572_s19 = scalar_select %p66_p5, %s1502_s10, %s68_s17  }
   0xb   : > { %144 = sbr.rel (%p1234_p7) target bundleno = 86 (0x56), region = 20 }
  0x12   : > { %147 = sbr.rel (!%p77_p3) target bundleno = 86 (0x56), region = 24  ;;  %s149_s20 = sand.u32 (%p77_p3), 1, %s1502_s10  }
  0x13   : > { %s1319_s21 = sshll.u32 (%p77_p3), %s1510_s12, 3  ;;  %s1235_s22 = sshll.u32 (%p77_p3), %s149_s20, 9 }
  0x14   : > { %s1580_s25 = scalar_lea.vmem (%p77_p3), %s1825_s1, %s1319_s21  ;;  %s1585_s26 = scalar_lea.vmem (%p77_p3), [#allocation3], %s1235_s22 }
  0x15   : > { %v311_v0 = vld [vmem:[%s1580_s25] sm:$0xff] (%p77_p3) }
  0x16   : > { %v313_v1 = vld [vmem:[%s1580_s25 + $0x20] sm:$0xff] (%p77_p3)  ;;  %312 = vst [vmem:[%s1585_s26] sm:$0xff] (%p77_p3), %v311_v0 }
  0x17   : > { %v315_v2 = vld [vmem:[%s1580_s25 + $0x40] sm:$0xff] (%p77_p3)  ;;  %314 = vst [vmem:[%s1585_s26 + $0x8] sm:$0xff] (%p77_p3), %v313_v1 }
  0x18   : > { %316 = vst [vmem:[%s1585_s26 + $0x10] sm:$0xff] (%p77_p3), %v315_v2  ;;  %v317_v3 = vld [vmem:[%s1580_s25 + $0x60] sm:$0xff] (%p77_p3) }
  0x19   : > { %v319_v4 = vld [vmem:[%s1580_s25 + $0x80] sm:$0xff]  ;;  %318 = vst [vmem:[%s1585_s26 + $0x18] sm:$0xff] %v317_v3 }
  0x1a   : > { %v321_v5 = vld [vmem:[%s1580_s25 + $0xa0] sm:$0xff]  ;;  %320 = vst [vmem:[%s1585_s26 + $0x20] sm:$0xff] %v319_v4 }
  0x1b   : > { %322 = vst [vmem:[%s1585_s26 + $0x28] sm:$0xff] %v321_v5  ;;  %v323_v6 = vld [vmem:[%s1580_s25 + $0xc0] sm:$0xff] }
  0x1c   : > { %v325_v7 = vld [vmem:[%s1580_s25 + $0xe0] sm:$0xff]  ;;  %324 = vst [vmem:[%s1585_s26 + $0x30] sm:$0xff] %v323_v6 }
  0x1d   : > { %v327_v8 = vld [vmem:[%s1580_s25 + $0x100] sm:$0xff]  ;;  %326 = vst [vmem:[%s1585_s26 + $0x38] sm:$0xff] %v325_v7 }
  0x1e   : > { %328 = vst [vmem:[%s1585_s26 + $0x40] sm:$0xff] %v327_v8  ;;  %v329_v9 = vld [vmem:[%s1580_s25 + $0x120] sm:$0xff] }
  0x1f   : > { %v331_v10 = vld [vmem:[%s1580_s25 + $0x140] sm:$0xff]  ;;  %330 = vst [vmem:[%s1585_s26 + $0x48] sm:$0xff] %v329_v9 }
  0x20   : > { %v333_v11 = vld [vmem:[%s1580_s25 + $0x160] sm:$0xff]  ;;  %332 = vst [vmem:[%s1585_s26 + $0x50] sm:$0xff] %v331_v10 }
  0x21   : > { %334 = vst [vmem:[%s1585_s26 + $0x58] sm:$0xff] %v333_v11  ;;  %v335_v12 = vld [vmem:[%s1580_s25 + $0x180] sm:$0xff] }
  0x22   : > { %v337_v13 = vld [vmem:[%s1580_s25 + $0x1a0] sm:$0xff]  ;;  %336 = vst [vmem:[%s1585_s26 + $0x60] sm:$0xff] %v335_v12 }
  0x23   : > { %v339_v14 = vld [vmem:[%s1580_s25 + $0x1c0] sm:$0xff]  ;;  %338 = vst [vmem:[%s1585_s26 + $0x68] sm:$0xff] %v337_v13 }
  0x24   : > { %340 = vst [vmem:[%s1585_s26 + $0x70] sm:$0xff] %v339_v14  ;;  %v341_v15 = vld [vmem:[%s1580_s25 + $0x1e0] sm:$0xff] }
  0x25   : > { %v343_v16 = vld [vmem:[%s1580_s25 + $0x200] sm:$0xff]  ;;  %342 = vst [vmem:[%s1585_s26 + $0x78] sm:$0xff] %v341_v15 }
  0x26   : > { %v345_v17 = vld [vmem:[%s1580_s25 + $0x220] sm:$0xff]  ;;  %344 = vst [vmem:[%s1585_s26 + $0x80] sm:$0xff] %v343_v16 }
  0x27   : > { %346 = vst [vmem:[%s1585_s26 + $0x88] sm:$0xff] %v345_v17  ;;  %v347_v18 = vld [vmem:[%s1580_s25 + $0x240] sm:$0xff] }
  0x28   : > { %v349_v19 = vld [vmem:[%s1580_s25 + $0x260] sm:$0xff]  ;;  %348 = vst [vmem:[%s1585_s26 + $0x90] sm:$0xff] %v347_v18 }
  0x29   : > { %v351_v20 = vld [vmem:[%s1580_s25 + $0x280] sm:$0xff]  ;;  %350 = vst [vmem:[%s1585_s26 + $0x98] sm:$0xff] %v349_v19 }
  0x2a   : > { %352 = vst [vmem:[%s1585_s26 + $0xa0] sm:$0xff] %v351_v20  ;;  %v353_v21 = vld [vmem:[%s1580_s25 + $0x2a0] sm:$0xff] }
  0x2b   : > { %v355_v22 = vld [vmem:[%s1580_s25 + $0x2c0] sm:$0xff]  ;;  %354 = vst [vmem:[%s1585_s26 + $0xa8] sm:$0xff] %v353_v21 }
  0x2c   : > { %v357_v23 = vld [vmem:[%s1580_s25 + $0x2e0] sm:$0xff]  ;;  %356 = vst [vmem:[%s1585_s26 + $0xb0] sm:$0xff] %v355_v22 }
  0x2d   : > { %358 = vst [vmem:[%s1585_s26 + $0xb8] sm:$0xff] %v357_v23  ;;  %v359_v24 = vld [vmem:[%s1580_s25 + $0x300] sm:$0xff] }
  0x2e   : > { %v361_v25 = vld [vmem:[%s1580_s25 + $0x320] sm:$0xff]  ;;  %360 = vst [vmem:[%s1585_s26 + $0xc0] sm:$0xff] %v359_v24 }
  0x2f   : > { %v363_v26 = vld [vmem:[%s1580_s25 + $0x340] sm:$0xff]  ;;  %362 = vst [vmem:[%s1585_s26 + $0xc8] sm:$0xff] %v361_v25 }
  0x30   : > { %364 = vst [vmem:[%s1585_s26 + $0xd0] sm:$0xff] %v363_v26  ;;  %v365_v27 = vld [vmem:[%s1580_s25 + $0x360] sm:$0xff] }
  0x31   : > { %v367_v28 = vld [vmem:[%s1580_s25 + $0x380] sm:$0xff]  ;;  %366 = vst [vmem:[%s1585_s26 + $0xd8] sm:$0xff] %v365_v27 }
  0x32   : > { %v369_v29 = vld [vmem:[%s1580_s25 + $0x3a0] sm:$0xff]  ;;  %368 = vst [vmem:[%s1585_s26 + $0xe0] sm:$0xff] %v367_v28 }
  0x33   : > { %370 = vst [vmem:[%s1585_s26 + $0xe8] sm:$0xff] %v369_v29  ;;  %v371_v30 = vld [vmem:[%s1580_s25 + $0x3c0] sm:$0xff] }
  0x34   : > { %v373_v31 = vld [vmem:[%s1580_s25 + $0x3e0] sm:$0xff]  ;;  %372 = vst [vmem:[%s1585_s26 + $0xf0] sm:$0xff] %v371_v30 }
  0x35   : > { %v375_v32 = vld [vmem:[%s1580_s25 + $0x400] sm:$0xff]  ;;  %374 = vst [vmem:[%s1585_s26 + $0xf8] sm:$0xff] %v373_v31 }
  0x36   : > { %376 = vst [vmem:[%s1585_s26 + $0x100] sm:$0xff] %v375_v32  ;;  %v377_v33 = vld [vmem:[%s1580_s25 + $0x420] sm:$0xff] }
  0x37   : > { %v379_v34 = vld [vmem:[%s1580_s25 + $0x440] sm:$0xff]  ;;  %378 = vst [vmem:[%s1585_s26 + $0x108] sm:$0xff] %v377_v33 }
  0x38   : > { %v381_v35 = vld [vmem:[%s1580_s25 + $0x460] sm:$0xff]  ;;  %380 = vst [vmem:[%s1585_s26 + $0x110] sm:$0xff] %v379_v34 }
  0x39   : > { %382 = vst [vmem:[%s1585_s26 + $0x118] sm:$0xff] %v381_v35  ;;  %v383_v36 = vld [vmem:[%s1580_s25 + $0x480] sm:$0xff] }
  0x3a   : > { %v385_v37 = vld [vmem:[%s1580_s25 + $0x4a0] sm:$0xff]  ;;  %384 = vst [vmem:[%s1585_s26 + $0x120] sm:$0xff] %v383_v36 }
  0x3b   : > { %v387_v38 = vld [vmem:[%s1580_s25 + $0x4c0] sm:$0xff]  ;;  %386 = vst [vmem:[%s1585_s26 + $0x128] sm:$0xff] %v385_v37 }
  0x3c   : > { %388 = vst [vmem:[%s1585_s26 + $0x130] sm:$0xff] %v387_v38  ;;  %v389_v39 = vld [vmem:[%s1580_s25 + $0x4e0] sm:$0xff] }
  0x3d   : > { %v391_v40 = vld [vmem:[%s1580_s25 + $0x500] sm:$0xff]  ;;  %390 = vst [vmem:[%s1585_s26 + $0x138] sm:$0xff] %v389_v39 }
  0x3e   : > { %v393_v41 = vld [vmem:[%s1580_s25 + $0x520] sm:$0xff]  ;;  %392 = vst [vmem:[%s1585_s26 + $0x140] sm:$0xff] %v391_v40 }
  0x3f   : > { %394 = vst [vmem:[%s1585_s26 + $0x148] sm:$0xff] %v393_v41  ;;  %v395_v42 = vld [vmem:[%s1580_s25 + $0x540] sm:$0xff] }
  0x40   : > { %v397_v43 = vld [vmem:[%s1580_s25 + $0x560] sm:$0xff]  ;;  %396 = vst [vmem:[%s1585_s26 + $0x150] sm:$0xff] %v395_v42 }
  0x41   : > { %v399_v44 = vld [vmem:[%s1580_s25 + $0x580] sm:$0xff]  ;;  %398 = vst [vmem:[%s1585_s26 + $0x158] sm:$0xff] %v397_v43 }
  0x42   : > { %400 = vst [vmem:[%s1585_s26 + $0x160] sm:$0xff] %v399_v44  ;;  %v401_v45 = vld [vmem:[%s1580_s25 + $0x5a0] sm:$0xff] }
  0x43   : > { %v403_v46 = vld [vmem:[%s1580_s25 + $0x5c0] sm:$0xff]  ;;  %402 = vst [vmem:[%s1585_s26 + $0x168] sm:$0xff] %v401_v45 }
  0x44   : > { %v405_v47 = vld [vmem:[%s1580_s25 + $0x5e0] sm:$0xff]  ;;  %404 = vst [vmem:[%s1585_s26 + $0x170] sm:$0xff] %v403_v46 }
  0x45   : > { %406 = vst [vmem:[%s1585_s26 + $0x178] sm:$0xff] %v405_v47  ;;  %v407_v48 = vld [vmem:[%s1580_s25 + $0x600] sm:$0xff] }
  0x46   : > { %v409_v49 = vld [vmem:[%s1580_s25 + $0x620] sm:$0xff]  ;;  %408 = vst [vmem:[%s1585_s26 + $0x180] sm:$0xff] %v407_v48 }
  0x47   : > { %v411_v50 = vld [vmem:[%s1580_s25 + $0x640] sm:$0xff]  ;;  %410 = vst [vmem:[%s1585_s26 + $0x188] sm:$0xff] %v409_v49 }
  0x48   : > { %412 = vst [vmem:[%s1585_s26 + $0x190] sm:$0xff] %v411_v50  ;;  %v413_v51 = vld [vmem:[%s1580_s25 + $0x660] sm:$0xff] }
  0x49   : > { %v415_v52 = vld [vmem:[%s1580_s25 + $0x680] sm:$0xff]  ;;  %414 = vst [vmem:[%s1585_s26 + $0x198] sm:$0xff] %v413_v51 }
  0x4a   : > { %v417_v53 = vld [vmem:[%s1580_s25 + $0x6a0] sm:$0xff]  ;;  %416 = vst [vmem:[%s1585_s26 + $0x1a0] sm:$0xff] %v415_v52 }
  0x4b   : > { %418 = vst [vmem:[%s1585_s26 + $0x1a8] sm:$0xff] %v417_v53  ;;  %v419_v54 = vld [vmem:[%s1580_s25 + $0x6c0] sm:$0xff] }
  0x4c   : > { %v421_v55 = vld [vmem:[%s1580_s25 + $0x6e0] sm:$0xff]  ;;  %420 = vst [vmem:[%s1585_s26 + $0x1b0] sm:$0xff] %v419_v54 }
  0x4d   : > { %v423_v56 = vld [vmem:[%s1580_s25 + $0x700] sm:$0xff]  ;;  %422 = vst [vmem:[%s1585_s26 + $0x1b8] sm:$0xff] %v421_v55 }
  0x4e   : > { %424 = vst [vmem:[%s1585_s26 + $0x1c0] sm:$0xff] %v423_v56  ;;  %v425_v57 = vld [vmem:[%s1580_s25 + $0x720] sm:$0xff] }
  0x4f   : > { %v427_v58 = vld [vmem:[%s1580_s25 + $0x740] sm:$0xff]  ;;  %426 = vst [vmem:[%s1585_s26 + $0x1c8] sm:$0xff] %v425_v57 }
  0x50   : > { %v429_v59 = vld [vmem:[%s1580_s25 + $0x760] sm:$0xff]  ;;  %428 = vst [vmem:[%s1585_s26 + $0x1d0] sm:$0xff] %v427_v58 }
  0x51   : > { %430 = vst [vmem:[%s1585_s26 + $0x1d8] sm:$0xff] %v429_v59  ;;  %v431_v60 = vld [vmem:[%s1580_s25 + $0x780] sm:$0xff] }
  0x52   : > { %v433_v61 = vld [vmem:[%s1580_s25 + $0x7a0] sm:$0xff]  ;;  %432 = vst [vmem:[%s1585_s26 + $0x1e0] sm:$0xff] %v431_v60 }
  0x53   : > { %v435_v62 = vld [vmem:[%s1580_s25 + $0x7c0] sm:$0xff]  ;;  %434 = vst [vmem:[%s1585_s26 + $0x1e8] sm:$0xff] %v433_v61 }
  0x54   : > { %436 = vst [vmem:[%s1585_s26 + $0x1f0] sm:$0xff] %v435_v62  ;;  %v437_v63 = vld [vmem:[%s1580_s25 + $0x7e0] sm:$0xff] }
  0x55   : > { %438 = vst [vmem:[%s1585_s26 + $0x1f8] sm:$0xff] %v437_v63 }
  0x56 PF: > { %p1238_p8 = scmp.ge.s32.totalorder %s1514_s13, 1  ;;  %p443_p9 = scmp.lt.s32.totalorder %s1514_s13, 5 }
  0x58   : > { %p444_p10 = pnand %p1238_p8, %p443_p9 }
  0x59   : > { %s450_s27 = sand.u32 (!%p444_p10), 1, %s1498_s9   ;;  %v1468_v0 = vld [vmem:[%s1824_s0 + $0x4] ss:$16 sps:$4 sm:$0xff] (!%p444_p10)   ;;  %v1471_v1 = vld [vmem:[%s1824_s0 + $0xc] ss:$16 sps:$4 sm:$0xff] (!%p444_p10)  }
  0x5a   : > { %447 = sbr.rel (%p444_p10) target bundleno = 402 (0x192), region = 62  ;;  %s1239_s28 = sshll.u32 (!%p444_p10), %s450_s27, 9  ;;  %968 = vmatprep.mubr.bf16.mxu1 (!%p444_p10), %v1468_v0  ;;  %1019 = vmatprep.mubr.bf16.mxu0 (!%p444_p10), %v1471_v1 }
  0x5b   : > { %s1723_s5 = scalar_lea.vmem (!%p444_p10), [#allocation3], %s1239_s28  ;;  %s1328_s22 = smul.u32 (!%p444_p10), 24, %s450_s27 }
  0x5c   : > { %v1370_v2 = vld [vmem:[%s1723_s5 + $0x4] ss:$8 sps:$4 sm:$0xff] (!%p444_p10)   ;;  %v1374_v4 = vld [vmem:[%s1723_s5] ss:$8 sps:$4 sm:$0xff] (!%p444_p10)   ;;  %v1376_v6 = vld [vmem:[%s1723_s5 + $0x14] ss:$8 sps:$4 sm:$0xff] (!%p444_p10)  }
  0x5d   : > { %v1372_v3 = vld [vmem:[%s1723_s5 + $0x104] ss:$8 sps:$4 sm:$0xff] (!%p444_p10)   ;;  %936 = vmatprep.subr.bf16.mxu1 (!%p444_p10), %v1370_v2  ;;  %v1375_v5 = vld [vmem:[%s1723_s5 + $0x100] ss:$8 sps:$4 sm:$0xff] (!%p444_p10)   ;;  %v1378_v7 = vld [vmem:[%s1723_s5 + $0x114] ss:$8 sps:$4 sm:$0xff] (!%p444_p10)  }
  0x5e   : > { %987 = vmatprep.subr.bf16.mxu0 (!%p444_p10), %v1372_v3  ;;  %937 = vmatpush1.bf16.msra.mxu1 (!%p444_p10), %v1374_v4  ;;  %v1380_v8 = vld [vmem:[%s1723_s5 + $0x10] ss:$8 sps:$4 sm:$0xff] (!%p444_p10)   ;;  %v1382_v10 = vld [vmem:[%s1723_s5 + $0x24] ss:$8 sps:$4 sm:$0xff] (!%p444_p10)   ;;  %v1386_v12 = vld [vmem:[%s1723_s5 + $0x20] ss:$8 sps:$4 sm:$0xff] (!%p444_p10)  }
  0x5f   : > { %988 = vmatpush1.bf16.msra.mxu0 (!%p444_p10), %v1375_v5  ;;  %938 = vmatprep.subr.bf16.mxu1 (!%p444_p10), %v1376_v6  ;;  %v1381_v9 = vld [vmem:[%s1723_s5 + $0x110] ss:$8 sps:$4 sm:$0xff] (!%p444_p10)   ;;  %v1384_v11 = vld [vmem:[%s1723_s5 + $0x124] ss:$8 sps:$4 sm:$0xff] (!%p444_p10)   ;;  %v1387_v13 = vld [vmem:[%s1723_s5 + $0x120] ss:$8 sps:$4 sm:$0xff] (!%p444_p10)  }
  0x60   : > { %989 = vmatprep.subr.bf16.mxu0 (!%p444_p10), %v1378_v7  ;;  %v1388_v14 = vld [vmem:[%s1723_s5 + $0x34] ss:$8 sps:$4 sm:$0xff] (!%p444_p10)   ;;  %v1392_v16 = vld [vmem:[%s1723_s5 + $0x30] ss:$8 sps:$4 sm:$0xff] (!%p444_p10)   ;;  %v1394_v18 = vld [vmem:[%s1723_s5 + $0x44] ss:$8 sps:$4 sm:$0xff] (!%p444_p10)  }
  0x61   : > { %v1390_v15 = vld [vmem:[%s1723_s5 + $0x134] ss:$8 sps:$4 sm:$0xff]   ;;  %v1393_v17 = vld [vmem:[%s1723_s5 + $0x130] ss:$8 sps:$4 sm:$0xff]   ;;  %v1396_v19 = vld [vmem:[%s1723_s5 + $0x144] ss:$8 sps:$4 sm:$0xff]  }
  0x62   : > { %939 = vmatpush1.bf16.msra.mxu1 %v1380_v8  ;;  %v1398_v20 = vld [vmem:[%s1723_s5 + $0x40] ss:$8 sps:$4 sm:$0xff]   ;;  %v1400_v22 = vld [vmem:[%s1723_s5 + $0x54] ss:$8 sps:$4 sm:$0xff]   ;;  %v1404_v24 = vld [vmem:[%s1723_s5 + $0x50] ss:$8 sps:$4 sm:$0xff]  }
  0x63   : > { %990 = vmatpush1.bf16.msra.mxu0 %v1381_v9  ;;  %940 = vmatprep.subr.bf16.mxu1 %v1382_v10  ;;  %v1399_v21 = vld [vmem:[%s1723_s5 + $0x140] ss:$8 sps:$4 sm:$0xff]   ;;  %v1402_v23 = vld [vmem:[%s1723_s5 + $0x154] ss:$8 sps:$4 sm:$0xff]   ;;  %v1405_v25 = vld [vmem:[%s1723_s5 + $0x150] ss:$8 sps:$4 sm:$0xff]  }
  0x64   : > { %991 = vmatprep.subr.bf16.mxu0 %v1384_v11  ;;  %v1406_v26 = vld [vmem:[%s1723_s5 + $0x64] ss:$8 sps:$4 sm:$0xff]   ;;  %v1410_v28 = vld [vmem:[%s1723_s5 + $0x60] ss:$8 sps:$4 sm:$0xff]   ;;  %v1412_v30 = vld [vmem:[%s1723_s5 + $0x74] ss:$8 sps:$4 sm:$0xff]  }
  0x65   : > { %v1408_v27 = vld [vmem:[%s1723_s5 + $0x164] ss:$8 sps:$4 sm:$0xff]   ;;  %v1411_v29 = vld [vmem:[%s1723_s5 + $0x160] ss:$8 sps:$4 sm:$0xff]   ;;  %v1414_v31 = vld [vmem:[%s1723_s5 + $0x174] ss:$8 sps:$4 sm:$0xff]  }
  0x66   : > { %941 = vmatpush1.bf16.msra.mxu1 %v1386_v12  ;;  %v1416_v32 = vld [vmem:[%s1723_s5 + $0x70] ss:$8 sps:$4 sm:$0xff]   ;;  %v1418_v34 = vld [vmem:[%s1723_s5 + $0x84] ss:$8 sps:$4 sm:$0xff]   ;;  %v1422_v36 = vld [vmem:[%s1723_s5 + $0x80] ss:$8 sps:$4 sm:$0xff]  }
  0x67   : > { %992 = vmatpush1.bf16.msra.mxu0 %v1387_v13  ;;  %942 = vmatprep.subr.bf16.mxu1 %v1388_v14  ;;  %v1417_v33 = vld [vmem:[%s1723_s5 + $0x170] ss:$8 sps:$4 sm:$0xff]   ;;  %v1420_v35 = vld [vmem:[%s1723_s5 + $0x184] ss:$8 sps:$4 sm:$0xff]   ;;  %v1423_v37 = vld [vmem:[%s1723_s5 + $0x180] ss:$8 sps:$4 sm:$0xff]  }
  0x68   : > { %993 = vmatprep.subr.bf16.mxu0 %v1390_v15  ;;  %v1424_v38 = vld [vmem:[%s1723_s5 + $0x94] ss:$8 sps:$4 sm:$0xff]   ;;  %v1428_v40 = vld [vmem:[%s1723_s5 + $0x90] ss:$8 sps:$4 sm:$0xff]   ;;  %v1430_v42 = vld [vmem:[%s1723_s5 + $0xa4] ss:$8 sps:$4 sm:$0xff]  }
  0x69   : > { %v1426_v39 = vld [vmem:[%s1723_s5 + $0x194] ss:$8 sps:$4 sm:$0xff]   ;;  %v1429_v41 = vld [vmem:[%s1723_s5 + $0x190] ss:$8 sps:$4 sm:$0xff]   ;;  %v1432_v43 = vld [vmem:[%s1723_s5 + $0x1a4] ss:$8 sps:$4 sm:$0xff]  }
  0x6a   : > { %943 = vmatpush1.bf16.msra.mxu1 %v1392_v16  ;;  %v1434_v44 = vld [vmem:[%s1723_s5 + $0xa0] ss:$8 sps:$4 sm:$0xff]   ;;  %v1436_v46 = vld [vmem:[%s1723_s5 + $0xb4] ss:$8 sps:$4 sm:$0xff]   ;;  %v1440_v48 = vld [vmem:[%s1723_s5 + $0xb0] ss:$8 sps:$4 sm:$0xff]  }
  0x6b   : > { %994 = vmatpush1.bf16.msra.mxu0 %v1393_v17  ;;  %944 = vmatprep.subr.bf16.mxu1 %v1394_v18  ;;  %v1435_v45 = vld [vmem:[%s1723_s5 + $0x1a0] ss:$8 sps:$4 sm:$0xff]   ;;  %v1438_v47 = vld [vmem:[%s1723_s5 + $0x1b4] ss:$8 sps:$4 sm:$0xff]   ;;  %v1441_v49 = vld [vmem:[%s1723_s5 + $0x1b0] ss:$8 sps:$4 sm:$0xff]  }
  0x6c   : > { %995 = vmatprep.subr.bf16.mxu0 %v1396_v19  ;;  %v1442_v50 = vld [vmem:[%s1723_s5 + $0xc4] ss:$8 sps:$4 sm:$0xff]   ;;  %v1446_v52 = vld [vmem:[%s1723_s5 + $0xc0] ss:$8 sps:$4 sm:$0xff]   ;;  %v1448_v54 = vld [vmem:[%s1723_s5 + $0xd4] ss:$8 sps:$4 sm:$0xff]  }
  0x6d   : > { %v1444_v51 = vld [vmem:[%s1723_s5 + $0x1c4] ss:$8 sps:$4 sm:$0xff]   ;;  %v1447_v53 = vld [vmem:[%s1723_s5 + $0x1c0] ss:$8 sps:$4 sm:$0xff]   ;;  %v1450_v55 = vld [vmem:[%s1723_s5 + $0x1d4] ss:$8 sps:$4 sm:$0xff]  }
  0x6e   : > { %945 = vmatpush1.bf16.msra.mxu1 %v1398_v20  ;;  %v1452_v56 = vld [vmem:[%s1723_s5 + $0xd0] ss:$8 sps:$4 sm:$0xff]   ;;  %v1454_v58 = vld [vmem:[%s1723_s5 + $0xe4] ss:$8 sps:$4 sm:$0xff]   ;;  %v1458_v60 = vld [vmem:[%s1723_s5 + $0xe0] ss:$8 sps:$4 sm:$0xff]  }
  0x6f   : > { %996 = vmatpush1.bf16.msra.mxu0 %v1399_v21  ;;  %946 = vmatprep.subr.bf16.mxu1 %v1400_v22  ;;  %v1453_v57 = vld [vmem:[%s1723_s5 + $0x1d0] ss:$8 sps:$4 sm:$0xff]   ;;  %v1456_v59 = vld [vmem:[%s1723_s5 + $0x1e4] ss:$8 sps:$4 sm:$0xff]   ;;  %v1459_v61 = vld [vmem:[%s1723_s5 + $0x1e0] ss:$8 sps:$4 sm:$0xff]  }
  0x70   : > { %997 = vmatprep.subr.bf16.mxu0 %v1402_v23  ;;  %v1460_v62 = vld [vmem:[%s1723_s5 + $0xf4] ss:$8 sps:$4 sm:$0xff]   ;;  %v1464_v0 = vld [vmem:[%s1723_s5 + $0xf0] ss:$8 sps:$4 sm:$0xff]   ;;  %v1516_v10 = vmov 0.0   ;;  %s479_s23 = scalar_lea.vmem [#allocation4], %s1328_s22 }
  0x71   : > { %v1462_v63 = vld [vmem:[%s1723_s5 + $0x1f4] ss:$8 sps:$4 sm:$0xff]   ;;  %v1465_v1 = vld [vmem:[%s1723_s5 + $0x1f0] ss:$8 sps:$4 sm:$0xff]   ;;  %504 = vst [vmem:[#allocation2 + $0x20] sm:$0x3] %v1516_v10 }
  0x72   : > { %947 = vmatpush1.bf16.msra.mxu1 %v1404_v24  ;;  %v516_v2 = vld [vmem:[%s1824_s0 + $0x20] sm:$0x11]  ;;  %v517_v3 = vld [vmem:[%s1824_s0 + $0x28] sm:$0x11]  ;;  %505 = vst [vmem:[#allocation2 + $0x28] sm:$0x3] %v1516_v10 }
  0x73   : > { %998 = vmatpush1.bf16.msra.mxu0 %v1405_v25  ;;  %948 = vmatprep.subr.bf16.mxu1 %v1406_v26  ;;  %v1466_v4 = vld [vmem:[%s1824_s0] ss:$16 sps:$4 sm:$0xff]   ;;  %v1469_v5 = vld [vmem:[%s1824_s0 + $0x8] ss:$16 sps:$4 sm:$0xff]   ;;  %v1245_v6 = vcombine.high %v516_v2, %v516_v2  ;;  %v1247_v7 = vcombine.high %v517_v3, %v517_v3  ;;  %v1244_v8 = vcombine.low %v516_v2, %v516_v2  ;;  %s1323_s9 = sshll.u32 (%p1567_p6), %s1506_s11, 3 }
  0x74   : > { %999 = vmatprep.subr.bf16.mxu0 %v1408_v27  ;;  %v1246_v9 = vcombine.low %v517_v3, %v517_v3  ;;  %s1094_s26 = scalar_lea.vmem (%p1567_p6), %s1826_s2, %s1323_s9 }
  0x76   : > { %949 = vmatpush1.bf16.msra.mxu1 %v1410_v28 }
  0x77   : > { %1000 = vmatpush1.bf16.msra.mxu0 %v1411_v29  ;;  %950 = vmatprep.subr.bf16.mxu1 %v1412_v30 }
  0x78   : > { %1001 = vmatprep.subr.bf16.mxu0 %v1414_v31  ;;  %v510_v26 = vld [vmem:[#allocation2 + $0x20] sm:$0x3] }
  0x79   : > { %v511_v30 = vld [vmem:[#allocation2 + $0x28] sm:$0x3] }
  0x7a   : > { %951 = vmatpush1.bf16.msra.mxu1 %v1416_v32 }
  0x7b   : > { %1002 = vmatpush1.bf16.msra.mxu0 %v1417_v33  ;;  %952 = vmatprep.subr.bf16.mxu1 %v1418_v34 }
  0x7c   : > { %1003 = vmatprep.subr.bf16.mxu0 %v1420_v35 }
  0x7e   : > { %953 = vmatpush1.bf16.msra.mxu1 %v1422_v36 }
  0x7f   : > { %1004 = vmatpush1.bf16.msra.mxu0 %v1423_v37  ;;  %954 = vmatprep.subr.bf16.mxu1 %v1424_v38 }
  0x80   : > { %1005 = vmatprep.subr.bf16.mxu0 %v1426_v39 }
  0x82   : > { %955 = vmatpush1.bf16.msra.mxu1 %v1428_v40 }
  0x83   : > { %1006 = vmatpush1.bf16.msra.mxu0 %v1429_v41  ;;  %956 = vmatprep.subr.bf16.mxu1 %v1430_v42 }
  0x84   : > { %1007 = vmatprep.subr.bf16.mxu0 %v1432_v43 }
  0x86   : > { %957 = vmatpush1.bf16.msra.mxu1 %v1434_v44 }
  0x87   : > { %1008 = vmatpush1.bf16.msra.mxu0 %v1435_v45  ;;  %958 = vmatprep.subr.bf16.mxu1 %v1436_v46 }
  0x88   : > { %1009 = vmatprep.subr.bf16.mxu0 %v1438_v47 }
  0x8a   : > { %959 = vmatpush1.bf16.msra.mxu1 %v1440_v48 }
  0x8b   : > { %1010 = vmatpush1.bf16.msra.mxu0 %v1441_v49  ;;  %960 = vmatprep.subr.bf16.mxu1 %v1442_v50 }
  0x8c   : > { %1011 = vmatprep.subr.bf16.mxu0 %v1444_v51 }
  0x8e   : > { %961 = vmatpush1.bf16.msra.mxu1 %v1446_v52 }
  0x8f   : > { %1012 = vmatpush1.bf16.msra.mxu0 %v1447_v53  ;;  %962 = vmatprep.subr.bf16.mxu1 %v1448_v54 }
  0x90   : > { %1013 = vmatprep.subr.bf16.mxu0 %v1450_v55 }
  0x92   : > { %963 = vmatpush1.bf16.msra.mxu1 %v1452_v56 }
  0x93   : > { %1014 = vmatpush1.bf16.msra.mxu0 %v1453_v57  ;;  %964 = vmatprep.subr.bf16.mxu1 %v1454_v58 }
  0x94   : > { %1015 = vmatprep.subr.bf16.mxu0 %v1456_v59 }
  0x96   : > { %965 = vmatpush1.bf16.msra.mxu1 %v1458_v60 }
  0x97   : > { %1016 = vmatpush1.bf16.msra.mxu0 %v1459_v61  ;;  %966 = vmatprep.subr.bf16.mxu1 %v1460_v62 }
  0x98   : > { %1017 = vmatprep.subr.bf16.mxu0 %v1462_v63 }
  0x9a   : > { %967 = vmatpush1.bf16.msra.mxu1 %v1464_v0 }
  0x9b   : > { %1018 = vmatpush1.bf16.msra.mxu0 %v1465_v1 }
  0x9d   : > { %969 = vmatmul.mubr.bf16.vlgmr.msra.gmra.mrb[0].mxu1 %v1466_v4 }
  0x9e   : > { %1020 = vmatmul.mubr.bf16.vlgmr.msra.gmra.mrb[0].mxu0 %v1469_v5  ;;  %978 = vmatprep.mubr.bf16.mxu1 %v1245_v6 }
  0x9f   : > { %1029 = vmatprep.mubr.bf16.mxu0 %v1247_v7 }
  0xa5   : > { %979 = vmatmul.mubr.bf16.gmra.mrb[4].mxu1 %v1244_v8 }
  0xa6   : > { %1030 = vmatmul.mubr.bf16.gmra.mrb[4].mxu0 %v1246_v9 }
 0x170   : > { %v970_v11 = vpop.f32.mrb[0].mxu1 }
 0x171   : > { %v1021_v12 = vpop.f32.mrb[0].mxu0  ;;  %v972_v14 = vpop.f32.mrb[1].mxu1 }
 0x172   : > { %v1022_v13 = vadd.f32 %v1021_v12, %v970_v11  ;;  %v1023_v15 = vpop.f32.mrb[1].mxu0  ;;  %v974_v17 = vpop.f32.mrb[2].mxu1 }
 0x173   : > { %v1024_v16 = vadd.f32 %v1023_v15, %v972_v14  ;;  %v1025_v18 = vpop.f32.mrb[2].mxu0  ;;  %v976_v20 = vpop.f32.mrb[3].mxu1 }
 0x174   : > { %v1026_v19 = vadd.f32 %v1025_v18, %v974_v17  ;;  %v1027_v21 = vpop.f32.mrb[3].mxu0 }
 0x175   : > { %v1028_v22 = vadd.f32 %v1027_v21, %v976_v20  ;;  %v1320_v23 = vpack.c.bf16 %v1024_v16, %v1022_v13 }
 0x177   : > { %1079 = vst [vmem:[%s479_s23] sm:$0xff] %v1320_v23  ;;  %v1321_v24 = vpack.c.bf16 %v1028_v22, %v1026_v19 }
 0x178   : > { %v980_v25 = vpop.f32.mrb[4].mxu1 }
 0x179   : > { %v1031_v27 = vpop.f32.mrb[4].mxu0  ;;  %v982_v29 = vpop.f32.mrb[5].mxu1  ;;  %1080 = vst [vmem:[%s479_s23 + $0x8] sm:$0xff] %v1321_v24 }
 0x17a   : > { %v1032_v28 = vadd.f32 %v1031_v27, %v980_v25  ;;  %v1033_v31 = vpop.f32.mrb[5].mxu0  ;;  %v984_v33 = vpop.f32.mrb[6].mxu1 }
 0x17b   : > { %v1034_v32 = vadd.f32 %v1033_v31, %v982_v29  ;;  %v1035_v34 = vpop.f32.mrb[6].mxu0  ;;  %v985_v36 = vpop.f32.mrb[7].mxu1 }
 0x17c   : > { %v1042_v35 = vadd.f32 %v1032_v28, %v510_v26  ;;  %v1036_v37 = vpop.f32.mrb[7].mxu0 }
 0x17d   : > { %v1043_v38 = vadd.f32 %v1034_v32, %v511_v30 }
 0x17e   : > { %1048 = vst [vmem:[#allocation2 + $0x20] sm:$0x3] %v1042_v35  ;;  %v1126_v42 = vld [vmem:[%s479_s23] sm:$0xff] (%p1567_p6) }
 0x17f   : > { %1049 = vst [vmem:[#allocation2 + $0x28] sm:$0x3] %v1043_v38  ;;  %1127 = vst [vmem:[%s1094_s26] sm:$0xff] (%p1567_p6), %v1126_v42 }
 0x180   : > { %v1128_v43 = vld [vmem:[%s479_s23 + $0x8] sm:$0xff] (%p1567_p6) }
 0x181   : > { %1129 = vst [vmem:[%s1094_s26 + $0x20] sm:$0xff] (%p1567_p6), %v1128_v43 }
 0x183   : > { %1088 = sbr.rel (!%p1567_p6) target bundleno = 402 (0x192), region = 78 }
 0x185   : > { %v1057_v39 = vld [vmem:[#allocation2 + $0x20] sm:$0x3] }
 0x186   : > { %v1058_v40 = vld [vmem:[#allocation2 + $0x28] sm:$0x3] }
 0x187   : > { %v1322_v41 = vpack.c.bf16 %v1058_v40, %v1057_v39 }
 0x189   : > { %1081 = vst [vmem:[%s479_s23 + $0x10] sm:$0x11] %v1322_v41 }
 0x190   : > { %v1130_v44 = vld [vmem:[%s479_s23 + $0x10] sm:$0xff] }
 0x191   : > { %1131 = vst [vmem:[%s1094_s26 + $0x40] sm:$0xff] %v1130_v44 }
 0x192 PF: > { %s12_s13 = sadd.s32 1, %s1514_s13   ;;  %s1828_s9 = smov %s1502_s10 }
 0x193   : > { %p9_p11 = scmp.ge.s32.totalorder %s12_s13, 6   ;;  %s1829_s10 = smov %s1572_s19 }
 0x194   : > { %s1830_s11 = smov %s1510_s12  ;;  %s1831_s12 = smov %s1833_s14 }
 0x195   :  { %11 = sbr.rel (!%p9_p11) target bundleno = 3 (0x3), region = 150 }

</bundles_post_ra>
